<compile_context>
chip_gen: v6e
topology: v6e:2x2x1
jax: 0.10.0
libtpu: 0.0.40
codegen_flags: <defaults>
</compile_context>

<pallas_src>
import functools
import math

import jax
import jax.numpy as jnp
from jax.experimental import pallas as pl
from jax.experimental.pallas import tpu as pltpu

LN_EPS = 1e-6                 # module default layer_norm_eps
MATMUL_DTYPE = jnp.float32    # set to jnp.bfloat16 on v6e/v7x for MXU-native matmuls


# ----------------------------- in-kernel helpers ------------------------------------

def _mm(a, b):
    """MXU matmul with optional bf16 operands and f32 accumulation."""
    if MATMUL_DTYPE != jnp.float32:
        a = a.astype(MATMUL_DTYPE)
        b = b.astype(MATMUL_DTYPE)
    return jnp.dot(a, b, preferred_element_type=jnp.float32)


def _ln(x, g, b, eps):
    """LayerNorm over the last dim (biased variance, like torch).  Math stays f32."""
    mean = jnp.mean(x, axis=-1, keepdims=True)
    var = jnp.mean(jnp.square(x - mean), axis=-1, keepdims=True)
    return (x - mean) * jax.lax.rsqrt(var + eps) * g + b


def _softmax_lastdim(s):
    s = s - jnp.max(s, axis=-1, keepdims=True)
    p = jnp.exp(s)
    return p * pl.reciprocal(jnp.sum(p, axis=-1, keepdims=True), approx=True)


def _full_spec(shape):
    """BlockSpec for a weight/bias loaded whole, with a constant block index
    (so the pipeline keeps it resident across the batch grid)."""
    return pl.BlockSpec(shape, lambda i: (0,) * len(shape))


# ----------------------------- Pallas kernels ---------------------------------------

def _embed_kernel(x_ref, w_ref, b_ref, pos_ref, g_ref, bn_ref, o_ref, *, eps):
    """Fused: embed Linear + positional add + embed LayerNorm.  One batch per step."""
    x = x_ref[0]                                              # [S, F]
    h = _mm(x, w_ref[...]) + b_ref[...] + pos_ref[...]
    o_ref[0] = _ln(h, g_ref[...], bn_ref[...], eps)


def _encoder_layer_kernel(x_ref, wqkv_ref, bqkv_ref, wo_ref, bo_ref,
                          g1_ref, b1_ref, w1_ref, bb1_ref, w2_ref, bb2_ref,
                          g2_ref, b2_ref, o_ref, *, num_heads, eps):
    """Fused nn.TransformerEncoderLayer (post-norm, relu, batch_first, eval).

    Packed QKV matmul -> per-head attention -> per-head slice of the output
    projection (avoids an explicit head concat) -> +residual -> LN1 ->
    lin1 + ReLU + lin2 -> +residual -> LN2.  One batch element per grid step.
    """
    x = x_ref[0]                                              # [T, D]
    D = x.shape[-1]
    Dh = D // num_heads
    scale = 1.0 / math.sqrt(Dh)

    qkv = _mm(x, wqkv_ref[...]) + bqkv_ref[...]               # [T, 3D]

    attn_out = None
    for h in range(num_heads):                                # static unroll, H small
        qh = qkv[:, h * Dh:(h + 1) * Dh]                      # [T, Dh]
        kh = qkv[:, D + h * Dh: D + (h + 1) * Dh]
        vh = qkv[:, 2 * D + h * Dh: 2 * D + (h + 1) * Dh]
        s = _mm(qh, kh.T) * scale                             # [T, T]
        p = _softmax_lastdim(s)
        ah = _mm(p, vh)                                       # [T, Dh]
        # out-proj decomposed per head: concat_h(a_h) @ Wo == sum_h a_h @ Wo[hDh:(h+1)Dh]
        contrib = _mm(ah, wo_ref[h * Dh:(h + 1) * Dh, :])     # [T, D]
        attn_out = contrib if attn_out is None else attn_out + contrib
    attn_out = attn_out + bo_ref[...]

    h1 = _ln(x + attn_out, g1_ref[...], b1_ref[...], eps)

    ff = jnp.maximum(_mm(h1, w1_ref[...]) + bb1_ref[...], 0.0)
    ff = _mm(ff, w2_ref[...]) + bb2_ref[...]

    o_ref[0] = _ln(h1 + ff, g2_ref[...], b2_ref[...], eps)


def _grouping_layer_kernel(x_ref, wq_ref, wkv_ref, wo_ref, g_ref, b_ref, o_ref,
                           *, num_groups, eps):
    """Fused GroupingLayer (eval: hard straight-through softmax over the group axis).

    group_assn is computed in VMEM and never written back (return_attn=False).
    """
    x = x_ref[0]                                              # [T, D], T = G + S
    G = num_groups
    D = x.shape[-1]
    grp = x[:G]                                               # [G, D]
    seq = x[G:]                                               # [S, D]

    q = _mm(grp, wq_ref[...])                                 # [G, D]
    kv = _mm(seq, wkv_ref[...])                               # [S, 2D]  (packed Wk|Wv)
    k = kv[:, :D]
    v = kv[:, D:]

    attn = _mm(q, k.T)                                        # [G, S]

    # softmax over the group axis (torch dim=-2)
    m = jnp.max(attn, axis=0, keepdims=True)
    e = jnp.exp(attn - m)
    y_soft = e * pl.reciprocal(jnp.sum(e, axis=0, keepdims=True), approx=True)

    # hard (straight-through) assignment: one-hot of the FIRST argmax over groups.
    # argmax taken on logits (column-wise softmax is monotone => same index as torch).
    iota_g = jax.lax.broadcasted_iota(jnp.int32, attn.shape, 0)
    cand = jnp.where(attn == m, iota_g, G)
    idx = jnp.min(cand, axis=0, keepdims=True)
    y_hard = (iota_g == idx).astype(jnp.float32)
    assn = (y_hard - y_soft) + y_soft                         # y_hard - y_soft.detach() + y_soft

    group_embs = _mm(assn, v)                                 # [G, D]
    o = _mm(group_embs, wo_ref[...])                          # [G, D]
    o_ref[0] = _ln(o + grp, g_ref[...], b_ref[...], eps)


def _head_kernel(x_ref, w_ref, b_ref, o_ref, *, avg):
    """Fused: (optional) mean over tokens + final projection."""
    x = x_ref[0]                                              # [T, D]
    if avg:
        x = jnp.mean(x, axis=0, keepdims=True)                # [1, D]
    o_ref[0] = _mm(x, w_ref[...]) + b_ref[...]


# ----------------------------- pallas_call wrappers ---------------------------------

def embed_forward(params, x):
    B, S, F = x.shape
    D = params["embed_w"].shape[1]
    pos = params["pos"][:S]                                   # host-side slice, cheap
    return pl.pallas_call(
        functools.partial(_embed_kernel, eps=LN_EPS),
        out_shape=jax.ShapeDtypeStruct((B, S, D), jnp.float32),
        grid=(B,),
        in_specs=[pl.BlockSpec((1, S, F), lambda i: (i, 0, 0)),
                  _full_spec((F, D)), _full_spec((1, D)),
                  _full_spec((S, D)),
                  _full_spec((1, D)), _full_spec((1, D))],
        out_specs=pl.BlockSpec((1, S, D), lambda i: (i, 0, 0)),
        compiler_params=pltpu.CompilerParams(dimension_semantics=("parallel",)),
    )(x, params["embed_w"], params["embed_b"].reshape(1, D), pos,
      params["embed_norm_g"].reshape(1, D), params["embed_norm_b"].reshape(1, D))


def encoder_layer_forward(p, x, num_heads):
    B, T, D = x.shape
    FF = p["w1"].shape[1]
    return pl.pallas_call(
        functools.partial(_encoder_layer_kernel, num_heads=num_heads, eps=LN_EPS),
        out_shape=jax.ShapeDtypeStruct((B, T, D), jnp.float32),
        grid=(B,),
        in_specs=[pl.BlockSpec((1, T, D), lambda i: (i, 0, 0)),
                  _full_spec((D, 3 * D)), _full_spec((1, 3 * D)),
                  _full_spec((D, D)), _full_spec((1, D)),
                  _full_spec((1, D)), _full_spec((1, D)),
                  _full_spec((D, FF)), _full_spec((1, FF)),
                  _full_spec((FF, D)), _full_spec((1, D)),
                  _full_spec((1, D)), _full_spec((1, D))],
        out_specs=pl.BlockSpec((1, T, D), lambda i: (i, 0, 0)),
        compiler_params=pltpu.CompilerParams(dimension_semantics=("parallel",)),
    )(x,
      p["wqkv"], p["bqkv"].reshape(1, 3 * D),
      p["wo"], p["bo"].reshape(1, D),
      p["norm1_g"].reshape(1, D), p["norm1_b"].reshape(1, D),
      p["w1"], p["b1"].reshape(1, FF),
      p["w2"], p["b2"].reshape(1, D),
      p["norm2_g"].reshape(1, D), p["norm2_b"].reshape(1, D))


def grouping_layer_forward(p, x, num_groups):
    B, T, D = x.shape
    return pl.pallas_call(
        functools.partial(_grouping_layer_kernel, num_groups=num_groups, eps=LN_EPS),
        out_shape=jax.ShapeDtypeStruct((B, num_groups, D), jnp.float32),
        grid=(B,),
        in_specs=[pl.BlockSpec((1, T, D), lambda i: (i, 0, 0)),
                  _full_spec((D, D)), _full_spec((D, 2 * D)), _full_spec((D, D)),
                  _full_spec((1, D)), _full_spec((1, D))],
        out_specs=pl.BlockSpec((1, num_groups, D), lambda i: (i, 0, 0)),
        compiler_params=pltpu.CompilerParams(dimension_semantics=("parallel",)),
    )(x, p["wq"], p["wkv"], p["wo"],
      p["norm_g"].reshape(1, D), p["norm_b"].reshape(1, D))


def head_forward(p, x, avg):
    B, T, D = x.shape
    P = p["w"].shape[1]
    T_out = 1 if avg else T
    return pl.pallas_call(
        functools.partial(_head_kernel, avg=avg),
        out_shape=jax.ShapeDtypeStruct((B, T_out, P), jnp.float32),
        grid=(B,),
        in_specs=[pl.BlockSpec((1, T, D), lambda i: (i, 0, 0)),
                  _full_spec((D, P)), _full_spec((1, P))],
        out_specs=pl.BlockSpec((1, T_out, P), lambda i: (i, 0, 0)),
        compiler_params=pltpu.CompilerParams(dimension_semantics=("parallel",)),
    )(x, p["w"], p["b"].reshape(1, P))


# ----------------------------- model glue (plain JAX, no transposes) ----------------

def grouping_stage_forward(p, x, num_heads):
    B = x.shape[0]
    G, D = p["groups"].shape
    grp = jnp.broadcast_to(p["groups"][None], (B, G, D))
    h = jnp.concatenate([grp, x], axis=1)                     # prepend group tokens
    for lp in p["layers"]:
        h = encoder_layer_forward(lp, h, num_heads)
    return grouping_layer_forward(p["grouping"], h, G)


def audio_segmenter_forward(params, x, num_heads, avg=True):
    """x: [B, S, n_features] -> (out [B, 1 if avg else G_last, final_proj_dim], attn_dicts)."""
    # TODO(synk): src_padding_mask support is not implemented (the test path passes None).
    h = embed_forward(params, x)
    for stage in params["stages"]:
        h = grouping_stage_forward(stage, h, num_heads)
    for lp in params["final_layers"]:
        h = encoder_layer_forward(lp, h, num_heads)
    out = head_forward(params["head"], h, avg)
    attn_dicts = [None] * len(params["stages"])               # return_attn=False
    return out, attn_dicts


# ----------------------------- deterministic parameter init -------------------------

def _rand(key, shape, scale=0.02):
    return jax.random.normal(key, shape, jnp.float32) * scale


def _init_encoder_layer(key, d, ff):
    ks = jax.random.split(key, 8)
    return {
        "wqkv": _rand(ks[0], (d, 3 * d)), "bqkv": _rand(ks[1], (3 * d,)),
        "wo": _rand(ks[2], (d, d)), "bo": _rand(ks[3], (d,)),
        "w1": _rand(ks[4], (d, ff)), "b1": _rand(ks[5], (ff,)),
        "w2": _rand(ks[6], (ff, d)), "b2": _rand(ks[7], (d,)),
        "norm1_g": jnp.ones((d,), jnp.float32), "norm1_b": jnp.zeros((d,), jnp.float32),
        "norm2_g": jnp.ones((d,), jnp.float32), "norm2_b": jnp.zeros((d,), jnp.float32),
    }


def _init_grouping_layer(key, d):
    ks = jax.random.split(key, 3)
    return {
        "wq": _rand(ks[0], (d, d)),
        "wkv": _rand(ks[1], (d, 2 * d)),      # packed [Wk | Wv], bias=False
        "wo": _rand(ks[2], (d, d)),
        "norm_g": jnp.ones((d,), jnp.float32), "norm_b": jnp.zeros((d,), jnp.float32),
    }


def init_params(key, *, n_features, max_seq_len, embed_dim, mlp_scale,
                groups_per_stage, layers_per_stage, final_attn_layers, final_proj_dim):
    ff = embed_dim * mlp_scale
    keys = jax.random.split(key, 8 + len(groups_per_stage))
    params = {
        "embed_w": _rand(keys[0], (n_features, embed_dim)),
        "embed_b": _rand(keys[1], (embed_dim,)),
        "pos": jax.random.uniform(keys[2], (max_seq_len, embed_dim), jnp.float32),
        "embed_norm_g": jnp.ones((embed_dim,), jnp.float32),
        "embed_norm_b": jnp.zeros((embed_dim,), jnp.float32),
        "head": {"w": _rand(keys[3], (embed_dim, final_proj_dim)),
                 "b": _rand(keys[4], (final_proj_dim,))},
        "stages": [],
        "final_layers": [],
    }
    for si, (g, nl) in enumerate(zip(groups_per_stage, layers_per_stage)):
        sk = jax.random.split(keys[5 + si], nl + 2)
        params["stages"].append({
            "groups": _rand(sk[0], (g, embed_dim)),
            "layers": [_init_encoder_layer(sk[1 + i], embed_dim, ff) for i in range(nl)],
            "grouping": _init_grouping_layer(sk[nl + 1], embed_dim),
        })
    fk = jax.random.split(keys[-1], final_attn_layers)
    params["final_layers"] = [_init_encoder_layer(fk[i], embed_dim, ff)
                              for i in range(final_attn_layers)]
    return params


# ----------------------------- demo ------------------------------------------------

if __name__ == "__main__":
    # Small config consistent with the module's constructor; dims chosen lane-dense
    # (multiples of 128) so every matmul output is a full-lane, unmasked store.
    N_FEATURES = 128            # module default n_features
    MAX_SEQ_LEN = 64
    EMBED_DIM = 128
    NUM_HEADS = 4               # head dim 32
    MLP_SCALE = 2               # ff = 256
    GROUPS_PER_STAGE = (8, 4)
    LAYERS_PER_STAGE = (1, 1)
    FINAL_ATTN_LAYERS = 1
    FINAL_PROJ_DIM = 128

    key = jax.random.PRNGKey(0)
    kp, kx = jax.random.split(key)
    params = init_params(
        kp, n_features=N_FEATURES, max_seq_len=MAX_SEQ_LEN, embed_dim=EMBED_DIM,
        mlp_scale=MLP_SCALE, groups_per_stage=GROUPS_PER_STAGE,
        layers_per_stage=LAYERS_PER_STAGE, final_attn_layers=FINAL_ATTN_LAYERS,
        final_proj_dim=FINAL_PROJ_DIM)

    B, S = 2, 16
    x = jax.random.normal(kx, (B, S, N_FEATURES), jnp.float32)

    fwd = jax.jit(functools.partial(audio_segmenter_forward,
                                    num_heads=NUM_HEADS, avg=True))
    out, attn_dicts = fwd(params, x)
    out = jax.block_until_ready(out)
    assert out.shape == (B, 1, FINAL_PROJ_DIM), out.shape
    assert bool(jnp.all(jnp.isfinite(out)))
    assert attn_dicts == [None, None]
    print("KERNEL_OK")
</pallas_src>

<mosaic_0001>
module attributes {stable_mosaic.version = 11 : i64} {
  func.func @_embed_kernel(%arg0: i32, %arg1: memref<1x16x128xf32, #tpu.memory_space<vmem>>, %arg2: memref<128x128xf32, #tpu.memory_space<vmem>>, %arg3: memref<1x128xf32, #tpu.memory_space<vmem>>, %arg4: memref<16x128xf32, #tpu.memory_space<vmem>>, %arg5: memref<1x128xf32, #tpu.memory_space<vmem>>, %arg6: memref<1x128xf32, #tpu.memory_space<vmem>>, %arg7: memref<1x16x128xf32, #tpu.memory_space<vmem>>) attributes {dimension_semantics = [#tpu.dimension_semantics<parallel>], iteration_bounds = array<i64: 2>, scalar_prefetch = 0 : i64, scratch_operands = 0 : i64, tpu.core_type = #tpu.core_type<tc>, window_params = [{transform_indices = @transform_0, window_bounds = array<i64: 1, 16, 128>}, {pipeline_mode = #tpu.pipeline_mode<synchronous>, transform_indices = @transform_1, window_bounds = array<i64: 128, 128>}, {pipeline_mode = #tpu.pipeline_mode<synchronous>, transform_indices = @transform_2, window_bounds = array<i64: 1, 128>}, {pipeline_mode = #tpu.pipeline_mode<synchronous>, transform_indices = @transform_3, window_bounds = array<i64: 16, 128>}, {pipeline_mode = #tpu.pipeline_mode<synchronous>, transform_indices = @transform_4, window_bounds = array<i64: 1, 128>}, {pipeline_mode = #tpu.pipeline_mode<synchronous>, transform_indices = @transform_5, window_bounds = array<i64: 1, 128>}, {transform_indices = @transform_6, window_bounds = array<i64: 1, 16, 128>}]} {
    %c0 = arith.constant 0 : index
    %c0_0 = arith.constant 0 : index
    %c0_1 = arith.constant 0 : index
    %0 = vector.load %arg1[%c0, %c0_0, %c0_1] : memref<1x16x128xf32, #tpu.memory_space<vmem>>, vector<1x16x128xf32>
    %1 = vector.shape_cast %0 : vector<1x16x128xf32> to vector<16x128xf32>
    %c0_2 = arith.constant 0 : index
    %c0_3 = arith.constant 0 : index
    %2 = vector.load %arg2[%c0_2, %c0_3] : memref<128x128xf32, #tpu.memory_space<vmem>>, vector<128x128xf32>
    %cst = arith.constant dense<0.000000e+00> : vector<16x128xf32>
    %3 = tpu.matmul %1, %2, %cst {dimension_numbers = #tpu.dot_dimension_numbers<[1], [0], [0], [1], [0, 0, 1, 1], [], []>} : vector<16x128xf32>, vector<128x128xf32>, vector<16x128xf32> -> vector<16x128xf32>
    %c0_4 = arith.constant 0 : index
    %c0_5 = arith.constant 0 : index
    %4 = vector.load %arg3[%c0_4, %c0_5] : memref<1x128xf32, #tpu.memory_space<vmem>>, vector<1x128xf32>
    %5 = vector.broadcast %4 : vector<1x128xf32> to vector<16x128xf32>
    %6 = arith.addf %3, %5 : vector<16x128xf32>
    %c0_6 = arith.constant 0 : index
    %c0_7 = arith.constant 0 : index
    %7 = vector.load %arg4[%c0_6, %c0_7] : memref<16x128xf32, #tpu.memory_space<vmem>>, vector<16x128xf32>
    %8 = arith.addf %6, %7 : vector<16x128xf32>
    %c0_8 = arith.constant 0 : index
    %c0_9 = arith.constant 0 : index
    %9 = vector.load %arg5[%c0_8, %c0_9] : memref<1x128xf32, #tpu.memory_space<vmem>>, vector<1x128xf32>
    %c0_10 = arith.constant 0 : index
    %c0_11 = arith.constant 0 : index
    %10 = vector.load %arg6[%c0_10, %c0_11] : memref<1x128xf32, #tpu.memory_space<vmem>>, vector<1x128xf32>
    %cst_12 = arith.constant dense<0.000000e+00> : vector<16xf32>
    %11 = vector.multi_reduction <add>, %8, %cst_12 [1] : vector<16x128xf32> to vector<16xf32>
    %12 = vector.shape_cast %11 : vector<16xf32> to vector<16x1xf32>
    %cst_13 = arith.constant 1.280000e+02 : f32
    %13 = vector.broadcast %cst_13 : f32 to vector<16x1xf32>
    %14 = arith.divf %12, %13 : vector<16x1xf32>
    %15 = vector.broadcast %14 : vector<16x1xf32> to vector<16x128xf32>
    %16 = arith.subf %8, %15 : vector<16x128xf32>
    %17 = arith.mulf %16, %16 : vector<16x128xf32>
    %cst_14 = arith.constant dense<0.000000e+00> : vector<16xf32>
    %18 = vector.multi_reduction <add>, %17, %cst_14 [1] : vector<16x128xf32> to vector<16xf32>
    %19 = vector.shape_cast %18 : vector<16xf32> to vector<16x1xf32>
    %cst_15 = arith.constant 1.280000e+02 : f32
    %20 = vector.broadcast %cst_15 : f32 to vector<16x1xf32>
    %21 = arith.divf %19, %20 : vector<16x1xf32>
    %22 = vector.broadcast %14 : vector<16x1xf32> to vector<16x128xf32>
    %23 = arith.subf %8, %22 : vector<16x128xf32>
    %cst_16 = arith.constant 9.99999997E-7 : f32
    %24 = vector.broadcast %cst_16 : f32 to vector<16x1xf32>
    %25 = arith.addf %21, %24 : vector<16x1xf32>
    %26 = math.rsqrt %25 : vector<16x1xf32>
    %27 = vector.broadcast %26 : vector<16x1xf32> to vector<16x128xf32>
    %28 = arith.mulf %23, %27 : vector<16x128xf32>
    %29 = vector.broadcast %9 : vector<1x128xf32> to vector<16x128xf32>
    %30 = arith.mulf %28, %29 : vector<16x128xf32>
    %31 = vector.broadcast %10 : vector<1x128xf32> to vector<16x128xf32>
    %32 = arith.addf %30, %31 : vector<16x128xf32>
    %c0_17 = arith.constant 0 : index
    %c0_18 = arith.constant 0 : index
    %c0_19 = arith.constant 0 : index
    %33 = vector.load %arg7[%c0_17, %c0_18, %c0_19] : memref<1x16x128xf32, #tpu.memory_space<vmem>>, vector<1x16x128xf32>
    %34 = vector.shape_cast %33 : vector<1x16x128xf32> to vector<16x128xf32>
    %35 = vector.shape_cast %32 : vector<16x128xf32> to vector<1x16x128xf32>
    tpu.vector_store %arg7[%c0_17, %c0_18, %c0_19], %35 {strides = array<i32>} : memref<1x16x128xf32, #tpu.memory_space<vmem>>, vector<1x16x128xf32>,
    return
  }
  func.func @transform_0(%arg0: i32) -> (i32, i32, i32) {
    %c0_i32 = arith.constant 0 : i32
    %c0_i32_0 = arith.constant 0 : i32
    %c0_i32_1 = arith.constant 0 : i32
    return %arg0, %c0_i32, %c0_i32_0 : i32, i32, i32
  }
  func.func @transform_1(%arg0: i32) -> (i32, i32) {
    %c0_i32 = arith.constant 0 : i32
    %c0_i32_0 = arith.constant 0 : i32
    %c0_i32_1 = arith.constant 0 : i32
    return %c0_i32, %c0_i32_0 : i32, i32
  }
  func.func @transform_2(%arg0: i32) -> (i32, i32) {
    %c0_i32 = arith.constant 0 : i32
    %c0_i32_0 = arith.constant 0 : i32
    %c0_i32_1 = arith.constant 0 : i32
    return %c0_i32, %c0_i32_0 : i32, i32
  }
  func.func @transform_3(%arg0: i32) -> (i32, i32) {
    %c0_i32 = arith.constant 0 : i32
    %c0_i32_0 = arith.constant 0 : i32
    %c0_i32_1 = arith.constant 0 : i32
    return %c0_i32, %c0_i32_0 : i32, i32
  }
  func.func @transform_4(%arg0: i32) -> (i32, i32) {
    %c0_i32 = arith.constant 0 : i32
    %c0_i32_0 = arith.constant 0 : i32
    %c0_i32_1 = arith.constant 0 : i32
    return %c0_i32, %c0_i32_0 : i32, i32
  }
  func.func @transform_5(%arg0: i32) -> (i32, i32) {
    %c0_i32 = arith.constant 0 : i32
    %c0_i32_0 = arith.constant 0 : i32
    %c0_i32_1 = arith.constant 0 : i32
    return %c0_i32, %c0_i32_0 : i32, i32
  }
  func.func @transform_6(%arg0: i32) -> (i32, i32, i32) {
    %c0_i32 = arith.constant 0 : i32
    %c0_i32_0 = arith.constant 0 : i32
    %c0_i32_1 = arith.constant 0 : i32
    return %arg0, %c0_i32, %c0_i32_0 : i32, i32, i32
  }
}

module attributes {stable_mosaic.version = 11 : i64} {
  func.func @_grouping_layer_kernel(%arg0: i32, %arg1: memref<1x24x128xf32, #tpu.memory_space<vmem>>, %arg2: memref<128x128xf32, #tpu.memory_space<vmem>>, %arg3: memref<128x256xf32, #tpu.memory_space<vmem>>, %arg4: memref<128x128xf32, #tpu.memory_space<vmem>>, %arg5: memref<1x128xf32, #tpu.memory_space<vmem>>, %arg6: memref<1x128xf32, #tpu.memory_space<vmem>>, %arg7: memref<1x8x128xf32, #tpu.memory_space<vmem>>) attributes {dimension_semantics = [#tpu.dimension_semantics<parallel>], iteration_bounds = array<i64: 2>, scalar_prefetch = 0 : i64, scratch_operands = 0 : i64, tpu.core_type = #tpu.core_type<tc>, window_params = [{transform_indices = @transform_0, window_bounds = array<i64: 1, 24, 128>}, {pipeline_mode = #tpu.pipeline_mode<synchronous>, transform_indices = @transform_1, window_bounds = array<i64: 128, 128>}, {pipeline_mode = #tpu.pipeline_mode<synchronous>, transform_indices = @transform_2, window_bounds = array<i64: 128, 256>}, {pipeline_mode = #tpu.pipeline_mode<synchronous>, transform_indices = @transform_3, window_bounds = array<i64: 128, 128>}, {pipeline_mode = #tpu.pipeline_mode<synchronous>, transform_indices = @transform_4, window_bounds = array<i64: 1, 128>}, {pipeline_mode = #tpu.pipeline_mode<synchronous>, transform_indices = @transform_5, window_bounds = array<i64: 1, 128>}, {transform_indices = @transform_6, window_bounds = array<i64: 1, 8, 128>}]} {
    %c0 = arith.constant 0 : index
    %c0_0 = arith.constant 0 : index
    %c0_1 = arith.constant 0 : index
    %0 = vector.load %arg1[%c0, %c0_0, %c0_1] : memref<1x24x128xf32, #tpu.memory_space<vmem>>, vector<1x24x128xf32>
    %1 = vector.shape_cast %0 : vector<1x24x128xf32> to vector<24x128xf32>
    %2 = vector.extract_strided_slice %1 {offsets = [0, 0], sizes = [8, 128], strides = [1, 1]} : vector<24x128xf32> to vector<8x128xf32>
    %3 = vector.extract_strided_slice %1 {offsets = [8, 0], sizes = [16, 128], strides = [1, 1]} : vector<24x128xf32> to vector<16x128xf32>
    %c0_2 = arith.constant 0 : index
    %c0_3 = arith.constant 0 : index
    %4 = vector.load %arg2[%c0_2, %c0_3] : memref<128x128xf32, #tpu.memory_space<vmem>>, vector<128x128xf32>
    %cst = arith.constant dense<0.000000e+00> : vector<8x128xf32>
    %5 = tpu.matmul %2, %4, %cst {dimension_numbers = #tpu.dot_dimension_numbers<[1], [0], [0], [1], [0, 0, 1, 1], [], []>} : vector<8x128xf32>, vector<128x128xf32>, vector<8x128xf32> -> vector<8x128xf32>
    %c0_4 = arith.constant 0 : index
    %c0_5 = arith.constant 0 : index
    %6 = vector.load %arg3[%c0_4, %c0_5] : memref<128x256xf32, #tpu.memory_space<vmem>>, vector<128x256xf32>
    %cst_6 = arith.constant dense<0.000000e+00> : vector<16x256xf32>
    %7 = tpu.matmul %3, %6, %cst_6 {dimension_numbers = #tpu.dot_dimension_numbers<[1], [0], [0], [1], [0, 0, 1, 1], [], []>} : vector<16x128xf32>, vector<128x256xf32>, vector<16x256xf32> -> vector<16x256xf32>
    %8 = vector.extract_strided_slice %7 {offsets = [0, 0], sizes = [16, 128], strides = [1, 1]} : vector<16x256xf32> to vector<16x128xf32>
    %9 = vector.extract_strided_slice %7 {offsets = [0, 128], sizes = [16, 128], strides = [1, 1]} : vector<16x256xf32> to vector<16x128xf32>
    %10 = tpu.transpose %8, [1, 0] : vector<16x128xf32> -> vector<128x16xf32>
    %cst_7 = arith.constant dense<0.000000e+00> : vector<8x16xf32>
    %11 = tpu.matmul %5, %10, %cst_7 {dimension_numbers = #tpu.dot_dimension_numbers<[1], [0], [0], [1], [0, 0, 1, 1], [], []>} : vector<8x128xf32>, vector<128x16xf32>, vector<8x16xf32> -> vector<8x16xf32>
    %cst_8 = arith.constant dense<0xFF800000> : vector<16xf32>
    %12 = vector.multi_reduction <maximumf>, %11, %cst_8 [0] : vector<8x16xf32> to vector<16xf32>
    %13 = vector.shape_cast %12 : vector<16xf32> to vector<1x16xf32>
    %14 = vector.broadcast %13 : vector<1x16xf32> to vector<8x16xf32>
    %15 = arith.subf %11, %14 : vector<8x16xf32>
    %16 = math.exp %15 : vector<8x16xf32>
    %cst_9 = arith.constant dense<0.000000e+00> : vector<16xf32>
    %17 = vector.multi_reduction <add>, %16, %cst_9 [0] : vector<8x16xf32> to vector<16xf32>
    %18 = vector.shape_cast %17 : vector<16xf32> to vector<1x16xf32>
    %19 = tpu.reciprocal %18 {approx = true} : vector<1x16xf32> -> vector<1x16xf32>
    %20 = vector.broadcast %19 : vector<1x16xf32> to vector<8x16xf32>
    %21 = arith.mulf %16, %20 : vector<8x16xf32>
    %22 = tpu.iota {dimensions = array<i32: 0>} : vector<8x16xi32>
    %23 = vector.broadcast %13 : vector<1x16xf32> to vector<8x16xf32>
    %24 = arith.cmpf oeq, %11, %23 : vector<8x16xf32>
    %c8_i32 = arith.constant 8 : i32
    %25 = vector.broadcast %c8_i32 : i32 to vector<8x16xi32>
    %26 = arith.select %24, %22, %25 : vector<8x16xi1>, vector<8x16xi32>
    %cst_10 = arith.constant dense<2147483647> : vector<16xi32>
    %27 = vector.multi_reduction <minsi>, %26, %cst_10 [0] : vector<8x16xi32> to vector<16xi32>
    %28 = vector.shape_cast %27 : vector<16xi32> to vector<1x16xi32>
    %29 = vector.broadcast %28 : vector<1x16xi32> to vector<8x16xi32>
    %30 = arith.cmpi eq, %22, %29 : vector<8x16xi32>
    %31 = arith.extui %30 : vector<8x16xi1> to vector<8x16xi32>
    %32 = arith.sitofp %31 : vector<8x16xi32> to vector<8x16xf32>
    %33 = arith.subf %32, %21 : vector<8x16xf32>
    %34 = arith.addf %33, %21 : vector<8x16xf32>
    %cst_11 = arith.constant dense<0.000000e+00> : vector<8x128xf32>
    %35 = tpu.matmul %34, %9, %cst_11 {dimension_numbers = #tpu.dot_dimension_numbers<[1], [0], [0], [1], [0, 0, 1, 1], [], []>} : vector<8x16xf32>, vector<16x128xf32>, vector<8x128xf32> -> vector<8x128xf32>
    %c0_12 = arith.constant 0 : index
    %c0_13 = arith.constant 0 : index
    %36 = vector.load %arg4[%c0_12, %c0_13] : memref<128x128xf32, #tpu.memory_space<vmem>>, vector<128x128xf32>
    %cst_14 = arith.constant dense<0.000000e+00> : vector<8x128xf32>
    %37 = tpu.matmul %35, %36, %cst_14 {dimension_numbers = #tpu.dot_dimension_numbers<[1], [0], [0], [1], [0, 0, 1, 1], [], []>} : vector<8x128xf32>, vector<128x128xf32>, vector<8x128xf32> -> vector<8x128xf32>
    %38 = arith.addf %37, %2 : vector<8x128xf32>
    %c0_15 = arith.constant 0 : index
    %c0_16 = arith.constant 0 : index
    %39 = vector.load %arg5[%c0_15, %c0_16] : memref<1x128xf32, #tpu.memory_space<vmem>>, vector<1x128xf32>
    %c0_17 = arith.constant 0 : index
    %c0_18 = arith.constant 0 : index
    %40 = vector.load %arg6[%c0_17, %c0_18] : memref<1x128xf32, #tpu.memory_space<vmem>>, vector<1x128xf32>
    %cst_19 = arith.constant dense<0.000000e+00> : vector<8xf32>
    %41 = vector.multi_reduction <add>, %38, %cst_19 [1] : vector<8x128xf32> to vector<8xf32>
    %42 = vector.shape_cast %41 : vector<8xf32> to vector<8x1xf32>
    %cst_20 = arith.constant 1.280000e+02 : f32
    %43 = vector.broadcast %cst_20 : f32 to vector<8x1xf32>
    %44 = arith.divf %42, %43 : vector<8x1xf32>
    %45 = vector.broadcast %44 : vector<8x1xf32> to vector<8x128xf32>
    %46 = arith.subf %38, %45 : vector<8x128xf32>
    %47 = arith.mulf %46, %46 : vector<8x128xf32>
    %cst_21 = arith.constant dense<0.000000e+00> : vector<8xf32>
    %48 = vector.multi_reduction <add>, %47, %cst_21 [1] : vector<8x128xf32> to vector<8xf32>
    %49 = vector.shape_cast %48 : vector<8xf32> to vector<8x1xf32>
    %cst_22 = arith.constant 1.280000e+02 : f32
    %50 = vector.broadcast %cst_22 : f32 to vector<8x1xf32>
    %51 = arith.divf %49, %50 : vector<8x1xf32>
    %52 = vector.broadcast %44 : vector<8x1xf32> to vector<8x128xf32>
    %53 = arith.subf %38, %52 : vector<8x128xf32>
    %cst_23 = arith.constant 9.99999997E-7 : f32
    %54 = vector.broadcast %cst_23 : f32 to vector<8x1xf32>
    %55 = arith.addf %51, %54 : vector<8x1xf32>
    %56 = math.rsqrt %55 : vector<8x1xf32>
    %57 = vector.broadcast %56 : vector<8x1xf32> to vector<8x128xf32>
    %58 = arith.mulf %53, %57 : vector<8x128xf32>
    %59 = vector.broadcast %39 : vector<1x128xf32> to vector<8x128xf32>
    %60 = arith.mulf %58, %59 : vector<8x128xf32>
    %61 = vector.broadcast %40 : vector<1x128xf32> to vector<8x128xf32>
    %62 = arith.addf %60, %61 : vector<8x128xf32>
    %c0_24 = arith.constant 0 : index
    %c0_25 = arith.constant 0 : index
    %c0_26 = arith.constant 0 : index
    %63 = vector.load %arg7[%c0_24, %c0_25, %c0_26] : memref<1x8x128xf32, #tpu.memory_space<vmem>>, vector<1x8x128xf32>
    %64 = vector.shape_cast %63 : vector<1x8x128xf32> to vector<8x128xf32>
    %65 = vector.shape_cast %62 : vector<8x128xf32> to vector<1x8x128xf32>
    tpu.vector_store %arg7[%c0_24, %c0_25, %c0_26], %65 {strides = array<i32>} : memref<1x8x128xf32, #tpu.memory_space<vmem>>, vector<1x8x128xf32>,
    return
  }
  func.func @transform_0(%arg0: i32) -> (i32, i32, i32) {
    %c0_i32 = arith.constant 0 : i32
    %c0_i32_0 = arith.constant 0 : i32
    %c0_i32_1 = arith.constant 0 : i32
    return %arg0, %c0_i32, %c0_i32_0 : i32, i32, i32
  }
  func.func @transform_1(%arg0: i32) -> (i32, i32) {
    %c0_i32 = arith.constant 0 : i32
    %c0_i32_0 = arith.constant 0 : i32
    %c0_i32_1 = arith.constant 0 : i32
    return %c0_i32, %c0_i32_0 : i32, i32
  }
  func.func @transform_2(%arg0: i32) -> (i32, i32) {
    %c0_i32 = arith.constant 0 : i32
    %c0_i32_0 = arith.constant 0 : i32
    %c0_i32_1 = arith.constant 0 : i32
    return %c0_i32, %c0_i32_0 : i32, i32
  }
  func.func @transform_3(%arg0: i32) -> (i32, i32) {
    %c0_i32 = arith.constant 0 : i32
    %c0_i32_0 = arith.constant 0 : i32
    %c0_i32_1 = arith.constant 0 : i32
    return %c0_i32, %c0_i32_0 : i32, i32
  }
  func.func @transform_4(%arg0: i32) -> (i32, i32) {
    %c0_i32 = arith.constant 0 : i32
    %c0_i32_0 = arith.constant 0 : i32
    %c0_i32_1 = arith.constant 0 : i32
    return %c0_i32, %c0_i32_0 : i32, i32
  }
  func.func @transform_5(%arg0: i32) -> (i32, i32) {
    %c0_i32 = arith.constant 0 : i32
    %c0_i32_0 = arith.constant 0 : i32
    %c0_i32_1 = arith.constant 0 : i32
    return %c0_i32, %c0_i32_0 : i32, i32
  }
  func.func @transform_6(%arg0: i32) -> (i32, i32, i32) {
    %c0_i32 = arith.constant 0 : i32
    %c0_i32_0 = arith.constant 0 : i32
    %c0_i32_1 = arith.constant 0 : i32
    return %arg0, %c0_i32, %c0_i32_0 : i32, i32, i32
  }
}

module attributes {stable_mosaic.version = 11 : i64} {
  func.func @_encoder_layer_kernel(%arg0: i32, %arg1: memref<1x24x128xf32, #tpu.memory_space<vmem>>, %arg2: memref<128x384xf32, #tpu.memory_space<vmem>>, %arg3: memref<1x384xf32, #tpu.memory_space<vmem>>, %arg4: memref<128x128xf32, #tpu.memory_space<vmem>>, %arg5: memref<1x128xf32, #tpu.memory_space<vmem>>, %arg6: memref<1x128xf32, #tpu.memory_space<vmem>>, %arg7: memref<1x128xf32, #tpu.memory_space<vmem>>, %arg8: memref<128x256xf32, #tpu.memory_space<vmem>>, %arg9: memref<1x256xf32, #tpu.memory_space<vmem>>, %arg10: memref<256x128xf32, #tpu.memory_space<vmem>>, %arg11: memref<1x128xf32, #tpu.memory_space<vmem>>, %arg12: memref<1x128xf32, #tpu.memory_space<vmem>>, %arg13: memref<1x128xf32, #tpu.memory_space<vmem>>, %arg14: memref<1x24x128xf32, #tpu.memory_space<vmem>>) attributes {dimension_semantics = [#tpu.dimension_semantics<parallel>], iteration_bounds = array<i64: 2>, scalar_prefetch = 0 : i64, scratch_operands = 0 : i64, tpu.core_type = #tpu.core_type<tc>, window_params = [{transform_indices = @transform_0, window_bounds = array<i64: 1, 24, 128>}, {pipeline_mode = #tpu.pipeline_mode<synchronous>, transform_indices = @transform_1, window_bounds = array<i64: 128, 384>}, {pipeline_mode = #tpu.pipeline_mode<synchronous>, transform_indices = @transform_2, window_bounds = array<i64: 1, 384>}, {pipeline_mode = #tpu.pipeline_mode<synchronous>, transform_indices = @transform_3, window_bounds = array<i64: 128, 128>}, {pipeline_mode = #tpu.pipeline_mode<synchronous>, transform_indices = @transform_4, window_bounds = array<i64: 1, 128>}, {pipeline_mode = #tpu.pipeline_mode<synchronous>, transform_indices = @transform_5, window_bounds = array<i64: 1, 128>}, {pipeline_mode = #tpu.pipeline_mode<synchronous>, transform_indices = @transform_6, window_bounds = array<i64: 1, 128>}, {pipeline_mode = #tpu.pipeline_mode<synchronous>, transform_indices = @transform_7, window_bounds = array<i64: 128, 256>}, {pipeline_mode = #tpu.pipeline_mode<synchronous>, transform_indices = @transform_8, window_bounds = array<i64: 1, 256>}, {pipeline_mode = #tpu.pipeline_mode<synchronous>, transform_indices = @transform_9, window_bounds = array<i64: 256, 128>}, {pipeline_mode = #tpu.pipeline_mode<synchronous>, transform_indices = @transform_10, window_bounds = array<i64: 1, 128>}, {pipeline_mode = #tpu.pipeline_mode<synchronous>, transform_indices = @transform_11, window_bounds = array<i64: 1, 128>}, {pipeline_mode = #tpu.pipeline_mode<synchronous>, transform_indices = @transform_12, window_bounds = array<i64: 1, 128>}, {transform_indices = @transform_13, window_bounds = array<i64: 1, 24, 128>}]} {
    %c0 = arith.constant 0 : index
    %c0_0 = arith.constant 0 : index
    %c0_1 = arith.constant 0 : index
    %0 = vector.load %arg1[%c0, %c0_0, %c0_1] : memref<1x24x128xf32, #tpu.memory_space<vmem>>, vector<1x24x128xf32>
    %1 = vector.shape_cast %0 : vector<1x24x128xf32> to vector<24x128xf32>
    %c0_2 = arith.constant 0 : index
    %c0_3 = arith.constant 0 : index
    %2 = vector.load %arg2[%c0_2, %c0_3] : memref<128x384xf32, #tpu.memory_space<vmem>>, vector<128x384xf32>
    %cst = arith.constant dense<0.000000e+00> : vector<24x384xf32>
    %3 = tpu.matmul %1, %2, %cst {dimension_numbers = #tpu.dot_dimension_numbers<[1], [0], [0], [1], [0, 0, 1, 1], [], []>} : vector<24x128xf32>, vector<128x384xf32>, vector<24x384xf32> -> vector<24x384xf32>
    %c0_4 = arith.constant 0 : index
    %c0_5 = arith.constant 0 : index
    %4 = vector.load %arg3[%c0_4, %c0_5] : memref<1x384xf32, #tpu.memory_space<vmem>>, vector<1x384xf32>
    %5 = vector.broadcast %4 : vector<1x384xf32> to vector<24x384xf32>
    %6 = arith.addf %3, %5 : vector<24x384xf32>
    %7 = vector.extract_strided_slice %6 {offsets = [0, 0], sizes = [24, 32], strides = [1, 1]} : vector<24x384xf32> to vector<24x32xf32>
    %8 = vector.extract_strided_slice %6 {offsets = [0, 128], sizes = [24, 32], strides = [1, 1]} : vector<24x384xf32> to vector<24x32xf32>
    %9 = vector.extract_strided_slice %6 {offsets = [0, 256], sizes = [24, 32], strides = [1, 1]} : vector<24x384xf32> to vector<24x32xf32>
    %10 = tpu.transpose %8, [1, 0] : vector<24x32xf32> -> vector<32x24xf32>
    %cst_6 = arith.constant dense<0.000000e+00> : vector<24x24xf32>
    %11 = tpu.matmul %7, %10, %cst_6 {dimension_numbers = #tpu.dot_dimension_numbers<[1], [0], [0], [1], [0, 0, 1, 1], [], []>} : vector<24x32xf32>, vector<32x24xf32>, vector<24x24xf32> -> vector<24x24xf32>
    %cst_7 = arith.constant 0.176776692 : f32
    %12 = vector.broadcast %cst_7 : f32 to vector<24x24xf32>
    %13 = arith.mulf %11, %12 : vector<24x24xf32>
    %cst_8 = arith.constant dense<0xFF800000> : vector<24xf32>
    %14 = vector.multi_reduction <maximumf>, %13, %cst_8 [1] : vector<24x24xf32> to vector<24xf32>
    %15 = vector.shape_cast %14 : vector<24xf32> to vector<24x1xf32>
    %16 = vector.broadcast %15 : vector<24x1xf32> to vector<24x24xf32>
    %17 = arith.subf %13, %16 : vector<24x24xf32>
    %18 = math.exp %17 : vector<24x24xf32>
    %cst_9 = arith.constant dense<0.000000e+00> : vector<24xf32>
    %19 = vector.multi_reduction <add>, %18, %cst_9 [1] : vector<24x24xf32> to vector<24xf32>
    %20 = vector.shape_cast %19 : vector<24xf32> to vector<24x1xf32>
    %21 = tpu.reciprocal %20 {approx = true} : vector<24x1xf32> -> vector<24x1xf32>
    %22 = vector.broadcast %21 : vector<24x1xf32> to vector<24x24xf32>
    %23 = arith.mulf %18, %22 : vector<24x24xf32>
    %cst_10 = arith.constant dense<0.000000e+00> : vector<24x32xf32>
    %24 = tpu.matmul %23, %9, %cst_10 {dimension_numbers = #tpu.dot_dimension_numbers<[1], [0], [0], [1], [0, 0, 1, 1], [], []>} : vector<24x24xf32>, vector<24x32xf32>, vector<24x32xf32> -> vector<24x32xf32>
    %c0_11 = arith.constant 0 : index
    %c0_12 = arith.constant 0 : index
    %25 = vector.load %arg4[%c0_11, %c0_12] : memref<128x128xf32, #tpu.memory_space<vmem>>, vector<32x128xf32>
    %cst_13 = arith.constant dense<0.000000e+00> : vector<24x128xf32>
    %26 = tpu.matmul %24, %25, %cst_13 {dimension_numbers = #tpu.dot_dimension_numbers<[1], [0], [0], [1], [0, 0, 1, 1], [], []>} : vector<24x32xf32>, vector<32x128xf32>, vector<24x128xf32> -> vector<24x128xf32>
    %27 = vector.extract_strided_slice %6 {offsets = [0, 32], sizes = [24, 32], strides = [1, 1]} : vector<24x384xf32> to vector<24x32xf32>
    %28 = vector.extract_strided_slice %6 {offsets = [0, 160], sizes = [24, 32], strides = [1, 1]} : vector<24x384xf32> to vector<24x32xf32>
    %29 = vector.extract_strided_slice %6 {offsets = [0, 288], sizes = [24, 32], strides = [1, 1]} : vector<24x384xf32> to vector<24x32xf32>
    %30 = tpu.transpose %28, [1, 0] : vector<24x32xf32> -> vector<32x24xf32>
    %cst_14 = arith.constant dense<0.000000e+00> : vector<24x24xf32>
    %31 = tpu.matmul %27, %30, %cst_14 {dimension_numbers = #tpu.dot_dimension_numbers<[1], [0], [0], [1], [0, 0, 1, 1], [], []>} : vector<24x32xf32>, vector<32x24xf32>, vector<24x24xf32> -> vector<24x24xf32>
    %cst_15 = arith.constant 0.176776692 : f32
    %32 = vector.broadcast %cst_15 : f32 to vector<24x24xf32>
    %33 = arith.mulf %31, %32 : vector<24x24xf32>
    %cst_16 = arith.constant dense<0xFF800000> : vector<24xf32>
    %34 = vector.multi_reduction <maximumf>, %33, %cst_16 [1] : vector<24x24xf32> to vector<24xf32>
    %35 = vector.shape_cast %34 : vector<24xf32> to vector<24x1xf32>
    %36 = vector.broadcast %35 : vector<24x1xf32> to vector<24x24xf32>
    %37 = arith.subf %33, %36 : vector<24x24xf32>
    %38 = math.exp %37 : vector<24x24xf32>
    %cst_17 = arith.constant dense<0.000000e+00> : vector<24xf32>
    %39 = vector.multi_reduction <add>, %38, %cst_17 [1] : vector<24x24xf32> to vector<24xf32>
    %40 = vector.shape_cast %39 : vector<24xf32> to vector<24x1xf32>
    %41 = tpu.reciprocal %40 {approx = true} : vector<24x1xf32> -> vector<24x1xf32>
    %42 = vector.broadcast %41 : vector<24x1xf32> to vector<24x24xf32>
    %43 = arith.mulf %38, %42 : vector<24x24xf32>
    %cst_18 = arith.constant dense<0.000000e+00> : vector<24x32xf32>
    %44 = tpu.matmul %43, %29, %cst_18 {dimension_numbers = #tpu.dot_dimension_numbers<[1], [0], [0], [1], [0, 0, 1, 1], [], []>} : vector<24x24xf32>, vector<24x32xf32>, vector<24x32xf32> -> vector<24x32xf32>
    %c32 = arith.constant 32 : index
    %c0_19 = arith.constant 0 : index
    %45 = vector.load %arg4[%c32, %c0_19] : memref<128x128xf32, #tpu.memory_space<vmem>>, vector<32x128xf32>
    %cst_20 = arith.constant dense<0.000000e+00> : vector<24x128xf32>
    %46 = tpu.matmul %44, %45, %cst_20 {dimension_numbers = #tpu.dot_dimension_numbers<[1], [0], [0], [1], [0, 0, 1, 1], [], []>} : vector<24x32xf32>, vector<32x128xf32>, vector<24x128xf32> -> vector<24x128xf32>
    %47 = arith.addf %26, %46 : vector<24x128xf32>
    %48 = vector.extract_strided_slice %6 {offsets = [0, 64], sizes = [24, 32], strides = [1, 1]} : vector<24x384xf32> to vector<24x32xf32>
    %49 = vector.extract_strided_slice %6 {offsets = [0, 192], sizes = [24, 32], strides = [1, 1]} : vector<24x384xf32> to vector<24x32xf32>
    %50 = vector.extract_strided_slice %6 {offsets = [0, 320], sizes = [24, 32], strides = [1, 1]} : vector<24x384xf32> to vector<24x32xf32>
    %51 = tpu.transpose %49, [1, 0] : vector<24x32xf32> -> vector<32x24xf32>
    %cst_21 = arith.constant dense<0.000000e+00> : vector<24x24xf32>
    %52 = tpu.matmul %48, %51, %cst_21 {dimension_numbers = #tpu.dot_dimension_numbers<[1], [0], [0], [1], [0, 0, 1, 1], [], []>} : vector<24x32xf32>, vector<32x24xf32>, vector<24x24xf32> -> vector<24x24xf32>
    %cst_22 = arith.constant 0.176776692 : f32
    %53 = vector.broadcast %cst_22 : f32 to vector<24x24xf32>
    %54 = arith.mulf %52, %53 : vector<24x24xf32>
    %cst_23 = arith.constant dense<0xFF800000> : vector<24xf32>
    %55 = vector.multi_reduction <maximumf>, %54, %cst_23 [1] : vector<24x24xf32> to vector<24xf32>
    %56 = vector.shape_cast %55 : vector<24xf32> to vector<24x1xf32>
    %57 = vector.broadcast %56 : vector<24x1xf32> to vector<24x24xf32>
    %58 = arith.subf %54, %57 : vector<24x24xf32>
    %59 = math.exp %58 : vector<24x24xf32>
    %cst_24 = arith.constant dense<0.000000e+00> : vector<24xf32>
    %60 = vector.multi_reduction <add>, %59, %cst_24 [1] : vector<24x24xf32> to vector<24xf32>
    %61 = vector.shape_cast %60 : vector<24xf32> to vector<24x1xf32>
    %62 = tpu.reciprocal %61 {approx = true} : vector<24x1xf32> -> vector<24x1xf32>
    %63 = vector.broadcast %62 : vector<24x1xf32> to vector<24x24xf32>
    %64 = arith.mulf %59, %63 : vector<24x24xf32>
    %cst_25 = arith.constant dense<0.000000e+00> : vector<24x32xf32>
    %65 = tpu.matmul %64, %50, %cst_25 {dimension_numbers = #tpu.dot_dimension_numbers<[1], [0], [0], [1], [0, 0, 1, 1], [], []>} : vector<24x24xf32>, vector<24x32xf32>, vector<24x32xf32> -> vector<24x32xf32>
    %c64 = arith.constant 64 : index
    %c0_26 = arith.constant 0 : index
    %66 = vector.load %arg4[%c64, %c0_26] : memref<128x128xf32, #tpu.memory_space<vmem>>, vector<32x128xf32>
    %cst_27 = arith.constant dense<0.000000e+00> : vector<24x128xf32>
    %67 = tpu.matmul %65, %66, %cst_27 {dimension_numbers = #tpu.dot_dimension_numbers<[1], [0], [0], [1], [0, 0, 1, 1], [], []>} : vector<24x32xf32>, vector<32x128xf32>, vector<24x128xf32> -> vector<24x128xf32>
    %68 = arith.addf %47, %67 : vector<24x128xf32>
    %69 = vector.extract_strided_slice %6 {offsets = [0, 96], sizes = [24, 32], strides = [1, 1]} : vector<24x384xf32> to vector<24x32xf32>
    %70 = vector.extract_strided_slice %6 {offsets = [0, 224], sizes = [24, 32], strides = [1, 1]} : vector<24x384xf32> to vector<24x32xf32>
    %71 = vector.extract_strided_slice %6 {offsets = [0, 352], sizes = [24, 32], strides = [1, 1]} : vector<24x384xf32> to vector<24x32xf32>
    %72 = tpu.transpose %70, [1, 0] : vector<24x32xf32> -> vector<32x24xf32>
    %cst_28 = arith.constant dense<0.000000e+00> : vector<24x24xf32>
    %73 = tpu.matmul %69, %72, %cst_28 {dimension_numbers = #tpu.dot_dimension_numbers<[1], [0], [0], [1], [0, 0, 1, 1], [], []>} : vector<24x32xf32>, vector<32x24xf32>, vector<24x24xf32> -> vector<24x24xf32>
    %cst_29 = arith.constant 0.176776692 : f32
    %74 = vector.broadcast %cst_29 : f32 to vector<24x24xf32>
    %75 = arith.mulf %73, %74 : vector<24x24xf32>
    %cst_30 = arith.constant dense<0xFF800000> : vector<24xf32>
    %76 = vector.multi_reduction <maximumf>, %75, %cst_30 [1] : vector<24x24xf32> to vector<24xf32>
    %77 = vector.shape_cast %76 : vector<24xf32> to vector<24x1xf32>
    %78 = vector.broadcast %77 : vector<24x1xf32> to vector<24x24xf32>
    %79 = arith.subf %75, %78 : vector<24x24xf32>
    %80 = math.exp %79 : vector<24x24xf32>
    %cst_31 = arith.constant dense<0.000000e+00> : vector<24xf32>
    %81 = vector.multi_reduction <add>, %80, %cst_31 [1] : vector<24x24xf32> to vector<24xf32>
    %82 = vector.shape_cast %81 : vector<24xf32> to vector<24x1xf32>
    %83 = tpu.reciprocal %82 {approx = true} : vector<24x1xf32> -> vector<24x1xf32>
    %84 = vector.broadcast %83 : vector<24x1xf32> to vector<24x24xf32>
    %85 = arith.mulf %80, %84 : vector<24x24xf32>
    %cst_32 = arith.constant dense<0.000000e+00> : vector<24x32xf32>
    %86 = tpu.matmul %85, %71, %cst_32 {dimension_numbers = #tpu.dot_dimension_numbers<[1], [0], [0], [1], [0, 0, 1, 1], [], []>} : vector<24x24xf32>, vector<24x32xf32>, vector<24x32xf32> -> vector<24x32xf32>
    %c96 = arith.constant 96 : index
    %c0_33 = arith.constant 0 : index
    %87 = vector.load %arg4[%c96, %c0_33] : memref<128x128xf32, #tpu.memory_space<vmem>>, vector<32x128xf32>
    %cst_34 = arith.constant dense<0.000000e+00> : vector<24x128xf32>
    %88 = tpu.matmul %86, %87, %cst_34 {dimension_numbers = #tpu.dot_dimension_numbers<[1], [0], [0], [1], [0, 0, 1, 1], [], []>} : vector<24x32xf32>, vector<32x128xf32>, vector<24x128xf32> -> vector<24x128xf32>
    %89 = arith.addf %68, %88 : vector<24x128xf32>
    %c0_35 = arith.constant 0 : index
    %c0_36 = arith.constant 0 : index
    %90 = vector.load %arg5[%c0_35, %c0_36] : memref<1x128xf32, #tpu.memory_space<vmem>>, vector<1x128xf32>
    %91 = vector.broadcast %90 : vector<1x128xf32> to vector<24x128xf32>
    %92 = arith.addf %89, %91 : vector<24x128xf32>
    %93 = arith.addf %1, %92 : vector<24x128xf32>
    %c0_37 = arith.constant 0 : index
    %c0_38 = arith.constant 0 : index
    %94 = vector.load %arg6[%c0_37, %c0_38] : memref<1x128xf32, #tpu.memory_space<vmem>>, vector<1x128xf32>
    %c0_39 = arith.constant 0 : index
    %c0_40 = arith.constant 0 : index
    %95 = vector.load %arg7[%c0_39, %c0_40] : memref<1x128xf32, #tpu.memory_space<vmem>>, vector<1x128xf32>
    %cst_41 = arith.constant dense<0.000000e+00> : vector<24xf32>
    %96 = vector.multi_reduction <add>, %93, %cst_41 [1] : vector<24x128xf32> to vector<24xf32>
    %97 = vector.shape_cast %96 : vector<24xf32> to vector<24x1xf32>
    %cst_42 = arith.constant 1.280000e+02 : f32
    %98 = vector.broadcast %cst_42 : f32 to vector<24x1xf32>
    %99 = arith.divf %97, %98 : vector<24x1xf32>
    %100 = vector.broadcast %99 : vector<24x1xf32> to vector<24x128xf32>
    %101 = arith.subf %93, %100 : vector<24x128xf32>
    %102 = arith.mulf %101, %101 : vector<24x128xf32>
    %cst_43 = arith.constant dense<0.000000e+00> : vector<24xf32>
    %103 = vector.multi_reduction <add>, %102, %cst_43 [1] : vector<24x128xf32> to vector<24xf32>
    %104 = vector.shape_cast %103 : vector<24xf32> to vector<24x1xf32>
    %cst_44 = arith.constant 1.280000e+02 : f32
    %105 = vector.broadcast %cst_44 : f32 to vector<24x1xf32>
    %106 = arith.divf %104, %105 : vector<24x1xf32>
    %107 = vector.broadcast %99 : vector<24x1xf32> to vector<24x128xf32>
    %108 = arith.subf %93, %107 : vector<24x128xf32>
    %cst_45 = arith.constant 9.99999997E-7 : f32
    %109 = vector.broadcast %cst_45 : f32 to vector<24x1xf32>
    %110 = arith.addf %106, %109 : vector<24x1xf32>
    %111 = math.rsqrt %110 : vector<24x1xf32>
    %112 = vector.broadcast %111 : vector<24x1xf32> to vector<24x128xf32>
    %113 = arith.mulf %108, %112 : vector<24x128xf32>
    %114 = vector.broadcast %94 : vector<1x128xf32> to vector<24x128xf32>
    %115 = arith.mulf %113, %114 : vector<24x128xf32>
    %116 = vector.broadcast %95 : vector<1x128xf32> to vector<24x128xf32>
    %117 = arith.addf %115, %116 : vector<24x128xf32>
    %c0_46 = arith.constant 0 : index
    %c0_47 = arith.constant 0 : index
    %118 = vector.load %arg8[%c0_46, %c0_47] : memref<128x256xf32, #tpu.memory_space<vmem>>, vector<128x256xf32>
    %cst_48 = arith.constant dense<0.000000e+00> : vector<24x256xf32>
    %119 = tpu.matmul %117, %118, %cst_48 {dimension_numbers = #tpu.dot_dimension_numbers<[1], [0], [0], [1], [0, 0, 1, 1], [], []>} : vector<24x128xf32>, vector<128x256xf32>, vector<24x256xf32> -> vector<24x256xf32>
    %c0_49 = arith.constant 0 : index
    %c0_50 = arith.constant 0 : index
    %120 = vector.load %arg9[%c0_49, %c0_50] : memref<1x256xf32, #tpu.memory_space<vmem>>, vector<1x256xf32>
    %121 = vector.broadcast %120 : vector<1x256xf32> to vector<24x256xf32>
    %122 = arith.addf %119, %121 : vector<24x256xf32>
    %cst_51 = arith.constant 0.000000e+00 : f32
    %123 = vector.broadcast %cst_51 : f32 to vector<24x256xf32>
    %124 = arith.maximumf %122, %123 : vector<24x256xf32>
    %c0_52 = arith.constant 0 : index
    %c0_53 = arith.constant 0 : index
    %125 = vector.load %arg10[%c0_52, %c0_53] : memref<256x128xf32, #tpu.memory_space<vmem>>, vector<256x128xf32>
    %cst_54 = arith.constant dense<0.000000e+00> : vector<24x128xf32>
    %126 = tpu.matmul %124, %125, %cst_54 {dimension_numbers = #tpu.dot_dimension_numbers<[1], [0], [0], [1], [0, 0, 1, 1], [], []>} : vector<24x256xf32>, vector<256x128xf32>, vector<24x128xf32> -> vector<24x128xf32>
    %c0_55 = arith.constant 0 : index
    %c0_56 = arith.constant 0 : index
    %127 = vector.load %arg11[%c0_55, %c0_56] : memref<1x128xf32, #tpu.memory_space<vmem>>, vector<1x128xf32>
    %128 = vector.broadcast %127 : vector<1x128xf32> to vector<24x128xf32>
    %129 = arith.addf %126, %128 : vector<24x128xf32>
    %130 = arith.addf %117, %129 : vector<24x128xf32>
    %c0_57 = arith.constant 0 : index
    %c0_58 = arith.constant 0 : index
    %131 = vector.load %arg12[%c0_57, %c0_58] : memref<1x128xf32, #tpu.memory_space<vmem>>, vector<1x128xf32>
    %c0_59 = arith.constant 0 : index
    %c0_60 = arith.constant 0 : index
    %132 = vector.load %arg13[%c0_59, %c0_60] : memref<1x128xf32, #tpu.memory_space<vmem>>, vector<1x128xf32>
    %cst_61 = arith.constant dense<0.000000e+00> : vector<24xf32>
    %133 = vector.multi_reduction <add>, %130, %cst_61 [1] : vector<24x128xf32> to vector<24xf32>
    %134 = vector.shape_cast %133 : vector<24xf32> to vector<24x1xf32>
    %cst_62 = arith.constant 1.280000e+02 : f32
    %135 = vector.broadcast %cst_62 : f32 to vector<24x1xf32>
    %136 = arith.divf %134, %135 : vector<24x1xf32>
    %137 = vector.broadcast %136 : vector<24x1xf32> to vector<24x128xf32>
    %138 = arith.subf %130, %137 : vector<24x128xf32>
    %139 = arith.mulf %138, %138 : vector<24x128xf32>
    %cst_63 = arith.constant dense<0.000000e+00> : vector<24xf32>
    %140 = vector.multi_reduction <add>, %139, %cst_63 [1] : vector<24x128xf32> to vector<24xf32>
    %141 = vector.shape_cast %140 : vector<24xf32> to vector<24x1xf32>
    %cst_64 = arith.constant 1.280000e+02 : f32
    %142 = vector.broadcast %cst_64 : f32 to vector<24x1xf32>
    %143 = arith.divf %141, %142 : vector<24x1xf32>
    %144 = vector.broadcast %136 : vector<24x1xf32> to vector<24x128xf32>
    %145 = arith.subf %130, %144 : vector<24x128xf32>
    %cst_65 = arith.constant 9.99999997E-7 : f32
    %146 = vector.broadcast %cst_65 : f32 to vector<24x1xf32>
    %147 = arith.addf %143, %146 : vector<24x1xf32>
    %148 = math.rsqrt %147 : vector<24x1xf32>
    %149 = vector.broadcast %148 : vector<24x1xf32> to vector<24x128xf32>
    %150 = arith.mulf %145, %149 : vector<24x128xf32>
    %151 = vector.broadcast %131 : vector<1x128xf32> to vector<24x128xf32>
    %152 = arith.mulf %150, %151 : vector<24x128xf32>
    %153 = vector.broadcast %132 : vector<1x128xf32> to vector<24x128xf32>
    %154 = arith.addf %152, %153 : vector<24x128xf32>
    %c0_66 = arith.constant 0 : index
    %c0_67 = arith.constant 0 : index
    %c0_68 = arith.constant 0 : index
    %155 = vector.load %arg14[%c0_66, %c0_67, %c0_68] : memref<1x24x128xf32, #tpu.memory_space<vmem>>, vector<1x24x128xf32>
    %156 = vector.shape_cast %155 : vector<1x24x128xf32> to vector<24x128xf32>
    %157 = vector.shape_cast %154 : vector<24x128xf32> to vector<1x24x128xf32>
    tpu.vector_store %arg14[%c0_66, %c0_67, %c0_68], %157 {strides = array<i32>} : memref<1x24x128xf32, #tpu.memory_space<vmem>>, vector<1x24x128xf32>,
    return
  }
  func.func @transform_0(%arg0: i32) -> (i32, i32, i32) {
    %c0_i32 = arith.constant 0 : i32
    %c0_i32_0 = arith.constant 0 : i32
    %c0_i32_1 = arith.constant 0 : i32
    return %arg0, %c0_i32, %c0_i32_0 : i32, i32, i32
  }
  func.func @transform_1(%arg0: i32) -> (i32, i32) {
    %c0_i32 = arith.constant 0 : i32
    %c0_i32_0 = arith.constant 0 : i32
    %c0_i32_1 = arith.constant 0 : i32
    return %c0_i32, %c0_i32_0 : i32, i32
  }
  func.func @transform_2(%arg0: i32) -> (i32, i32) {
    %c0_i32 = arith.constant 0 : i32
    %c0_i32_0 = arith.constant 0 : i32
    %c0_i32_1 = arith.constant 0 : i32
    return %c0_i32, %c0_i32_0 : i32, i32
  }
  func.func @transform_3(%arg0: i32) -> (i32, i32) {
    %c0_i32 = arith.constant 0 : i32
    %c0_i32_0 = arith.constant 0 : i32
    %c0_i32_1 = arith.constant 0 : i32
    return %c0_i32, %c0_i32_0 : i32, i32
  }
  func.func @transform_4(%arg0: i32) -> (i32, i32) {
    %c0_i32 = arith.constant 0 : i32
    %c0_i32_0 = arith.constant 0 : i32
    %c0_i32_1 = arith.constant 0 : i32
    return %c0_i32, %c0_i32_0 : i32, i32
  }
  func.func @transform_5(%arg0: i32) -> (i32, i32) {
    %c0_i32 = arith.constant 0 : i32
    %c0_i32_0 = arith.constant 0 : i32
    %c0_i32_1 = arith.constant 0 : i32
    return %c0_i32, %c0_i32_0 : i32, i32
  }
  func.func @transform_6(%arg0: i32) -> (i32, i32) {
    %c0_i32 = arith.constant 0 : i32
    %c0_i32_0 = arith.constant 0 : i32
    %c0_i32_1 = arith.constant 0 : i32
    return %c0_i32, %c0_i32_0 : i32, i32
  }
  func.func @transform_7(%arg0: i32) -> (i32, i32) {
    %c0_i32 = arith.constant 0 : i32
    %c0_i32_0 = arith.constant 0 : i32
    %c0_i32_1 = arith.constant 0 : i32
    return %c0_i32, %c0_i32_0 : i32, i32
  }
  func.func @transform_8(%arg0: i32) -> (i32, i32) {
    %c0_i32 = arith.constant 0 : i32
    %c0_i32_0 = arith.constant 0 : i32
    %c0_i32_1 = arith.constant 0 : i32
    return %c0_i32, %c0_i32_0 : i32, i32
  }
  func.func @transform_9(%arg0: i32) -> (i32, i32) {
    %c0_i32 = arith.constant 0 : i32
    %c0_i32_0 = arith.constant 0 : i32
    %c0_i32_1 = arith.constant 0 : i32
    return %c0_i32, %c0_i32_0 : i32, i32
  }
  func.func @transform_10(%arg0: i32) -> (i32, i32) {
    %c0_i32 = arith.constant 0 : i32
    %c0_i32_0 = arith.constant 0 : i32
    %c0_i32_1 = arith.constant 0 : i32
    return %c0_i32, %c0_i32_0 : i32, i32
  }
  func.func @transform_11(%arg0: i32) -> (i32, i32) {
    %c0_i32 = arith.constant 0 : i32
    %c0_i32_0 = arith.constant 0 : i32
    %c0_i32_1 = arith.constant 0 : i32
    return %c0_i32, %c0_i32_0 : i32, i32
  }
  func.func @transform_12(%arg0: i32) -> (i32, i32) {
    %c0_i32 = arith.constant 0 : i32
    %c0_i32_0 = arith.constant 0 : i32
    %c0_i32_1 = arith.constant 0 : i32
    return %c0_i32, %c0_i32_0 : i32, i32
  }
  func.func @transform_13(%arg0: i32) -> (i32, i32, i32) {
    %c0_i32 = arith.constant 0 : i32
    %c0_i32_0 = arith.constant 0 : i32
    %c0_i32_1 = arith.constant 0 : i32
    return %arg0, %c0_i32, %c0_i32_0 : i32, i32, i32
  }
}

module attributes {stable_mosaic.version = 11 : i64} {
  func.func @_encoder_layer_kernel(%arg0: i32, %arg1: memref<1x12x128xf32, #tpu.memory_space<vmem>>, %arg2: memref<128x384xf32, #tpu.memory_space<vmem>>, %arg3: memref<1x384xf32, #tpu.memory_space<vmem>>, %arg4: memref<128x128xf32, #tpu.memory_space<vmem>>, %arg5: memref<1x128xf32, #tpu.memory_space<vmem>>, %arg6: memref<1x128xf32, #tpu.memory_space<vmem>>, %arg7: memref<1x128xf32, #tpu.memory_space<vmem>>, %arg8: memref<128x256xf32, #tpu.memory_space<vmem>>, %arg9: memref<1x256xf32, #tpu.memory_space<vmem>>, %arg10: memref<256x128xf32, #tpu.memory_space<vmem>>, %arg11: memref<1x128xf32, #tpu.memory_space<vmem>>, %arg12: memref<1x128xf32, #tpu.memory_space<vmem>>, %arg13: memref<1x128xf32, #tpu.memory_space<vmem>>, %arg14: memref<1x12x128xf32, #tpu.memory_space<vmem>>) attributes {dimension_semantics = [#tpu.dimension_semantics<parallel>], iteration_bounds = array<i64: 2>, scalar_prefetch = 0 : i64, scratch_operands = 0 : i64, tpu.core_type = #tpu.core_type<tc>, window_params = [{transform_indices = @transform_0, window_bounds = array<i64: 1, 12, 128>}, {pipeline_mode = #tpu.pipeline_mode<synchronous>, transform_indices = @transform_1, window_bounds = array<i64: 128, 384>}, {pipeline_mode = #tpu.pipeline_mode<synchronous>, transform_indices = @transform_2, window_bounds = array<i64: 1, 384>}, {pipeline_mode = #tpu.pipeline_mode<synchronous>, transform_indices = @transform_3, window_bounds = array<i64: 128, 128>}, {pipeline_mode = #tpu.pipeline_mode<synchronous>, transform_indices = @transform_4, window_bounds = array<i64: 1, 128>}, {pipeline_mode = #tpu.pipeline_mode<synchronous>, transform_indices = @transform_5, window_bounds = array<i64: 1, 128>}, {pipeline_mode = #tpu.pipeline_mode<synchronous>, transform_indices = @transform_6, window_bounds = array<i64: 1, 128>}, {pipeline_mode = #tpu.pipeline_mode<synchronous>, transform_indices = @transform_7, window_bounds = array<i64: 128, 256>}, {pipeline_mode = #tpu.pipeline_mode<synchronous>, transform_indices = @transform_8, window_bounds = array<i64: 1, 256>}, {pipeline_mode = #tpu.pipeline_mode<synchronous>, transform_indices = @transform_9, window_bounds = array<i64: 256, 128>}, {pipeline_mode = #tpu.pipeline_mode<synchronous>, transform_indices = @transform_10, window_bounds = array<i64: 1, 128>}, {pipeline_mode = #tpu.pipeline_mode<synchronous>, transform_indices = @transform_11, window_bounds = array<i64: 1, 128>}, {pipeline_mode = #tpu.pipeline_mode<synchronous>, transform_indices = @transform_12, window_bounds = array<i64: 1, 128>}, {transform_indices = @transform_13, window_bounds = array<i64: 1, 12, 128>}]} {
    %c0 = arith.constant 0 : index
    %c0_0 = arith.constant 0 : index
    %c0_1 = arith.constant 0 : index
    %0 = vector.load %arg1[%c0, %c0_0, %c0_1] : memref<1x12x128xf32, #tpu.memory_space<vmem>>, vector<1x12x128xf32>
    %1 = vector.shape_cast %0 : vector<1x12x128xf32> to vector<12x128xf32>
    %c0_2 = arith.constant 0 : index
    %c0_3 = arith.constant 0 : index
    %2 = vector.load %arg2[%c0_2, %c0_3] : memref<128x384xf32, #tpu.memory_space<vmem>>, vector<128x384xf32>
    %cst = arith.constant dense<0.000000e+00> : vector<12x384xf32>
    %3 = tpu.matmul %1, %2, %cst {dimension_numbers = #tpu.dot_dimension_numbers<[1], [0], [0], [1], [0, 0, 1, 1], [], []>} : vector<12x128xf32>, vector<128x384xf32>, vector<12x384xf32> -> vector<12x384xf32>
    %c0_4 = arith.constant 0 : index
    %c0_5 = arith.constant 0 : index
    %4 = vector.load %arg3[%c0_4, %c0_5] : memref<1x384xf32, #tpu.memory_space<vmem>>, vector<1x384xf32>
    %5 = vector.broadcast %4 : vector<1x384xf32> to vector<12x384xf32>
    %6 = arith.addf %3, %5 : vector<12x384xf32>
    %7 = vector.extract_strided_slice %6 {offsets = [0, 0], sizes = [12, 32], strides = [1, 1]} : vector<12x384xf32> to vector<12x32xf32>
    %8 = vector.extract_strided_slice %6 {offsets = [0, 128], sizes = [12, 32], strides = [1, 1]} : vector<12x384xf32> to vector<12x32xf32>
    %9 = vector.extract_strided_slice %6 {offsets = [0, 256], sizes = [12, 32], strides = [1, 1]} : vector<12x384xf32> to vector<12x32xf32>
    %10 = tpu.transpose %8, [1, 0] : vector<12x32xf32> -> vector<32x12xf32>
    %cst_6 = arith.constant dense<0.000000e+00> : vector<12x12xf32>
    %11 = tpu.matmul %7, %10, %cst_6 {dimension_numbers = #tpu.dot_dimension_numbers<[1], [0], [0], [1], [0, 0, 1, 1], [], []>} : vector<12x32xf32>, vector<32x12xf32>, vector<12x12xf32> -> vector<12x12xf32>
    %cst_7 = arith.constant 0.176776692 : f32
    %12 = vector.broadcast %cst_7 : f32 to vector<12x12xf32>
    %13 = arith.mulf %11, %12 : vector<12x12xf32>
    %cst_8 = arith.constant dense<0xFF800000> : vector<12xf32>
    %14 = vector.multi_reduction <maximumf>, %13, %cst_8 [1] : vector<12x12xf32> to vector<12xf32>
    %15 = vector.shape_cast %14 : vector<12xf32> to vector<12x1xf32>
    %16 = vector.broadcast %15 : vector<12x1xf32> to vector<12x12xf32>
    %17 = arith.subf %13, %16 : vector<12x12xf32>
    %18 = math.exp %17 : vector<12x12xf32>
    %cst_9 = arith.constant dense<0.000000e+00> : vector<12xf32>
    %19 = vector.multi_reduction <add>, %18, %cst_9 [1] : vector<12x12xf32> to vector<12xf32>
    %20 = vector.shape_cast %19 : vector<12xf32> to vector<12x1xf32>
    %21 = tpu.reciprocal %20 {approx = true} : vector<12x1xf32> -> vector<12x1xf32>
    %22 = vector.broadcast %21 : vector<12x1xf32> to vector<12x12xf32>
    %23 = arith.mulf %18, %22 : vector<12x12xf32>
    %cst_10 = arith.constant dense<0.000000e+00> : vector<12x32xf32>
    %24 = tpu.matmul %23, %9, %cst_10 {dimension_numbers = #tpu.dot_dimension_numbers<[1], [0], [0], [1], [0, 0, 1, 1], [], []>} : vector<12x12xf32>, vector<12x32xf32>, vector<12x32xf32> -> vector<12x32xf32>
    %c0_11 = arith.constant 0 : index
    %c0_12 = arith.constant 0 : index
    %25 = vector.load %arg4[%c0_11, %c0_12] : memref<128x128xf32, #tpu.memory_space<vmem>>, vector<32x128xf32>
    %cst_13 = arith.constant dense<0.000000e+00> : vector<12x128xf32>
    %26 = tpu.matmul %24, %25, %cst_13 {dimension_numbers = #tpu.dot_dimension_numbers<[1], [0], [0], [1], [0, 0, 1, 1], [], []>} : vector<12x32xf32>, vector<32x128xf32>, vector<12x128xf32> -> vector<12x128xf32>
    %27 = vector.extract_strided_slice %6 {offsets = [0, 32], sizes = [12, 32], strides = [1, 1]} : vector<12x384xf32> to vector<12x32xf32>
    %28 = vector.extract_strided_slice %6 {offsets = [0, 160], sizes = [12, 32], strides = [1, 1]} : vector<12x384xf32> to vector<12x32xf32>
    %29 = vector.extract_strided_slice %6 {offsets = [0, 288], sizes = [12, 32], strides = [1, 1]} : vector<12x384xf32> to vector<12x32xf32>
    %30 = tpu.transpose %28, [1, 0] : vector<12x32xf32> -> vector<32x12xf32>
    %cst_14 = arith.constant dense<0.000000e+00> : vector<12x12xf32>
    %31 = tpu.matmul %27, %30, %cst_14 {dimension_numbers = #tpu.dot_dimension_numbers<[1], [0], [0], [1], [0, 0, 1, 1], [], []>} : vector<12x32xf32>, vector<32x12xf32>, vector<12x12xf32> -> vector<12x12xf32>
    %cst_15 = arith.constant 0.176776692 : f32
    %32 = vector.broadcast %cst_15 : f32 to vector<12x12xf32>
    %33 = arith.mulf %31, %32 : vector<12x12xf32>
    %cst_16 = arith.constant dense<0xFF800000> : vector<12xf32>
    %34 = vector.multi_reduction <maximumf>, %33, %cst_16 [1] : vector<12x12xf32> to vector<12xf32>
    %35 = vector.shape_cast %34 : vector<12xf32> to vector<12x1xf32>
    %36 = vector.broadcast %35 : vector<12x1xf32> to vector<12x12xf32>
    %37 = arith.subf %33, %36 : vector<12x12xf32>
    %38 = math.exp %37 : vector<12x12xf32>
    %cst_17 = arith.constant dense<0.000000e+00> : vector<12xf32>
    %39 = vector.multi_reduction <add>, %38, %cst_17 [1] : vector<12x12xf32> to vector<12xf32>
    %40 = vector.shape_cast %39 : vector<12xf32> to vector<12x1xf32>
    %41 = tpu.reciprocal %40 {approx = true} : vector<12x1xf32> -> vector<12x1xf32>
    %42 = vector.broadcast %41 : vector<12x1xf32> to vector<12x12xf32>
    %43 = arith.mulf %38, %42 : vector<12x12xf32>
    %cst_18 = arith.constant dense<0.000000e+00> : vector<12x32xf32>
    %44 = tpu.matmul %43, %29, %cst_18 {dimension_numbers = #tpu.dot_dimension_numbers<[1], [0], [0], [1], [0, 0, 1, 1], [], []>} : vector<12x12xf32>, vector<12x32xf32>, vector<12x32xf32> -> vector<12x32xf32>
    %c32 = arith.constant 32 : index
    %c0_19 = arith.constant 0 : index
    %45 = vector.load %arg4[%c32, %c0_19] : memref<128x128xf32, #tpu.memory_space<vmem>>, vector<32x128xf32>
    %cst_20 = arith.constant dense<0.000000e+00> : vector<12x128xf32>
    %46 = tpu.matmul %44, %45, %cst_20 {dimension_numbers = #tpu.dot_dimension_numbers<[1], [0], [0], [1], [0, 0, 1, 1], [], []>} : vector<12x32xf32>, vector<32x128xf32>, vector<12x128xf32> -> vector<12x128xf32>
    %47 = arith.addf %26, %46 : vector<12x128xf32>
    %48 = vector.extract_strided_slice %6 {offsets = [0, 64], sizes = [12, 32], strides = [1, 1]} : vector<12x384xf32> to vector<12x32xf32>
    %49 = vector.extract_strided_slice %6 {offsets = [0, 192], sizes = [12, 32], strides = [1, 1]} : vector<12x384xf32> to vector<12x32xf32>
    %50 = vector.extract_strided_slice %6 {offsets = [0, 320], sizes = [12, 32], strides = [1, 1]} : vector<12x384xf32> to vector<12x32xf32>
    %51 = tpu.transpose %49, [1, 0] : vector<12x32xf32> -> vector<32x12xf32>
    %cst_21 = arith.constant dense<0.000000e+00> : vector<12x12xf32>
    %52 = tpu.matmul %48, %51, %cst_21 {dimension_numbers = #tpu.dot_dimension_numbers<[1], [0], [0], [1], [0, 0, 1, 1], [], []>} : vector<12x32xf32>, vector<32x12xf32>, vector<12x12xf32> -> vector<12x12xf32>
    %cst_22 = arith.constant 0.176776692 : f32
    %53 = vector.broadcast %cst_22 : f32 to vector<12x12xf32>
    %54 = arith.mulf %52, %53 : vector<12x12xf32>
    %cst_23 = arith.constant dense<0xFF800000> : vector<12xf32>
    %55 = vector.multi_reduction <maximumf>, %54, %cst_23 [1] : vector<12x12xf32> to vector<12xf32>
    %56 = vector.shape_cast %55 : vector<12xf32> to vector<12x1xf32>
    %57 = vector.broadcast %56 : vector<12x1xf32> to vector<12x12xf32>
    %58 = arith.subf %54, %57 : vector<12x12xf32>
    %59 = math.exp %58 : vector<12x12xf32>
    %cst_24 = arith.constant dense<0.000000e+00> : vector<12xf32>
    %60 = vector.multi_reduction <add>, %59, %cst_24 [1] : vector<12x12xf32> to vector<12xf32>
    %61 = vector.shape_cast %60 : vector<12xf32> to vector<12x1xf32>
    %62 = tpu.reciprocal %61 {approx = true} : vector<12x1xf32> -> vector<12x1xf32>
    %63 = vector.broadcast %62 : vector<12x1xf32> to vector<12x12xf32>
    %64 = arith.mulf %59, %63 : vector<12x12xf32>
    %cst_25 = arith.constant dense<0.000000e+00> : vector<12x32xf32>
    %65 = tpu.matmul %64, %50, %cst_25 {dimension_numbers = #tpu.dot_dimension_numbers<[1], [0], [0], [1], [0, 0, 1, 1], [], []>} : vector<12x12xf32>, vector<12x32xf32>, vector<12x32xf32> -> vector<12x32xf32>
    %c64 = arith.constant 64 : index
    %c0_26 = arith.constant 0 : index
    %66 = vector.load %arg4[%c64, %c0_26] : memref<128x128xf32, #tpu.memory_space<vmem>>, vector<32x128xf32>
    %cst_27 = arith.constant dense<0.000000e+00> : vector<12x128xf32>
    %67 = tpu.matmul %65, %66, %cst_27 {dimension_numbers = #tpu.dot_dimension_numbers<[1], [0], [0], [1], [0, 0, 1, 1], [], []>} : vector<12x32xf32>, vector<32x128xf32>, vector<12x128xf32> -> vector<12x128xf32>
    %68 = arith.addf %47, %67 : vector<12x128xf32>
    %69 = vector.extract_strided_slice %6 {offsets = [0, 96], sizes = [12, 32], strides = [1, 1]} : vector<12x384xf32> to vector<12x32xf32>
    %70 = vector.extract_strided_slice %6 {offsets = [0, 224], sizes = [12, 32], strides = [1, 1]} : vector<12x384xf32> to vector<12x32xf32>
    %71 = vector.extract_strided_slice %6 {offsets = [0, 352], sizes = [12, 32], strides = [1, 1]} : vector<12x384xf32> to vector<12x32xf32>
    %72 = tpu.transpose %70, [1, 0] : vector<12x32xf32> -> vector<32x12xf32>
    %cst_28 = arith.constant dense<0.000000e+00> : vector<12x12xf32>
    %73 = tpu.matmul %69, %72, %cst_28 {dimension_numbers = #tpu.dot_dimension_numbers<[1], [0], [0], [1], [0, 0, 1, 1], [], []>} : vector<12x32xf32>, vector<32x12xf32>, vector<12x12xf32> -> vector<12x12xf32>
    %cst_29 = arith.constant 0.176776692 : f32
    %74 = vector.broadcast %cst_29 : f32 to vector<12x12xf32>
    %75 = arith.mulf %73, %74 : vector<12x12xf32>
    %cst_30 = arith.constant dense<0xFF800000> : vector<12xf32>
    %76 = vector.multi_reduction <maximumf>, %75, %cst_30 [1] : vector<12x12xf32> to vector<12xf32>
    %77 = vector.shape_cast %76 : vector<12xf32> to vector<12x1xf32>
    %78 = vector.broadcast %77 : vector<12x1xf32> to vector<12x12xf32>
    %79 = arith.subf %75, %78 : vector<12x12xf32>
    %80 = math.exp %79 : vector<12x12xf32>
    %cst_31 = arith.constant dense<0.000000e+00> : vector<12xf32>
    %81 = vector.multi_reduction <add>, %80, %cst_31 [1] : vector<12x12xf32> to vector<12xf32>
    %82 = vector.shape_cast %81 : vector<12xf32> to vector<12x1xf32>
    %83 = tpu.reciprocal %82 {approx = true} : vector<12x1xf32> -> vector<12x1xf32>
    %84 = vector.broadcast %83 : vector<12x1xf32> to vector<12x12xf32>
    %85 = arith.mulf %80, %84 : vector<12x12xf32>
    %cst_32 = arith.constant dense<0.000000e+00> : vector<12x32xf32>
    %86 = tpu.matmul %85, %71, %cst_32 {dimension_numbers = #tpu.dot_dimension_numbers<[1], [0], [0], [1], [0, 0, 1, 1], [], []>} : vector<12x12xf32>, vector<12x32xf32>, vector<12x32xf32> -> vector<12x32xf32>
    %c96 = arith.constant 96 : index
    %c0_33 = arith.constant 0 : index
    %87 = vector.load %arg4[%c96, %c0_33] : memref<128x128xf32, #tpu.memory_space<vmem>>, vector<32x128xf32>
    %cst_34 = arith.constant dense<0.000000e+00> : vector<12x128xf32>
    %88 = tpu.matmul %86, %87, %cst_34 {dimension_numbers = #tpu.dot_dimension_numbers<[1], [0], [0], [1], [0, 0, 1, 1], [], []>} : vector<12x32xf32>, vector<32x128xf32>, vector<12x128xf32> -> vector<12x128xf32>
    %89 = arith.addf %68, %88 : vector<12x128xf32>
    %c0_35 = arith.constant 0 : index
    %c0_36 = arith.constant 0 : index
    %90 = vector.load %arg5[%c0_35, %c0_36] : memref<1x128xf32, #tpu.memory_space<vmem>>, vector<1x128xf32>
    %91 = vector.broadcast %90 : vector<1x128xf32> to vector<12x128xf32>
    %92 = arith.addf %89, %91 : vector<12x128xf32>
    %93 = arith.addf %1, %92 : vector<12x128xf32>
    %c0_37 = arith.constant 0 : index
    %c0_38 = arith.constant 0 : index
    %94 = vector.load %arg6[%c0_37, %c0_38] : memref<1x128xf32, #tpu.memory_space<vmem>>, vector<1x128xf32>
    %c0_39 = arith.constant 0 : index
    %c0_40 = arith.constant 0 : index
    %95 = vector.load %arg7[%c0_39, %c0_40] : memref<1x128xf32, #tpu.memory_space<vmem>>, vector<1x128xf32>
    %cst_41 = arith.constant dense<0.000000e+00> : vector<12xf32>
    %96 = vector.multi_reduction <add>, %93, %cst_41 [1] : vector<12x128xf32> to vector<12xf32>
    %97 = vector.shape_cast %96 : vector<12xf32> to vector<12x1xf32>
    %cst_42 = arith.constant 1.280000e+02 : f32
    %98 = vector.broadcast %cst_42 : f32 to vector<12x1xf32>
    %99 = arith.divf %97, %98 : vector<12x1xf32>
    %100 = vector.broadcast %99 : vector<12x1xf32> to vector<12x128xf32>
    %101 = arith.subf %93, %100 : vector<12x128xf32>
    %102 = arith.mulf %101, %101 : vector<12x128xf32>
    %cst_43 = arith.constant dense<0.000000e+00> : vector<12xf32>
    %103 = vector.multi_reduction <add>, %102, %cst_43 [1] : vector<12x128xf32> to vector<12xf32>
    %104 = vector.shape_cast %103 : vector<12xf32> to vector<12x1xf32>
    %cst_44 = arith.constant 1.280000e+02 : f32
    %105 = vector.broadcast %cst_44 : f32 to vector<12x1xf32>
    %106 = arith.divf %104, %105 : vector<12x1xf32>
    %107 = vector.broadcast %99 : vector<12x1xf32> to vector<12x128xf32>
    %108 = arith.subf %93, %107 : vector<12x128xf32>
    %cst_45 = arith.constant 9.99999997E-7 : f32
    %109 = vector.broadcast %cst_45 : f32 to vector<12x1xf32>
    %110 = arith.addf %106, %109 : vector<12x1xf32>
    %111 = math.rsqrt %110 : vector<12x1xf32>
    %112 = vector.broadcast %111 : vector<12x1xf32> to vector<12x128xf32>
    %113 = arith.mulf %108, %112 : vector<12x128xf32>
    %114 = vector.broadcast %94 : vector<1x128xf32> to vector<12x128xf32>
    %115 = arith.mulf %113, %114 : vector<12x128xf32>
    %116 = vector.broadcast %95 : vector<1x128xf32> to vector<12x128xf32>
    %117 = arith.addf %115, %116 : vector<12x128xf32>
    %c0_46 = arith.constant 0 : index
    %c0_47 = arith.constant 0 : index
    %118 = vector.load %arg8[%c0_46, %c0_47] : memref<128x256xf32, #tpu.memory_space<vmem>>, vector<128x256xf32>
    %cst_48 = arith.constant dense<0.000000e+00> : vector<12x256xf32>
    %119 = tpu.matmul %117, %118, %cst_48 {dimension_numbers = #tpu.dot_dimension_numbers<[1], [0], [0], [1], [0, 0, 1, 1], [], []>} : vector<12x128xf32>, vector<128x256xf32>, vector<12x256xf32> -> vector<12x256xf32>
    %c0_49 = arith.constant 0 : index
    %c0_50 = arith.constant 0 : index
    %120 = vector.load %arg9[%c0_49, %c0_50] : memref<1x256xf32, #tpu.memory_space<vmem>>, vector<1x256xf32>
    %121 = vector.broadcast %120 : vector<1x256xf32> to vector<12x256xf32>
    %122 = arith.addf %119, %121 : vector<12x256xf32>
    %cst_51 = arith.constant 0.000000e+00 : f32
    %123 = vector.broadcast %cst_51 : f32 to vector<12x256xf32>
    %124 = arith.maximumf %122, %123 : vector<12x256xf32>
    %c0_52 = arith.constant 0 : index
    %c0_53 = arith.constant 0 : index
    %125 = vector.load %arg10[%c0_52, %c0_53] : memref<256x128xf32, #tpu.memory_space<vmem>>, vector<256x128xf32>
    %cst_54 = arith.constant dense<0.000000e+00> : vector<12x128xf32>
    %126 = tpu.matmul %124, %125, %cst_54 {dimension_numbers = #tpu.dot_dimension_numbers<[1], [0], [0], [1], [0, 0, 1, 1], [], []>} : vector<12x256xf32>, vector<256x128xf32>, vector<12x128xf32> -> vector<12x128xf32>
    %c0_55 = arith.constant 0 : index
    %c0_56 = arith.constant 0 : index
    %127 = vector.load %arg11[%c0_55, %c0_56] : memref<1x128xf32, #tpu.memory_space<vmem>>, vector<1x128xf32>
    %128 = vector.broadcast %127 : vector<1x128xf32> to vector<12x128xf32>
    %129 = arith.addf %126, %128 : vector<12x128xf32>
    %130 = arith.addf %117, %129 : vector<12x128xf32>
    %c0_57 = arith.constant 0 : index
    %c0_58 = arith.constant 0 : index
    %131 = vector.load %arg12[%c0_57, %c0_58] : memref<1x128xf32, #tpu.memory_space<vmem>>, vector<1x128xf32>
    %c0_59 = arith.constant 0 : index
    %c0_60 = arith.constant 0 : index
    %132 = vector.load %arg13[%c0_59, %c0_60] : memref<1x128xf32, #tpu.memory_space<vmem>>, vector<1x128xf32>
    %cst_61 = arith.constant dense<0.000000e+00> : vector<12xf32>
    %133 = vector.multi_reduction <add>, %130, %cst_61 [1] : vector<12x128xf32> to vector<12xf32>
    %134 = vector.shape_cast %133 : vector<12xf32> to vector<12x1xf32>
    %cst_62 = arith.constant 1.280000e+02 : f32
    %135 = vector.broadcast %cst_62 : f32 to vector<12x1xf32>
    %136 = arith.divf %134, %135 : vector<12x1xf32>
    %137 = vector.broadcast %136 : vector<12x1xf32> to vector<12x128xf32>
    %138 = arith.subf %130, %137 : vector<12x128xf32>
    %139 = arith.mulf %138, %138 : vector<12x128xf32>
    %cst_63 = arith.constant dense<0.000000e+00> : vector<12xf32>
    %140 = vector.multi_reduction <add>, %139, %cst_63 [1] : vector<12x128xf32> to vector<12xf32>
    %141 = vector.shape_cast %140 : vector<12xf32> to vector<12x1xf32>
    %cst_64 = arith.constant 1.280000e+02 : f32
    %142 = vector.broadcast %cst_64 : f32 to vector<12x1xf32>
    %143 = arith.divf %141, %142 : vector<12x1xf32>
    %144 = vector.broadcast %136 : vector<12x1xf32> to vector<12x128xf32>
    %145 = arith.subf %130, %144 : vector<12x128xf32>
    %cst_65 = arith.constant 9.99999997E-7 : f32
    %146 = vector.broadcast %cst_65 : f32 to vector<12x1xf32>
    %147 = arith.addf %143, %146 : vector<12x1xf32>
    %148 = math.rsqrt %147 : vector<12x1xf32>
    %149 = vector.broadcast %148 : vector<12x1xf32> to vector<12x128xf32>
    %150 = arith.mulf %145, %149 : vector<12x128xf32>
    %151 = vector.broadcast %131 : vector<1x128xf32> to vector<12x128xf32>
    %152 = arith.mulf %150, %151 : vector<12x128xf32>
    %153 = vector.broadcast %132 : vector<1x128xf32> to vector<12x128xf32>
    %154 = arith.addf %152, %153 : vector<12x128xf32>
    %c0_66 = arith.constant 0 : index
    %c0_67 = arith.constant 0 : index
    %c0_68 = arith.constant 0 : index
    %155 = vector.load %arg14[%c0_66, %c0_67, %c0_68] : memref<1x12x128xf32, #tpu.memory_space<vmem>>, vector<1x12x128xf32>
    %156 = vector.shape_cast %155 : vector<1x12x128xf32> to vector<12x128xf32>
    %157 = vector.shape_cast %154 : vector<12x128xf32> to vector<1x12x128xf32>
    tpu.vector_store %arg14[%c0_66, %c0_67, %c0_68], %157 {strides = array<i32>} : memref<1x12x128xf32, #tpu.memory_space<vmem>>, vector<1x12x128xf32>,
    return
  }
  func.func @transform_0(%arg0: i32) -> (i32, i32, i32) {
    %c0_i32 = arith.constant 0 : i32
    %c0_i32_0 = arith.constant 0 : i32
    %c0_i32_1 = arith.constant 0 : i32
    return %arg0, %c0_i32, %c0_i32_0 : i32, i32, i32
  }
  func.func @transform_1(%arg0: i32) -> (i32, i32) {
    %c0_i32 = arith.constant 0 : i32
    %c0_i32_0 = arith.constant 0 : i32
    %c0_i32_1 = arith.constant 0 : i32
    return %c0_i32, %c0_i32_0 : i32, i32
  }
  func.func @transform_2(%arg0: i32) -> (i32, i32) {
    %c0_i32 = arith.constant 0 : i32
    %c0_i32_0 = arith.constant 0 : i32
    %c0_i32_1 = arith.constant 0 : i32
    return %c0_i32, %c0_i32_0 : i32, i32
  }
  func.func @transform_3(%arg0: i32) -> (i32, i32) {
    %c0_i32 = arith.constant 0 : i32
    %c0_i32_0 = arith.constant 0 : i32
    %c0_i32_1 = arith.constant 0 : i32
    return %c0_i32, %c0_i32_0 : i32, i32
  }
  func.func @transform_4(%arg0: i32) -> (i32, i32) {
    %c0_i32 = arith.constant 0 : i32
    %c0_i32_0 = arith.constant 0 : i32
    %c0_i32_1 = arith.constant 0 : i32
    return %c0_i32, %c0_i32_0 : i32, i32
  }
  func.func @transform_5(%arg0: i32) -> (i32, i32) {
    %c0_i32 = arith.constant 0 : i32
    %c0_i32_0 = arith.constant 0 : i32
    %c0_i32_1 = arith.constant 0 : i32
    return %c0_i32, %c0_i32_0 : i32, i32
  }
  func.func @transform_6(%arg0: i32) -> (i32, i32) {
    %c0_i32 = arith.constant 0 : i32
    %c0_i32_0 = arith.constant 0 : i32
    %c0_i32_1 = arith.constant 0 : i32
    return %c0_i32, %c0_i32_0 : i32, i32
  }
  func.func @transform_7(%arg0: i32) -> (i32, i32) {
    %c0_i32 = arith.constant 0 : i32
    %c0_i32_0 = arith.constant 0 : i32
    %c0_i32_1 = arith.constant 0 : i32
    return %c0_i32, %c0_i32_0 : i32, i32
  }
  func.func @transform_8(%arg0: i32) -> (i32, i32) {
    %c0_i32 = arith.constant 0 : i32
    %c0_i32_0 = arith.constant 0 : i32
    %c0_i32_1 = arith.constant 0 : i32
    return %c0_i32, %c0_i32_0 : i32, i32
  }
  func.func @transform_9(%arg0: i32) -> (i32, i32) {
    %c0_i32 = arith.constant 0 : i32
    %c0_i32_0 = arith.constant 0 : i32
    %c0_i32_1 = arith.constant 0 : i32
    return %c0_i32, %c0_i32_0 : i32, i32
  }
  func.func @transform_10(%arg0: i32) -> (i32, i32) {
    %c0_i32 = arith.constant 0 : i32
    %c0_i32_0 = arith.constant 0 : i32
    %c0_i32_1 = arith.constant 0 : i32
    return %c0_i32, %c0_i32_0 : i32, i32
  }
  func.func @transform_11(%arg0: i32) -> (i32, i32) {
    %c0_i32 = arith.constant 0 : i32
    %c0_i32_0 = arith.constant 0 : i32
    %c0_i32_1 = arith.constant 0 : i32
    return %c0_i32, %c0_i32_0 : i32, i32
  }
  func.func @transform_12(%arg0: i32) -> (i32, i32) {
    %c0_i32 = arith.constant 0 : i32
    %c0_i32_0 = arith.constant 0 : i32
    %c0_i32_1 = arith.constant 0 : i32
    return %c0_i32, %c0_i32_0 : i32, i32
  }
  func.func @transform_13(%arg0: i32) -> (i32, i32, i32) {
    %c0_i32 = arith.constant 0 : i32
    %c0_i32_0 = arith.constant 0 : i32
    %c0_i32_1 = arith.constant 0 : i32
    return %arg0, %c0_i32, %c0_i32_0 : i32, i32, i32
  }
}

module attributes {stable_mosaic.version = 11 : i64} {
  func.func @_grouping_layer_kernel(%arg0: i32, %arg1: memref<1x12x128xf32, #tpu.memory_space<vmem>>, %arg2: memref<128x128xf32, #tpu.memory_space<vmem>>, %arg3: memref<128x256xf32, #tpu.memory_space<vmem>>, %arg4: memref<128x128xf32, #tpu.memory_space<vmem>>, %arg5: memref<1x128xf32, #tpu.memory_space<vmem>>, %arg6: memref<1x128xf32, #tpu.memory_space<vmem>>, %arg7: memref<1x4x128xf32, #tpu.memory_space<vmem>>) attributes {dimension_semantics = [#tpu.dimension_semantics<parallel>], iteration_bounds = array<i64: 2>, scalar_prefetch = 0 : i64, scratch_operands = 0 : i64, tpu.core_type = #tpu.core_type<tc>, window_params = [{transform_indices = @transform_0, window_bounds = array<i64: 1, 12, 128>}, {pipeline_mode = #tpu.pipeline_mode<synchronous>, transform_indices = @transform_1, window_bounds = array<i64: 128, 128>}, {pipeline_mode = #tpu.pipeline_mode<synchronous>, transform_indices = @transform_2, window_bounds = array<i64: 128, 256>}, {pipeline_mode = #tpu.pipeline_mode<synchronous>, transform_indices = @transform_3, window_bounds = array<i64: 128, 128>}, {pipeline_mode = #tpu.pipeline_mode<synchronous>, transform_indices = @transform_4, window_bounds = array<i64: 1, 128>}, {pipeline_mode = #tpu.pipeline_mode<synchronous>, transform_indices = @transform_5, window_bounds = array<i64: 1, 128>}, {transform_indices = @transform_6, window_bounds = array<i64: 1, 4, 128>}]} {
    %c0 = arith.constant 0 : index
    %c0_0 = arith.constant 0 : index
    %c0_1 = arith.constant 0 : index
    %0 = vector.load %arg1[%c0, %c0_0, %c0_1] : memref<1x12x128xf32, #tpu.memory_space<vmem>>, vector<1x12x128xf32>
    %1 = vector.shape_cast %0 : vector<1x12x128xf32> to vector<12x128xf32>
    %2 = vector.extract_strided_slice %1 {offsets = [0, 0], sizes = [4, 128], strides = [1, 1]} : vector<12x128xf32> to vector<4x128xf32>
    %3 = vector.extract_strided_slice %1 {offsets = [4, 0], sizes = [8, 128], strides = [1, 1]} : vector<12x128xf32> to vector<8x128xf32>
    %c0_2 = arith.constant 0 : index
    %c0_3 = arith.constant 0 : index
    %4 = vector.load %arg2[%c0_2, %c0_3] : memref<128x128xf32, #tpu.memory_space<vmem>>, vector<128x128xf32>
    %cst = arith.constant dense<0.000000e+00> : vector<4x128xf32>
    %5 = tpu.matmul %2, %4, %cst {dimension_numbers = #tpu.dot_dimension_numbers<[1], [0], [0], [1], [0, 0, 1, 1], [], []>} : vector<4x128xf32>, vector<128x128xf32>, vector<4x128xf32> -> vector<4x128xf32>
    %c0_4 = arith.constant 0 : index
    %c0_5 = arith.constant 0 : index
    %6 = vector.load %arg3[%c0_4, %c0_5] : memref<128x256xf32, #tpu.memory_space<vmem>>, vector<128x256xf32>
    %cst_6 = arith.constant dense<0.000000e+00> : vector<8x256xf32>
    %7 = tpu.matmul %3, %6, %cst_6 {dimension_numbers = #tpu.dot_dimension_numbers<[1], [0], [0], [1], [0, 0, 1, 1], [], []>} : vector<8x128xf32>, vector<128x256xf32>, vector<8x256xf32> -> vector<8x256xf32>
    %8 = vector.extract_strided_slice %7 {offsets = [0, 0], sizes = [8, 128], strides = [1, 1]} : vector<8x256xf32> to vector<8x128xf32>
    %9 = vector.extract_strided_slice %7 {offsets = [0, 128], sizes = [8, 128], strides = [1, 1]} : vector<8x256xf32> to vector<8x128xf32>
    %10 = tpu.transpose %8, [1, 0] : vector<8x128xf32> -> vector<128x8xf32>
    %cst_7 = arith.constant dense<0.000000e+00> : vector<4x8xf32>
    %11 = tpu.matmul %5, %10, %cst_7 {dimension_numbers = #tpu.dot_dimension_numbers<[1], [0], [0], [1], [0, 0, 1, 1], [], []>} : vector<4x128xf32>, vector<128x8xf32>, vector<4x8xf32> -> vector<4x8xf32>
    %cst_8 = arith.constant dense<0xFF800000> : vector<8xf32>
    %12 = vector.multi_reduction <maximumf>, %11, %cst_8 [0] : vector<4x8xf32> to vector<8xf32>
    %13 = vector.shape_cast %12 : vector<8xf32> to vector<1x8xf32>
    %14 = vector.broadcast %13 : vector<1x8xf32> to vector<4x8xf32>
    %15 = arith.subf %11, %14 : vector<4x8xf32>
    %16 = math.exp %15 : vector<4x8xf32>
    %cst_9 = arith.constant dense<0.000000e+00> : vector<8xf32>
    %17 = vector.multi_reduction <add>, %16, %cst_9 [0] : vector<4x8xf32> to vector<8xf32>
    %18 = vector.shape_cast %17 : vector<8xf32> to vector<1x8xf32>
    %19 = tpu.reciprocal %18 {approx = true} : vector<1x8xf32> -> vector<1x8xf32>
    %20 = vector.broadcast %19 : vector<1x8xf32> to vector<4x8xf32>
    %21 = arith.mulf %16, %20 : vector<4x8xf32>
    %22 = tpu.iota {dimensions = array<i32: 0>} : vector<4x8xi32>
    %23 = vector.broadcast %13 : vector<1x8xf32> to vector<4x8xf32>
    %24 = arith.cmpf oeq, %11, %23 : vector<4x8xf32>
    %c4_i32 = arith.constant 4 : i32
    %25 = vector.broadcast %c4_i32 : i32 to vector<4x8xi32>
    %26 = arith.select %24, %22, %25 : vector<4x8xi1>, vector<4x8xi32>
    %cst_10 = arith.constant dense<2147483647> : vector<8xi32>
    %27 = vector.multi_reduction <minsi>, %26, %cst_10 [0] : vector<4x8xi32> to vector<8xi32>
    %28 = vector.shape_cast %27 : vector<8xi32> to vector<1x8xi32>
    %29 = vector.broadcast %28 : vector<1x8xi32> to vector<4x8xi32>
    %30 = arith.cmpi eq, %22, %29 : vector<4x8xi32>
    %31 = arith.extui %30 : vector<4x8xi1> to vector<4x8xi32>
    %32 = arith.sitofp %31 : vector<4x8xi32> to vector<4x8xf32>
    %33 = arith.subf %32, %21 : vector<4x8xf32>
    %34 = arith.addf %33, %21 : vector<4x8xf32>
    %cst_11 = arith.constant dense<0.000000e+00> : vector<4x128xf32>
    %35 = tpu.matmul %34, %9, %cst_11 {dimension_numbers = #tpu.dot_dimension_numbers<[1], [0], [0], [1], [0, 0, 1, 1], [], []>} : vector<4x8xf32>, vector<8x128xf32>, vector<4x128xf32> -> vector<4x128xf32>
    %c0_12 = arith.constant 0 : index
    %c0_13 = arith.constant 0 : index
    %36 = vector.load %arg4[%c0_12, %c0_13] : memref<128x128xf32, #tpu.memory_space<vmem>>, vector<128x128xf32>
    %cst_14 = arith.constant dense<0.000000e+00> : vector<4x128xf32>
    %37 = tpu.matmul %35, %36, %cst_14 {dimension_numbers = #tpu.dot_dimension_numbers<[1], [0], [0], [1], [0, 0, 1, 1], [], []>} : vector<4x128xf32>, vector<128x128xf32>, vector<4x128xf32> -> vector<4x128xf32>
    %38 = arith.addf %37, %2 : vector<4x128xf32>
    %c0_15 = arith.constant 0 : index
    %c0_16 = arith.constant 0 : index
    %39 = vector.load %arg5[%c0_15, %c0_16] : memref<1x128xf32, #tpu.memory_space<vmem>>, vector<1x128xf32>
    %c0_17 = arith.constant 0 : index
    %c0_18 = arith.constant 0 : index
    %40 = vector.load %arg6[%c0_17, %c0_18] : memref<1x128xf32, #tpu.memory_space<vmem>>, vector<1x128xf32>
    %cst_19 = arith.constant dense<0.000000e+00> : vector<4xf32>
    %41 = vector.multi_reduction <add>, %38, %cst_19 [1] : vector<4x128xf32> to vector<4xf32>
    %42 = vector.shape_cast %41 : vector<4xf32> to vector<4x1xf32>
    %cst_20 = arith.constant 1.280000e+02 : f32
    %43 = vector.broadcast %cst_20 : f32 to vector<4x1xf32>
    %44 = arith.divf %42, %43 : vector<4x1xf32>
    %45 = vector.broadcast %44 : vector<4x1xf32> to vector<4x128xf32>
    %46 = arith.subf %38, %45 : vector<4x128xf32>
    %47 = arith.mulf %46, %46 : vector<4x128xf32>
    %cst_21 = arith.constant dense<0.000000e+00> : vector<4xf32>
    %48 = vector.multi_reduction <add>, %47, %cst_21 [1] : vector<4x128xf32> to vector<4xf32>
    %49 = vector.shape_cast %48 : vector<4xf32> to vector<4x1xf32>
    %cst_22 = arith.constant 1.280000e+02 : f32
    %50 = vector.broadcast %cst_22 : f32 to vector<4x1xf32>
    %51 = arith.divf %49, %50 : vector<4x1xf32>
    %52 = vector.broadcast %44 : vector<4x1xf32> to vector<4x128xf32>
    %53 = arith.subf %38, %52 : vector<4x128xf32>
    %cst_23 = arith.constant 9.99999997E-7 : f32
    %54 = vector.broadcast %cst_23 : f32 to vector<4x1xf32>
    %55 = arith.addf %51, %54 : vector<4x1xf32>
    %56 = math.rsqrt %55 : vector<4x1xf32>
    %57 = vector.broadcast %56 : vector<4x1xf32> to vector<4x128xf32>
    %58 = arith.mulf %53, %57 : vector<4x128xf32>
    %59 = vector.broadcast %39 : vector<1x128xf32> to vector<4x128xf32>
    %60 = arith.mulf %58, %59 : vector<4x128xf32>
    %61 = vector.broadcast %40 : vector<1x128xf32> to vector<4x128xf32>
    %62 = arith.addf %60, %61 : vector<4x128xf32>
    %c0_24 = arith.constant 0 : index
    %c0_25 = arith.constant 0 : index
    %c0_26 = arith.constant 0 : index
    %63 = vector.load %arg7[%c0_24, %c0_25, %c0_26] : memref<1x4x128xf32, #tpu.memory_space<vmem>>, vector<1x4x128xf32>
    %64 = vector.shape_cast %63 : vector<1x4x128xf32> to vector<4x128xf32>
    %65 = vector.shape_cast %62 : vector<4x128xf32> to vector<1x4x128xf32>
    tpu.vector_store %arg7[%c0_24, %c0_25, %c0_26], %65 {strides = array<i32>} : memref<1x4x128xf32, #tpu.memory_space<vmem>>, vector<1x4x128xf32>,
    return
  }
  func.func @transform_0(%arg0: i32) -> (i32, i32, i32) {
    %c0_i32 = arith.constant 0 : i32
    %c0_i32_0 = arith.constant 0 : i32
    %c0_i32_1 = arith.constant 0 : i32
    return %arg0, %c0_i32, %c0_i32_0 : i32, i32, i32
  }
  func.func @transform_1(%arg0: i32) -> (i32, i32) {
    %c0_i32 = arith.constant 0 : i32
    %c0_i32_0 = arith.constant 0 : i32
    %c0_i32_1 = arith.constant 0 : i32
    return %c0_i32, %c0_i32_0 : i32, i32
  }
  func.func @transform_2(%arg0: i32) -> (i32, i32) {
    %c0_i32 = arith.constant 0 : i32
    %c0_i32_0 = arith.constant 0 : i32
    %c0_i32_1 = arith.constant 0 : i32
    return %c0_i32, %c0_i32_0 : i32, i32
  }
  func.func @transform_3(%arg0: i32) -> (i32, i32) {
    %c0_i32 = arith.constant 0 : i32
    %c0_i32_0 = arith.constant 0 : i32
    %c0_i32_1 = arith.constant 0 : i32
    return %c0_i32, %c0_i32_0 : i32, i32
  }
  func.func @transform_4(%arg0: i32) -> (i32, i32) {
    %c0_i32 = arith.constant 0 : i32
    %c0_i32_0 = arith.constant 0 : i32
    %c0_i32_1 = arith.constant 0 : i32
    return %c0_i32, %c0_i32_0 : i32, i32
  }
  func.func @transform_5(%arg0: i32) -> (i32, i32) {
    %c0_i32 = arith.constant 0 : i32
    %c0_i32_0 = arith.constant 0 : i32
    %c0_i32_1 = arith.constant 0 : i32
    return %c0_i32, %c0_i32_0 : i32, i32
  }
  func.func @transform_6(%arg0: i32) -> (i32, i32, i32) {
    %c0_i32 = arith.constant 0 : i32
    %c0_i32_0 = arith.constant 0 : i32
    %c0_i32_1 = arith.constant 0 : i32
    return %arg0, %c0_i32, %c0_i32_0 : i32, i32, i32
  }
}

module attributes {stable_mosaic.version = 11 : i64} {
  func.func @_encoder_layer_kernel(%arg0: i32, %arg1: memref<1x4x128xf32, #tpu.memory_space<vmem>>, %arg2: memref<128x384xf32, #tpu.memory_space<vmem>>, %arg3: memref<1x384xf32, #tpu.memory_space<vmem>>, %arg4: memref<128x128xf32, #tpu.memory_space<vmem>>, %arg5: memref<1x128xf32, #tpu.memory_space<vmem>>, %arg6: memref<1x128xf32, #tpu.memory_space<vmem>>, %arg7: memref<1x128xf32, #tpu.memory_space<vmem>>, %arg8: memref<128x256xf32, #tpu.memory_space<vmem>>, %arg9: memref<1x256xf32, #tpu.memory_space<vmem>>, %arg10: memref<256x128xf32, #tpu.memory_space<vmem>>, %arg11: memref<1x128xf32, #tpu.memory_space<vmem>>, %arg12: memref<1x128xf32, #tpu.memory_space<vmem>>, %arg13: memref<1x128xf32, #tpu.memory_space<vmem>>, %arg14: memref<1x4x128xf32, #tpu.memory_space<vmem>>) attributes {dimension_semantics = [#tpu.dimension_semantics<parallel>], iteration_bounds = array<i64: 2>, scalar_prefetch = 0 : i64, scratch_operands = 0 : i64, tpu.core_type = #tpu.core_type<tc>, window_params = [{transform_indices = @transform_0, window_bounds = array<i64: 1, 4, 128>}, {pipeline_mode = #tpu.pipeline_mode<synchronous>, transform_indices = @transform_1, window_bounds = array<i64: 128, 384>}, {pipeline_mode = #tpu.pipeline_mode<synchronous>, transform_indices = @transform_2, window_bounds = array<i64: 1, 384>}, {pipeline_mode = #tpu.pipeline_mode<synchronous>, transform_indices = @transform_3, window_bounds = array<i64: 128, 128>}, {pipeline_mode = #tpu.pipeline_mode<synchronous>, transform_indices = @transform_4, window_bounds = array<i64: 1, 128>}, {pipeline_mode = #tpu.pipeline_mode<synchronous>, transform_indices = @transform_5, window_bounds = array<i64: 1, 128>}, {pipeline_mode = #tpu.pipeline_mode<synchronous>, transform_indices = @transform_6, window_bounds = array<i64: 1, 128>}, {pipeline_mode = #tpu.pipeline_mode<synchronous>, transform_indices = @transform_7, window_bounds = array<i64: 128, 256>}, {pipeline_mode = #tpu.pipeline_mode<synchronous>, transform_indices = @transform_8, window_bounds = array<i64: 1, 256>}, {pipeline_mode = #tpu.pipeline_mode<synchronous>, transform_indices = @transform_9, window_bounds = array<i64: 256, 128>}, {pipeline_mode = #tpu.pipeline_mode<synchronous>, transform_indices = @transform_10, window_bounds = array<i64: 1, 128>}, {pipeline_mode = #tpu.pipeline_mode<synchronous>, transform_indices = @transform_11, window_bounds = array<i64: 1, 128>}, {pipeline_mode = #tpu.pipeline_mode<synchronous>, transform_indices = @transform_12, window_bounds = array<i64: 1, 128>}, {transform_indices = @transform_13, window_bounds = array<i64: 1, 4, 128>}]} {
    %c0 = arith.constant 0 : index
    %c0_0 = arith.constant 0 : index
    %c0_1 = arith.constant 0 : index
    %0 = vector.load %arg1[%c0, %c0_0, %c0_1] : memref<1x4x128xf32, #tpu.memory_space<vmem>>, vector<1x4x128xf32>
    %1 = vector.shape_cast %0 : vector<1x4x128xf32> to vector<4x128xf32>
    %c0_2 = arith.constant 0 : index
    %c0_3 = arith.constant 0 : index
    %2 = vector.load %arg2[%c0_2, %c0_3] : memref<128x384xf32, #tpu.memory_space<vmem>>, vector<128x384xf32>
    %cst = arith.constant dense<0.000000e+00> : vector<4x384xf32>
    %3 = tpu.matmul %1, %2, %cst {dimension_numbers = #tpu.dot_dimension_numbers<[1], [0], [0], [1], [0, 0, 1, 1], [], []>} : vector<4x128xf32>, vector<128x384xf32>, vector<4x384xf32> -> vector<4x384xf32>
    %c0_4 = arith.constant 0 : index
    %c0_5 = arith.constant 0 : index
    %4 = vector.load %arg3[%c0_4, %c0_5] : memref<1x384xf32, #tpu.memory_space<vmem>>, vector<1x384xf32>
    %5 = vector.broadcast %4 : vector<1x384xf32> to vector<4x384xf32>
    %6 = arith.addf %3, %5 : vector<4x384xf32>
    %7 = vector.extract_strided_slice %6 {offsets = [0, 0], sizes = [4, 32], strides = [1, 1]} : vector<4x384xf32> to vector<4x32xf32>
    %8 = vector.extract_strided_slice %6 {offsets = [0, 128], sizes = [4, 32], strides = [1, 1]} : vector<4x384xf32> to vector<4x32xf32>
    %9 = vector.extract_strided_slice %6 {offsets = [0, 256], sizes = [4, 32], strides = [1, 1]} : vector<4x384xf32> to vector<4x32xf32>
    %10 = tpu.transpose %8, [1, 0] : vector<4x32xf32> -> vector<32x4xf32>
    %cst_6 = arith.constant dense<0.000000e+00> : vector<4x4xf32>
    %11 = tpu.matmul %7, %10, %cst_6 {dimension_numbers = #tpu.dot_dimension_numbers<[1], [0], [0], [1], [0, 0, 1, 1], [], []>} : vector<4x32xf32>, vector<32x4xf32>, vector<4x4xf32> -> vector<4x4xf32>
    %cst_7 = arith.constant 0.176776692 : f32
    %12 = vector.broadcast %cst_7 : f32 to vector<4x4xf32>
    %13 = arith.mulf %11, %12 : vector<4x4xf32>
    %cst_8 = arith.constant dense<0xFF800000> : vector<4xf32>
    %14 = vector.multi_reduction <maximumf>, %13, %cst_8 [1] : vector<4x4xf32> to vector<4xf32>
    %15 = vector.shape_cast %14 : vector<4xf32> to vector<4x1xf32>
    %16 = vector.broadcast %15 : vector<4x1xf32> to vector<4x4xf32>
    %17 = arith.subf %13, %16 : vector<4x4xf32>
    %18 = math.exp %17 : vector<4x4xf32>
    %cst_9 = arith.constant dense<0.000000e+00> : vector<4xf32>
    %19 = vector.multi_reduction <add>, %18, %cst_9 [1] : vector<4x4xf32> to vector<4xf32>
    %20 = vector.shape_cast %19 : vector<4xf32> to vector<4x1xf32>
    %21 = tpu.reciprocal %20 {approx = true} : vector<4x1xf32> -> vector<4x1xf32>
    %22 = vector.broadcast %21 : vector<4x1xf32> to vector<4x4xf32>
    %23 = arith.mulf %18, %22 : vector<4x4xf32>
    %cst_10 = arith.constant dense<0.000000e+00> : vector<4x32xf32>
    %24 = tpu.matmul %23, %9, %cst_10 {dimension_numbers = #tpu.dot_dimension_numbers<[1], [0], [0], [1], [0, 0, 1, 1], [], []>} : vector<4x4xf32>, vector<4x32xf32>, vector<4x32xf32> -> vector<4x32xf32>
    %c0_11 = arith.constant 0 : index
    %c0_12 = arith.constant 0 : index
    %25 = vector.load %arg4[%c0_11, %c0_12] : memref<128x128xf32, #tpu.memory_space<vmem>>, vector<32x128xf32>
    %cst_13 = arith.constant dense<0.000000e+00> : vector<4x128xf32>
    %26 = tpu.matmul %24, %25, %cst_13 {dimension_numbers = #tpu.dot_dimension_numbers<[1], [0], [0], [1], [0, 0, 1, 1], [], []>} : vector<4x32xf32>, vector<32x128xf32>, vector<4x128xf32> -> vector<4x128xf32>
    %27 = vector.extract_strided_slice %6 {offsets = [0, 32], sizes = [4, 32], strides = [1, 1]} : vector<4x384xf32> to vector<4x32xf32>
    %28 = vector.extract_strided_slice %6 {offsets = [0, 160], sizes = [4, 32], strides = [1, 1]} : vector<4x384xf32> to vector<4x32xf32>
    %29 = vector.extract_strided_slice %6 {offsets = [0, 288], sizes = [4, 32], strides = [1, 1]} : vector<4x384xf32> to vector<4x32xf32>
    %30 = tpu.transpose %28, [1, 0] : vector<4x32xf32> -> vector<32x4xf32>
    %cst_14 = arith.constant dense<0.000000e+00> : vector<4x4xf32>
    %31 = tpu.matmul %27, %30, %cst_14 {dimension_numbers = #tpu.dot_dimension_numbers<[1], [0], [0], [1], [0, 0, 1, 1], [], []>} : vector<4x32xf32>, vector<32x4xf32>, vector<4x4xf32> -> vector<4x4xf32>
    %cst_15 = arith.constant 0.176776692 : f32
    %32 = vector.broadcast %cst_15 : f32 to vector<4x4xf32>
    %33 = arith.mulf %31, %32 : vector<4x4xf32>
    %cst_16 = arith.constant dense<0xFF800000> : vector<4xf32>
    %34 = vector.multi_reduction <maximumf>, %33, %cst_16 [1] : vector<4x4xf32> to vector<4xf32>
    %35 = vector.shape_cast %34 : vector<4xf32> to vector<4x1xf32>
    %36 = vector.broadcast %35 : vector<4x1xf32> to vector<4x4xf32>
    %37 = arith.subf %33, %36 : vector<4x4xf32>
    %38 = math.exp %37 : vector<4x4xf32>
    %cst_17 = arith.constant dense<0.000000e+00> : vector<4xf32>
    %39 = vector.multi_reduction <add>, %38, %cst_17 [1] : vector<4x4xf32> to vector<4xf32>
    %40 = vector.shape_cast %39 : vector<4xf32> to vector<4x1xf32>
    %41 = tpu.reciprocal %40 {approx = true} : vector<4x1xf32> -> vector<4x1xf32>
    %42 = vector.broadcast %41 : vector<4x1xf32> to vector<4x4xf32>
    %43 = arith.mulf %38, %42 : vector<4x4xf32>
    %cst_18 = arith.constant dense<0.000000e+00> : vector<4x32xf32>
    %44 = tpu.matmul %43, %29, %cst_18 {dimension_numbers = #tpu.dot_dimension_numbers<[1], [0], [0], [1], [0, 0, 1, 1], [], []>} : vector<4x4xf32>, vector<4x32xf32>, vector<4x32xf32> -> vector<4x32xf32>
    %c32 = arith.constant 32 : index
    %c0_19 = arith.constant 0 : index
    %45 = vector.load %arg4[%c32, %c0_19] : memref<128x128xf32, #tpu.memory_space<vmem>>, vector<32x128xf32>
    %cst_20 = arith.constant dense<0.000000e+00> : vector<4x128xf32>
    %46 = tpu.matmul %44, %45, %cst_20 {dimension_numbers = #tpu.dot_dimension_numbers<[1], [0], [0], [1], [0, 0, 1, 1], [], []>} : vector<4x32xf32>, vector<32x128xf32>, vector<4x128xf32> -> vector<4x128xf32>
    %47 = arith.addf %26, %46 : vector<4x128xf32>
    %48 = vector.extract_strided_slice %6 {offsets = [0, 64], sizes = [4, 32], strides = [1, 1]} : vector<4x384xf32> to vector<4x32xf32>
    %49 = vector.extract_strided_slice %6 {offsets = [0, 192], sizes = [4, 32], strides = [1, 1]} : vector<4x384xf32> to vector<4x32xf32>
    %50 = vector.extract_strided_slice %6 {offsets = [0, 320], sizes = [4, 32], strides = [1, 1]} : vector<4x384xf32> to vector<4x32xf32>
    %51 = tpu.transpose %49, [1, 0] : vector<4x32xf32> -> vector<32x4xf32>
    %cst_21 = arith.constant dense<0.000000e+00> : vector<4x4xf32>
    %52 = tpu.matmul %48, %51, %cst_21 {dimension_numbers = #tpu.dot_dimension_numbers<[1], [0], [0], [1], [0, 0, 1, 1], [], []>} : vector<4x32xf32>, vector<32x4xf32>, vector<4x4xf32> -> vector<4x4xf32>
    %cst_22 = arith.constant 0.176776692 : f32
    %53 = vector.broadcast %cst_22 : f32 to vector<4x4xf32>
    %54 = arith.mulf %52, %53 : vector<4x4xf32>
    %cst_23 = arith.constant dense<0xFF800000> : vector<4xf32>
    %55 = vector.multi_reduction <maximumf>, %54, %cst_23 [1] : vector<4x4xf32> to vector<4xf32>
    %56 = vector.shape_cast %55 : vector<4xf32> to vector<4x1xf32>
    %57 = vector.broadcast %56 : vector<4x1xf32> to vector<4x4xf32>
    %58 = arith.subf %54, %57 : vector<4x4xf32>
    %59 = math.exp %58 : vector<4x4xf32>
    %cst_24 = arith.constant dense<0.000000e+00> : vector<4xf32>
    %60 = vector.multi_reduction <add>, %59, %cst_24 [1] : vector<4x4xf32> to vector<4xf32>
    %61 = vector.shape_cast %60 : vector<4xf32> to vector<4x1xf32>
    %62 = tpu.reciprocal %61 {approx = true} : vector<4x1xf32> -> vector<4x1xf32>
    %63 = vector.broadcast %62 : vector<4x1xf32> to vector<4x4xf32>
    %64 = arith.mulf %59, %63 : vector<4x4xf32>
    %cst_25 = arith.constant dense<0.000000e+00> : vector<4x32xf32>
    %65 = tpu.matmul %64, %50, %cst_25 {dimension_numbers = #tpu.dot_dimension_numbers<[1], [0], [0], [1], [0, 0, 1, 1], [], []>} : vector<4x4xf32>, vector<4x32xf32>, vector<4x32xf32> -> vector<4x32xf32>
    %c64 = arith.constant 64 : index
    %c0_26 = arith.constant 0 : index
    %66 = vector.load %arg4[%c64, %c0_26] : memref<128x128xf32, #tpu.memory_space<vmem>>, vector<32x128xf32>
    %cst_27 = arith.constant dense<0.000000e+00> : vector<4x128xf32>
    %67 = tpu.matmul %65, %66, %cst_27 {dimension_numbers = #tpu.dot_dimension_numbers<[1], [0], [0], [1], [0, 0, 1, 1], [], []>} : vector<4x32xf32>, vector<32x128xf32>, vector<4x128xf32> -> vector<4x128xf32>
    %68 = arith.addf %47, %67 : vector<4x128xf32>
    %69 = vector.extract_strided_slice %6 {offsets = [0, 96], sizes = [4, 32], strides = [1, 1]} : vector<4x384xf32> to vector<4x32xf32>
    %70 = vector.extract_strided_slice %6 {offsets = [0, 224], sizes = [4, 32], strides = [1, 1]} : vector<4x384xf32> to vector<4x32xf32>
    %71 = vector.extract_strided_slice %6 {offsets = [0, 352], sizes = [4, 32], strides = [1, 1]} : vector<4x384xf32> to vector<4x32xf32>
    %72 = tpu.transpose %70, [1, 0] : vector<4x32xf32> -> vector<32x4xf32>
    %cst_28 = arith.constant dense<0.000000e+00> : vector<4x4xf32>
    %73 = tpu.matmul %69, %72, %cst_28 {dimension_numbers = #tpu.dot_dimension_numbers<[1], [0], [0], [1], [0, 0, 1, 1], [], []>} : vector<4x32xf32>, vector<32x4xf32>, vector<4x4xf32> -> vector<4x4xf32>
    %cst_29 = arith.constant 0.176776692 : f32
    %74 = vector.broadcast %cst_29 : f32 to vector<4x4xf32>
    %75 = arith.mulf %73, %74 : vector<4x4xf32>
    %cst_30 = arith.constant dense<0xFF800000> : vector<4xf32>
    %76 = vector.multi_reduction <maximumf>, %75, %cst_30 [1] : vector<4x4xf32> to vector<4xf32>
    %77 = vector.shape_cast %76 : vector<4xf32> to vector<4x1xf32>
    %78 = vector.broadcast %77 : vector<4x1xf32> to vector<4x4xf32>
    %79 = arith.subf %75, %78 : vector<4x4xf32>
    %80 = math.exp %79 : vector<4x4xf32>
    %cst_31 = arith.constant dense<0.000000e+00> : vector<4xf32>
    %81 = vector.multi_reduction <add>, %80, %cst_31 [1] : vector<4x4xf32> to vector<4xf32>
    %82 = vector.shape_cast %81 : vector<4xf32> to vector<4x1xf32>
    %83 = tpu.reciprocal %82 {approx = true} : vector<4x1xf32> -> vector<4x1xf32>
    %84 = vector.broadcast %83 : vector<4x1xf32> to vector<4x4xf32>
    %85 = arith.mulf %80, %84 : vector<4x4xf32>
    %cst_32 = arith.constant dense<0.000000e+00> : vector<4x32xf32>
    %86 = tpu.matmul %85, %71, %cst_32 {dimension_numbers = #tpu.dot_dimension_numbers<[1], [0], [0], [1], [0, 0, 1, 1], [], []>} : vector<4x4xf32>, vector<4x32xf32>, vector<4x32xf32> -> vector<4x32xf32>
    %c96 = arith.constant 96 : index
    %c0_33 = arith.constant 0 : index
    %87 = vector.load %arg4[%c96, %c0_33] : memref<128x128xf32, #tpu.memory_space<vmem>>, vector<32x128xf32>
    %cst_34 = arith.constant dense<0.000000e+00> : vector<4x128xf32>
    %88 = tpu.matmul %86, %87, %cst_34 {dimension_numbers = #tpu.dot_dimension_numbers<[1], [0], [0], [1], [0, 0, 1, 1], [], []>} : vector<4x32xf32>, vector<32x128xf32>, vector<4x128xf32> -> vector<4x128xf32>
    %89 = arith.addf %68, %88 : vector<4x128xf32>
    %c0_35 = arith.constant 0 : index
    %c0_36 = arith.constant 0 : index
    %90 = vector.load %arg5[%c0_35, %c0_36] : memref<1x128xf32, #tpu.memory_space<vmem>>, vector<1x128xf32>
    %91 = vector.broadcast %90 : vector<1x128xf32> to vector<4x128xf32>
    %92 = arith.addf %89, %91 : vector<4x128xf32>
    %93 = arith.addf %1, %92 : vector<4x128xf32>
    %c0_37 = arith.constant 0 : index
    %c0_38 = arith.constant 0 : index
    %94 = vector.load %arg6[%c0_37, %c0_38] : memref<1x128xf32, #tpu.memory_space<vmem>>, vector<1x128xf32>
    %c0_39 = arith.constant 0 : index
    %c0_40 = arith.constant 0 : index
    %95 = vector.load %arg7[%c0_39, %c0_40] : memref<1x128xf32, #tpu.memory_space<vmem>>, vector<1x128xf32>
    %cst_41 = arith.constant dense<0.000000e+00> : vector<4xf32>
    %96 = vector.multi_reduction <add>, %93, %cst_41 [1] : vector<4x128xf32> to vector<4xf32>
    %97 = vector.shape_cast %96 : vector<4xf32> to vector<4x1xf32>
    %cst_42 = arith.constant 1.280000e+02 : f32
    %98 = vector.broadcast %cst_42 : f32 to vector<4x1xf32>
    %99 = arith.divf %97, %98 : vector<4x1xf32>
    %100 = vector.broadcast %99 : vector<4x1xf32> to vector<4x128xf32>
    %101 = arith.subf %93, %100 : vector<4x128xf32>
    %102 = arith.mulf %101, %101 : vector<4x128xf32>
    %cst_43 = arith.constant dense<0.000000e+00> : vector<4xf32>
    %103 = vector.multi_reduction <add>, %102, %cst_43 [1] : vector<4x128xf32> to vector<4xf32>
    %104 = vector.shape_cast %103 : vector<4xf32> to vector<4x1xf32>
    %cst_44 = arith.constant 1.280000e+02 : f32
    %105 = vector.broadcast %cst_44 : f32 to vector<4x1xf32>
    %106 = arith.divf %104, %105 : vector<4x1xf32>
    %107 = vector.broadcast %99 : vector<4x1xf32> to vector<4x128xf32>
    %108 = arith.subf %93, %107 : vector<4x128xf32>
    %cst_45 = arith.constant 9.99999997E-7 : f32
    %109 = vector.broadcast %cst_45 : f32 to vector<4x1xf32>
    %110 = arith.addf %106, %109 : vector<4x1xf32>
    %111 = math.rsqrt %110 : vector<4x1xf32>
    %112 = vector.broadcast %111 : vector<4x1xf32> to vector<4x128xf32>
    %113 = arith.mulf %108, %112 : vector<4x128xf32>
    %114 = vector.broadcast %94 : vector<1x128xf32> to vector<4x128xf32>
    %115 = arith.mulf %113, %114 : vector<4x128xf32>
    %116 = vector.broadcast %95 : vector<1x128xf32> to vector<4x128xf32>
    %117 = arith.addf %115, %116 : vector<4x128xf32>
    %c0_46 = arith.constant 0 : index
    %c0_47 = arith.constant 0 : index
    %118 = vector.load %arg8[%c0_46, %c0_47] : memref<128x256xf32, #tpu.memory_space<vmem>>, vector<128x256xf32>
    %cst_48 = arith.constant dense<0.000000e+00> : vector<4x256xf32>
    %119 = tpu.matmul %117, %118, %cst_48 {dimension_numbers = #tpu.dot_dimension_numbers<[1], [0], [0], [1], [0, 0, 1, 1], [], []>} : vector<4x128xf32>, vector<128x256xf32>, vector<4x256xf32> -> vector<4x256xf32>
    %c0_49 = arith.constant 0 : index
    %c0_50 = arith.constant 0 : index
    %120 = vector.load %arg9[%c0_49, %c0_50] : memref<1x256xf32, #tpu.memory_space<vmem>>, vector<1x256xf32>
    %121 = vector.broadcast %120 : vector<1x256xf32> to vector<4x256xf32>
    %122 = arith.addf %119, %121 : vector<4x256xf32>
    %cst_51 = arith.constant 0.000000e+00 : f32
    %123 = vector.broadcast %cst_51 : f32 to vector<4x256xf32>
    %124 = arith.maximumf %122, %123 : vector<4x256xf32>
    %c0_52 = arith.constant 0 : index
    %c0_53 = arith.constant 0 : index
    %125 = vector.load %arg10[%c0_52, %c0_53] : memref<256x128xf32, #tpu.memory_space<vmem>>, vector<256x128xf32>
    %cst_54 = arith.constant dense<0.000000e+00> : vector<4x128xf32>
    %126 = tpu.matmul %124, %125, %cst_54 {dimension_numbers = #tpu.dot_dimension_numbers<[1], [0], [0], [1], [0, 0, 1, 1], [], []>} : vector<4x256xf32>, vector<256x128xf32>, vector<4x128xf32> -> vector<4x128xf32>
    %c0_55 = arith.constant 0 : index
    %c0_56 = arith.constant 0 : index
    %127 = vector.load %arg11[%c0_55, %c0_56] : memref<1x128xf32, #tpu.memory_space<vmem>>, vector<1x128xf32>
    %128 = vector.broadcast %127 : vector<1x128xf32> to vector<4x128xf32>
    %129 = arith.addf %126, %128 : vector<4x128xf32>
    %130 = arith.addf %117, %129 : vector<4x128xf32>
    %c0_57 = arith.constant 0 : index
    %c0_58 = arith.constant 0 : index
    %131 = vector.load %arg12[%c0_57, %c0_58] : memref<1x128xf32, #tpu.memory_space<vmem>>, vector<1x128xf32>
    %c0_59 = arith.constant 0 : index
    %c0_60 = arith.constant 0 : index
    %132 = vector.load %arg13[%c0_59, %c0_60] : memref<1x128xf32, #tpu.memory_space<vmem>>, vector<1x128xf32>
    %cst_61 = arith.constant dense<0.000000e+00> : vector<4xf32>
    %133 = vector.multi_reduction <add>, %130, %cst_61 [1] : vector<4x128xf32> to vector<4xf32>
    %134 = vector.shape_cast %133 : vector<4xf32> to vector<4x1xf32>
    %cst_62 = arith.constant 1.280000e+02 : f32
    %135 = vector.broadcast %cst_62 : f32 to vector<4x1xf32>
    %136 = arith.divf %134, %135 : vector<4x1xf32>
    %137 = vector.broadcast %136 : vector<4x1xf32> to vector<4x128xf32>
    %138 = arith.subf %130, %137 : vector<4x128xf32>
    %139 = arith.mulf %138, %138 : vector<4x128xf32>
    %cst_63 = arith.constant dense<0.000000e+00> : vector<4xf32>
    %140 = vector.multi_reduction <add>, %139, %cst_63 [1] : vector<4x128xf32> to vector<4xf32>
    %141 = vector.shape_cast %140 : vector<4xf32> to vector<4x1xf32>
    %cst_64 = arith.constant 1.280000e+02 : f32
    %142 = vector.broadcast %cst_64 : f32 to vector<4x1xf32>
    %143 = arith.divf %141, %142 : vector<4x1xf32>
    %144 = vector.broadcast %136 : vector<4x1xf32> to vector<4x128xf32>
    %145 = arith.subf %130, %144 : vector<4x128xf32>
    %cst_65 = arith.constant 9.99999997E-7 : f32
    %146 = vector.broadcast %cst_65 : f32 to vector<4x1xf32>
    %147 = arith.addf %143, %146 : vector<4x1xf32>
    %148 = math.rsqrt %147 : vector<4x1xf32>
    %149 = vector.broadcast %148 : vector<4x1xf32> to vector<4x128xf32>
    %150 = arith.mulf %145, %149 : vector<4x128xf32>
    %151 = vector.broadcast %131 : vector<1x128xf32> to vector<4x128xf32>
    %152 = arith.mulf %150, %151 : vector<4x128xf32>
    %153 = vector.broadcast %132 : vector<1x128xf32> to vector<4x128xf32>
    %154 = arith.addf %152, %153 : vector<4x128xf32>
    %c0_66 = arith.constant 0 : index
    %c0_67 = arith.constant 0 : index
    %c0_68 = arith.constant 0 : index
    %155 = vector.load %arg14[%c0_66, %c0_67, %c0_68] : memref<1x4x128xf32, #tpu.memory_space<vmem>>, vector<1x4x128xf32>
    %156 = vector.shape_cast %155 : vector<1x4x128xf32> to vector<4x128xf32>
    %157 = vector.shape_cast %154 : vector<4x128xf32> to vector<1x4x128xf32>
    tpu.vector_store %arg14[%c0_66, %c0_67, %c0_68], %157 {strides = array<i32>} : memref<1x4x128xf32, #tpu.memory_space<vmem>>, vector<1x4x128xf32>,
    return
  }
  func.func @transform_0(%arg0: i32) -> (i32, i32, i32) {
    %c0_i32 = arith.constant 0 : i32
    %c0_i32_0 = arith.constant 0 : i32
    %c0_i32_1 = arith.constant 0 : i32
    return %arg0, %c0_i32, %c0_i32_0 : i32, i32, i32
  }
  func.func @transform_1(%arg0: i32) -> (i32, i32) {
    %c0_i32 = arith.constant 0 : i32
    %c0_i32_0 = arith.constant 0 : i32
    %c0_i32_1 = arith.constant 0 : i32
    return %c0_i32, %c0_i32_0 : i32, i32
  }
  func.func @transform_2(%arg0: i32) -> (i32, i32) {
    %c0_i32 = arith.constant 0 : i32
    %c0_i32_0 = arith.constant 0 : i32
    %c0_i32_1 = arith.constant 0 : i32
    return %c0_i32, %c0_i32_0 : i32, i32
  }
  func.func @transform_3(%arg0: i32) -> (i32, i32) {
    %c0_i32 = arith.constant 0 : i32
    %c0_i32_0 = arith.constant 0 : i32
    %c0_i32_1 = arith.constant 0 : i32
    return %c0_i32, %c0_i32_0 : i32, i32
  }
  func.func @transform_4(%arg0: i32) -> (i32, i32) {
    %c0_i32 = arith.constant 0 : i32
    %c0_i32_0 = arith.constant 0 : i32
    %c0_i32_1 = arith.constant 0 : i32
    return %c0_i32, %c0_i32_0 : i32, i32
  }
  func.func @transform_5(%arg0: i32) -> (i32, i32) {
    %c0_i32 = arith.constant 0 : i32
    %c0_i32_0 = arith.constant 0 : i32
    %c0_i32_1 = arith.constant 0 : i32
    return %c0_i32, %c0_i32_0 : i32, i32
  }
  func.func @transform_6(%arg0: i32) -> (i32, i32) {
    %c0_i32 = arith.constant 0 : i32
    %c0_i32_0 = arith.constant 0 : i32
    %c0_i32_1 = arith.constant 0 : i32
    return %c0_i32, %c0_i32_0 : i32, i32
  }
  func.func @transform_7(%arg0: i32) -> (i32, i32) {
    %c0_i32 = arith.constant 0 : i32
    %c0_i32_0 = arith.constant 0 : i32
    %c0_i32_1 = arith.constant 0 : i32
    return %c0_i32, %c0_i32_0 : i32, i32
  }
  func.func @transform_8(%arg0: i32) -> (i32, i32) {
    %c0_i32 = arith.constant 0 : i32
    %c0_i32_0 = arith.constant 0 : i32
    %c0_i32_1 = arith.constant 0 : i32
    return %c0_i32, %c0_i32_0 : i32, i32
  }
  func.func @transform_9(%arg0: i32) -> (i32, i32) {
    %c0_i32 = arith.constant 0 : i32
    %c0_i32_0 = arith.constant 0 : i32
    %c0_i32_1 = arith.constant 0 : i32
    return %c0_i32, %c0_i32_0 : i32, i32
  }
  func.func @transform_10(%arg0: i32) -> (i32, i32) {
    %c0_i32 = arith.constant 0 : i32
    %c0_i32_0 = arith.constant 0 : i32
    %c0_i32_1 = arith.constant 0 : i32
    return %c0_i32, %c0_i32_0 : i32, i32
  }
  func.func @transform_11(%arg0: i32) -> (i32, i32) {
    %c0_i32 = arith.constant 0 : i32
    %c0_i32_0 = arith.constant 0 : i32
    %c0_i32_1 = arith.constant 0 : i32
    return %c0_i32, %c0_i32_0 : i32, i32
  }
  func.func @transform_12(%arg0: i32) -> (i32, i32) {
    %c0_i32 = arith.constant 0 : i32
    %c0_i32_0 = arith.constant 0 : i32
    %c0_i32_1 = arith.constant 0 : i32
    return %c0_i32, %c0_i32_0 : i32, i32
  }
  func.func @transform_13(%arg0: i32) -> (i32, i32, i32) {
    %c0_i32 = arith.constant 0 : i32
    %c0_i32_0 = arith.constant 0 : i32
    %c0_i32_1 = arith.constant 0 : i32
    return %arg0, %c0_i32, %c0_i32_0 : i32, i32, i32
  }
}

module attributes {stable_mosaic.version = 11 : i64} {
  func.func @_head_kernel(%arg0: i32, %arg1: memref<1x4x128xf32, #tpu.memory_space<vmem>>, %arg2: memref<128x128xf32, #tpu.memory_space<vmem>>, %arg3: memref<1x128xf32, #tpu.memory_space<vmem>>, %arg4: memref<1x1x128xf32, #tpu.memory_space<vmem>>) attributes {dimension_semantics = [#tpu.dimension_semantics<parallel>], iteration_bounds = array<i64: 2>, scalar_prefetch = 0 : i64, scratch_operands = 0 : i64, tpu.core_type = #tpu.core_type<tc>, window_params = [{transform_indices = @transform_0, window_bounds = array<i64: 1, 4, 128>}, {pipeline_mode = #tpu.pipeline_mode<synchronous>, transform_indices = @transform_1, window_bounds = array<i64: 128, 128>}, {pipeline_mode = #tpu.pipeline_mode<synchronous>, transform_indices = @transform_2, window_bounds = array<i64: 1, 128>}, {transform_indices = @transform_3, window_bounds = array<i64: 1, 1, 128>}]} {
    %c0 = arith.constant 0 : index
    %c0_0 = arith.constant 0 : index
    %c0_1 = arith.constant 0 : index
    %0 = vector.load %arg1[%c0, %c0_0, %c0_1] : memref<1x4x128xf32, #tpu.memory_space<vmem>>, vector<1x4x128xf32>
    %1 = vector.shape_cast %0 : vector<1x4x128xf32> to vector<4x128xf32>
    %cst = arith.constant dense<0.000000e+00> : vector<128xf32>
    %2 = vector.multi_reduction <add>, %1, %cst [0] : vector<4x128xf32> to vector<128xf32>
    %3 = vector.shape_cast %2 : vector<128xf32> to vector<1x128xf32>
    %cst_2 = arith.constant 4.000000e+00 : f32
    %4 = vector.broadcast %cst_2 : f32 to vector<1x128xf32>
    %5 = arith.divf %3, %4 : vector<1x128xf32>
    %c0_3 = arith.constant 0 : index
    %c0_4 = arith.constant 0 : index
    %6 = vector.load %arg2[%c0_3, %c0_4] : memref<128x128xf32, #tpu.memory_space<vmem>>, vector<128x128xf32>
    %cst_5 = arith.constant dense<0.000000e+00> : vector<1x128xf32>
    %7 = tpu.matmul %5, %6, %cst_5 {dimension_numbers = #tpu.dot_dimension_numbers<[1], [0], [0], [1], [0, 0, 1, 1], [], []>} : vector<1x128xf32>, vector<128x128xf32>, vector<1x128xf32> -> vector<1x128xf32>
    %c0_6 = arith.constant 0 : index
    %c0_7 = arith.constant 0 : index
    %8 = vector.load %arg3[%c0_6, %c0_7] : memref<1x128xf32, #tpu.memory_space<vmem>>, vector<1x128xf32>
    %9 = arith.addf %7, %8 : vector<1x128xf32>
    %c0_8 = arith.constant 0 : index
    %c0_9 = arith.constant 0 : index
    %c0_10 = arith.constant 0 : index
    %10 = vector.load %arg4[%c0_8, %c0_9, %c0_10] : memref<1x1x128xf32, #tpu.memory_space<vmem>>, vector<1x1x128xf32>
    %11 = vector.shape_cast %10 : vector<1x1x128xf32> to vector<1x128xf32>
    %12 = vector.shape_cast %9 : vector<1x128xf32> to vector<1x1x128xf32>
    tpu.vector_store %arg4[%c0_8, %c0_9, %c0_10], %12 {strides = array<i32>} : memref<1x1x128xf32, #tpu.memory_space<vmem>>, vector<1x1x128xf32>,
    return
  }
  func.func @transform_0(%arg0: i32) -> (i32, i32, i32) {
    %c0_i32 = arith.constant 0 : i32
    %c0_i32_0 = arith.constant 0 : i32
    %c0_i32_1 = arith.constant 0 : i32
    return %arg0, %c0_i32, %c0_i32_0 : i32, i32, i32
  }
  func.func @transform_1(%arg0: i32) -> (i32, i32) {
    %c0_i32 = arith.constant 0 : i32
    %c0_i32_0 = arith.constant 0 : i32
    %c0_i32_1 = arith.constant 0 : i32
    return %c0_i32, %c0_i32_0 : i32, i32
  }
  func.func @transform_2(%arg0: i32) -> (i32, i32) {
    %c0_i32 = arith.constant 0 : i32
    %c0_i32_0 = arith.constant 0 : i32
    %c0_i32_1 = arith.constant 0 : i32
    return %c0_i32, %c0_i32_0 : i32, i32
  }
  func.func @transform_3(%arg0: i32) -> (i32, i32, i32) {
    %c0_i32 = arith.constant 0 : i32
    %c0_i32_0 = arith.constant 0 : i32
    %c0_i32_1 = arith.constant 0 : i32
    return %arg0, %c0_i32, %c0_i32_0 : i32, i32, i32
  }
}

</mosaic_0001>

<bundles_post_ra>
// kernel: audio_segmenter_forward.9
= control target key start
LH: loop header
LB: loop body
LE: loop exit
PB: predicated region body
PF: predicated region fallthrough
CT: control target
= control target key end

     0   :  { %s997_s21 = smov 0   ;;  %s1281_s0 = inlined_call_operand.vmem [shape: f32[2,24,128], index: 0, kind: input, shape index: {}]   ;;  %s1282_s1 = inlined_call_operand.vmem [shape: f32[128,128], index: 1, kind: input, shape index: {}]   ;;  %s1283_s2 = inlined_call_operand.vmem [shape: f32[128,256], index: 2, kind: input, shape index: {}]   ;;  %s1284_s3 = inlined_call_operand.vmem [shape: f32[128,128], index: 3, kind: input, shape index: {}]   ;;  %s1285_s4 = inlined_call_operand.vmem [shape: f32[1,128], index: 4, kind: input, shape index: {}]   ;;  %s1286_s5 = inlined_call_operand.vmem [shape: f32[1,128], index: 5, kind: input, shape index: {}]   ;;  %s1287_s6 = inlined_call_operand.vmem [shape: f32[2,8,128], index: 6, kind: output, shape index: {}]  }
   0x1 LB: > { %s798_s22 = sadd.s32 4294967295, %s958_s21   ;;  %p802_p0 = scmp.ge.s32.totalorder %s958_s21, 1  ;;  %s958_s21 = sphi %s997_s21, %s16_s21  }
   0x2   : > { %p212_p1 = scmp.lt.s32.totalorder %s958_s21, 3 }
   0x4   : > { %p213_p2 = pnand %p802_p0, %p212_p1 }
   0x5   : > { %p1095_p3 = scmp.lt.s32.totalorder (!%p213_p2), %s798_s22, 1 }
   0x6   : > { %216 = sbr.rel (%p213_p2) target bundleno = 1200 (0x4b0), region = 44 }
   0xb   : > { %v370_v0 = vld [vmem:[%s1283_s2 + $0xf8] sm:$0xff]  ;;  %v369_v1 = vld [vmem:[%s1283_s2 + $0xf0] sm:$0xff]  ;;  %v368_v2 = vld [vmem:[%s1283_s2 + $0xe8] sm:$0xff]  ;;  %v960_v4 = vmov 0.0   ;;  %vm961_vm0 = vmmov 0   ;;  %s1290_s22 = smov (!%p1095_p3, %s798_s22), 1 }
   0xc   : > { %371 = vmatprep.subr.mxu1 %v370_v0  ;;  %v367_v3 = vld [vmem:[%s1283_s2 + $0xe0] sm:$0xff]  ;;  %851 = vmatprep.subr.mxu0 %v960_v4  ;;  %v366_v5 = vld [vmem:[%s1283_s2 + $0xd8] sm:$0xff]  ;;  %v365_v6 = vld [vmem:[%s1283_s2 + $0xd0] sm:$0xff]  ;;  %s935_s8 = smul.u32 24, %s1290_s22  ;;  %vm518_vm1 = vcmask 130048   ;;  %s804_s26 = sshll.u32 %s1290_s22, 3 }
   0xd   : > { %372 = vmatpush1.msra.mxu1 %v369_v1  ;;  %435 = vmatprep.mubr.f32.mxu1 %v960_v4  ;;  %v268_v7 = vld [vmem:[%s1282_s1 + $0x78] sm:$0xff]  ;;  %v364_v8 = vld [vmem:[%s1283_s2 + $0xc8] sm:$0xff]  ;;  %v267_v9 = vld [vmem:[%s1282_s1 + $0x70] sm:$0xff]  ;;  %s249_s7 = scalar_lea.vmem %s1287_s6, %s804_s26 }
   0xe   : > { %373 = vmatprep.subr.mxu1 %v368_v2  ;;  %883 = vmatprep.mubr.msk.f32.mxu0 %vm961_vm0, %v960_v4  ;;  %v363_v10 = vld [vmem:[%s1283_s2 + $0xc0] sm:$0xff]  ;;  %v266_v11 = vld [vmem:[%s1282_s1 + $0x68] sm:$0xff]  ;;  %v362_v12 = vld [vmem:[%s1283_s2 + $0xb8] sm:$0xff]  ;;  %s245_s25 = scalar_lea.vmem %s1281_s0, %s935_s8 }
   0xf   : > { %374 = vmatpush1.msra.mxu1 %v367_v3  ;;  %852 = vmatpush3.msra.mxu0 %v268_v7  ;;  %v361_v13 = vld [vmem:[%s1283_s2 + $0xb0] sm:$0xff]  ;;  %v265_v14 = vld [vmem:[%s1282_s1 + $0x60] sm:$0xff]  ;;  %v360_v15 = vld [vmem:[%s1283_s2 + $0xa8] sm:$0xff] }
  0x10   : > { %375 = vmatprep.subr.mxu1 %v366_v5  ;;  %853 = vmatprep.subr.mxu0 %v960_v4  ;;  %v359_v16 = vld [vmem:[%s1283_s2 + $0xa0] sm:$0xff]  ;;  %v264_v17 = vld [vmem:[%s1282_s1 + $0x58] sm:$0xff]  ;;  %v357_v19 = vld [vmem:[%s1283_s2 + $0x90] sm:$0xff] }
  0x11   : > { %376 = vmatpush1.msra.mxu1 %v365_v6  ;;  %854 = vmatpush3.msra.mxu0 %v267_v9  ;;  %v358_v18 = vld [vmem:[%s1283_s2 + $0x98] sm:$0xff]  ;;  %v263_v20 = vld [vmem:[%s1282_s1 + $0x50] sm:$0xff]  ;;  %v356_v21 = vld [vmem:[%s1283_s2 + $0x88] sm:$0xff] }
  0x12   : > { %377 = vmatprep.subr.mxu1 %v364_v8  ;;  %855 = vmatprep.subr.mxu0 %v960_v4  ;;  %v355_v22 = vld [vmem:[%s1283_s2 + $0x80] sm:$0xff]  ;;  %v262_v23 = vld [vmem:[%s1282_s1 + $0x48] sm:$0xff]  ;;  %v354_v24 = vld [vmem:[%s1283_s2 + $0x78] sm:$0xff] }
  0x13   : > { %378 = vmatpush1.msra.mxu1 %v363_v10  ;;  %856 = vmatpush3.msra.mxu0 %v266_v11  ;;  %v353_v25 = vld [vmem:[%s1283_s2 + $0x70] sm:$0xff]  ;;  %v261_v26 = vld [vmem:[%s1282_s1 + $0x40] sm:$0xff]  ;;  %v352_v27 = vld [vmem:[%s1283_s2 + $0x68] sm:$0xff] }
  0x14   : > { %379 = vmatprep.subr.mxu1 %v362_v12  ;;  %857 = vmatprep.subr.mxu0 %v960_v4  ;;  %v351_v28 = vld [vmem:[%s1283_s2 + $0x60] sm:$0xff]  ;;  %v260_v29 = vld [vmem:[%s1282_s1 + $0x38] sm:$0xff]  ;;  %v349_v31 = vld [vmem:[%s1283_s2 + $0x50] sm:$0xff] }
  0x15   : > { %380 = vmatpush1.msra.mxu1 %v361_v13  ;;  %858 = vmatpush3.msra.mxu0 %v265_v14  ;;  %v350_v30 = vld [vmem:[%s1283_s2 + $0x58] sm:$0xff]  ;;  %v259_v32 = vld [vmem:[%s1282_s1 + $0x30] sm:$0xff]  ;;  %v348_v33 = vld [vmem:[%s1283_s2 + $0x48] sm:$0xff] }
  0x16   : > { %381 = vmatprep.subr.mxu1 %v360_v15  ;;  %859 = vmatprep.subr.mxu0 %v960_v4  ;;  %v347_v34 = vld [vmem:[%s1283_s2 + $0x40] sm:$0xff]  ;;  %v258_v35 = vld [vmem:[%s1282_s1 + $0x28] sm:$0xff]  ;;  %v346_v36 = vld [vmem:[%s1283_s2 + $0x38] sm:$0xff] }
  0x17   : > { %382 = vmatpush1.msra.mxu1 %v359_v16  ;;  %860 = vmatpush3.msra.mxu0 %v264_v17  ;;  %v345_v37 = vld [vmem:[%s1283_s2 + $0x30] sm:$0xff]  ;;  %v257_v38 = vld [vmem:[%s1282_s1 + $0x20] sm:$0xff]  ;;  %v344_v39 = vld [vmem:[%s1283_s2 + $0x28] sm:$0xff] }
  0x18   : > { %383 = vmatprep.subr.mxu1 %v358_v18  ;;  %861 = vmatprep.subr.mxu0 %v960_v4  ;;  %v343_v40 = vld [vmem:[%s1283_s2 + $0x20] sm:$0xff]  ;;  %v256_v41 = vld [vmem:[%s1282_s1 + $0x18] sm:$0xff]  ;;  %v341_v43 = vld [vmem:[%s1283_s2 + $0x10] sm:$0xff] }
  0x19   : > { %384 = vmatpush1.msra.mxu1 %v357_v19  ;;  %862 = vmatpush3.msra.mxu0 %v263_v20  ;;  %v342_v42 = vld [vmem:[%s1283_s2 + $0x18] sm:$0xff]  ;;  %v255_v44 = vld [vmem:[%s1282_s1 + $0x10] sm:$0xff]  ;;  %v340_v45 = vld [vmem:[%s1283_s2 + $0x8] sm:$0xff]  ;;  %v538_v19 = vlaneseq }
  0x1a   : > { %385 = vmatprep.subr.mxu1 %v356_v21  ;;  %863 = vmatprep.subr.mxu0 %v960_v4  ;;  %v339_v46 = vld [vmem:[%s1283_s2] sm:$0xff]  ;;  %v254_v47 = vld [vmem:[%s1282_s1 + $0x8] sm:$0xff]  ;;  %v252_v51 = vld [vmem:[%s245_s25 + $0x10] sm:$0xff] }
  0x1b   : > { %386 = vmatpush1.msra.mxu1 %v355_v22  ;;  %864 = vmatpush3.msra.mxu0 %v262_v23  ;;  %v251_v48 = vld [vmem:[%s245_s25 + $0x8] sm:$0xff]  ;;  %v253_v49 = vld [vmem:[%s1282_s1] sm:$0xff]  ;;  %v645_v58 = vld [vmem:[%s1284_s3 + $0x78] sm:$0xff]  ;;  %v539_v22 = vshrl.u32 %v538_v19, 7 }
  0x1c   : > { %387 = vmatprep.subr.mxu1 %v354_v24  ;;  %865 = vmatprep.subr.mxu0 %v960_v4  ;;  %v1183_v50 = vld [vmem:[%s245_s25] sm:$0xff]  ;;  %v644_v59 = vld [vmem:[%s1284_s3 + $0x70] sm:$0xff]  ;;  %v643_v60 = vld [vmem:[%s1284_s3 + $0x68] sm:$0xff] }
  0x1d   : > { %388 = vmatpush1.msra.mxu1 %v353_v25  ;;  %866 = vmatpush3.msra.mxu0 %v261_v26  ;;  %v642_v61 = vld [vmem:[%s1284_s3 + $0x60] sm:$0xff]  ;;  %v641_v62 = vld [vmem:[%s1284_s3 + $0x58] sm:$0xff]  ;;  %v640_v63 = vld [vmem:[%s1284_s3 + $0x50] sm:$0xff] }
  0x1e   : > { %389 = vmatprep.subr.mxu1 %v352_v27  ;;  %867 = vmatprep.subr.mxu0 %v960_v4  ;;  %v639_v0 = vld [vmem:[%s1284_s3 + $0x48] sm:$0xff]  ;;  %v638_v1 = vld [vmem:[%s1284_s3 + $0x40] sm:$0xff]  ;;  %v637_v2 = vld [vmem:[%s1284_s3 + $0x38] sm:$0xff] }
  0x1f   : > { %390 = vmatpush1.msra.mxu1 %v351_v28  ;;  %868 = vmatpush3.msra.mxu0 %v260_v29  ;;  %v636_v3 = vld [vmem:[%s1284_s3 + $0x30] sm:$0xff]  ;;  %v635_v5 = vld [vmem:[%s1284_s3 + $0x28] sm:$0xff]  ;;  %v634_v6 = vld [vmem:[%s1284_s3 + $0x20] sm:$0xff] }
  0x20   : > { %391 = vmatprep.subr.mxu1 %v350_v30  ;;  %869 = vmatprep.subr.mxu0 %v960_v4  ;;  %v633_v7 = vld [vmem:[%s1284_s3 + $0x18] sm:$0xff]  ;;  %v632_v8 = vld [vmem:[%s1284_s3 + $0x10] sm:$0xff]  ;;  %v631_v9 = vld [vmem:[%s1284_s3 + $0x8] sm:$0xff] }
  0x21   : > { %392 = vmatpush1.msra.mxu1 %v349_v31  ;;  %870 = vmatpush3.msra.mxu0 %v259_v32 }
  0x22   : > { %393 = vmatprep.subr.mxu1 %v348_v33  ;;  %871 = vmatprep.subr.mxu0 %v960_v4 }
  0x23   : > { %394 = vmatpush1.msra.mxu1 %v347_v34  ;;  %872 = vmatpush3.msra.mxu0 %v258_v35 }
  0x24   : > { %395 = vmatprep.subr.mxu1 %v346_v36  ;;  %873 = vmatprep.subr.mxu0 %v960_v4 }
  0x25   : > { %396 = vmatpush1.msra.mxu1 %v345_v37  ;;  %874 = vmatpush3.msra.mxu0 %v257_v38 }
  0x26   : > { %397 = vmatprep.subr.mxu1 %v344_v39  ;;  %875 = vmatprep.subr.mxu0 %v960_v4 }
  0x27   : > { %398 = vmatpush1.msra.mxu1 %v343_v40  ;;  %876 = vmatpush3.msra.mxu0 %v256_v41 }
  0x28   : > { %399 = vmatprep.subr.mxu1 %v342_v42  ;;  %877 = vmatprep.subr.mxu0 %v960_v4 }
  0x29   : > { %400 = vmatpush1.msra.mxu1 %v341_v43  ;;  %878 = vmatpush3.msra.mxu0 %v255_v44  ;;  %v630_v44 = vld [vmem:[%s1284_s3] sm:$0xff] }
  0x2a   : > { %401 = vmatprep.subr.mxu1 %v340_v45  ;;  %879 = vmatprep.subr.mxu0 %v960_v4 }
  0x2b   : > { %402 = vmatpush1.msra.mxu1 %v339_v46  ;;  %880 = vmatpush3.msra.mxu0 %v254_v47 }
  0x2c   : > { %436 = vmatmul.mubr.f32.vlgmr.msra.gmra.mxu1 %v251_v48  ;;  %881 = vmatprep.subr.mxu0 %v960_v4 }
  0x2d   : > { %441 = vmatprep.mubr.f32.mxu1 %v960_v4  ;;  %882 = vmatpush3.msra.mxu0 %v253_v49 }
  0x2e   : > { %884 = vmatmul.mubr.f32.vlgmr.msra.gmra.mxu0 %v1183_v50  ;;  %886 = vmatprep.subr.mxu1 %v960_v4 }
  0x2f   : > { %900 = vmatprep.subr.mxu0 %v960_v4  ;;  %932 = vmatprep.mubr.msk.f32.mxu0 %vm961_vm0, %v960_v4 }
  0x30   : > { %442 = vmatmul.mubr.f32.gmra.mxu1 %v252_v51  ;;  %901 = vmatpush3.msra.mxu0 %v645_v58  ;;  %v807_v58 = vld [vmem:[%s1285_s4] ss:$0 sm:$0xff] }
  0x31   : > { %890 = vmatprep.mubr.msk.f32.mxu1 %vm961_vm0, %v960_v4  ;;  %902 = vmatprep.subr.mxu0 %v960_v4 }
  0x32   : > { %903 = vmatpush3.msra.mxu0 %v644_v59 }
  0x33   : > { %904 = vmatprep.subr.mxu0 %v960_v4 }
  0x34   : > { %905 = vmatpush3.msra.mxu0 %v643_v60 }
  0x35   : > { %906 = vmatprep.subr.mxu0 %v960_v4 }
  0x36   : > { %907 = vmatpush3.msra.mxu0 %v642_v61 }
  0x37   : > { %908 = vmatprep.subr.mxu0 %v960_v4 }
  0x38   : > { %909 = vmatpush3.msra.mxu0 %v641_v62 }
  0x39   : > { %910 = vmatprep.subr.mxu0 %v960_v4 }
  0x3a   : > { %911 = vmatpush3.msra.mxu0 %v640_v63 }
  0x3b   : > { %912 = vmatprep.subr.mxu0 %v960_v4 }
  0x3c   : > { %913 = vmatpush3.msra.mxu0 %v639_v0 }
  0x3d   : > { %914 = vmatprep.subr.mxu0 %v960_v4 }
  0x3e   : > { %915 = vmatpush3.msra.mxu0 %v638_v1 }
  0x3f   : > { %916 = vmatprep.subr.mxu0 %v960_v4 }
  0x40   : > { %917 = vmatpush3.msra.mxu0 %v637_v2 }
  0x41   : > { %918 = vmatprep.subr.mxu0 %v960_v4 }
  0x42   : > { %919 = vmatpush3.msra.mxu0 %v636_v3 }
  0x43   : > { %920 = vmatprep.subr.mxu0 %v960_v4 }
  0x44   : > { %921 = vmatpush3.msra.mxu0 %v635_v5 }
  0x45   : > { %922 = vmatprep.subr.mxu0 %v960_v4 }
  0x46   : > { %923 = vmatpush3.msra.mxu0 %v634_v6 }
  0x47   : > { %924 = vmatprep.subr.mxu0 %v960_v4 }
  0x48   : > { %925 = vmatpush3.msra.mxu0 %v633_v7 }
  0x49   : > { %926 = vmatprep.subr.mxu0 %v960_v4 }
  0x4a   : > { %927 = vmatpush3.msra.mxu0 %v632_v8 }
  0x4b   : > { %928 = vmatprep.subr.mxu0 %v960_v4 }
  0x4c   : > { %929 = vmatpush3.msra.mxu0 %v631_v9 }
  0x4d   : > { %930 = vmatprep.subr.mxu0 %v960_v4 }
  0x4e   : > { %931 = vmatpush3.msra.mxu0 %v630_v44 }
  0xec   : > { %v437_v52 = vpop.f32.mrf.mxu1 }
  0xee   : > { %v439_v53 = vpop.f32.mrf.mxu1  ;;  %v335_v54 = vpop.f32.mrf.mxu0 }
  0xf0   : > { %v443_v55 = vpop.f32.mrf.mxu1  ;;  %v885_v56 = vpop.f32.mrf.mxu0 }
  0xf1   : > { %887 = vmatpush3.xpose.msra.mxu1 %v443_v55 }
  0xf2   : > { %888 = vmatprep.subr.mxu1 %v960_v4  ;;  %v445_v57 = vpop.f32.mrf.mxu1 }
  0xf5   : > { %889 = vmatpush3.xpose.msra.mxu1 %v437_v52 }
  0xf6   : > { %893 = vmatprep.subr.mxu1 %v960_v4 }
  0xf8   : > { %891 = vmatmul.mubr.f32.vlgmr.msra.gmra.mxu1 %v335_v54 }
  0xf9   : > { %894 = vmatpush3.msra.mxu1 %v445_v57  ;;  %897 = vmatprep.mubr.msk.f32.mxu1 %vm961_vm0, %v960_v4 }
  0xfa   : > { %895 = vmatprep.subr.mxu1 %v960_v4 }
  0xfb   : > { %896 = vmatpush3.msra.mxu1 %v439_v53 }
 0x1b8   : > { %v514_v10 = vpop.f32.mrf.mxu1 }
 0x1b9   : > { %v519_v11 = vsel %vm518_vm1, %v514_v10, -inf }
 0x1ba   : > { %v520_v12 = vrot.slane %v519_v11, 4  ;;  %v892_v13 = vpop.f32.mrf.mxu1 }
 0x1bc   : > { %v521_v14 = vmax.f32 %v519_v11, %v520_v12 }
 0x1be   : > { %v522_v15 = vrot.slane %v521_v14, 2 }
 0x1c0   : > { %v523_v16 = vmax.f32 %v521_v14, %v522_v15 }
 0x1c2   : > { %v524_v17 = vrot.slane %v523_v16, 1 }
 0x1c4   : > { %v525_v18 = vmax.f32 %v523_v16, %v524_v17 }
 0x1c6   : > { %v526_v20 = vsub.f32 %v514_v10, %v525_v18  ;;  %vm540_vm2 = vcmp.eq.f32.partialorder %v514_v10, %v525_v18 }
 0x1c7   : > { %v541_v23 = vsel %vm540_vm2, %v539_v22, 8 }
 0x1c8   : > { %v527_v21 = vmul.f32 1.442695, %v526_v20  ;;  %v542_v24 = vsel %vm518_vm1, %v541_v23, 2147483647 }
 0x1c9   : > { %v543_v25 = vrot.slane %v542_v24, 4 }
 0x1ca   : > { %946 = vpow2.f32 %v527_v21 }
 0x1cb   : > { %vm544_vm3 = vcmp.lt.s32.totalorder %v542_v24, %v543_v25 }
 0x1cc   : > { %v545_v29 = vsel %vm544_vm3, %v542_v24, %v543_v25 }
 0x1cd   : > { %v546_v32 = vrot.slane %v545_v29, 2 }
 0x1cf   : > { %vm547_vm4 = vcmp.lt.s32.totalorder %v545_v29, %v546_v32 }
 0x1d0   : > { %v548_v36 = vsel %vm547_vm4, %v545_v29, %v546_v32 }
 0x1d1   : > { %v549_v37 = vrot.slane %v548_v36, 1 }
 0x1d3   : > { %vm550_vm5 = vcmp.lt.s32.totalorder %v548_v36, %v549_v37 }
 0x1d4   : > { %v551_v38 = vsel %vm550_vm5, %v548_v36, %v549_v37 }
 0x1d5   : > { %vm552_vm6 = vcmp.eq.s32.totalorder %v539_v22, %v551_v38 }
 0x1d6   : > { %v805_v41 = vsel %vm552_vm6, 1.0, %v960_v4 }
 0x1d7   : > { %v947_v26 = vpop.eup %946 }
 0x1d8   : > { %v529_v27 = vsel %vm518_vm1, %v947_v26, 0.0 }
 0x1d9   : > { %v530_v28 = vrot.slane %v529_v27, 4 }
 0x1db   : > { %v531_v30 = vadd.f32 %v530_v28, %v529_v27 }
 0x1dd   : > { %v532_v31 = vrot.slane %v531_v30, 2 }
 0x1df   : > { %v533_v33 = vadd.f32 %v532_v31, %v531_v30 }
 0x1e1   : > { %v534_v34 = vrot.slane %v533_v33, 1 }
 0x1e3   : > { %v535_v35 = vadd.f32 %v534_v34, %v533_v33 }
 0x1e5   : > { %948 = vrcp.f32 %v535_v35 }
 0x1f2   : > { %v949_v39 = vpop.eup %948 }
 0x1f3   : > { %v537_v40 = vmul.f32 %v949_v39, %v947_v26 }
 0x1f5   : > { %v555_v42 = vsub.f32 %v805_v41, %v537_v40 }
 0x1f7   : > { %v556_v43 = vadd.f32 %v555_v42, %v537_v40 }
 0x1f9   : > { %898 = vmatmul.mubr.msk.f32.vlgmr.msra.gmra.mxu1 %vm518_vm1, %v556_v43 }
 0x2b9   : > { %v626_v45 = vpop.f32.mrf.mxu1 }
 0x2ba   : > { %933 = vmatmul.mubr.f32.vlgmr.msra.gmra.mxu0 %v626_v45 }
 0x2bb   : > { %v899_v46 = vpop.f32.mrf.mxu1 }
 0x37a   : > { %v712_v47 = vpop.f32.mrf.mxu0 }
 0x37b   : > { %v713_v48 = vadd.f32 %v712_v47, %v1183_v50  ;;  %v808_v50 = vld [vmem:[%s1286_s5] ss:$0 sm:$0xff] }
 0x37c   : > { %v934_v49 = vpop.f32.mrf.mxu0 }
 0x37d   : > { %718 = vadd.xlane.f32.xlu0 %v713_v48 }
 0x406   : > { %v719_v51 = vpop.xlane.xlu0 %718 }
 0x407   : > { %v721_v4 = vmul.f32 0.0078125, %v719_v51 }
 0x409   : > { %v722_v52 = vsub.f32 %v713_v48, %v721_v4 }
 0x40b   : > { %v723_v53 = vmul.f32 %v722_v52, %v722_v52 }
 0x40d   : > { %724 = vadd.xlane.f32.xlu0 %v723_v53 }
 0x496   : > { %v725_v54 = vpop.xlane.xlu0 %724 }
 0x497   : > { %v726_v55 = vmul.f32 0.0078125, %v725_v54 }
 0x499   : > { %v727_v56 = vadd.f32 1e-06, %v726_v55 }
 0x49b   : > { %950 = vrsqrt.f32 %v727_v56 }
 0x4a8   : > { %v951_v57 = vpop.eup %950 }
 0x4a9   : > { %v729_v59 = vmul.f32 %v951_v57, %v722_v52 }
 0x4ab   : > { %v736_v60 = vmul.f32 %v807_v58, %v729_v59 }
 0x4ad   : > { %v743_v61 = vadd.f32 %v808_v50, %v736_v60 }
 0x4af   : > { %744 = vst [vmem:[%s249_s7] sm:$0xff] %v743_v61 }
 0x4b0 PF: > { %s16_s21 = sadd.s32 1, %s958_s21  }
 0x4b1   : > { %p13_p4 = scmp.ge.s32.totalorder %s16_s21, 4  }
 0x4b3   :  { %15 = sbr.rel (!%p13_p4) target bundleno = 1 (0x1), region = 74 }

// kernel: audio_segmenter_forward.7
= control target key start
LH: loop header
LB: loop body
LE: loop exit
PB: predicated region body
PF: predicated region fallthrough
CT: control target
= control target key end

     0   :  { %11 = vsyncpa [#allocation3], 0  ;;  %s653_s21 = smov 0   ;;  %s710_s0 = inlined_call_operand.vmem [shape: f32[2,16,128], index: 0, kind: input, shape index: {}]   ;;  %s711_s1 = inlined_call_operand.hbm [shape: f32[128,128], index: 1, kind: input, shape index: {}]   ;;  %s712_s2 = inlined_call_operand.vmem [shape: f32[1,128], index: 2, kind: input, shape index: {}]   ;;  %s713_s3 = inlined_call_operand.vmem [shape: f32[16,128], index: 3, kind: input, shape index: {}]   ;;  %s714_s4 = inlined_call_operand.vmem [shape: f32[1,128], index: 4, kind: input, shape index: {}]   ;;  %s715_s5 = inlined_call_operand.vmem [shape: f32[1,128], index: 5, kind: input, shape index: {}]   ;;  %s716_s6 = inlined_call_operand.vmem [shape: f32[2,16,128], index: 6, kind: output, shape index: {}]  }
   0x1 LB: > { %s481_s22 = sadd.s32 4294967295, %s613_s21   ;;  %p483_p0 = scmp.ge.s32.totalorder %s613_s21, 1  ;;  %s613_s21 = sphi %s653_s21, %s17_s21  }
   0x2   : > { %p179_p1 = scmp.lt.s32.totalorder %s613_s21, 3  ;;  %s615_s23 = smov [#allocation2]  }
   0x3   : > { %s191_s24 = sshll.u32 %s615_s23, 4  ;;  %p560_p3 = scmp.eq.s32.totalorder %s481_s22, 0  ;;  %s192_s24 = int_to_ptr.vmem [resolvable:$true] %s191_s24 }
   0x4   : > { %p661_p2 = pnand %p483_p0, %p179_p1  ;;  %s588_s26 = scalar_lea.vmem %s192_s24, 2048 }
   0x5   : > { %p589_p7 = scmp.ne.s32.totalorder %s192_s24, %s588_s26  ;;  %p596_p10 = scmp.lt.s32.totalorder %s192_s24, %s192_s24 }
   0x6   : > { %p556_p4 = pneg %p661_p2  ;;  %p597_p11 = scmp.lt.s32.totalorder %s588_s26, %s588_s26 }
   0x8   : > { %p557_p5 = pnand %p560_p3, %p556_p4  ;;  %p598_p12 = por %p597_p11, %p596_p10 }
   0xa   : > { %p579_p6 = pneg %p557_p5 }
   0xc   : > { %p591_p8 = pnand %p589_p7, %p579_p6 }
   0xe   : > { %p592_p9 = pneg %p591_p8 }
  0x10   : > { %p599_p13 = pnand %p598_p12, %p592_p9 }
  0x12   : > { %602 = shalt.err (!%p599_p13)
}
  0x13   : > { %s616_s27 = smov 128   ;;  %s617_s28 = smov 8  }
  0x14   : > { %559 = dma.hbm_to_vmem [thread:$0]  (!%p557_p5), %s711_s1, 2048, %s192_s24, [#allocation3], %s616_s27, %s616_s27, %s617_s28  }
  0x15   : > { %227 = sbr.rel (%p661_p2) target bundleno = 570 (0x23a), region = 44 }
  0x1a   : > { %608 = dma.done.wait (%p560_p3), [#allocation3], 2048  }
  0x1b   : > { %610 = vsyncadd (%p560_p3), [#allocation3], 4294965248  ;;  %p257_p0 = scmp.lt.s32.totalorder %s481_s22, 1  ;;  %v284_v0 = vld [vmem:[#allocation2 + $0x78] sm:$0xff]  ;;  %v283_v1 = vld [vmem:[#allocation2 + $0x70] sm:$0xff] }
  0x1c   : > { %517 = vmatprep.subr.mxu0 %v284_v0  ;;  %v282_v2 = vld [vmem:[#allocation2 + $0x68] sm:$0xff]  ;;  %v281_v3 = vld [vmem:[#allocation2 + $0x60] sm:$0xff]  ;;  %v280_v5 = vld [vmem:[#allocation2 + $0x58] sm:$0xff] }
  0x1d   : > { %s719_s22 = smov (!%p257_p0, %s481_s22), 1  ;;  %518 = vmatpush3.msra.mxu0 %v284_v0  ;;  %v279_v6 = vld [vmem:[#allocation2 + $0x50] sm:$0xff]  ;;  %v278_v7 = vld [vmem:[#allocation2 + $0x48] sm:$0xff]  ;;  %v277_v8 = vld [vmem:[#allocation2 + $0x40] sm:$0xff] }
  0x1e   : > { %s497_s7 = sshll.u32 %s719_s22, 4  ;;  %519 = vmatprep.subr.mxu0 %v283_v1  ;;  %v276_v9 = vld [vmem:[#allocation2 + $0x38] sm:$0xff]  ;;  %v275_v10 = vld [vmem:[#allocation2 + $0x30] sm:$0xff]  ;;  %v274_v11 = vld [vmem:[#allocation2 + $0x28] sm:$0xff] }
  0x1f   : > { %s683_s10 = scalar_lea.vmem %s710_s0, %s497_s7  ;;  %520 = vmatpush3.msra.mxu0 %v283_v1  ;;  %v273_v12 = vld [vmem:[#allocation2 + $0x20] sm:$0xff]  ;;  %v272_v13 = vld [vmem:[#allocation2 + $0x18] sm:$0xff]  ;;  %v271_v14 = vld [vmem:[#allocation2 + $0x10] sm:$0xff]  ;;  %s266_s25 = scalar_lea.vmem %s716_s6, %s497_s7 }
  0x20   : > { %521 = vmatprep.subr.mxu0 %v282_v2  ;;  %v267_v4 = vld [vmem:[%s683_s10] sm:$0xff]  ;;  %v270_v15 = vld [vmem:[#allocation2 + $0x8] sm:$0xff] }
  0x21   : > { %522 = vmatpush3.msra.mxu0 %v282_v2  ;;  %549 = vmatprep.mubr.f32.mxu0 %v267_v4  ;;  %v269_v16 = vld [vmem:[#allocation2] sm:$0xff]  ;;  %v268_v17 = vld [vmem:[%s683_s10 + $0x8] sm:$0xff] }
  0x22   : > { %523 = vmatprep.subr.mxu0 %v281_v3  ;;  %v492_v19 = vld [vmem:[%s712_s2] ss:$0 sm:$0xff]  ;;  %v368_v25 = vld [vmem:[%s713_s3 + $0x8] sm:$0xff] }
  0x23   : > { %524 = vmatpush3.msra.mxu0 %v281_v3  ;;  %v367_v21 = vld [vmem:[%s713_s3] sm:$0xff] }
  0x24   : > { %525 = vmatprep.subr.mxu0 %v280_v5  ;;  %v493_v42 = vld [vmem:[%s714_s4] ss:$0 sm:$0xff] }
  0x25   : > { %526 = vmatpush3.msra.mxu0 %v280_v5  ;;  %v494_v44 = vld [vmem:[%s715_s5] ss:$0 sm:$0xff] }
  0x26   : > { %527 = vmatprep.subr.mxu0 %v279_v6 }
  0x27   : > { %528 = vmatpush3.msra.mxu0 %v279_v6 }
  0x28   : > { %529 = vmatprep.subr.mxu0 %v278_v7 }
  0x29   : > { %530 = vmatpush3.msra.mxu0 %v278_v7 }
  0x2a   : > { %531 = vmatprep.subr.mxu0 %v277_v8 }
  0x2b   : > { %532 = vmatpush3.msra.mxu0 %v277_v8 }
  0x2c   : > { %533 = vmatprep.subr.mxu0 %v276_v9 }
  0x2d   : > { %534 = vmatpush3.msra.mxu0 %v276_v9 }
  0x2e   : > { %535 = vmatprep.subr.mxu0 %v275_v10 }
  0x2f   : > { %536 = vmatpush3.msra.mxu0 %v275_v10 }
  0x30   : > { %537 = vmatprep.subr.mxu0 %v274_v11 }
  0x31   : > { %538 = vmatpush3.msra.mxu0 %v274_v11 }
  0x32   : > { %539 = vmatprep.subr.mxu0 %v273_v12 }
  0x33   : > { %540 = vmatpush3.msra.mxu0 %v273_v12 }
  0x34   : > { %541 = vmatprep.subr.mxu0 %v272_v13 }
  0x35   : > { %542 = vmatpush3.msra.mxu0 %v272_v13 }
  0x36   : > { %543 = vmatprep.subr.mxu0 %v271_v14 }
  0x37   : > { %544 = vmatpush3.msra.mxu0 %v271_v14 }
  0x38   : > { %545 = vmatprep.subr.mxu0 %v270_v15 }
  0x39   : > { %546 = vmatpush3.msra.mxu0 %v270_v15 }
  0x3a   : > { %547 = vmatprep.subr.mxu0 %v269_v16 }
  0x3b   : > { %548 = vmatpush3.msra.mxu0 %v269_v16 }
  0x3c   : > { %550 = vmatmul.mubr.f32.vlgmr.msra.gmra.mxu0 %v268_v17 }
  0xfc   : > { %v551_v18 = vpop.f32.mrf.mxu0 }
  0xfd   : > { %v364_v23 = vadd.f32 %v551_v18, %v492_v19 }
  0xfe   : > { %v358_v20 = vpop.f32.mrf.mxu0 }
  0xff   : > { %v359_v22 = vadd.f32 %v492_v19, %v358_v20  ;;  %v370_v26 = vadd.f32 %v368_v25, %v364_v23 }
 0x101   : > { %v369_v24 = vadd.f32 %v367_v21, %v359_v22 }
 0x103   : > { %373 = vadd.xlane.f32.xlu0 %v369_v24 }
 0x107   : > { %375 = vadd.xlane.f32.xlu0 %v370_v26 }
 0x18c   : > { %v374_v27 = vpop.xlane.xlu0 %373 }
 0x18d   : > { %v378_v28 = vmul.f32 0.0078125, %v374_v27 }
 0x18f   : > { %v380_v29 = vsub.f32 %v369_v24, %v378_v28 }
 0x190   : > { %v376_v30 = vpop.xlane.xlu0 %375 }
 0x191   : > { %v379_v31 = vmul.f32 0.0078125, %v376_v30  ;;  %v382_v32 = vmul.f32 %v380_v29, %v380_v29 }
 0x193   : > { %v381_v33 = vsub.f32 %v370_v26, %v379_v31  ;;  %384 = vadd.xlane.f32.xlu1 %v382_v32 }
 0x195   : > { %v383_v34 = vmul.f32 %v381_v33, %v381_v33 }
 0x197   : > { %386 = vadd.xlane.f32.xlu1 %v383_v34 }
 0x21c   : > { %v385_v35 = vpop.xlane.xlu1 %384 }
 0x21d   : > { %v388_v36 = vmul.f32 0.0078125, %v385_v35 }
 0x21f   : > { %v390_v37 = vadd.f32 1e-06, %v388_v36 }
 0x220   : > { %v387_v38 = vpop.xlane.xlu1 %386 }
 0x221   : > { %573 = vrsqrt.f32 %v390_v37  ;;  %v389_v39 = vmul.f32 0.0078125, %v387_v38 }
 0x223   : > { %v391_v40 = vadd.f32 1e-06, %v389_v39 }
 0x225   : > { %575 = vrsqrt.f32 %v391_v40 }
 0x22e   : > { %v574_v41 = vpop.eup %573 }
 0x22f   : > { %v394_v43 = vmul.f32 %v574_v41, %v380_v29 }
 0x231   : > { %v402_v45 = vmul.f32 %v493_v42, %v394_v43 }
 0x232   : > { %v576_v46 = vpop.eup %575 }
 0x233   : > { %v410_v47 = vadd.f32 %v494_v44, %v402_v45  ;;  %v395_v48 = vmul.f32 %v576_v46, %v381_v33 }
 0x235   : > { %412 = vst [vmem:[%s266_s25] sm:$0xff] %v410_v47  ;;  %v403_v49 = vmul.f32 %v493_v42, %v395_v48 }
 0x237   : > { %v411_v50 = vadd.f32 %v494_v44, %v403_v49 }
 0x239   : > { %413 = vst [vmem:[%s266_s25 + $0x8] sm:$0xff] %v411_v50 }
 0x23a PF: > { %s17_s21 = sadd.s32 1, %s613_s21  }
 0x23b   : > { %p14_p1 = scmp.ge.s32.totalorder %s17_s21, 4  }
 0x23d   :  { %16 = sbr.rel (!%p14_p1) target bundleno = 1 (0x1), region = 79 }
 0x242   :  { %435 = vsyncpa [#allocation3], 1 }
 0x243   :  { %437 = vsyncpa [#allocation3 + $0x1], 1 }

// kernel: audio_segmenter_forward.11
= control target key start
LH: loop header
LB: loop body
LE: loop exit
PB: predicated region body
PF: predicated region fallthrough
CT: control target
= control target key end

     0   :  { %s995_s21 = smov 0   ;;  %s1275_s0 = inlined_call_operand.vmem [shape: f32[2,12,128], index: 0, kind: input, shape index: {}]   ;;  %s1276_s1 = inlined_call_operand.vmem [shape: f32[128,128], index: 1, kind: input, shape index: {}]   ;;  %s1277_s2 = inlined_call_operand.vmem [shape: f32[128,256], index: 2, kind: input, shape index: {}]   ;;  %s1278_s3 = inlined_call_operand.vmem [shape: f32[128,128], index: 3, kind: input, shape index: {}]   ;;  %s1279_s4 = inlined_call_operand.vmem [shape: f32[1,128], index: 4, kind: input, shape index: {}]   ;;  %s1280_s5 = inlined_call_operand.vmem [shape: f32[1,128], index: 5, kind: input, shape index: {}]   ;;  %s1281_s6 = inlined_call_operand.vmem [shape: f32[2,4,128], index: 6, kind: output, shape index: {}]  }
   0x1 LB: > { %s801_s22 = sadd.s32 4294967295, %s956_s21   ;;  %p805_p0 = scmp.ge.s32.totalorder %s956_s21, 1  ;;  %s956_s21 = sphi %s995_s21, %s16_s21  }
   0x2   : > { %p212_p1 = scmp.lt.s32.totalorder %s956_s21, 3 }
   0x4   : > { %p213_p2 = pnand %p805_p0, %p212_p1 }
   0x5   : > { %p1064_p3 = scmp.lt.s32.totalorder (!%p213_p2), %s801_s22, 1 }
   0x6   : > { %216 = sbr.rel (%p213_p2) target bundleno = 1194 (0x4aa), region = 44 }
   0xb   : > { %v369_v0 = vld [vmem:[%s1277_s2 + $0xf8] sm:$0xff]  ;;  %v368_v1 = vld [vmem:[%s1277_s2 + $0xf0] sm:$0xff]  ;;  %v367_v2 = vld [vmem:[%s1277_s2 + $0xe8] sm:$0xff]  ;;  %v958_v3 = vmov 0.0   ;;  %s1284_s22 = smov (!%p1064_p3, %s801_s22), 1  ;;  %vm372_vm0 = vcmask 1043456  }
   0xc   : > { %377 = vmatprep.subr.mxu1 %v369_v0  ;;  %854 = vmatprep.subr.mxu0 %v958_v3  ;;  %v267_v4 = vld [vmem:[%s1276_s1 + $0x78] sm:$0xff]  ;;  %v366_v5 = vld [vmem:[%s1277_s2 + $0xe0] sm:$0xff]  ;;  %v266_v7 = vld [vmem:[%s1276_s1 + $0x70] sm:$0xff]  ;;  %s815_s16 = sshll.u32 %s1284_s22, 4  ;;  %vm959_vm1 = vmmov 0   ;;  %vm518_vm2 = vcmask 60416  }
   0xd   : > { %378 = vmatpush1.msra.mxu1 %v368_v1  ;;  %855 = vmatpush3.msra.mxu0 %v267_v4  ;;  %v365_v6 = vld [vmem:[%s1277_s2 + $0xd8] sm:$0xff]  ;;  %v364_v8 = vld [vmem:[%s1277_s2 + $0xd0] sm:$0xff]  ;;  %v265_v9 = vld [vmem:[%s1276_s1 + $0x68] sm:$0xff]  ;;  %s245_s29 = scalar_lea.vmem %s1275_s0, %s815_s16  ;;  %vm557_vm8 = vcmask 64512   ;;  %s808_s26 = sshll.u32 %s1284_s22, 2 }
   0xe   : > { %379 = vmatprep.subr.mxu1 %v367_v2  ;;  %856 = vmatprep.subr.mxu0 %v958_v3  ;;  %v363_v10 = vld [vmem:[%s1277_s2 + $0xc8] sm:$0xff]  ;;  %v362_v11 = vld [vmem:[%s1277_s2 + $0xc0] sm:$0xff]  ;;  %v361_v13 = vld [vmem:[%s1277_s2 + $0xb8] sm:$0xff]  ;;  %s249_s7 = scalar_lea.vmem %s1281_s6, %s808_s26 }
   0xf   : > { %380 = vmatpush1.msra.mxu1 %v366_v5  ;;  %857 = vmatpush3.msra.mxu0 %v266_v7  ;;  %v264_v12 = vld [vmem:[%s1276_s1 + $0x60] sm:$0xff]  ;;  %v360_v14 = vld [vmem:[%s1277_s2 + $0xb0] sm:$0xff]  ;;  %v263_v15 = vld [vmem:[%s1276_s1 + $0x58] sm:$0xff] }
  0x10   : > { %381 = vmatprep.subr.mxu1 %v365_v6  ;;  %858 = vmatprep.subr.mxu0 %v958_v3  ;;  %v359_v16 = vld [vmem:[%s1277_s2 + $0xa8] sm:$0xff]  ;;  %v358_v17 = vld [vmem:[%s1277_s2 + $0xa0] sm:$0xff]  ;;  %v262_v18 = vld [vmem:[%s1276_s1 + $0x50] sm:$0xff] }
  0x11   : > { %382 = vmatpush1.msra.mxu1 %v364_v8  ;;  %859 = vmatpush3.msra.mxu0 %v265_v9  ;;  %v357_v19 = vld [vmem:[%s1277_s2 + $0x98] sm:$0xff]  ;;  %v356_v20 = vld [vmem:[%s1277_s2 + $0x90] sm:$0xff]  ;;  %v261_v21 = vld [vmem:[%s1276_s1 + $0x48] sm:$0xff] }
  0x12   : > { %383 = vmatprep.subr.mxu1 %v363_v10  ;;  %860 = vmatprep.subr.mxu0 %v958_v3  ;;  %v355_v22 = vld [vmem:[%s1277_s2 + $0x88] sm:$0xff]  ;;  %v354_v23 = vld [vmem:[%s1277_s2 + $0x80] sm:$0xff]  ;;  %v353_v25 = vld [vmem:[%s1277_s2 + $0x78] sm:$0xff] }
  0x13   : > { %384 = vmatpush1.msra.mxu1 %v362_v11  ;;  %861 = vmatpush3.msra.mxu0 %v264_v12  ;;  %v260_v24 = vld [vmem:[%s1276_s1 + $0x40] sm:$0xff]  ;;  %v352_v26 = vld [vmem:[%s1277_s2 + $0x70] sm:$0xff]  ;;  %v259_v27 = vld [vmem:[%s1276_s1 + $0x38] sm:$0xff] }
  0x14   : > { %385 = vmatprep.subr.mxu1 %v361_v13  ;;  %862 = vmatprep.subr.mxu0 %v958_v3  ;;  %v351_v28 = vld [vmem:[%s1277_s2 + $0x68] sm:$0xff]  ;;  %v350_v29 = vld [vmem:[%s1277_s2 + $0x60] sm:$0xff]  ;;  %v258_v30 = vld [vmem:[%s1276_s1 + $0x30] sm:$0xff] }
  0x15   : > { %386 = vmatpush1.msra.mxu1 %v360_v14  ;;  %863 = vmatpush3.msra.mxu0 %v263_v15  ;;  %v349_v31 = vld [vmem:[%s1277_s2 + $0x58] sm:$0xff]  ;;  %v348_v32 = vld [vmem:[%s1277_s2 + $0x50] sm:$0xff]  ;;  %v257_v33 = vld [vmem:[%s1276_s1 + $0x28] sm:$0xff] }
  0x16   : > { %387 = vmatprep.subr.mxu1 %v359_v16  ;;  %864 = vmatprep.subr.mxu0 %v958_v3  ;;  %v347_v34 = vld [vmem:[%s1277_s2 + $0x48] sm:$0xff]  ;;  %v346_v35 = vld [vmem:[%s1277_s2 + $0x40] sm:$0xff]  ;;  %v345_v37 = vld [vmem:[%s1277_s2 + $0x38] sm:$0xff] }
  0x17   : > { %388 = vmatpush1.msra.mxu1 %v358_v17  ;;  %865 = vmatpush3.msra.mxu0 %v262_v18  ;;  %v256_v36 = vld [vmem:[%s1276_s1 + $0x20] sm:$0xff]  ;;  %v344_v38 = vld [vmem:[%s1277_s2 + $0x30] sm:$0xff]  ;;  %v255_v39 = vld [vmem:[%s1276_s1 + $0x18] sm:$0xff] }
  0x18   : > { %389 = vmatprep.subr.mxu1 %v357_v19  ;;  %866 = vmatprep.subr.mxu0 %v958_v3  ;;  %v1148_v40 = vld [vmem:[%s245_s29] sm:$0xff]  ;;  %v251_v41 = vld [vmem:[%s245_s29 + $0x8] sm:$0xf]  ;;  %v254_v44 = vld [vmem:[%s1276_s1 + $0x10] sm:$0xff]  ;;  %v538_v19 = vlaneseq }
  0x19   : > { %390 = vmatpush1.msra.mxu1 %v356_v20  ;;  %867 = vmatpush3.msra.mxu0 %v261_v21  ;;  %v343_v42 = vld [vmem:[%s1277_s2 + $0x28] sm:$0xff]  ;;  %v342_v43 = vld [vmem:[%s1277_s2 + $0x20] sm:$0xff]  ;;  %v341_v45 = vld [vmem:[%s1277_s2 + $0x18] sm:$0xff]  ;;  %v373_v46 = vrot.slane %v1148_v40, 4  ;;  %v374_v47 = vrot.slane %v251_v41, 4 }
  0x1a   : > { %391 = vmatprep.subr.mxu1 %v355_v22  ;;  %868 = vmatprep.subr.mxu0 %v958_v3  ;;  %v340_v48 = vld [vmem:[%s1277_s2 + $0x10] sm:$0xff]  ;;  %v253_v49 = vld [vmem:[%s1276_s1 + $0x8] sm:$0xff]  ;;  %v338_v51 = vld [vmem:[%s1277_s2] sm:$0xff]  ;;  %v539_v22 = vshrl.u32 %v538_v19, 7 }
  0x1b   : > { %392 = vmatpush1.msra.mxu1 %v354_v23  ;;  %869 = vmatpush3.msra.mxu0 %v260_v24  ;;  %v339_v50 = vld [vmem:[%s1277_s2 + $0x8] sm:$0xff]  ;;  %v375_v52 = vsel %vm372_vm0, %v373_v46, %v374_v47  ;;  %v252_v53 = vld [vmem:[%s1276_s1] sm:$0xff]  ;;  %v646_v58 = vld [vmem:[%s1278_s3 + $0x78] sm:$0xff] }
  0x1c   : > { %393 = vmatprep.subr.mxu1 %v353_v25  ;;  %870 = vmatprep.subr.mxu0 %v958_v3  ;;  %v645_v59 = vld [vmem:[%s1278_s3 + $0x70] sm:$0xff]  ;;  %v644_v60 = vld [vmem:[%s1278_s3 + $0x68] sm:$0xff]  ;;  %v643_v61 = vld [vmem:[%s1278_s3 + $0x60] sm:$0xff] }
  0x1d   : > { %394 = vmatpush1.msra.mxu1 %v352_v26  ;;  %871 = vmatpush3.msra.mxu0 %v259_v27  ;;  %v642_v62 = vld [vmem:[%s1278_s3 + $0x58] sm:$0xff]  ;;  %v641_v63 = vld [vmem:[%s1278_s3 + $0x50] sm:$0xff]  ;;  %v640_v0 = vld [vmem:[%s1278_s3 + $0x48] sm:$0xff] }
  0x1e   : > { %395 = vmatprep.subr.mxu1 %v351_v28  ;;  %872 = vmatprep.subr.mxu0 %v958_v3  ;;  %v639_v1 = vld [vmem:[%s1278_s3 + $0x40] sm:$0xff]  ;;  %v638_v2 = vld [vmem:[%s1278_s3 + $0x38] sm:$0xff]  ;;  %v637_v4 = vld [vmem:[%s1278_s3 + $0x30] sm:$0xff] }
  0x1f   : > { %396 = vmatpush1.msra.mxu1 %v350_v29  ;;  %873 = vmatpush3.msra.mxu0 %v258_v30  ;;  %v636_v5 = vld [vmem:[%s1278_s3 + $0x28] sm:$0xff]  ;;  %v635_v6 = vld [vmem:[%s1278_s3 + $0x20] sm:$0xff]  ;;  %v634_v7 = vld [vmem:[%s1278_s3 + $0x18] sm:$0xff] }
  0x20   : > { %397 = vmatprep.subr.mxu1 %v349_v31  ;;  %874 = vmatprep.subr.mxu0 %v958_v3  ;;  %v633_v8 = vld [vmem:[%s1278_s3 + $0x10] sm:$0xff]  ;;  %v632_v9 = vld [vmem:[%s1278_s3 + $0x8] sm:$0xff] }
  0x21   : > { %398 = vmatpush1.msra.mxu1 %v348_v32  ;;  %875 = vmatpush3.msra.mxu0 %v257_v33 }
  0x22   : > { %399 = vmatprep.subr.mxu1 %v347_v34  ;;  %876 = vmatprep.subr.mxu0 %v958_v3 }
  0x23   : > { %400 = vmatpush1.msra.mxu1 %v346_v35  ;;  %877 = vmatpush3.msra.mxu0 %v256_v36 }
  0x24   : > { %401 = vmatprep.subr.mxu1 %v345_v37  ;;  %878 = vmatprep.subr.mxu0 %v958_v3 }
  0x25   : > { %402 = vmatpush1.msra.mxu1 %v344_v38  ;;  %879 = vmatpush3.msra.mxu0 %v255_v39 }
  0x26   : > { %403 = vmatprep.subr.mxu1 %v343_v42  ;;  %880 = vmatprep.subr.mxu0 %v958_v3 }
  0x27   : > { %404 = vmatpush1.msra.mxu1 %v342_v43  ;;  %881 = vmatpush3.msra.mxu0 %v254_v44 }
  0x28   : > { %405 = vmatprep.subr.mxu1 %v341_v45  ;;  %882 = vmatprep.subr.mxu0 %v958_v3  ;;  %v631_v45 = vld [vmem:[%s1278_s3] sm:$0xff] }
  0x29   : > { %406 = vmatpush1.msra.mxu1 %v340_v48  ;;  %883 = vmatpush3.msra.mxu0 %v253_v49 }
  0x2a   : > { %407 = vmatprep.subr.mxu1 %v339_v50  ;;  %441 = vmatprep.mubr.f32.mxu1 %v958_v3 }
  0x2b   : > { %408 = vmatpush1.msra.mxu1 %v338_v51  ;;  %884 = vmatprep.subr.mxu0 %v958_v3 }
  0x2c   : > { %442 = vmatmul.mubr.f32.vlgmr.msra.gmra.mxu1 %v375_v52  ;;  %885 = vmatpush3.msra.mxu0 %v252_v53 }
  0x2d   : > { %886 = vmatprep.mubr.msk.f32.mxu0 %vm959_vm1, %v958_v3  ;;  %889 = vmatprep.subr.mxu1 %v958_v3 }
  0x2e   : > { %887 = vmatmul.mubr.f32.vlgmr.msra.gmra.mxu0 %v1148_v40  ;;  %891 = vmatprep.mubr.msk.f32.mxu1 %vm959_vm1, %v958_v3 }
  0x2f   : > { %899 = vmatprep.subr.mxu0 %v958_v3  ;;  %931 = vmatprep.mubr.msk.f32.mxu0 %vm959_vm1, %v958_v3 }
  0x30   : > { %900 = vmatpush3.msra.mxu0 %v646_v58 }
  0x31   : > { %901 = vmatprep.subr.mxu0 %v958_v3 }
  0x32   : > { %902 = vmatpush3.msra.mxu0 %v645_v59 }
  0x33   : > { %903 = vmatprep.subr.mxu0 %v958_v3 }
  0x34   : > { %904 = vmatpush3.msra.mxu0 %v644_v60 }
  0x35   : > { %905 = vmatprep.subr.mxu0 %v958_v3 }
  0x36   : > { %906 = vmatpush3.msra.mxu0 %v643_v61  ;;  %v812_v61 = vld [vmem:[%s1280_s5] ss:$0 sm:$0xff] }
  0x37   : > { %907 = vmatprep.subr.mxu0 %v958_v3 }
  0x38   : > { %908 = vmatpush3.msra.mxu0 %v642_v62 }
  0x39   : > { %909 = vmatprep.subr.mxu0 %v958_v3 }
  0x3a   : > { %910 = vmatpush3.msra.mxu0 %v641_v63 }
  0x3b   : > { %911 = vmatprep.subr.mxu0 %v958_v3 }
  0x3c   : > { %912 = vmatpush3.msra.mxu0 %v640_v0 }
  0x3d   : > { %913 = vmatprep.subr.mxu0 %v958_v3 }
  0x3e   : > { %914 = vmatpush3.msra.mxu0 %v639_v1 }
  0x3f   : > { %915 = vmatprep.subr.mxu0 %v958_v3 }
  0x40   : > { %916 = vmatpush3.msra.mxu0 %v638_v2 }
  0x41   : > { %917 = vmatprep.subr.mxu0 %v958_v3 }
  0x42   : > { %918 = vmatpush3.msra.mxu0 %v637_v4 }
  0x43   : > { %919 = vmatprep.subr.mxu0 %v958_v3 }
  0x44   : > { %920 = vmatpush3.msra.mxu0 %v636_v5 }
  0x45   : > { %921 = vmatprep.subr.mxu0 %v958_v3 }
  0x46   : > { %922 = vmatpush3.msra.mxu0 %v635_v6 }
  0x47   : > { %923 = vmatprep.subr.mxu0 %v958_v3 }
  0x48   : > { %924 = vmatpush3.msra.mxu0 %v634_v7 }
  0x49   : > { %925 = vmatprep.subr.mxu0 %v958_v3 }
  0x4a   : > { %926 = vmatpush3.msra.mxu0 %v633_v8 }
  0x4b   : > { %927 = vmatprep.subr.mxu0 %v958_v3 }
  0x4c   : > { %928 = vmatpush3.msra.mxu0 %v632_v9 }
  0x4d   : > { %929 = vmatprep.subr.mxu0 %v958_v3 }
  0x4e   : > { %930 = vmatpush3.msra.mxu0 %v631_v45 }
  0xec   : > { %v443_v54 = vpop.f32.mrf.mxu1 }
  0xed   : > { %890 = vmatpush3.xpose.msra.mxu1 %v443_v54 }
  0xee   : > { %v334_v55 = vpop.f32.mrf.mxu0  ;;  %894 = vmatprep.subr.mxu1 %v958_v3  ;;  %v445_v56 = vpop.f32.mrf.mxu1 }
  0xf0   : > { %v888_v57 = vpop.f32.mrf.mxu0  ;;  %892 = vmatmul.mubr.f32.vlgmr.msra.gmra.mxu1 %v334_v55 }
  0xf1   : > { %895 = vmatpush3.msra.mxu1 %v445_v56  ;;  %896 = vmatprep.mubr.msk.f32.mxu1 %vm959_vm1, %v958_v3 }
 0x1b0   : > { %v514_v10 = vpop.f32.mrf.mxu1 }
 0x1b1   : > { %v519_v11 = vsel %vm518_vm2, %v514_v10, -inf }
 0x1b2   : > { %v520_v12 = vrot.slane %v519_v11, 4  ;;  %v893_v13 = vpop.f32.mrf.mxu1 }
 0x1b4   : > { %v521_v14 = vmax.f32 %v519_v11, %v520_v12 }
 0x1b6   : > { %v522_v15 = vrot.slane %v521_v14, 2 }
 0x1b8   : > { %v523_v16 = vmax.f32 %v521_v14, %v522_v15 }
 0x1ba   : > { %v524_v17 = vrot.slane %v523_v16, 1 }
 0x1bc   : > { %v525_v18 = vmax.f32 %v523_v16, %v524_v17 }
 0x1be   : > { %v526_v20 = vsub.f32 %v514_v10, %v525_v18  ;;  %vm540_vm3 = vcmp.eq.f32.partialorder %v514_v10, %v525_v18 }
 0x1bf   : > { %v541_v23 = vsel %vm540_vm3, %v539_v22, 4 }
 0x1c0   : > { %v527_v21 = vmul.f32 1.442695, %v526_v20  ;;  %v542_v24 = vsel %vm518_vm2, %v541_v23, 2147483647 }
 0x1c1   : > { %v543_v25 = vrot.slane %v542_v24, 4 }
 0x1c2   : > { %944 = vpow2.f32 %v527_v21 }
 0x1c3   : > { %vm544_vm4 = vcmp.lt.s32.totalorder %v542_v24, %v543_v25 }
 0x1c4   : > { %v545_v29 = vsel %vm544_vm4, %v542_v24, %v543_v25 }
 0x1c5   : > { %v546_v32 = vrot.slane %v545_v29, 2 }
 0x1c7   : > { %vm547_vm5 = vcmp.lt.s32.totalorder %v545_v29, %v546_v32 }
 0x1c8   : > { %v548_v36 = vsel %vm547_vm5, %v545_v29, %v546_v32 }
 0x1c9   : > { %v549_v37 = vrot.slane %v548_v36, 1 }
 0x1cb   : > { %vm550_vm6 = vcmp.lt.s32.totalorder %v548_v36, %v549_v37 }
 0x1cc   : > { %v551_v38 = vsel %vm550_vm6, %v548_v36, %v549_v37 }
 0x1cd   : > { %vm552_vm7 = vcmp.eq.s32.totalorder %v539_v22, %v551_v38 }
 0x1ce   : > { %v809_v42 = vsel %vm552_vm7, 1.0, %v958_v3 }
 0x1cf   : > { %v945_v26 = vpop.eup %944 }
 0x1d0   : > { %v529_v27 = vsel %vm518_vm2, %v945_v26, 0.0 }
 0x1d1   : > { %v530_v28 = vrot.slane %v529_v27, 4 }
 0x1d3   : > { %v531_v30 = vadd.f32 %v530_v28, %v529_v27 }
 0x1d5   : > { %v532_v31 = vrot.slane %v531_v30, 2 }
 0x1d7   : > { %v533_v33 = vadd.f32 %v532_v31, %v531_v30 }
 0x1d9   : > { %v534_v34 = vrot.slane %v533_v33, 1 }
 0x1db   : > { %v535_v35 = vadd.f32 %v534_v34, %v533_v33 }
 0x1dd   : > { %946 = vrcp.f32 %v535_v35 }
 0x1ea   : > { %v947_v39 = vpop.eup %946 }
 0x1eb   : > { %v537_v41 = vmul.f32 %v947_v39, %v945_v26 }
 0x1ed   : > { %v555_v43 = vsub.f32 %v809_v42, %v537_v41 }
 0x1ef   : > { %v556_v44 = vadd.f32 %v555_v43, %v537_v41 }
 0x1f1   : > { %897 = vmatmul.mubr.msk.f32.vlgmr.msra.gmra.mxu1 %vm557_vm8, %v556_v44 }
 0x2b1   : > { %v627_v46 = vpop.f32.mrf.mxu1 }
 0x2b2   : > { %932 = vmatmul.mubr.f32.vlgmr.msra.gmra.mxu0 %v627_v46 }
 0x2b3   : > { %v898_v47 = vpop.f32.mrf.mxu1 }
 0x372   : > { %v713_v48 = vpop.f32.mrf.mxu0 }
 0x373   : > { %v714_v49 = vadd.f32 %v713_v48, %v1148_v40  ;;  %v811_v40 = vld [vmem:[%s1279_s4] ss:$0 sm:$0xff] }
 0x374   : > { %v933_v50 = vpop.f32.mrf.mxu0 }
 0x375   : > { %v719_v51 = vsel %vm372_vm0, %v714_v49, 0.0 }
 0x376   : > { %720 = vadd.xlane.f32.xlu0 %v719_v51 }
 0x3ff   : > { %v721_v3 = vpop.xlane.xlu0 %720 }
 0x400   : > { %v723_v52 = vmul.f32 0.0078125, %v721_v3 }
 0x402   : > { %v724_v53 = vsub.f32 %v714_v49, %v723_v52 }
 0x404   : > { %v725_v54 = vmul.f32 %v724_v53, %v724_v53 }
 0x406   : > { %v726_v55 = vsel %vm372_vm0, %v725_v54, 0.0 }
 0x407   : > { %727 = vadd.xlane.f32.xlu0 %v726_v55 }
 0x490   : > { %v728_v56 = vpop.xlane.xlu0 %727 }
 0x491   : > { %v729_v57 = vmul.f32 0.0078125, %v728_v56 }
 0x493   : > { %v730_v58 = vadd.f32 1e-06, %v729_v57 }
 0x495   : > { %948 = vrsqrt.f32 %v730_v58 }
 0x4a2   : > { %v949_v59 = vpop.eup %948 }
 0x4a3   : > { %v732_v60 = vmul.f32 %v949_v59, %v724_v53 }
 0x4a5   : > { %v739_v62 = vmul.f32 %v811_v40, %v732_v60 }
 0x4a7   : > { %v746_v63 = vadd.f32 %v812_v61, %v739_v62 }
 0x4a9   : > { %747 = vst [vmem:[%s249_s7] sm:$0xf] %v746_v63 }
 0x4aa PF: > { %s16_s21 = sadd.s32 1, %s956_s21  }
 0x4ab   : > { %p13_p4 = scmp.ge.s32.totalorder %s16_s21, 4  }
 0x4ad   :  { %15 = sbr.rel (!%p13_p4) target bundleno = 1 (0x1), region = 74 }

// kernel: audio_segmenter_forward.10
= control target key start
LH: loop header
LB: loop body
LE: loop exit
PB: predicated region body
PF: predicated region fallthrough
CT: control target
= control target key end

     0   :  { %s2643_s25 = smov 0   ;;  %s3259_s0 = inlined_call_operand.vmem [shape: f32[2,12,128], index: 0, kind: input, shape index: {}]   ;;  %s3260_s1 = inlined_call_operand.vmem [shape: f32[128,384], index: 1, kind: input, shape index: {}]   ;;  %s3261_s2 = inlined_call_operand.vmem [shape: f32[1,384], index: 2, kind: input, shape index: {}]   ;;  %s3262_s3 = inlined_call_operand.vmem [shape: f32[128,128], index: 3, kind: input, shape index: {}]   ;;  %s3263_s4 = inlined_call_operand.vmem [shape: f32[1,128], index: 4, kind: input, shape index: {}]   ;;  %s3264_s5 = inlined_call_operand.vmem [shape: f32[1,128], index: 5, kind: input, shape index: {}]   ;;  %s3265_s6 = inlined_call_operand.vmem [shape: f32[1,128], index: 6, kind: input, shape index: {}]   ;;  %s3266_s7 = inlined_call_operand.vmem [shape: f32[128,256], index: 7, kind: input, shape index: {}]   ;;  %s3267_s8 = inlined_call_operand.vmem [shape: f32[1,256], index: 8, kind: input, shape index: {}]   ;;  %s3268_s9 = inlined_call_operand.vmem [shape: f32[256,128], index: 9, kind: input, shape index: {}]   ;;  %s3269_s10 = inlined_call_operand.vmem [shape: f32[1,128], index: 10, kind: input, shape index: {}]   ;;  %s3270_s11 = inlined_call_operand.vmem [shape: f32[1,128], index: 11, kind: input, shape index: {}]   ;;  %s3271_s12 = inlined_call_operand.vmem [shape: f32[1,128], index: 12, kind: input, shape index: {}]   ;;  %s3272_s13 = inlined_call_operand.vmem [shape: f32[2,12,128], index: 13, kind: output, shape index: {}]  }
   0x1 LB: > { %s2207_s26 = sadd.s32 4294967295, %s2567_s25   ;;  %p2211_p0 = scmp.ge.s32.totalorder %s2567_s25, 1  ;;  %s2567_s25 = sphi %s2643_s25, %s23_s25  }
   0x2   : > { %p387_p1 = scmp.lt.s32.totalorder %s2567_s25, 3 }
   0x4   : > { %p388_p2 = pnand %p2211_p0, %p387_p1 }
   0x5   : > { %p431_p3 = scmp.lt.s32.totalorder (!%p388_p2), %s2207_s26, 1  ;;  %s2570_s27 = smov (!%p388_p2), 96  }
   0x6   : > { %391 = sbr.rel (%p388_p2) target bundleno = 3633 (0xe31), region = 72  ;;  %s2571_s30 = smov (!%p388_p2), 64  }
   0xb   : > { %v489_v0 = vld [vmem:[%s3260_s1 + $0x170] sm:$0xff]  ;;  %v488_v1 = vld [vmem:[%s3260_s1 + $0x168] sm:$0xff]  ;;  %v486_v2 = vld [vmem:[%s3260_s1 + $0x158] sm:$0xff]  ;;  %v2569_v4 = vmov 0.0   ;;  %s3274_s26 = smov (!%p431_p3, %s2207_s26), 1  ;;  %v493_v35 = vlaneseq  ;;  %vm660_vm0 = vcmask 261120  }
   0xc   : > { %508 = vmatprep.subr.mxu0 %v489_v0  ;;  %v485_v3 = vld [vmem:[%s3260_s1 + $0x150] sm:$0xff]  ;;  %572 = vmatprep.mubr.f32.mxu0 %v2569_v4  ;;  %v483_v5 = vld [vmem:[%s3260_s1 + $0x140] sm:$0xff]  ;;  %v482_v6 = vld [vmem:[%s3260_s1 + $0x138] sm:$0xff]  ;;  %s2260_s24 = sshll.u32 %s3274_s26, 4  ;;  %vm750_vm1 = vcmask 97280   ;;  %vm754_vm2 = vcmask 93184  }
   0xd   : > { %509 = vmatpush1.msra.mxu0 %v488_v1  ;;  %v480_v7 = vld [vmem:[%s3260_s1 + $0x128] sm:$0xff]  ;;  %v479_v8 = vld [vmem:[%s3260_s1 + $0x120] sm:$0xff]  ;;  %v477_v9 = vld [vmem:[%s3260_s1 + $0x110] sm:$0xff]  ;;  %s2690_s18 = scalar_lea.vmem %s3259_s0, %s2260_s24  ;;  %v2768_v36 = vshrl.u32 %v493_v35, 7  ;;  %vm780_vm3 = vcmask 1043456  }
   0xe   : > { %510 = vmatprep.subr.mxu0 %v486_v2  ;;  %v476_v10 = vld [vmem:[%s3260_s1 + $0x108] sm:$0xff]  ;;  %v474_v11 = vld [vmem:[%s3260_s1 + $0xf8] sm:$0xff]  ;;  %v473_v12 = vld [vmem:[%s3260_s1 + $0xf0] sm:$0xff] }
   0xf   : > { %511 = vmatpush1.msra.mxu0 %v485_v3  ;;  %v471_v13 = vld [vmem:[%s3260_s1 + $0xe0] sm:$0xff]  ;;  %v470_v15 = vld [vmem:[%s3260_s1 + $0xd8] sm:$0xff]  ;;  %v468_v16 = vld [vmem:[%s3260_s1 + $0xc8] sm:$0xff]  ;;  %v495_v37 = vsub.s32 0, %v2768_v36  ;;  %v499_v39 = vsub.s32 1, %v2768_v36 }
  0x10   : > { %512 = vmatprep.subr.mxu0 %v483_v5  ;;  %v2702_v14 = vld [vmem:[%s2690_s18] sm:$0xff]  ;;  %v465_v18 = vld [vmem:[%s3260_s1 + $0xb0] sm:$0xff]  ;;  %v464_v19 = vld [vmem:[%s3260_s1 + $0xa8] sm:$0xff] }
  0x11   : > { %513 = vmatpush1.msra.mxu0 %v482_v6  ;;  %2406 = vmatprep.mubr.f32.mxu1 %v2702_v14  ;;  %v467_v17 = vld [vmem:[%s3260_s1 + $0xc0] sm:$0xff]  ;;  %v462_v20 = vld [vmem:[%s3260_s1 + $0x98] sm:$0xff]  ;;  %v461_v21 = vld [vmem:[%s3260_s1 + $0x90] sm:$0xff] }
  0x12   : > { %514 = vmatprep.subr.mxu0 %v480_v7  ;;  %v459_v22 = vld [vmem:[%s3260_s1 + $0x80] sm:$0xff]  ;;  %v458_v23 = vld [vmem:[%s3260_s1 + $0x78] sm:$0xff]  ;;  %v456_v24 = vld [vmem:[%s3260_s1 + $0x68] sm:$0xff] }
  0x13   : > { %515 = vmatpush1.msra.mxu0 %v479_v8  ;;  %v455_v25 = vld [vmem:[%s3260_s1 + $0x60] sm:$0xff]  ;;  %v453_v26 = vld [vmem:[%s3260_s1 + $0x50] sm:$0xff]  ;;  %v452_v27 = vld [vmem:[%s3260_s1 + $0x48] sm:$0xff] }
  0x14   : > { %516 = vmatprep.subr.mxu0 %v477_v9  ;;  %v450_v28 = vld [vmem:[%s3260_s1 + $0x38] sm:$0xff]  ;;  %v449_v29 = vld [vmem:[%s3260_s1 + $0x30] sm:$0xff]  ;;  %v447_v30 = vld [vmem:[%s3260_s1 + $0x20] sm:$0xff]  ;;  %v503_v9 = vsub.s32 2, %v2768_v36 }
  0x15   : > { %517 = vmatpush1.msra.mxu0 %v476_v10  ;;  %v446_v31 = vld [vmem:[%s3260_s1 + $0x18] sm:$0xff]  ;;  %v444_v32 = vld [vmem:[%s3260_s1 + $0x8] sm:$0xff]  ;;  %v443_v33 = vld [vmem:[%s3260_s1] sm:$0xff] }
  0x16   : > { %518 = vmatprep.subr.mxu0 %v474_v11  ;;  %v2765_v34 = vld [vmem:[%s2690_s18 + $0x8] sm:$0xf]  ;;  %v2774_v38 = vld [vmem:[%s3261_s2] sm:$0x7]  ;;  %v490_v40 = vld [vmem:[%s3260_s1 + $0x178] sm:$0xff]  ;;  %s2572_s18 = smov 32  }
  0x17   : > { %519 = vmatpush1.msra.mxu0 %v473_v12  ;;  %v487_v41 = vld [vmem:[%s3260_s1 + $0x160] sm:$0xff]  ;;  %2374 = vmatprep.subr.mxu1 %v490_v40  ;;  %v496_v42 = vrot.slane %v2774_v38, %v495_v37  ;;  %v484_v43 = vld [vmem:[%s3260_s1 + $0x148] sm:$0xff]  ;;  %v500_v44 = vrot.slane %v2774_v38, %v499_v39  ;;  %v481_v45 = vld [vmem:[%s3260_s1 + $0x130] sm:$0xff]  ;;  %v504_v10 = vrot.slane %v2774_v38, %v503_v9 }
  0x18   : > { %520 = vmatprep.subr.mxu0 %v471_v13  ;;  %2375 = vmatpush3.msra.mxu1 %v490_v40  ;;  %v478_v48 = vld [vmem:[%s3260_s1 + $0x118] sm:$0xff]  ;;  %v475_v51 = vld [vmem:[%s3260_s1 + $0x100] sm:$0xff]  ;;  %v472_v53 = vld [vmem:[%s3260_s1 + $0xe8] sm:$0xff] }
  0x19   : > { %521 = vmatpush1.msra.mxu0 %v470_v15  ;;  %2376 = vmatprep.subr.mxu1 %v487_v41  ;;  %v469_v56 = vld [vmem:[%s3260_s1 + $0xd0] sm:$0xff]  ;;  %v466_v57 = vld [vmem:[%s3260_s1 + $0xb8] sm:$0xff]  ;;  %v463_v58 = vld [vmem:[%s3260_s1 + $0xa0] sm:$0xff] }
  0x1a   : > { %522 = vmatprep.subr.mxu0 %v468_v16  ;;  %2377 = vmatpush3.msra.mxu1 %v487_v41  ;;  %v460_v59 = vld [vmem:[%s3260_s1 + $0x88] sm:$0xff]  ;;  %v457_v61 = vld [vmem:[%s3260_s1 + $0x70] sm:$0xff]  ;;  %v454_v62 = vld [vmem:[%s3260_s1 + $0x58] sm:$0xff] }
  0x1b   : > { %523 = vmatpush1.msra.mxu0 %v467_v17  ;;  %2378 = vmatprep.subr.mxu1 %v484_v43  ;;  %v451_v63 = vld [vmem:[%s3260_s1 + $0x40] sm:$0xff]  ;;  %v448_v0 = vld [vmem:[%s3260_s1 + $0x28] sm:$0xff]  ;;  %v445_v1 = vld [vmem:[%s3260_s1 + $0x10] sm:$0xff] }
  0x1c   : > { %524 = vmatprep.subr.mxu0 %v465_v18  ;;  %2379 = vmatpush3.msra.mxu1 %v484_v43  ;;  %v861_v9 = vld [vmem:[%s3262_s3 + $0x10] sm:$0xff]  ;;  %v2255_v36 = vld [vmem:[%s3269_s10] ss:$0 sm:$0xff] }
  0x1d   : > { %525 = vmatpush1.msra.mxu0 %v464_v19  ;;  %2380 = vmatprep.subr.mxu1 %v481_v45 }
  0x1e   : > { %526 = vmatprep.subr.mxu0 %v462_v20  ;;  %2381 = vmatpush3.msra.mxu1 %v481_v45 }
  0x1f   : > { %527 = vmatpush1.msra.mxu0 %v461_v21  ;;  %2382 = vmatprep.subr.mxu1 %v478_v48 }
  0x20   : > { %528 = vmatprep.subr.mxu0 %v459_v22  ;;  %2383 = vmatpush3.msra.mxu1 %v478_v48 }
  0x21   : > { %529 = vmatpush1.msra.mxu0 %v458_v23  ;;  %2384 = vmatprep.subr.mxu1 %v475_v51 }
  0x22   : > { %530 = vmatprep.subr.mxu0 %v456_v24  ;;  %2385 = vmatpush3.msra.mxu1 %v475_v51  ;;  %v1069_v51 = vld [vmem:[%s3262_s3 + $0x30] sm:$0xff] }
  0x23   : > { %531 = vmatpush1.msra.mxu0 %v455_v25  ;;  %2386 = vmatprep.subr.mxu1 %v472_v53 }
  0x24   : > { %532 = vmatprep.subr.mxu0 %v453_v26  ;;  %2387 = vmatpush3.msra.mxu1 %v472_v53  ;;  %v1067_v53 = vld [vmem:[%s3262_s3 + $0x20] sm:$0xff] }
  0x25   : > { %533 = vmatpush1.msra.mxu0 %v452_v27  ;;  %2388 = vmatprep.subr.mxu1 %v469_v56 }
  0x26   : > { %534 = vmatprep.subr.mxu0 %v450_v28  ;;  %2389 = vmatpush3.msra.mxu1 %v469_v56 }
  0x27   : > { %535 = vmatpush1.msra.mxu0 %v449_v29  ;;  %2390 = vmatprep.subr.mxu1 %v466_v57 }
  0x28   : > { %536 = vmatprep.subr.mxu0 %v447_v30  ;;  %2391 = vmatpush3.msra.mxu1 %v466_v57 }
  0x29   : > { %537 = vmatpush1.msra.mxu0 %v446_v31  ;;  %2392 = vmatprep.subr.mxu1 %v463_v58 }
  0x2a   : > { %538 = vmatprep.subr.mxu0 %v444_v32  ;;  %2393 = vmatpush3.msra.mxu1 %v463_v58 }
  0x2b   : > { %539 = vmatpush1.msra.mxu0 %v443_v33  ;;  %2394 = vmatprep.subr.mxu1 %v460_v59 }
  0x2c   : > { %573 = vmatmul.mubr.f32.vlgmr.msra.gmra.mxu0 %v2702_v14  ;;  %2395 = vmatpush3.msra.mxu1 %v460_v59 }
  0x2d   : > { %578 = vmatprep.mubr.f32.mxu0 %v2569_v4  ;;  %2396 = vmatprep.subr.mxu1 %v457_v61 }
  0x2e   : > { %2397 = vmatpush3.msra.mxu1 %v457_v61 }
  0x2f   : > { %2398 = vmatprep.subr.mxu1 %v454_v62 }
  0x30   : > { %579 = vmatmul.mubr.f32.gmra.mxu0 %v2765_v34  ;;  %2399 = vmatpush3.msra.mxu1 %v454_v62 }
  0x31   : > { %2400 = vmatprep.subr.mxu1 %v451_v63 }
  0x32   : > { %2401 = vmatpush3.msra.mxu1 %v451_v63 }
  0x33   : > { %2402 = vmatprep.subr.mxu1 %v448_v0 }
  0x34   : > { %2403 = vmatpush3.msra.mxu1 %v448_v0 }
  0x35   : > { %2404 = vmatprep.subr.mxu1 %v445_v1 }
  0x36   : > { %2405 = vmatpush3.msra.mxu1 %v445_v1 }
  0x37   : > { %2407 = vmatmul.mubr.f32.vlgmr.msra.gmra.mxu1 %v2765_v34 }
  0xec   : > { %v574_v46 = vpop.f32.mrf.mxu0 }
  0xed   : > { %v2795_v47 = vadd.f32 %v574_v46, %v496_v42 }
  0xee   : > { %v576_v49 = vpop.f32.mrf.mxu0 }
  0xef   : > { %v2800_v50 = vadd.f32 %v576_v49, %v500_v44  ;;  %2413 = vmatprep.mubr.msk.f32.mxu0 %vm660_vm0, %v2795_v47  ;;  %v1070_v49 = vld [vmem:[%s3262_s3 + $0x38] sm:$0xff] }
  0xf0   : > { %v580_v52 = vpop.f32.mrf.mxu0 }
  0xf1   : > { %867 = vrot.lane.b32.xlu1 %v2800_v50, %s2570_s27  ;;  %v2836_v60 = vadd.f32 %v580_v52, %v496_v42  ;;  %v1068_v52 = vld [vmem:[%s3262_s3 + $0x28] sm:$0xff] }
  0xf2   : > { %v582_v54 = vpop.f32.mrf.mxu0 }
  0xf3   : > { %v2812_v55 = vadd.f32 %v582_v54, %v500_v44 }
  0xf5   : > { %2409 = vmatprep.subr.msk.mxu0 %vm660_vm0, %v2812_v55  ;;  %863 = vrot.lane.b32.xlu1 %v2795_v47, %s2570_s27 }
  0xf6   : > { %2410 = vmatpush3.xpose.msk.msra.mxu0 %vm660_vm0, %v2812_v55 }
  0xf7   : > { %2411 = vmatprep.subr.msk.mxu0 %vm660_vm0, %v2800_v50  ;;  %v2408_v11 = vpop.f32.mrf.mxu1 }
  0xf8   : > { %v2860_v12 = vadd.f32 %v2408_v11, %v504_v10  ;;  %v859_v11 = vld [vmem:[%s3262_s3] sm:$0xff] }
  0xf9   : > { %v651_v13 = vpop.f32.mrf.mxu1 }
  0xfa   : > { %2412 = vmatpush3.xpose.msk.msra.mxu0 %vm660_vm0, %v2800_v50  ;;  %v2862_v15 = vadd.f32 %v651_v13, %v504_v10  ;;  %2416 = vmatprep.subr.msk.mxu1 %vm780_vm3, %v2860_v12  ;;  %v860_v10 = vld [vmem:[%s3262_s3 + $0x8] sm:$0xff] }
  0xfb   : > { %2417 = vmatpush3.msk.msra.mxu1 %vm780_vm3, %v2860_v12  ;;  %2437 = vmatprep.subr.mxu0 %v1070_v49 }
  0xfc   : > { %2418 = vmatprep.subr.mxu1 %v2862_v15 }
  0xfd   : > { %2414 = vmatmul.mubr.msk.f32.vlgmr.msra.gmra.mxu0 %vm660_vm0, %v2836_v60  ;;  %2419 = vmatpush3.msra.mxu1 %v2862_v15 }
  0xfe   : > { %2438 = vmatpush3.msra.mxu0 %v1070_v49 }
  0xff   : > { %2439 = vmatprep.subr.mxu0 %v1069_v51 }
 0x100   : > { %2440 = vmatpush3.msra.mxu0 %v1069_v51 }
 0x101   : > { %2441 = vmatprep.subr.mxu0 %v1068_v52 }
 0x102   : > { %2442 = vmatpush3.msra.mxu0 %v1068_v52 }
 0x103   : > { %2443 = vmatprep.subr.mxu0 %v1067_v53 }
 0x104   : > { %2444 = vmatpush3.msra.mxu0 %v1067_v53 }
 0x163   : > { %v868_v27 = vpop.permute.xlu1 %867 }
 0x167   : > { %v864_v28 = vpop.permute.xlu1 %863 }
 0x1bd   : > { %v2415_v2 = vpop.f32.mrf.mxu0 }
 0x1be   : > { %v749_v6 = vmul.f32 0.17677669, %v2415_v2 }
 0x1bf   : > { %v739_v3 = vpop.f32.mrf.mxu0 }
 0x1c0   : > { %v748_v5 = vmul.f32 0.17677669, %v739_v3  ;;  %v755_v8 = vsel %vm754_vm2, %v749_v6, -inf }
 0x1c2   : > { %v751_v7 = vsel %vm750_vm1, %v748_v5, -inf }
 0x1c3   : > { %752 = vmax.xlane.f32.xlu0 %v751_v7 }
 0x1c7   : > { %756 = vmax.xlane.f32.xlu0 %v755_v8 }
 0x1dd   : > { %869 = vrot.lane.b32.xlu0 %v2812_v55, %s2570_s27 }
 0x24c   : > { %v753_v16 = vpop.xlane.xlu0 %752 }
 0x24d   : > { %v758_v17 = vsub.f32 %v748_v5, %v753_v16 }
 0x24f   : > { %v760_v20 = vmul.f32 1.442695, %v758_v17 }
 0x250   : > { %v757_v18 = vpop.xlane.xlu0 %756 }
 0x251   : > { %v759_v19 = vsub.f32 %v749_v6, %v757_v18  ;;  %v862_v6 = vld [vmem:[%s3262_s3 + $0x18] sm:$0xff] }
 0x253   : > { %v762_v21 = vmul.f32 1.442695, %v759_v19 }
 0x254   : > { %v870_v22 = vpop.permute.xlu0 %869 }
 0x255   : > { %2521 = vpow2.f32 %v762_v21  ;;  %2423 = vmatprep.subr.msk.mxu1 %vm660_vm0, %v870_v22 }
 0x256   : > { %2523 = vpow2.f32 %v760_v20 }
 0x262   : > { %v2522_v23 = vpop.eup %2521 }
 0x263   : > { %v767_v24 = vsel %vm754_vm2, %v2522_v23, 0.0  ;;  %v2524_v25 = vpop.eup %2523 }
 0x264   : > { %768 = vadd.xlane.f32.xlu1 %v767_v24  ;;  %v764_v26 = vsel %vm750_vm1, %v2524_v25, 0.0 }
 0x268   : > { %765 = vadd.xlane.f32.xlu1 %v764_v26 }
 0x279   : > { %865 = vrot.lane.b32.xlu1 %v2836_v60, %s2570_s27 }
 0x2ed   : > { %v769_v29 = vpop.xlane.xlu1 %768 }
 0x2ee   : > { %2525 = vrcp.f32 %v769_v29 }
 0x2f1   : > { %v766_v30 = vpop.xlane.xlu1 %765 }
 0x2f2   : > { %2527 = vrcp.f32 %v766_v30 }
 0x2f5   : > { %v866_v38 = vpop.permute.xlu1 %865 }
 0x2fb   : > { %v2526_v31 = vpop.eup %2525 }
 0x2fc   : > { %v773_v35 = vmul.f32 %v2526_v31, %v2522_v23 }
 0x2ff   : > { %v2528_v32 = vpop.eup %2527 }
 0x300   : > { %v772_v33 = vmul.f32 %v2528_v32, %v2524_v25 }
 0x302   : > { %2420 = vmatprep.mubr.msk.f32.mxu1 %vm750_vm1, %v772_v33 }
 0x303   : > { %2421 = vmatmul.mubr.msk.f32.vlgmr.msra.gmra.mxu1 %vm750_vm1, %v773_v35 }
 0x304   : > { %2424 = vmatpush3.xpose.msk.msra.mxu1 %vm660_vm0, %v870_v22  ;;  %2427 = vmatprep.mubr.msk.f32.mxu1 %vm660_vm0, %v864_v28 }
 0x305   : > { %2425 = vmatprep.subr.msk.mxu1 %vm660_vm0, %v868_v27 }
 0x308   : > { %2426 = vmatpush3.xpose.msk.msra.mxu1 %vm660_vm0, %v868_v27 }
 0x30b   : > { %2428 = vmatmul.mubr.msk.f32.vlgmr.msra.gmra.mxu1 %vm660_vm0, %v866_v38 }
 0x3c3   : > { %v2884_v40 = vpop.f32.mrf.mxu1 }
 0x3c5   : > { %v2886_v41 = vpop.f32.mrf.mxu1 }
 0x3cb   : > { %v2429_v42 = vpop.f32.mrf.mxu1 }
 0x3cc   : > { %v955_v43 = vmul.f32 0.17677669, %v2429_v42 }
 0x3cd   : > { %v945_v44 = vpop.f32.mrf.mxu1 }
 0x3ce   : > { %v954_v45 = vmul.f32 0.17677669, %v945_v44  ;;  %v959_v46 = vsel %vm754_vm2, %v955_v43, -inf }
 0x3cf   : > { %960 = vmax.xlane.f32.xlu1 %v959_v46 }
 0x3d0   : > { %v956_v48 = vsel %vm750_vm1, %v954_v45, -inf }
 0x3d1   : > { %957 = vmax.xlane.f32.xlu0 %v956_v48 }
 0x3e0   : > { %979 = vrot.lane.b32.xlu1 %v2862_v15, %s2570_s27 }
 0x3e4   : > { %1239 = vrot.lane.b32.xlu1 %v2812_v55, %s2571_s30 }
 0x3e8   : > { %1237 = vrot.lane.b32.xlu1 %v2800_v50, %s2571_s30 }
 0x3ec   : > { %1235 = vrot.lane.b32.xlu1 %v2836_v60, %s2571_s30 }
 0x3f0   : > { %1527 = vrot.lane.b32.xlu1 %v2800_v50, %s2572_s18 }
 0x3f4   : > { %1525 = vrot.lane.b32.xlu1 %v2836_v60, %s2572_s18 }
 0x458   : > { %v961_v54 = vpop.xlane.xlu1 %960 }
 0x459   : > { %v963_v56 = vsub.f32 %v955_v43, %v961_v54 }
 0x45a   : > { %v958_v57 = vpop.xlane.xlu0 %957 }
 0x45b   : > { %v966_v58 = vmul.f32 1.442695, %v963_v56  ;;  %v962_v59 = vsub.f32 %v954_v45, %v958_v57 }
 0x45c   : > { %v980_v61 = vpop.permute.xlu1 %979 }
 0x45d   : > { %2529 = vpow2.f32 %v966_v58  ;;  %v964_v62 = vmul.f32 1.442695, %v962_v59 }
 0x45f   : > { %2531 = vpow2.f32 %v964_v62 }
 0x460   : > { %v1240_v63 = vpop.permute.xlu1 %1239 }
 0x461   : > { %2459 = vmatprep.subr.msk.mxu0 %vm660_vm0, %v1240_v63 }
 0x464   : > { %v1238_v17 = vpop.permute.xlu1 %1237 }
 0x468   : > { %v1236_v20 = vpop.permute.xlu1 %1235 }
 0x46a   : > { %v2530_v0 = vpop.eup %2529 }
 0x46b   : > { %v971_v1 = vsel %vm754_vm2, %v2530_v0, 0.0 }
 0x46c   : > { %v2532_v2 = vpop.eup %2531  ;;  %972 = vadd.xlane.f32.xlu0 %v971_v1  ;;  %v1528_v22 = vpop.permute.xlu1 %1527  ;;  %v1439_v1 = vld [vmem:[%s3262_s3 + $0x58] sm:$0xff] }
 0x46d   : > { %v968_v50 = vsel %vm750_vm1, %v2532_v2, 0.0 }
 0x470   : > { %969 = vadd.xlane.f32.xlu0 %v968_v50  ;;  %v1526_v23 = vpop.permute.xlu1 %1525 }
 0x486   : > { %981 = vrot.lane.b32.xlu0 %v2860_v12, %s2570_s27  ;;  %s440_s27 = scalar_lea.vmem %s3272_s13, %s2260_s24 }
 0x48a   : > { %1233 = vrot.lane.b32.xlu0 %v2795_v47, %s2571_s30 }
 0x48e   : > { %1529 = vrot.lane.b32.xlu0 %v2812_v55, %s2572_s18 }
 0x492   : > { %1523 = vrot.lane.b32.xlu0 %v2795_v47, %s2572_s18 }
 0x4f5   : > { %v973_v60 = vpop.xlane.xlu0 %972 }
 0x4f6   : > { %2533 = vrcp.f32 %v973_v60 }
 0x4f9   : > { %v970_v3 = vpop.xlane.xlu0 %969 }
 0x4fa   : > { %2535 = vrcp.f32 %v970_v3  ;;  %v1438_v3 = vld [vmem:[%s3262_s3 + $0x50] sm:$0xff] }
 0x4fd   : > { %v982_v5 = vpop.permute.xlu0 %981 }
 0x4fe   : > { %2430 = vmatprep.subr.msk.mxu1 %vm780_vm3, %v982_v5 }
 0x4ff   : > { %2431 = vmatpush3.msk.msra.mxu1 %vm780_vm3, %v982_v5  ;;  %v1437_v5 = vld [vmem:[%s3262_s3 + $0x48] sm:$0xff] }
 0x500   : > { %2432 = vmatprep.subr.mxu1 %v980_v61 }
 0x501   : > { %2433 = vmatpush3.msra.mxu1 %v980_v61  ;;  %v1234_v13 = vpop.permute.xlu0 %1233 }
 0x502   : > { %2448 = vmatprep.subr.mxu1 %v862_v6 }
 0x503   : > { %v2534_v55 = vpop.eup %2533 }
 0x504   : > { %v977_v47 = vmul.f32 %v2534_v55, %v2530_v0 }
 0x505   : > { %v1530_v19 = vpop.permute.xlu0 %1529 }
 0x507   : > { %v2536_v7 = vpop.eup %2535 }
 0x508   : > { %v976_v8 = vmul.f32 %v2536_v7, %v2532_v2 }
 0x509   : > { %v1524_v21 = vpop.permute.xlu0 %1523 }
 0x50a   : > { %2434 = vmatprep.mubr.msk.f32.mxu1 %vm750_vm1, %v976_v8 }
 0x50b   : > { %2435 = vmatmul.mubr.msk.f32.vlgmr.msra.gmra.mxu1 %vm750_vm1, %v977_v47 }
 0x50c   : > { %2449 = vmatpush3.msra.mxu1 %v862_v6  ;;  %2456 = vmatprep.mubr.msk.f32.mxu1 %vm660_vm0, %v2886_v41  ;;  %v1436_v6 = vld [vmem:[%s3262_s3 + $0x40] sm:$0xff] }
 0x50d   : > { %2450 = vmatprep.subr.mxu1 %v861_v9 }
 0x50e   : > { %2451 = vmatpush3.msra.mxu1 %v861_v9 }
 0x50f   : > { %2452 = vmatprep.subr.mxu1 %v860_v10 }
 0x510   : > { %2453 = vmatpush3.msra.mxu1 %v860_v10 }
 0x511   : > { %2454 = vmatprep.subr.mxu1 %v859_v11 }
 0x512   : > { %2455 = vmatpush3.msra.mxu1 %v859_v11 }
 0x513   : > { %2457 = vmatmul.mubr.msk.f32.vlgmr.msra.gmra.mxu1 %vm660_vm0, %v2884_v40 }
 0x5cb   : > { %v2436_v16 = vpop.f32.mrf.mxu1 }
 0x5cd   : > { %v1058_v18 = vpop.f32.mrf.mxu1 }
 0x5ce   : > { %2445 = vmatprep.mubr.msk.f32.mxu0 %vm660_vm0, %v1058_v18 }
 0x5cf   : > { %2446 = vmatmul.mubr.msk.f32.vlgmr.msra.gmra.mxu0 %vm660_vm0, %v2436_v16 }
 0x5d0   : > { %2460 = vmatpush3.xpose.msk.msra.mxu0 %vm660_vm0, %v1240_v63  ;;  %2463 = vmatprep.mubr.msk.f32.mxu0 %vm660_vm0, %v1234_v13 }
 0x5d1   : > { %2461 = vmatprep.subr.msk.mxu0 %vm660_vm0, %v1238_v17 }
 0x5d3   : > { %v2458_v13 = vpop.f32.mrf.mxu1 }
 0x5d4   : > { %2462 = vmatpush3.xpose.msk.msra.mxu0 %vm660_vm0, %v1238_v17 }
 0x5d5   : > { %2484 = vmatprep.subr.msk.mxu0 %vm660_vm0, %v1530_v19  ;;  %v1224_v16 = vpop.f32.mrf.mxu1 }
 0x5d7   : > { %2464 = vmatmul.mubr.msk.f32.vlgmr.msra.gmra.mxu0 %vm660_vm0, %v1236_v20 }
 0x5d8   : > { %2485 = vmatpush3.xpose.msk.msra.mxu0 %vm660_vm0, %v1530_v19  ;;  %2488 = vmatprep.mubr.msk.f32.mxu0 %vm660_vm0, %v1524_v21 }
 0x5d9   : > { %2486 = vmatprep.subr.msk.mxu0 %vm660_vm0, %v1528_v22 }
 0x5dc   : > { %2487 = vmatpush3.xpose.msk.msra.mxu0 %vm660_vm0, %v1528_v22 }
 0x5df   : > { %2489 = vmatmul.mubr.msk.f32.vlgmr.msra.gmra.mxu0 %vm660_vm0, %v1526_v23 }
 0x68f   : > { %v2958_v24 = vpop.f32.mrf.mxu0 }
 0x691   : > { %v2960_v25 = vpop.f32.mrf.mxu0 }
 0x697   : > { %v2465_v26 = vpop.f32.mrf.mxu0 }
 0x698   : > { %v1325_v27 = vmul.f32 0.17677669, %v2465_v26  ;;  %v1729_v26 = vld [vmem:[%s3262_s3 + $0x78] sm:$0xff] }
 0x699   : > { %v1315_v28 = vpop.f32.mrf.mxu0  ;;  %2498 = vmatprep.subr.mxu0 %v1729_v26 }
 0x69a   : > { %v1324_v29 = vmul.f32 0.17677669, %v1315_v28  ;;  %v1329_v30 = vsel %vm754_vm2, %v1325_v27, -inf  ;;  %2499 = vmatpush3.msra.mxu0 %v1729_v26  ;;  %v1727_v28 = vld [vmem:[%s3262_s3 + $0x68] sm:$0xff]  ;;  %v1869_v26 = vld [vmem:[%s3266_s7 + $0x10] sm:$0xff] }
 0x69b   : > { %1330 = vmax.xlane.f32.xlu1 %v1329_v30  ;;  %v1230_v30 = vadd.f32 %v2458_v13, %v2958_v24  ;;  %v1879_v13 = vld [vmem:[%s3266_s7 + $0x60] sm:$0xff] }
 0x69c   : > { %v1326_v31 = vsel %vm750_vm1, %v1324_v29, -inf }
 0x69d   : > { %1327 = vmax.xlane.f32.xlu0 %v1326_v31 }
 0x69f   : > { %v2490_v32 = vpop.f32.mrf.mxu0 }
 0x6a0   : > { %v1615_v57 = vmul.f32 0.17677669, %v2490_v32  ;;  %v1225_v32 = vadd.f32 %v1224_v16, %v2960_v25  ;;  %v1878_v16 = vld [vmem:[%s3266_s7 + $0x58] sm:$0xff] }
 0x6a1   : > { %v1605_v33 = vpop.f32.mrf.mxu0 }
 0x6a2   : > { %v1614_v35 = vmul.f32 0.17677669, %v1605_v33  ;;  %v1619_v58 = vsel %vm754_vm2, %v1615_v57, -inf }
 0x6a4   : > { %v1616_v38 = vsel %vm750_vm1, %v1614_v35, -inf }
 0x6ac   : > { %1348 = vrot.lane.b32.xlu1 %v2862_v15, %s2571_s30 }
 0x6d0   : > { %1617 = vmax.xlane.f32.xlu1 %v1616_v38 }
 0x724   : > { %v1331_v40 = vpop.xlane.xlu1 %1330 }
 0x725   : > { %v1333_v41 = vsub.f32 %v1325_v27, %v1331_v40  ;;  %v1728_v27 = vld [vmem:[%s3262_s3 + $0x70] sm:$0xff] }
 0x726   : > { %v1328_v42 = vpop.xlane.xlu0 %1327  ;;  %2500 = vmatprep.subr.mxu0 %v1728_v27 }
 0x727   : > { %v1336_v43 = vmul.f32 1.442695, %v1333_v41  ;;  %v1332_v44 = vsub.f32 %v1324_v29, %v1328_v42  ;;  %2501 = vmatpush3.msra.mxu0 %v1728_v27  ;;  %v1726_v29 = vld [vmem:[%s3262_s3 + $0x60] sm:$0xff]  ;;  %v1868_v27 = vld [vmem:[%s3266_s7 + $0x8] sm:$0xff] }
 0x728   : > { %v1349_v52 = vpop.permute.xlu1 %1348  ;;  %2502 = vmatprep.subr.mxu0 %v1727_v28 }
 0x729   : > { %2537 = vpow2.f32 %v1336_v43  ;;  %v1334_v45 = vmul.f32 1.442695, %v1332_v44  ;;  %2503 = vmatpush3.msra.mxu0 %v1727_v28  ;;  %v2252_v43 = vld [vmem:[%s3263_s4] ss:$0 sm:$0xff] }
 0x72a   : > { %2504 = vmatprep.subr.mxu0 %v1726_v29  ;;  %v1867_v28 = vld [vmem:[%s3266_s7] sm:$0xff] }
 0x72b   : > { %2539 = vpow2.f32 %v1334_v45  ;;  %2505 = vmatpush3.msra.mxu0 %v1726_v29  ;;  %v2023_v29 = vld [vmem:[%s3268_s9 + $0xf8] sm:$0xff] }
 0x72c   : > { %2336 = vmatprep.subr.mxu0 %v2023_v29 }
 0x736   : > { %v2538_v46 = vpop.eup %2537 }
 0x737   : > { %v1341_v48 = vsel %vm754_vm2, %v2538_v46, 0.0 }
 0x738   : > { %v2540_v49 = vpop.eup %2539  ;;  %1342 = vadd.xlane.f32.xlu0 %v1341_v48 }
 0x739   : > { %v1338_v51 = vsel %vm750_vm1, %v2540_v49, 0.0 }
 0x73c   : > { %1339 = vadd.xlane.f32.xlu0 %v1338_v51 }
 0x752   : > { %1350 = vrot.lane.b32.xlu0 %v2860_v12, %s2571_s30 }
 0x759   : > { %v1618_v53 = vpop.xlane.xlu1 %1617 }
 0x75a   : > { %v1622_v54 = vsub.f32 %v1614_v35, %v1618_v53  ;;  %v1897_v53 = vld [vmem:[%s3266_s7 + $0xf0] sm:$0xff] }
 0x75c   : > { %v1624_v56 = vmul.f32 1.442695, %v1622_v54  ;;  %v1896_v54 = vld [vmem:[%s3266_s7 + $0xe8] sm:$0xff] }
 0x75e   : > { %2541 = vpow2.f32 %v1624_v56  ;;  %v1893_v56 = vld [vmem:[%s3266_s7 + $0xd0] sm:$0xff] }
 0x76b   : > { %v2542_v59 = vpop.eup %2541 }
 0x76c   : > { %v1628_v61 = vsel %vm750_vm1, %v2542_v59, 0.0 }
 0x771   : > { %1620 = vmax.xlane.f32.xlu0 %v1619_v58  ;;  %v1891_v58 = vld [vmem:[%s3266_s7 + $0xc0] sm:$0xff] }
 0x775   : > { %1629 = vadd.xlane.f32.xlu0 %v1628_v61 }
 0x78b   : > { %1640 = vrot.lane.b32.xlu0 %v2860_v12, %s2572_s18 }
 0x7c1   : > { %v1343_v62 = vpop.xlane.xlu0 %1342 }
 0x7c2   : > { %2543 = vrcp.f32 %v1343_v62 }
 0x7c5   : > { %v1340_v63 = vpop.xlane.xlu0 %1339 }
 0x7c6   : > { %2545 = vrcp.f32 %v1340_v63 }
 0x7c9   : > { %v1351_v0 = vpop.permute.xlu0 %1350 }
 0x7ca   : > { %2466 = vmatprep.subr.msk.mxu1 %vm780_vm3, %v1351_v0 }
 0x7cb   : > { %2467 = vmatpush3.msk.msra.mxu1 %vm780_vm3, %v1351_v0 }
 0x7cc   : > { %2468 = vmatprep.subr.mxu1 %v1349_v52 }
 0x7cd   : > { %2469 = vmatpush3.msra.mxu1 %v1349_v52  ;;  %v1898_v52 = vld [vmem:[%s3266_s7 + $0xf8] sm:$0xff] }
 0x7ce   : > { %2473 = vmatprep.subr.mxu1 %v1439_v1 }
 0x7cf   : > { %v2544_v2 = vpop.eup %2543 }
 0x7d0   : > { %v1347_v12 = vmul.f32 %v2544_v2, %v2538_v46 }
 0x7d3   : > { %v2546_v50 = vpop.eup %2545 }
 0x7d4   : > { %v1346_v60 = vmul.f32 %v2546_v50, %v2540_v49 }
 0x7d6   : > { %2470 = vmatprep.mubr.msk.f32.mxu1 %vm750_vm1, %v1346_v60 }
 0x7d7   : > { %2471 = vmatmul.mubr.msk.f32.vlgmr.msra.gmra.mxu1 %vm750_vm1, %v1347_v12  ;;  %v1890_v12 = vld [vmem:[%s3266_s7 + $0xb8] sm:$0xff] }
 0x7d8   : > { %2474 = vmatpush3.msra.mxu1 %v1439_v1 }
 0x7d9   : > { %2475 = vmatprep.subr.mxu1 %v1438_v3 }
 0x7da   : > { %2476 = vmatpush3.msra.mxu1 %v1438_v3  ;;  %v1889_v3 = vld [vmem:[%s3266_s7 + $0xb0] sm:$0xff] }
 0x7db   : > { %2477 = vmatprep.subr.mxu1 %v1437_v5 }
 0x7dc   : > { %2478 = vmatpush3.msra.mxu1 %v1437_v5  ;;  %v1888_v5 = vld [vmem:[%s3266_s7 + $0xa8] sm:$0xff] }
 0x7dd   : > { %2479 = vmatprep.subr.mxu1 %v1436_v6 }
 0x7de   : > { %2480 = vmatpush3.msra.mxu1 %v1436_v6  ;;  %v1887_v6 = vld [vmem:[%s3266_s7 + $0xa0] sm:$0xff] }
 0x7fa   : > { %v1621_v55 = vpop.xlane.xlu0 %1620 }
 0x7fb   : > { %v1623_v7 = vsub.f32 %v1615_v57, %v1621_v55  ;;  %v1892_v57 = vld [vmem:[%s3266_s7 + $0xc8] sm:$0xff]  ;;  %v1886_v55 = vld [vmem:[%s3266_s7 + $0x98] sm:$0xff] }
 0x7fd   : > { %v1626_v8 = vmul.f32 1.442695, %v1623_v7  ;;  %v1885_v7 = vld [vmem:[%s3266_s7 + $0x90] sm:$0xff] }
 0x7fe   : > { %v1630_v47 = vpop.xlane.xlu0 %1629 }
 0x7ff   : > { %2547 = vpow2.f32 %v1626_v8  ;;  %v1884_v8 = vld [vmem:[%s3266_s7 + $0x88] sm:$0xff] }
 0x800   : > { %2549 = vrcp.f32 %v1630_v47  ;;  %v1883_v47 = vld [vmem:[%s3266_s7 + $0x80] sm:$0xff] }
 0x802   : > { %v1641_v9 = vpop.permute.xlu0 %1640 }
 0x803   : > { %2491 = vmatprep.subr.msk.mxu1 %vm780_vm3, %v1641_v9 }
 0x80c   : > { %v2548_v10 = vpop.eup %2547 }
 0x80d   : > { %v1631_v11 = vsel %vm754_vm2, %v2548_v10, 0.0  ;;  %v2550_v17 = vpop.eup %2549 }
 0x80e   : > { %1632 = vadd.xlane.f32.xlu1 %v1631_v11  ;;  %v1636_v21 = vmul.f32 %v2550_v17, %v2542_v59  ;;  %v1880_v11 = vld [vmem:[%s3266_s7 + $0x68] sm:$0xff]  ;;  %v1877_v17 = vld [vmem:[%s3266_s7 + $0x50] sm:$0xff] }
 0x81f   : > { %1638 = vrot.lane.b32.xlu1 %v2862_v15, %s2572_s18 }
 0x897   : > { %v2472_v18 = vpop.f32.mrf.mxu1  ;;  %v1633_v19 = vpop.xlane.xlu1 %1632 }
 0x898   : > { %2551 = vrcp.f32 %v1633_v19  ;;  %v1875_v19 = vld [vmem:[%s3266_s7 + $0x40] sm:$0xff] }
 0x899   : > { %v1427_v20 = vpop.f32.mrf.mxu1 }
 0x89a   : > { %2481 = vmatprep.mubr.msk.f32.mxu1 %vm660_vm0, %v1427_v20  ;;  %v1874_v20 = vld [vmem:[%s3266_s7 + $0x38] sm:$0xff] }
 0x89b   : > { %2482 = vmatmul.mubr.msk.f32.vlgmr.msra.gmra.mxu1 %vm660_vm0, %v2472_v18  ;;  %v1639_v22 = vpop.permute.xlu1 %1638  ;;  %v1876_v18 = vld [vmem:[%s3266_s7 + $0x48] sm:$0xff] }
 0x89c   : > { %2492 = vmatpush3.msk.msra.mxu1 %vm780_vm3, %v1641_v9  ;;  %2495 = vmatprep.mubr.msk.f32.mxu1 %vm750_vm1, %v1636_v21  ;;  %v1882_v9 = vld [vmem:[%s3266_s7 + $0x78] sm:$0xff]  ;;  %v1873_v21 = vld [vmem:[%s3266_s7 + $0x30] sm:$0xff] }
 0x89d   : > { %2493 = vmatprep.subr.mxu1 %v1639_v22 }
 0x89e   : > { %2494 = vmatpush3.msra.mxu1 %v1639_v22  ;;  %v1872_v22 = vld [vmem:[%s3266_s7 + $0x28] sm:$0xff] }
 0x89f   : > { %1911 = vmatprep.subr.mxu1 %v1898_v52  ;;  %v1998_v52 = vld [vmem:[%s3268_s9 + $0x30] sm:$0xff] }
 0x8a5   : > { %v2552_v15 = vpop.eup %2551 }
 0x8a6   : > { %v1637_v23 = vmul.f32 %v2552_v15, %v2548_v10  ;;  %v1881_v10 = vld [vmem:[%s3266_s7 + $0x70] sm:$0xff]  ;;  %v1871_v15 = vld [vmem:[%s3266_s7 + $0x20] sm:$0xff] }
 0x8a8   : > { %2496 = vmatmul.mubr.msk.f32.vlgmr.msra.gmra.mxu1 %vm750_vm1, %v1637_v23  ;;  %v1870_v23 = vld [vmem:[%s3266_s7 + $0x18] sm:$0xff] }
 0x8a9   : > { %1975 = vmatprep.mubr.f32.mxu1 %v2569_v4  ;;  %1912 = vmatpush1.msra.mxu1 %v1897_v53  ;;  %v2013_v53 = vld [vmem:[%s3268_s9 + $0xa8] sm:$0xff] }
 0x8aa   : > { %1913 = vmatprep.subr.mxu1 %v1896_v54  ;;  %v1997_v54 = vld [vmem:[%s3268_s9 + $0x28] sm:$0xff] }
 0x95b   : > { %v2483_v31 = vpop.f32.mrf.mxu1 }
 0x95c   : > { %v1522_v33 = vadd.f32 %v2483_v31, %v1230_v30  ;;  %v2007_v30 = vld [vmem:[%s3268_s9 + $0x78] sm:$0xff]  ;;  %v2022_v31 = vld [vmem:[%s3268_s9 + $0xf0] sm:$0xff] }
 0x95d   : > { %v1512_v35 = vpop.f32.mrf.mxu1 }
 0x95e   : > { %v1521_v38 = vadd.f32 %v1512_v35, %v1225_v32  ;;  %v2006_v32 = vld [vmem:[%s3268_s9 + $0x70] sm:$0xff]  ;;  %v2005_v35 = vld [vmem:[%s3268_s9 + $0x68] sm:$0xff] }
 0x968   : > { %v2497_v40 = vpop.f32.mrf.mxu1 }
 0x96a   : > { %v1717_v41 = vpop.f32.mrf.mxu1 }
 0x96b   : > { %2506 = vmatprep.mubr.msk.f32.mxu0 %vm660_vm0, %v1717_v41  ;;  %v2019_v41 = vld [vmem:[%s3268_s9 + $0xd8] sm:$0xff] }
 0x96c   : > { %2507 = vmatmul.mubr.msk.f32.vlgmr.msra.gmra.mxu0 %vm660_vm0, %v2497_v40  ;;  %v2004_v40 = vld [vmem:[%s3268_s9 + $0x60] sm:$0xff] }
 0x96d   : > { %2337 = vmatpush3.msra.mxu0 %v2007_v30 }
 0x96e   : > { %2338 = vmatprep.subr.mxu0 %v2022_v31 }
 0x96f   : > { %2339 = vmatpush3.msra.mxu0 %v2006_v32 }
 0xa2c   : > { %v2508_v42 = vpop.f32.mrf.mxu0 }
 0xa2d   : > { %v1812_v44 = vadd.f32 %v2508_v42, %v1522_v33  ;;  %v2021_v33 = vld [vmem:[%s3268_s9 + $0xe8] sm:$0xff]  ;;  %v2003_v42 = vld [vmem:[%s3268_s9 + $0x58] sm:$0xff] }
 0xa2e   : > { %v1802_v45 = vpop.f32.mrf.mxu0  ;;  %2340 = vmatprep.subr.mxu0 %v2021_v33 }
 0xa2f   : > { %v1821_v24 = vadd.f32 %v2252_v43, %v1812_v44  ;;  %v1811_v46 = vadd.f32 %v1802_v45, %v1521_v38  ;;  %v2020_v38 = vld [vmem:[%s3268_s9 + $0xe0] sm:$0xff]  ;;  %2341 = vmatpush3.msra.mxu0 %v2005_v35  ;;  %v2002_v44 = vld [vmem:[%s3268_s9 + $0x50] sm:$0xff]  ;;  %v2017_v45 = vld [vmem:[%s3268_s9 + $0xc8] sm:$0xff] }
 0xa30   : > { %2342 = vmatprep.subr.mxu0 %v2020_v38 }
 0xa31   : > { %v1820_v48 = vadd.f32 %v2252_v43, %v1811_v46  ;;  %v1823_v25 = vadd.f32 %v1821_v24, %v2765_v34  ;;  %v1895_v34 = vld [vmem:[%s3266_s7 + $0xe0] sm:$0xff]  ;;  %2343 = vmatpush3.msra.mxu0 %v2004_v40  ;;  %v2018_v43 = vld [vmem:[%s3268_s9 + $0xd0] sm:$0xff]  ;;  %v2001_v24 = vld [vmem:[%s3268_s9 + $0x48] sm:$0xff] }
 0xa32   : > { %1914 = vmatpush1.msra.mxu1 %v1895_v34  ;;  %2344 = vmatprep.subr.mxu0 %v2019_v41  ;;  %v2016_v46 = vld [vmem:[%s3268_s9 + $0xc0] sm:$0xff] }
 0xa33   : > { %v1828_v49 = vsel %vm780_vm3, %v1823_v25, 0.0  ;;  %v1822_v51 = vadd.f32 %v1820_v48, %v2702_v14  ;;  %v1894_v14 = vld [vmem:[%s3266_s7 + $0xd8] sm:$0xff]  ;;  %2345 = vmatpush3.msra.mxu0 %v2003_v42  ;;  %v2000_v48 = vld [vmem:[%s3268_s9 + $0x40] sm:$0xff] }
 0xa34   : > { %1829 = vadd.xlane.f32.xlu0 %v1828_v49  ;;  %1915 = vmatprep.subr.mxu1 %v1894_v14  ;;  %v1999_v49 = vld [vmem:[%s3268_s9 + $0x38] sm:$0xff]  ;;  %v2012_v34 = vld [vmem:[%s3268_s9 + $0xa0] sm:$0xff] }
 0xa35   : > { %1826 = vadd.xlane.f32.xlu1 %v1822_v51  ;;  %1916 = vmatpush1.msra.mxu1 %v1893_v56  ;;  %v1996_v14 = vld [vmem:[%s3268_s9 + $0x20] sm:$0xff] }
 0xa36   : > { %1917 = vmatprep.subr.mxu1 %v1892_v57  ;;  %2346 = vmatprep.subr.mxu0 %v2018_v43 }
 0xa37   : > { %1918 = vmatpush1.msra.mxu1 %v1891_v58  ;;  %2347 = vmatpush3.msra.mxu0 %v2002_v44 }
 0xa38   : > { %1919 = vmatprep.subr.mxu1 %v1890_v12  ;;  %2348 = vmatprep.subr.mxu0 %v2017_v45  ;;  %v2254_v12 = vld [vmem:[%s3265_s6] ss:$0 sm:$0xff] }
 0xa39   : > { %1920 = vmatpush1.msra.mxu1 %v1889_v3  ;;  %2349 = vmatpush3.msra.mxu0 %v2001_v24 }
 0xa3a   : > { %1921 = vmatprep.subr.mxu1 %v1888_v5  ;;  %2350 = vmatprep.subr.mxu0 %v2016_v46 }
 0xa3b   : > { %1922 = vmatpush1.msra.mxu1 %v1887_v6  ;;  %2351 = vmatpush3.msra.mxu0 %v2000_v48 }
 0xa3c   : > { %1923 = vmatprep.subr.mxu1 %v1886_v55 }
 0xa3d   : > { %1924 = vmatpush1.msra.mxu1 %v1885_v7 }
 0xa3e   : > { %1925 = vmatprep.subr.mxu1 %v1884_v8  ;;  %v2011_v8 = vld [vmem:[%s3268_s9 + $0x98] sm:$0xff] }
 0xa3f   : > { %1926 = vmatpush1.msra.mxu1 %v1883_v47  ;;  %v2009_v47 = vld [vmem:[%s3268_s9 + $0x88] sm:$0xff] }
 0xa40   : > { %1927 = vmatprep.subr.mxu1 %v1882_v9  ;;  %v1993_v9 = vld [vmem:[%s3268_s9 + $0x8] sm:$0xff] }
 0xa41   : > { %1928 = vmatpush1.msra.mxu1 %v1881_v10  ;;  %v2008_v10 = vld [vmem:[%s3268_s9 + $0x80] sm:$0xff] }
 0xa42   : > { %1929 = vmatprep.subr.mxu1 %v1880_v11  ;;  %v1992_v11 = vld [vmem:[%s3268_s9] sm:$0xff] }
 0xa43   : > { %1930 = vmatpush1.msra.mxu1 %v1879_v13  ;;  %v1899_v13 = vld [vmem:[%s3267_s8] sm:$0x3] }
 0xa44   : > { %1931 = vmatprep.subr.mxu1 %v1878_v16  ;;  %v1904_v16 = vrot.slane %v1899_v13, %v495_v37 }
 0xa45   : > { %1932 = vmatpush1.msra.mxu1 %v1877_v17  ;;  %v1908_v17 = vrot.slane %v1899_v13, %v499_v39 }
 0xa46   : > { %1933 = vmatprep.subr.mxu1 %v1876_v18 }
 0xa47   : > { %1934 = vmatpush1.msra.mxu1 %v1875_v19 }
 0xa48   : > { %1935 = vmatprep.subr.mxu1 %v1874_v20 }
 0xa49   : > { %1936 = vmatpush1.msra.mxu1 %v1873_v21 }
 0xa4a   : > { %1937 = vmatprep.subr.mxu1 %v1872_v22 }
 0xa4b   : > { %1938 = vmatpush1.msra.mxu1 %v1871_v15 }
 0xa4c   : > { %1939 = vmatprep.subr.mxu1 %v1870_v23 }
 0xa4d   : > { %1940 = vmatpush1.msra.mxu1 %v1869_v26 }
 0xa4e   : > { %1941 = vmatprep.subr.mxu1 %v1868_v27 }
 0xa4f   : > { %1942 = vmatpush1.msra.mxu1 %v1867_v28 }
 0xabd   : > { %v1830_v59 = vpop.xlane.xlu0 %1829 }
 0xabe   : > { %v1833_v61 = vmul.f32 0.0078125, %v1830_v59  ;;  %v1827_v62 = vpop.xlane.xlu1 %1826 }
 0xabf   : > { %v1832_v63 = vmul.f32 0.0078125, %v1827_v62 }
 0xac0   : > { %v3047_v0 = vsub.f32 %v1823_v25, %v1833_v61  ;;  %v2015_v25 = vld [vmem:[%s3268_s9 + $0xb8] sm:$0xff] }
 0xac1   : > { %v3049_v1 = vsub.f32 %v1822_v51, %v1832_v63  ;;  %v2014_v51 = vld [vmem:[%s3268_s9 + $0xb0] sm:$0xff]  ;;  %2352 = vmatprep.subr.mxu0 %v2015_v25 }
 0xac2   : > { %v1837_v2 = vmul.f32 %v3047_v0, %v3047_v0  ;;  %2353 = vmatpush3.msra.mxu0 %v1999_v49 }
 0xac3   : > { %v1836_v50 = vmul.f32 %v3049_v1, %v3049_v1  ;;  %2354 = vmatprep.subr.mxu0 %v2014_v51 }
 0xac4   : > { %v1840_v60 = vsel %vm780_vm3, %v1837_v2, 0.0  ;;  %2355 = vmatpush3.msra.mxu0 %v1998_v52  ;;  %v2253_v2 = vld [vmem:[%s3264_s5] ss:$0 sm:$0xff] }
 0xac5   : > { %1841 = vadd.xlane.f32.xlu1 %v1840_v60  ;;  %1838 = vadd.xlane.f32.xlu0 %v1836_v50 }
 0xac6   : > { %2356 = vmatprep.subr.mxu0 %v2013_v53 }
 0xac7   : > { %2357 = vmatpush3.msra.mxu0 %v1997_v54 }
 0xac8   : > { %2358 = vmatprep.subr.mxu0 %v2012_v34 }
 0xac9   : > { %2359 = vmatpush3.msra.mxu0 %v1996_v14 }
 0xaca   : > { %2360 = vmatprep.subr.mxu0 %v2011_v8 }
 0xb4e   : > { %v1839_v56 = vpop.xlane.xlu0 %1838  ;;  %v1842_v57 = vpop.xlane.xlu1 %1841 }
 0xb4f   : > { %v1843_v58 = vmul.f32 0.0078125, %v1839_v56  ;;  %v1844_v59 = vmul.f32 0.0078125, %v1842_v57 }
 0xb51   : > { %v1845_v61 = vadd.f32 1e-06, %v1843_v58  ;;  %v1846_v62 = vadd.f32 1e-06, %v1844_v59  ;;  %v2256_v59 = vld [vmem:[%s3270_s11] ss:$0 sm:$0xff] }
 0xb53   : > { %2553 = vrsqrt.f32 %v1845_v61 }
 0xb54   : > { %2555 = vrsqrt.f32 %v1846_v62  ;;  %v2257_v62 = vld [vmem:[%s3271_s12] ss:$0 sm:$0xff] }
 0xb60   : > { %v2554_v63 = vpop.eup %2553 }
 0xb61   : > { %v2556_v50 = vpop.eup %2555  ;;  %v1849_v60 = vmul.f32 %v2554_v63, %v3049_v1  ;;  %v1995_v1 = vld [vmem:[%s3268_s9 + $0x18] sm:$0xff] }
 0xb62   : > { %v1850_v3 = vmul.f32 %v2556_v50, %v3047_v0  ;;  %2361 = vmatpush3.msra.mxu0 %v1995_v1  ;;  %v2010_v0 = vld [vmem:[%s3268_s9 + $0x90] sm:$0xff] }
 0xb63   : > { %v1857_v5 = vmul.f32 %v2253_v2, %v1849_v60  ;;  %2362 = vmatprep.subr.mxu0 %v2010_v0 }
 0xb64   : > { %v1858_v55 = vmul.f32 %v2253_v2, %v1850_v3 }
 0xb65   : > { %v1865_v6 = vadd.f32 %v2254_v12, %v1857_v5 }
 0xb66   : > { %v1866_v7 = vadd.f32 %v2254_v12, %v1858_v55 }
 0xb67   : > { %1976 = vmatmul.mubr.f32.vlgmr.msra.gmra.mxu1 %v1865_v6 }
 0xb68   : > { %1981 = vmatprep.mubr.f32.mxu1 %v2569_v4  ;;  %v1994_v4 = vld [vmem:[%s3268_s9 + $0x10] sm:$0xff] }
 0xb69   : > { %2363 = vmatpush3.msra.mxu0 %v1994_v4 }
 0xb6a   : > { %2364 = vmatprep.subr.mxu0 %v2009_v47 }
 0xb6b   : > { %1982 = vmatmul.mubr.f32.gmra.mxu1 %v1866_v7  ;;  %2365 = vmatpush3.msra.mxu0 %v1993_v9 }
 0xb6c   : > { %2366 = vmatprep.subr.mxu0 %v2008_v10 }
 0xb6d   : > { %2367 = vmatpush3.msra.mxu0 %v1992_v11 }
 0xc27   : > { %v1977_v18 = vpop.f32.mrf.mxu1 }
 0xc28   : > { %v1978_v19 = vadd.f32 %v1977_v18, %v1904_v16 }
 0xc29   : > { %v1979_v20 = vpop.f32.mrf.mxu1 }
 0xc2a   : > { %v1980_v21 = vadd.f32 %v1979_v20, %v1908_v17  ;;  %v1988_v23 = vmax.f32 %v1978_v19, 0.0 }
 0xc2b   : > { %v1983_v22 = vpop.f32.mrf.mxu1 }
 0xc2c   : > { %v1989_v15 = vmax.f32 %v1980_v21, 0.0  ;;  %v1984_v26 = vadd.f32 %v1983_v22, %v1904_v16 }
 0xc2d   : > { %v1985_v27 = vpop.f32.mrf.mxu1 }
 0xc2e   : > { %v1986_v28 = vadd.f32 %v1985_v27, %v1908_v17  ;;  %2095 = vmatprep.mubr.f32.mxu0 %v1989_v15  ;;  %v1990_v30 = vmax.f32 %v1984_v26, 0.0 }
 0xc2f   : > { %2096 = vmatmul.mubr.f32.vlgmr.msra.gmra.mxu0 %v1988_v23 }
 0xc30   : > { %v1991_v29 = vmax.f32 %v1986_v28, 0.0 }
 0xc32   : > { %2100 = vmatprep.mubr.f32.mxu0 %v1991_v29 }
 0xc33   : > { %2101 = vmatmul.mubr.f32.gmra.mxu0 %v1990_v30 }
 0xcef   : > { %v2368_v37 = vpop.f32.mrf.mxu0 }
 0xcf1   : > { %v2369_v39 = vpop.f32.mrf.mxu0 }
 0xcf2   : > { %v2370_v31 = vadd.f32 %v2369_v39, %v2368_v37 }
 0xcf3   : > { %v2371_v32 = vpop.f32.mrf.mxu0 }
 0xcf4   : > { %v2098_v33 = vadd.f32 %v2370_v31, %v2255_v36 }
 0xcf5   : > { %v2372_v35 = vpop.f32.mrf.mxu0 }
 0xcf6   : > { %v2373_v38 = vadd.f32 %v2372_v35, %v2371_v32  ;;  %v2106_v40 = vadd.f32 %v2098_v33, %v1865_v6 }
 0xcf8   : > { %v2103_v41 = vadd.f32 %v2373_v38, %v2255_v36  ;;  %2110 = vadd.xlane.f32.xlu1 %v2106_v40 }
 0xcfa   : > { %v2107_v42 = vadd.f32 %v2103_v41, %v1866_v7 }
 0xcfc   : > { %v2112_v43 = vsel %vm780_vm3, %v2107_v42, 0.0 }
 0xcfd   : > { %2113 = vadd.xlane.f32.xlu0 %v2112_v43 }
 0xd81   : > { %v2111_v44 = vpop.xlane.xlu1 %2110 }
 0xd82   : > { %v2115_v45 = vmul.f32 0.0078125, %v2111_v44 }
 0xd84   : > { %v2117_v24 = vsub.f32 %v2106_v40, %v2115_v45 }
 0xd86   : > { %v2114_v46 = vpop.xlane.xlu0 %2113  ;;  %v2119_v48 = vmul.f32 %v2117_v24, %v2117_v24 }
 0xd87   : > { %v2116_v25 = vmul.f32 0.0078125, %v2114_v46 }
 0xd88   : > { %2121 = vadd.xlane.f32.xlu0 %v2119_v48 }
 0xd89   : > { %v2118_v49 = vsub.f32 %v2107_v42, %v2116_v25 }
 0xd8b   : > { %v2120_v51 = vmul.f32 %v2118_v49, %v2118_v49 }
 0xd8d   : > { %v2123_v52 = vsel %vm780_vm3, %v2120_v51, 0.0 }
 0xd8e   : > { %2124 = vadd.xlane.f32.xlu1 %v2123_v52 }
 0xe11   : > { %v2122_v53 = vpop.xlane.xlu0 %2121 }
 0xe12   : > { %v2126_v54 = vmul.f32 0.0078125, %v2122_v53 }
 0xe14   : > { %v2128_v34 = vadd.f32 1e-06, %v2126_v54 }
 0xe16   : > { %2557 = vrsqrt.f32 %v2128_v34 }
 0xe17   : > { %v2125_v14 = vpop.xlane.xlu1 %2124 }
 0xe18   : > { %v2127_v56 = vmul.f32 0.0078125, %v2125_v14 }
 0xe1a   : > { %v2129_v57 = vadd.f32 1e-06, %v2127_v56 }
 0xe1c   : > { %2559 = vrsqrt.f32 %v2129_v57 }
 0xe23   : > { %v2558_v58 = vpop.eup %2557 }
 0xe24   : > { %v2132_v61 = vmul.f32 %v2558_v58, %v2117_v24 }
 0xe26   : > { %v2140_v63 = vmul.f32 %v2256_v59, %v2132_v61 }
 0xe28   : > { %v2148_v2 = vadd.f32 %v2257_v62, %v2140_v63 }
 0xe29   : > { %v2560_v50 = vpop.eup %2559 }
 0xe2a   : > { %2150 = vst [vmem:[%s440_s27] sm:$0xff] %v2148_v2  ;;  %v2133_v60 = vmul.f32 %v2560_v50, %v2118_v49 }
 0xe2c   : > { %v2141_v12 = vmul.f32 %v2256_v59, %v2133_v60 }
 0xe2e   : > { %v2149_v3 = vadd.f32 %v2257_v62, %v2141_v12 }
 0xe30   : > { %2151 = vst [vmem:[%s440_s27 + $0x8] sm:$0xf] %v2149_v3 }
 0xe31 PF: > { %s23_s25 = sadd.s32 1, %s2567_s25  }
 0xe32   : > { %p20_p4 = scmp.ge.s32.totalorder %s23_s25, 4  }
 0xe34   :  { %22 = sbr.rel (!%p20_p4) target bundleno = 1 (0x1), region = 102 }

// kernel: audio_segmenter_forward.8
= control target key start
LH: loop header
LB: loop body
LE: loop exit
PB: predicated region body
PF: predicated region fallthrough
CT: control target
= control target key end

     0   :  { %18 = vsyncpa [#allocation3], 0  ;;  %s3863_s0 = inlined_call_operand.vmem [shape: f32[2,24,128], index: 0, kind: input, shape index: {}]   ;;  %s3864_s1 = inlined_call_operand.vmem [shape: f32[128,384], index: 1, kind: input, shape index: {}]   ;;  %s3865_s2 = inlined_call_operand.vmem [shape: f32[1,384], index: 2, kind: input, shape index: {}]   ;;  %s3866_s3 = inlined_call_operand.hbm [shape: f32[128,128], index: 3, kind: input, shape index: {}]   ;;  %s3867_s4 = inlined_call_operand.vmem [shape: f32[1,128], index: 4, kind: input, shape index: {}]   ;;  %s3868_s5 = inlined_call_operand.vmem [shape: f32[1,128], index: 5, kind: input, shape index: {}]   ;;  %s3869_s6 = inlined_call_operand.vmem [shape: f32[1,128], index: 6, kind: input, shape index: {}]   ;;  %s3870_s7 = inlined_call_operand.hbm [shape: f32[128,256], index: 7, kind: input, shape index: {}]   ;;  %s3871_s8 = inlined_call_operand.vmem [shape: f32[1,256], index: 8, kind: input, shape index: {}]   ;;  %s3872_s9 = inlined_call_operand.hbm [shape: f32[256,128], index: 9, kind: input, shape index: {}]   ;;  %s3873_s10 = inlined_call_operand.vmem [shape: f32[1,128], index: 10, kind: input, shape index: {}]   ;;  %s3874_s11 = inlined_call_operand.vmem [shape: f32[1,128], index: 11, kind: input, shape index: {}]   ;;  %s3875_s12 = inlined_call_operand.vmem [shape: f32[1,128], index: 12, kind: input, shape index: {}]   ;;  %s3876_s13 = inlined_call_operand.vmem [shape: f32[2,24,128], index: 13, kind: output, shape index: {}]  }
   0x1   :  { %19 = vsyncpa [#allocation5], 0  ;;  %s3222_s25 = smov 0  }
   0x2 LB: > { %s3140_s26 = smov [#allocation4]   ;;  %s3228_s28 = sadd.s32 4294967295, %s3138_s25   ;;  %s3138_s25 = sphi %s3222_s25, %s25_s25  }
   0x3   : > { %s374_s27 = sshll.u32 %s3140_s26, 4  ;;  %p2502_p0 = scmp.ge.s32.totalorder %s3138_s25, 1  ;;  %s375_s27 = int_to_ptr.vmem [resolvable:$true] %s374_s27 }
   0x4   : > { %p334_p1 = scmp.lt.s32.totalorder %s3138_s25, 3  ;;  %p2957_p2 = scmp.eq.s32.totalorder %s3228_s28, 0 }
   0x5   : > { %s3141_s30 = smov [#allocation2]   ;;  %s3142_s16 = smov [#allocation6]  }
   0x6   : > { %p3233_p3 = pnand %p2502_p0, %p334_p1  ;;  %s352_s14 = sshll.u32 %s3141_s30, 4  ;;  %s3239_s14 = int_to_ptr.vmem [resolvable:$true] %s352_s14 }
   0x7   : > { %s3247_s17 = sshll.u32 %s3142_s16, 4  ;;  %s3057_s18 = scalar_lea.vmem %s375_s27, 4096  ;;  %s391_s17 = int_to_ptr.vmem [resolvable:$true] %s3247_s17 }
   0x8   : > { %p2947_p4 = pneg %p3233_p3  ;;  %p3058_p7 = scmp.ne.s32.totalorder %s375_s27, %s3057_s18 }
   0x9   : > { %p3065_p10 = scmp.lt.s32.totalorder %s375_s27, %s375_s27  ;;  %p3066_p11 = scmp.lt.s32.totalorder %s3057_s18, %s3057_s18 }
   0xa   : > { %p3243_p5 = pnand %p2957_p2, %p2947_p4 }
   0xb   : > { %p3067_p12 = por %p3066_p11, %p3065_p10 }
   0xc   : > { %p3048_p6 = pneg %p3243_p5 }
   0xe   : > { %p3060_p8 = pnand %p3058_p7, %p3048_p6 }
  0x10   : > { %p3061_p9 = pneg %p3060_p8 }
  0x12   : > { %p3068_p13 = pnand %p3067_p12, %p3061_p9 }
  0x14   : > { %3071 = shalt.err (!%p3068_p13)
}
  0x15   : > { %s3143_s19 = smov 256   ;;  %s3144_s20 = smov 16  }
  0x16   : > { %2953 = dma.hbm_to_vmem [thread:$0]  (!%p3243_p5), %s3870_s7, 4096, %s375_s27, [#allocation5], %s3143_s19, %s3143_s19, %s3144_s20  }
  0x17   : > { %s3083_s23 = scalar_lea.vmem %s3239_s14, 2048  ;;  %p3091_p7 = scmp.lt.s32.totalorder %s3239_s14, %s3239_s14 }
  0x18   : > { %p3084_p0 = scmp.ne.s32.totalorder %s3239_s14, %s3083_s23  ;;  %p3092_p8 = scmp.lt.s32.totalorder %s3083_s23, %s3083_s23 }
  0x1a   : > { %p3086_p1 = pnand %p3084_p0, %p3048_p6  ;;  %p3093_p9 = por %p3092_p8, %p3091_p7 }
  0x1c   : > { %p3087_p4 = pneg %p3086_p1 }
  0x1e   : > { %p3094_p10 = pnand %p3093_p9, %p3087_p4 }
  0x20   : > { %3097 = shalt.err (!%p3094_p10)
}
  0x21   : > { %s3145_s24 = smov 128   ;;  %s3146_s26 = smov 8  }
  0x22   : > { %2950 = dma.hbm_to_vmem [thread:$0]  (!%p3243_p5), %s3866_s3, 2048, %s3239_s14, [#allocation3], %s3145_s24, %s3145_s24, %s3146_s26  }
  0x23   : > { %s3109_s16 = scalar_lea.vmem %s391_s17, 4096  ;;  %p3117_p0 = scmp.lt.s32.totalorder %s391_s17, %s391_s17 }
  0x24   : > { %p3110_p11 = scmp.ne.s32.totalorder %s391_s17, %s3109_s16  ;;  %p3118_p1 = scmp.lt.s32.totalorder %s3109_s16, %s3109_s16 }
  0x26   : > { %p3112_p12 = pnand %p3110_p11, %p3048_p6  ;;  %p3119_p4 = por %p3118_p1, %p3117_p0 }
  0x28   : > { %p3113_p13 = pneg %p3112_p12 }
  0x2a   : > { %p3120_p7 = pnand %p3119_p4, %p3113_p13 }
  0x2c   : > { %3123 = shalt.err (!%p3120_p7)
}
  0x2d   : > { %2956 = dma.hbm_to_vmem [thread:$0]  (!%p3243_p5), %s3872_s9, 4096, %s391_s17, [#allocation5], %s3145_s24, %s3145_s24, %s3146_s26  }
  0x2e   : > { %423 = sbr.rel (%p3233_p3) target bundleno = 3616 (0xe20), region = 72 }
  0x33   : > { %3129 = dma.done.wait (%p2957_p2), [#allocation3], 2048  }
  0x34   : > { %3131 = vsyncadd (%p2957_p2), [#allocation3], 4294965248 }
  0x35   : > { %3133 = dma.done.wait (%p2957_p2), [#allocation5], 8192  }
  0x36   : > { %3135 = vsyncadd (%p2957_p2), [#allocation5], 4294959104  ;;  %v3147_v0 = vmov 0.0   ;;  %v534_v1 = vld [vmem:[%s3864_s1 + $0x170] sm:$0xff]  ;;  %v533_v2 = vld [vmem:[%s3864_s1 + $0x168] sm:$0xff]  ;;  %p475_p2 = scmp.lt.s32.totalorder %s3228_s28, 1  ;;  %v538_v36 = vlaneseq }
  0x37   : > { %617 = vmatprep.mubr.f32.mxu0 %v3147_v0  ;;  %2705 = vmatprep.subr.mxu1 %v3147_v0  ;;  %v531_v3 = vld [vmem:[%s3864_s1 + $0x158] sm:$0xff]  ;;  %v530_v4 = vld [vmem:[%s3864_s1 + $0x150] sm:$0xff]  ;;  %v528_v5 = vld [vmem:[%s3864_s1 + $0x140] sm:$0xff]  ;;  %vm3148_vm0 = vmmov 0   ;;  %s3149_s16 = smov 96   ;;  %vm716_vm1 = vcmask 261120  }
  0x38   : > { %553 = vmatprep.subr.mxu0 %v534_v1  ;;  %v527_v6 = vld [vmem:[%s3864_s1 + $0x138] sm:$0xff]  ;;  %v525_v7 = vld [vmem:[%s3864_s1 + $0x128] sm:$0xff]  ;;  %v524_v8 = vld [vmem:[%s3864_s1 + $0x120] sm:$0xff]  ;;  %s3880_s28 = smov (!%p475_p2, %s3228_s28), 1  ;;  %2737 = vmatprep.mubr.msk.f32.mxu1 %vm3148_vm0, %v3147_v0  ;;  %v3423_v38 = vshrl.u32 %v538_v36, 7  ;;  %vm818_vm2 = vcmask 195584  }
  0x39   : > { %554 = vmatpush1.msra.mxu0 %v533_v2  ;;  %v522_v9 = vld [vmem:[%s3864_s1 + $0x110] sm:$0xff]  ;;  %v521_v10 = vld [vmem:[%s3864_s1 + $0x108] sm:$0xff]  ;;  %v519_v11 = vld [vmem:[%s3864_s1 + $0xf8] sm:$0xff]  ;;  %s2934_s23 = smul.u32 24, %s3880_s28  ;;  %s3150_s21 = smov 64  }
  0x3a   : > { %555 = vmatprep.subr.mxu0 %v531_v3  ;;  %v518_v12 = vld [vmem:[%s3864_s1 + $0xf0] sm:$0xff]  ;;  %v516_v13 = vld [vmem:[%s3864_s1 + $0xe0] sm:$0xff]  ;;  %v515_v14 = vld [vmem:[%s3864_s1 + $0xd8] sm:$0xff]  ;;  %v544_v39 = vsub.s32 1, %v3423_v38  ;;  %v540_v43 = vsub.s32 0, %v3423_v38 }
  0x3b   : > { %556 = vmatpush1.msra.mxu0 %v530_v4  ;;  %v513_v15 = vld [vmem:[%s3864_s1 + $0xc8] sm:$0xff]  ;;  %v512_v16 = vld [vmem:[%s3864_s1 + $0xc0] sm:$0xff]  ;;  %v510_v17 = vld [vmem:[%s3864_s1 + $0xb0] sm:$0xff]  ;;  %s3393_s17 = scalar_lea.vmem %s3863_s0, %s2934_s23 }
  0x3c   : > { %557 = vmatprep.subr.mxu0 %v528_v5  ;;  %v509_v18 = vld [vmem:[%s3864_s1 + $0xa8] sm:$0xff]  ;;  %v507_v19 = vld [vmem:[%s3864_s1 + $0x98] sm:$0xff]  ;;  %v506_v20 = vld [vmem:[%s3864_s1 + $0x90] sm:$0xff] }
  0x3d   : > { %558 = vmatpush1.msra.mxu0 %v527_v6  ;;  %v504_v21 = vld [vmem:[%s3864_s1 + $0x80] sm:$0xff]  ;;  %v503_v22 = vld [vmem:[%s3864_s1 + $0x78] sm:$0xff]  ;;  %v501_v23 = vld [vmem:[%s3864_s1 + $0x68] sm:$0xff] }
  0x3e   : > { %559 = vmatprep.subr.mxu0 %v525_v7  ;;  %v500_v24 = vld [vmem:[%s3864_s1 + $0x60] sm:$0xff]  ;;  %v498_v25 = vld [vmem:[%s3864_s1 + $0x50] sm:$0xff]  ;;  %v497_v26 = vld [vmem:[%s3864_s1 + $0x48] sm:$0xff] }
  0x3f   : > { %560 = vmatpush1.msra.mxu0 %v524_v8  ;;  %v495_v27 = vld [vmem:[%s3864_s1 + $0x38] sm:$0xff]  ;;  %v494_v28 = vld [vmem:[%s3864_s1 + $0x30] sm:$0xff]  ;;  %v492_v29 = vld [vmem:[%s3864_s1 + $0x20] sm:$0xff] }
  0x40   : > { %561 = vmatprep.subr.mxu0 %v522_v9  ;;  %v491_v30 = vld [vmem:[%s3864_s1 + $0x18] sm:$0xff]  ;;  %v489_v31 = vld [vmem:[%s3864_s1 + $0x8] sm:$0xff]  ;;  %v488_v32 = vld [vmem:[%s3864_s1] sm:$0xff] }
  0x41   : > { %562 = vmatpush1.msra.mxu0 %v521_v10  ;;  %v3402_v33 = vld [vmem:[%s3393_s17] sm:$0xff]  ;;  %v3408_v34 = vld [vmem:[%s3393_s17 + $0x8] sm:$0xff]  ;;  %v3413_v35 = vld [vmem:[%s3393_s17 + $0x10] sm:$0xff] }
  0x42   : > { %563 = vmatprep.subr.mxu0 %v519_v11  ;;  %v535_v37 = vld [vmem:[%s3864_s1 + $0x178] sm:$0xff]  ;;  %v532_v40 = vld [vmem:[%s3864_s1 + $0x160] sm:$0xff]  ;;  %v529_v41 = vld [vmem:[%s3864_s1 + $0x148] sm:$0xff] }
  0x43   : > { %564 = vmatpush1.msra.mxu0 %v518_v12  ;;  %2706 = vmatpush3.msra.mxu1 %v535_v37  ;;  %v3437_v42 = vld [vmem:[%s3865_s2] sm:$0x7]  ;;  %v526_v46 = vld [vmem:[%s3864_s1 + $0x130] sm:$0xff]  ;;  %v523_v47 = vld [vmem:[%s3864_s1 + $0x118] sm:$0xff] }
  0x44   : > { %565 = vmatprep.subr.mxu0 %v516_v13  ;;  %2707 = vmatprep.subr.mxu1 %v3147_v0  ;;  %v545_v44 = vrot.slane %v3437_v42, %v544_v39  ;;  %v541_v49 = vrot.slane %v3437_v42, %v540_v43  ;;  %v520_v51 = vld [vmem:[%s3864_s1 + $0x100] sm:$0xff]  ;;  %v517_v53 = vld [vmem:[%s3864_s1 + $0xe8] sm:$0xff]  ;;  %v514_v56 = vld [vmem:[%s3864_s1 + $0xd0] sm:$0xff] }
  0x45   : > { %566 = vmatpush1.msra.mxu0 %v515_v14  ;;  %2708 = vmatpush3.msra.mxu1 %v532_v40  ;;  %v511_v58 = vld [vmem:[%s3864_s1 + $0xb8] sm:$0xff]  ;;  %v508_v62 = vld [vmem:[%s3864_s1 + $0xa0] sm:$0xff]  ;;  %v505_v1 = vld [vmem:[%s3864_s1 + $0x88] sm:$0xff] }
  0x46   : > { %567 = vmatprep.subr.mxu0 %v513_v15  ;;  %2709 = vmatprep.subr.mxu1 %v3147_v0  ;;  %v502_v2 = vld [vmem:[%s3864_s1 + $0x70] sm:$0xff]  ;;  %v499_v4 = vld [vmem:[%s3864_s1 + $0x58] sm:$0xff]  ;;  %v496_v5 = vld [vmem:[%s3864_s1 + $0x40] sm:$0xff] }
  0x47   : > { %568 = vmatpush1.msra.mxu0 %v512_v16  ;;  %2710 = vmatpush3.msra.mxu1 %v529_v41  ;;  %v493_v6 = vld [vmem:[%s3864_s1 + $0x28] sm:$0xff]  ;;  %v490_v7 = vld [vmem:[%s3864_s1 + $0x10] sm:$0xff] }
  0x48   : > { %569 = vmatprep.subr.mxu0 %v510_v17  ;;  %2711 = vmatprep.subr.mxu1 %v3147_v0 }
  0x49   : > { %570 = vmatpush1.msra.mxu0 %v509_v18  ;;  %2712 = vmatpush3.msra.mxu1 %v526_v46 }
  0x4a   : > { %571 = vmatprep.subr.mxu0 %v507_v19  ;;  %2713 = vmatprep.subr.mxu1 %v3147_v0 }
  0x4b   : > { %572 = vmatpush1.msra.mxu0 %v506_v20  ;;  %2714 = vmatpush3.msra.mxu1 %v523_v47 }
  0x4c   : > { %573 = vmatprep.subr.mxu0 %v504_v21  ;;  %2715 = vmatprep.subr.mxu1 %v3147_v0 }
  0x4d   : > { %574 = vmatpush1.msra.mxu0 %v503_v22  ;;  %2716 = vmatpush3.msra.mxu1 %v520_v51 }
  0x4e   : > { %575 = vmatprep.subr.mxu0 %v501_v23  ;;  %2717 = vmatprep.subr.mxu1 %v3147_v0  ;;  %v548_v23 = vsub.s32 2, %v3423_v38 }
  0x4f   : > { %576 = vmatpush1.msra.mxu0 %v500_v24  ;;  %2718 = vmatpush3.msra.mxu1 %v517_v53 }
  0x50   : > { %577 = vmatprep.subr.mxu0 %v498_v25  ;;  %2719 = vmatprep.subr.mxu1 %v3147_v0 }
  0x51   : > { %578 = vmatpush1.msra.mxu0 %v497_v26  ;;  %2720 = vmatpush3.msra.mxu1 %v514_v56 }
  0x52   : > { %579 = vmatprep.subr.mxu0 %v495_v27  ;;  %2721 = vmatprep.subr.mxu1 %v3147_v0 }
  0x53   : > { %580 = vmatpush1.msra.mxu0 %v494_v28  ;;  %2722 = vmatpush3.msra.mxu1 %v511_v58 }
  0x54   : > { %581 = vmatprep.subr.mxu0 %v492_v29  ;;  %2723 = vmatprep.subr.mxu1 %v3147_v0 }
  0x55   : > { %582 = vmatpush1.msra.mxu0 %v491_v30  ;;  %2724 = vmatpush3.msra.mxu1 %v508_v62  ;;  %v549_v30 = vrot.slane %v3437_v42, %v548_v23 }
  0x56   : > { %583 = vmatprep.subr.mxu0 %v489_v31  ;;  %2725 = vmatprep.subr.mxu1 %v3147_v0 }
  0x57   : > { %584 = vmatpush1.msra.mxu0 %v488_v32  ;;  %2726 = vmatpush3.msra.mxu1 %v505_v1 }
  0x58   : > { %618 = vmatmul.mubr.f32.vlgmr.msra.gmra.mxu0 %v3402_v33  ;;  %2746 = vmatprep.subr.mxu0 %v3147_v0 }
  0x59   : > { %623 = vmatprep.mubr.f32.mxu0 %v3147_v0  ;;  %2727 = vmatprep.subr.mxu1 %v3147_v0 }
  0x5a   : > { %2728 = vmatpush3.msra.mxu1 %v502_v2 }
  0x5b   : > { %2729 = vmatprep.subr.mxu1 %v3147_v0 }
  0x5c   : > { %624 = vmatmul.mubr.f32.gmra.mxu0 %v3408_v34  ;;  %2730 = vmatpush3.msra.mxu1 %v499_v4 }
  0x5d   : > { %629 = vmatprep.mubr.f32.mxu0 %v3147_v0  ;;  %2731 = vmatprep.subr.mxu1 %v3147_v0 }
  0x5e   : > { %2732 = vmatpush3.msra.mxu1 %v496_v5 }
  0x5f   : > { %2733 = vmatprep.subr.mxu1 %v3147_v0 }
  0x60   : > { %630 = vmatmul.mubr.f32.gmra.mxu0 %v3413_v35  ;;  %2734 = vmatpush3.msra.mxu1 %v493_v6 }
  0x61   : > { %2752 = vmatprep.mubr.msk.f32.mxu0 %vm3148_vm0, %v3147_v0  ;;  %2735 = vmatprep.subr.mxu1 %v3147_v0 }
  0x62   : > { %2736 = vmatpush3.msra.mxu1 %v490_v7 }
  0x63   : > { %2738 = vmatmul.mubr.f32.vlgmr.msra.gmra.mxu1 %v3402_v33  ;;  %2761 = vmatprep.subr.mxu1 %v3147_v0 }
  0x64   : > { %2740 = vmatprep.mubr.msk.f32.mxu1 %vm3148_vm0, %v3147_v0 }
  0x67   : > { %2741 = vmatmul.mubr.f32.gmra.mxu1 %v3408_v34 }
  0x68   : > { %2743 = vmatprep.mubr.msk.f32.mxu1 %vm3148_vm0, %v3147_v0 }
  0x6b   : > { %2744 = vmatmul.mubr.f32.gmra.mxu1 %v3413_v35 }
  0x6c   : > { %2767 = vmatprep.mubr.msk.f32.mxu1 %vm3148_vm0, %v3147_v0 }
 0x118   : > { %v619_v45 = vpop.f32.mrf.mxu0 }
 0x119   : > { %v3466_v55 = vadd.f32 %v619_v45, %v541_v49 }
 0x11a   : > { %v621_v48 = vpop.f32.mrf.mxu0 }
 0x11b   : > { %v3454_v50 = vadd.f32 %v621_v48, %v545_v44 }
 0x11c   : > { %v625_v52 = vpop.f32.mrf.mxu0 }
 0x11d   : > { %951 = vrot.lane.b32.xlu1 %v3454_v50, %s3149_s16  ;;  %v3507_v3 = vadd.f32 %v625_v52, %v541_v49 }
 0x11e   : > { %v627_v54 = vpop.f32.mrf.mxu0 }
 0x11f   : > { %v3493_v63 = vadd.f32 %v627_v54, %v545_v44 }
 0x120   : > { %v631_v57 = vpop.f32.mrf.mxu0 }
 0x121   : > { %945 = vrot.lane.b32.xlu1 %v3466_v55, %s3149_s16  ;;  %v3480_v61 = vadd.f32 %v631_v57, %v541_v49 }
 0x122   : > { %v633_v59 = vpop.f32.mrf.mxu0 }
 0x123   : > { %v3478_v60 = vadd.f32 %v633_v59, %v545_v44  ;;  %v702_v21 = vpop.f32.mrf.mxu1 }
 0x124   : > { %v3577_v36 = vadd.f32 %v702_v21, %v549_v30 }
 0x125   : > { %955 = vrot.lane.b32.xlu0 %v3478_v60, %s3149_s16  ;;  %2747 = vmatpush3.xpose.msk.msra.mxu0 %vm716_vm1, %v3478_v60  ;;  %v2739_v25 = vpop.f32.mrf.mxu1 }
 0x126   : > { %949 = vrot.lane.b32.xlu1 %v3480_v61, %s3149_s16  ;;  %2748 = vmatprep.subr.mxu0 %v3147_v0 }
 0x127   : > { %v707_v28 = vpop.f32.mrf.mxu1 }
 0x128   : > { %v3573_v33 = vadd.f32 %v707_v28, %v549_v30 }
 0x129   : > { %953 = vrot.lane.b32.xlu0 %v3493_v63, %s3149_s16  ;;  %2749 = vmatpush3.xpose.msk.msra.mxu0 %vm716_vm1, %v3493_v63  ;;  %v2742_v31 = vpop.f32.mrf.mxu1 }
 0x12a   : > { %2750 = vmatprep.subr.mxu0 %v3147_v0 }
 0x12b   : > { %v712_v32 = vpop.f32.mrf.mxu1 }
 0x12c   : > { %v3575_v34 = vadd.f32 %v712_v32, %v549_v30 }
 0x12d   : > { %947 = vrot.lane.b32.xlu0 %v3507_v3, %s3149_s16  ;;  %2751 = vmatpush3.xpose.msk.msra.mxu0 %vm716_vm1, %v3454_v50  ;;  %v2745_v35 = vpop.f32.mrf.mxu1 }
 0x12e   : > { %2776 = vmatprep.subr.mxu0 %v3147_v0  ;;  %2762 = vmatpush3.msra.mxu1 %v3575_v34 }
 0x12f   : > { %2763 = vmatprep.subr.mxu1 %v3147_v0 }
 0x130   : > { %2753 = vmatmul.mubr.msk.f32.vlgmr.msra.gmra.mxu0 %vm716_vm1, %v3466_v55  ;;  %2764 = vmatpush3.msra.mxu1 %v3573_v33 }
 0x131   : > { %2755 = vmatprep.mubr.msk.f32.mxu0 %vm3148_vm0, %v3147_v0  ;;  %2765 = vmatprep.subr.mxu1 %v3147_v0 }
 0x132   : > { %2766 = vmatpush3.msra.mxu1 %v3577_v36 }
 0x133   : > { %2791 = vmatprep.subr.mxu1 %v3147_v0 }
 0x134   : > { %2756 = vmatmul.mubr.msk.f32.gmra.mxu0 %vm716_vm1, %v3507_v3 }
 0x135   : > { %2758 = vmatprep.mubr.msk.f32.mxu0 %vm3148_vm0, %v3147_v0 }
 0x138   : > { %2759 = vmatmul.mubr.msk.f32.gmra.mxu0 %vm716_vm1, %v3480_v61 }
 0x139   : > { %2782 = vmatprep.mubr.msk.f32.mxu0 %vm3148_vm0, %v3147_v0 }
 0x18f   : > { %v952_v10 = vpop.permute.xlu1 %951 }
 0x193   : > { %v946_v11 = vpop.permute.xlu1 %945 }
 0x197   : > { %v956_v8 = vpop.permute.xlu0 %955 }
 0x198   : > { %2777 = vmatpush3.xpose.msk.msra.mxu0 %vm716_vm1, %v956_v8  ;;  %v950_v13 = vpop.permute.xlu1 %949 }
 0x199   : > { %2778 = vmatprep.subr.mxu0 %v3147_v0 }
 0x19b   : > { %v954_v9 = vpop.permute.xlu0 %953 }
 0x19c   : > { %2779 = vmatpush3.xpose.msk.msra.mxu0 %vm716_vm1, %v954_v9 }
 0x19d   : > { %2780 = vmatprep.subr.mxu0 %v3147_v0 }
 0x19f   : > { %v948_v12 = vpop.permute.xlu0 %947 }
 0x1a0   : > { %2781 = vmatpush3.xpose.msk.msra.mxu0 %vm716_vm1, %v952_v10 }
 0x1a1   : > { %2806 = vmatprep.subr.mxu0 %v3147_v0 }
 0x1a3   : > { %2783 = vmatmul.mubr.msk.f32.vlgmr.msra.gmra.mxu0 %vm716_vm1, %v946_v11 }
 0x1a4   : > { %2785 = vmatprep.mubr.msk.f32.mxu0 %vm3148_vm0, %v3147_v0 }
 0x1a7   : > { %2786 = vmatmul.mubr.msk.f32.gmra.mxu0 %vm716_vm1, %v948_v12 }
 0x1a8   : > { %2788 = vmatprep.mubr.msk.f32.mxu0 %vm3148_vm0, %v3147_v0 }
 0x1ab   : > { %2789 = vmatmul.mubr.msk.f32.gmra.mxu0 %vm716_vm1, %v950_v13 }
 0x1ac   : > { %2814 = vmatprep.mubr.msk.f32.mxu0 %vm3148_vm0, %v3147_v0 }
 0x1f0   : > { %v801_v14 = vpop.f32.mrf.mxu0 }
 0x1f1   : > { %v815_v15 = vmul.f32 0.17677669, %v801_v14 }
 0x1f2   : > { %v2754_v16 = vpop.f32.mrf.mxu0 }
 0x1f3   : > { %v819_v17 = vsel %vm818_vm2, %v815_v15, -inf }
 0x1f4   : > { %820 = vmax.xlane.f32.xlu0 %v819_v17  ;;  %v806_v18 = vpop.f32.mrf.mxu0 }
 0x1f5   : > { %v816_v19 = vmul.f32 0.17677669, %v806_v18 }
 0x1f6   : > { %v2757_v20 = vpop.f32.mrf.mxu0 }
 0x1f7   : > { %v822_v22 = vsel %vm818_vm2, %v816_v19, -inf }
 0x1f8   : > { %823 = vmax.xlane.f32.xlu1 %v822_v22  ;;  %v811_v24 = vpop.f32.mrf.mxu0 }
 0x1f9   : > { %v817_v26 = vmul.f32 0.17677669, %v811_v24 }
 0x1fa   : > { %v2760_v27 = vpop.f32.mrf.mxu0 }
 0x1fb   : > { %v825_v29 = vsel %vm818_vm2, %v817_v26, -inf }
 0x1fc   : > { %826 = vmax.xlane.f32.xlu0 %v825_v29 }
 0x263   : > { %v1035_v37 = vpop.f32.mrf.mxu0 }
 0x264   : > { %v1049_v40 = vmul.f32 0.17677669, %v1035_v37 }
 0x265   : > { %v2784_v41 = vpop.f32.mrf.mxu0 }
 0x266   : > { %v1052_v42 = vsel %vm818_vm2, %v1049_v40, -inf  ;;  %v1188_v41 = vld [vmem:[#allocation2 + $0x30] sm:$0xff] }
 0x267   : > { %1053 = vmax.xlane.f32.xlu0 %v1052_v42  ;;  %v1040_v44 = vpop.f32.mrf.mxu0  ;;  %v1187_v42 = vld [vmem:[#allocation2 + $0x28] sm:$0xff] }
 0x268   : > { %v1050_v45 = vmul.f32 0.17677669, %v1040_v44  ;;  %v1186_v44 = vld [vmem:[#allocation2 + $0x20] sm:$0xff] }
 0x269   : > { %v2787_v46 = vpop.f32.mrf.mxu0 }
 0x26a   : > { %v1055_v47 = vsel %vm818_vm2, %v1050_v45, -inf }
 0x26b   : > { %1056 = vmax.xlane.f32.xlu1 %v1055_v47  ;;  %v1045_v48 = vpop.f32.mrf.mxu0 }
 0x26c   : > { %v1051_v49 = vmul.f32 0.17677669, %v1045_v48 }
 0x26d   : > { %v2790_v51 = vpop.f32.mrf.mxu0 }
 0x26e   : > { %v1058_v52 = vsel %vm818_vm2, %v1051_v49, -inf }
 0x26f   : > { %1059 = vmax.xlane.f32.xlu0 %v1058_v52 }
 0x27c   : > { %1092 = vrot.lane.b32.xlu1 %v3575_v34, %s3149_s16 }
 0x27d   : > { %v821_v56 = vpop.xlane.xlu0 %820 }
 0x27e   : > { %v828_v58 = vsub.f32 %v815_v15, %v821_v56 }
 0x280   : > { %v831_v62 = vmul.f32 1.442695, %v828_v58  ;;  %v942_v58 = vld [vmem:[#allocation2 + $0x8] sm:$0xff] }
 0x281   : > { %v824_v53 = vpop.xlane.xlu1 %823 }
 0x282   : > { %v829_v54 = vsub.f32 %v816_v19, %v824_v53  ;;  %v944_v53 = vld [vmem:[#allocation2 + $0x18] sm:$0xff] }
 0x284   : > { %v833_v57 = vmul.f32 1.442695, %v829_v54  ;;  %v943_v54 = vld [vmem:[#allocation2 + $0x10] sm:$0xff] }
 0x285   : > { %v827_v59 = vpop.xlane.xlu0 %826 }
 0x286   : > { %2983 = vpow2.f32 %v833_v57  ;;  %v830_v1 = vsub.f32 %v817_v26, %v827_v59  ;;  %v941_v59 = vld [vmem:[#allocation2] sm:$0xff] }
 0x287   : > { %2985 = vpow2.f32 %v831_v62 }
 0x288   : > { %v835_v2 = vmul.f32 1.442695, %v830_v1 }
 0x28a   : > { %2987 = vpow2.f32 %v835_v2 }
 0x293   : > { %v2984_v4 = vpop.eup %2983 }
 0x294   : > { %v840_v5 = vsel %vm818_vm2, %v2984_v4, 0.0  ;;  %v2986_v6 = vpop.eup %2985 }
 0x295   : > { %841 = vadd.xlane.f32.xlu0 %v840_v5  ;;  %v837_v7 = vsel %vm818_vm2, %v2986_v6, 0.0 }
 0x297   : > { %v2988_v8 = vpop.eup %2987 }
 0x298   : > { %v843_v9 = vsel %vm818_vm2, %v2988_v8, 0.0 }
 0x2a0   : > { %838 = vadd.xlane.f32.xlu1 %v837_v7 }
 0x2a4   : > { %844 = vadd.xlane.f32.xlu1 %v843_v9 }
 0x2f0   : > { %v1054_v10 = vpop.xlane.xlu0 %1053 }
 0x2f1   : > { %v1061_v11 = vsub.f32 %v1049_v40, %v1054_v10  ;;  %v1189_v40 = vld [vmem:[#allocation2 + $0x38] sm:$0xff] }
 0x2f2   : > { %2807 = vmatpush3.msra.mxu0 %v1189_v40 }
 0x2f3   : > { %v1064_v12 = vmul.f32 1.442695, %v1061_v11  ;;  %2808 = vmatprep.subr.mxu0 %v3147_v0 }
 0x2f4   : > { %v1057_v13 = vpop.xlane.xlu1 %1056  ;;  %2809 = vmatpush3.msra.mxu0 %v1188_v41 }
 0x2f5   : > { %2989 = vpow2.f32 %v1064_v12  ;;  %v1062_v14 = vsub.f32 %v1050_v45, %v1057_v13  ;;  %2810 = vmatprep.subr.mxu0 %v3147_v0 }
 0x2f6   : > { %2811 = vmatpush3.msra.mxu0 %v1187_v42 }
 0x2f7   : > { %v1066_v15 = vmul.f32 1.442695, %v1062_v14  ;;  %2812 = vmatprep.subr.mxu0 %v3147_v0 }
 0x2f8   : > { %v1060_v16 = vpop.xlane.xlu0 %1059  ;;  %v1093_v25 = vpop.permute.xlu1 %1092  ;;  %2813 = vmatpush3.msra.mxu0 %v1186_v44 }
 0x2f9   : > { %2991 = vpow2.f32 %v1066_v15  ;;  %v1063_v17 = vsub.f32 %v1051_v49, %v1060_v16  ;;  %2840 = vmatprep.subr.mxu0 %v3147_v0 }
 0x2fb   : > { %v1068_v18 = vmul.f32 1.442695, %v1063_v17 }
 0x2fd   : > { %2993 = vpow2.f32 %v1068_v18 }
 0x302   : > { %v2990_v19 = vpop.eup %2989 }
 0x303   : > { %v1070_v20 = vsel %vm818_vm2, %v2990_v19, 0.0 }
 0x304   : > { %1071 = vadd.xlane.f32.xlu0 %v1070_v20 }
 0x306   : > { %v3594_v21 = vpop.eup %2991 }
 0x307   : > { %v1073_v22 = vsel %vm818_vm2, %v3594_v21, 0.0 }
 0x308   : > { %1074 = vadd.xlane.f32.xlu1 %v1073_v22 }
 0x30a   : > { %v3598_v23 = vpop.eup %2993 }
 0x30b   : > { %v1076_v24 = vsel %vm818_vm2, %v3598_v23, 0.0 }
 0x30c   : > { %1077 = vadd.xlane.f32.xlu0 %v1076_v24 }
 0x319   : > { %1088 = vrot.lane.b32.xlu1 %v3577_v36, %s3149_s16 }
 0x31d   : > { %1378 = vrot.lane.b32.xlu1 %v3478_v60, %s3150_s21 }
 0x31e   : > { %v842_v26 = vpop.xlane.xlu0 %841 }
 0x321   : > { %1374 = vrot.lane.b32.xlu1 %v3454_v50, %s3150_s21 }
 0x322   : > { %1090 = vrot.lane.b32.xlu0 %v3573_v33, %s3149_s16  ;;  %s3151_s16 = smov 32  }
 0x325   : > { %1370 = vrot.lane.b32.xlu1 %v3507_v3, %s3150_s21 }
 0x326   : > { %1376 = vrot.lane.b32.xlu0 %v3493_v63, %s3150_s21 }
 0x329   : > { %v839_v27 = vpop.xlane.xlu1 %838 }
 0x32a   : > { %2995 = vrcp.f32 %v839_v27  ;;  %1368 = vrot.lane.b32.xlu0 %v3466_v55, %s3150_s21 }
 0x32b   : > { %2997 = vrcp.f32 %v842_v26 }
 0x32d   : > { %v845_v28 = vpop.xlane.xlu1 %844 }
 0x32e   : > { %1372 = vrot.lane.b32.xlu0 %v3480_v61, %s3150_s21  ;;  %2999 = vrcp.f32 %v845_v28 }
 0x337   : > { %v2996_v29 = vpop.eup %2995 }
 0x338   : > { %v849_v30 = vmul.f32 %v2996_v29, %v2986_v6  ;;  %v2998_v31 = vpop.eup %2997 }
 0x339   : > { %v850_v32 = vmul.f32 %v2998_v31, %v2984_v4 }
 0x33a   : > { %2768 = vmatmul.mubr.msk.f32.vlgmr.msra.gmra.mxu1 %vm818_vm2, %v849_v30 }
 0x33b   : > { %2770 = vmatprep.mubr.msk.f32.mxu1 %vm3148_vm0, %v3147_v0  ;;  %2792 = vmatpush3.msra.mxu1 %v1093_v25  ;;  %v3000_v35 = vpop.eup %2999 }
 0x33c   : > { %2793 = vmatprep.subr.mxu1 %v3147_v0  ;;  %v851_v37 = vmul.f32 %v3000_v35, %v2988_v8 }
 0x33e   : > { %2771 = vmatmul.mubr.msk.f32.gmra.mxu1 %vm818_vm2, %v850_v32 }
 0x33f   : > { %2773 = vmatprep.mubr.msk.f32.mxu1 %vm3148_vm0, %v3147_v0 }
 0x342   : > { %2774 = vmatmul.mubr.msk.f32.gmra.mxu1 %vm818_vm2, %v851_v37 }
 0x343   : > { %2797 = vmatprep.mubr.msk.f32.mxu1 %vm3148_vm0, %v3147_v0 }
 0x38d   : > { %v1072_v45 = vpop.xlane.xlu0 %1071 }
 0x38e   : > { %3001 = vrcp.f32 %v1072_v45 }
 0x391   : > { %v1075_v46 = vpop.xlane.xlu1 %1074 }
 0x392   : > { %3003 = vrcp.f32 %v1075_v46 }
 0x395   : > { %v1078_v47 = vpop.xlane.xlu0 %1077  ;;  %v1089_v51 = vpop.permute.xlu1 %1088 }
 0x396   : > { %3005 = vrcp.f32 %v1078_v47 }
 0x399   : > { %v1091_v48 = vpop.permute.xlu0 %1090  ;;  %v1379_v10 = vpop.permute.xlu1 %1378 }
 0x39a   : > { %2794 = vmatpush3.msra.mxu1 %v1091_v48 }
 0x39b   : > { %v3002_v49 = vpop.eup %3001  ;;  %2795 = vmatprep.subr.mxu1 %v3147_v0 }
 0x39c   : > { %v1082_v52 = vmul.f32 %v3002_v49, %v2990_v19  ;;  %2796 = vmatpush3.msra.mxu1 %v1089_v51 }
 0x39d   : > { %2823 = vmatprep.subr.mxu1 %v3147_v0  ;;  %v1377_v13 = vpop.permute.xlu0 %1376  ;;  %v1375_v16 = vpop.permute.xlu1 %1374 }
 0x39e   : > { %2798 = vmatmul.mubr.msk.f32.vlgmr.msra.gmra.mxu1 %vm818_vm2, %v1082_v52 }
 0x39f   : > { %v3004_v56 = vpop.eup %3003  ;;  %2800 = vmatprep.mubr.msk.f32.mxu1 %vm3148_vm0, %v3147_v0  ;;  %2824 = vmatpush3.msra.mxu1 %v944_v53 }
 0x3a0   : > { %v1083_v57 = vmul.f32 %v3004_v56, %v3594_v21  ;;  %2825 = vmatprep.subr.mxu1 %v3147_v0 }
 0x3a1   : > { %2826 = vmatpush3.msra.mxu1 %v943_v54  ;;  %v1369_v18 = vpop.permute.xlu0 %1368  ;;  %v1371_v19 = vpop.permute.xlu1 %1370 }
 0x3a2   : > { %2801 = vmatmul.mubr.msk.f32.gmra.mxu1 %vm818_vm2, %v1083_v57  ;;  %2827 = vmatprep.subr.mxu1 %v3147_v0 }
 0x3a3   : > { %v3006_v62 = vpop.eup %3005  ;;  %2803 = vmatprep.mubr.msk.f32.mxu1 %vm3148_vm0, %v3147_v0  ;;  %2828 = vmatpush3.msra.mxu1 %v942_v58 }
 0x3a4   : > { %v1084_v1 = vmul.f32 %v3006_v62, %v3598_v23  ;;  %2829 = vmatprep.subr.mxu1 %v3147_v0 }
 0x3a5   : > { %2830 = vmatpush3.msra.mxu1 %v941_v59  ;;  %v1373_v20 = vpop.permute.xlu0 %1372 }
 0x3a6   : > { %2804 = vmatmul.mubr.msk.f32.gmra.mxu1 %vm818_vm2, %v1084_v1  ;;  %2855 = vmatprep.subr.mxu1 %v3147_v0 }
 0x3a7   : > { %2831 = vmatprep.mubr.msk.f32.mxu1 %vm3148_vm0, %v3147_v0 }
 0x3fa   : > { %v927_v2 = vpop.f32.mrf.mxu1 }
 0x3fb   : > { %2832 = vmatmul.mubr.msk.f32.vlgmr.msra.gmra.mxu1 %vm716_vm1, %v927_v2 }
 0x3fc   : > { %v2769_v4 = vpop.f32.mrf.mxu1  ;;  %2834 = vmatprep.mubr.msk.f32.mxu1 %vm3148_vm0, %v3147_v0 }
 0x3fe   : > { %v932_v5 = vpop.f32.mrf.mxu1 }
 0x3ff   : > { %2835 = vmatmul.mubr.msk.f32.gmra.mxu1 %vm716_vm1, %v932_v5 }
 0x400   : > { %v2772_v6 = vpop.f32.mrf.mxu1  ;;  %2837 = vmatprep.mubr.msk.f32.mxu1 %vm3148_vm0, %v3147_v0 }
 0x402   : > { %v937_v7 = vpop.f32.mrf.mxu1 }
 0x403   : > { %2838 = vmatmul.mubr.msk.f32.gmra.mxu1 %vm716_vm1, %v937_v7 }
 0x404   : > { %v2775_v8 = vpop.f32.mrf.mxu1  ;;  %2861 = vmatprep.mubr.msk.f32.mxu1 %vm3148_vm0, %v3147_v0 }
 0x45e   : > { %v1172_v9 = vpop.f32.mrf.mxu1 }
 0x45f   : > { %2815 = vmatmul.mubr.msk.f32.vlgmr.msra.gmra.mxu0 %vm716_vm1, %v1172_v9 }
 0x460   : > { %2841 = vmatpush3.xpose.msk.msra.mxu0 %vm716_vm1, %v1379_v10  ;;  %v2799_v11 = vpop.f32.mrf.mxu1  ;;  %2817 = vmatprep.mubr.msk.f32.mxu0 %vm3148_vm0, %v3147_v0 }
 0x461   : > { %2842 = vmatprep.subr.mxu0 %v3147_v0 }
 0x462   : > { %v1177_v12 = vpop.f32.mrf.mxu1 }
 0x463   : > { %2818 = vmatmul.mubr.msk.f32.gmra.mxu0 %vm716_vm1, %v1177_v12 }
 0x464   : > { %2843 = vmatpush3.xpose.msk.msra.mxu0 %vm716_vm1, %v1377_v13  ;;  %v2802_v14 = vpop.f32.mrf.mxu1  ;;  %2820 = vmatprep.mubr.msk.f32.mxu0 %vm3148_vm0, %v3147_v0 }
 0x465   : > { %2844 = vmatprep.subr.mxu0 %v3147_v0 }
 0x466   : > { %v1182_v15 = vpop.f32.mrf.mxu1 }
 0x467   : > { %2821 = vmatmul.mubr.msk.f32.gmra.mxu0 %vm716_vm1, %v1182_v15 }
 0x468   : > { %2845 = vmatpush3.xpose.msk.msra.mxu0 %vm716_vm1, %v1375_v16  ;;  %v2805_v17 = vpop.f32.mrf.mxu1  ;;  %2846 = vmatprep.mubr.msk.f32.mxu0 %vm3148_vm0, %v3147_v0 }
 0x469   : > { %2870 = vmatprep.subr.mxu0 %v3147_v0 }
 0x46b   : > { %2847 = vmatmul.mubr.msk.f32.vlgmr.msra.gmra.mxu0 %vm716_vm1, %v1369_v18 }
 0x46c   : > { %2849 = vmatprep.mubr.msk.f32.mxu0 %vm3148_vm0, %v3147_v0 }
 0x46f   : > { %2850 = vmatmul.mubr.msk.f32.gmra.mxu0 %vm716_vm1, %v1371_v19 }
 0x470   : > { %2852 = vmatprep.mubr.msk.f32.mxu0 %vm3148_vm0, %v3147_v0 }
 0x473   : > { %2853 = vmatmul.mubr.msk.f32.gmra.mxu0 %vm716_vm1, %v1373_v20 }
 0x474   : > { %2878 = vmatprep.mubr.msk.f32.mxu0 %vm3148_vm0, %v3147_v0 }
 0x4bb   : > { %v3682_v21 = vpop.f32.mrf.mxu1 }
 0x4bd   : > { %v2833_v22 = vpop.f32.mrf.mxu1 }
 0x4bf   : > { %v3684_v23 = vpop.f32.mrf.mxu1 }
 0x4c1   : > { %v2836_v24 = vpop.f32.mrf.mxu1 }
 0x4c3   : > { %v3686_v25 = vpop.f32.mrf.mxu1 }
 0x4c5   : > { %v2839_v26 = vpop.f32.mrf.mxu1 }
 0x51f   : > { %v3688_v27 = vpop.f32.mrf.mxu0 }
 0x521   : > { %v2816_v28 = vpop.f32.mrf.mxu0 }
 0x522   : > { %v1606_v28 = vld [vmem:[#allocation2 + $0x40] sm:$0xff] }
 0x523   : > { %v3690_v29 = vpop.f32.mrf.mxu0 }
 0x525   : > { %v2819_v30 = vpop.f32.mrf.mxu0 }
 0x527   : > { %v3692_v31 = vpop.f32.mrf.mxu0 }
 0x529   : > { %v2822_v32 = vpop.f32.mrf.mxu0 }
 0x52b   : > { %v1458_v35 = vpop.f32.mrf.mxu0 }
 0x52c   : > { %v1472_v37 = vmul.f32 0.17677669, %v1458_v35 }
 0x52d   : > { %v2848_v40 = vpop.f32.mrf.mxu0 }
 0x52e   : > { %v1475_v41 = vsel %vm818_vm2, %v1472_v37, -inf }
 0x52f   : > { %1476 = vmax.xlane.f32.xlu1 %v1475_v41  ;;  %v1463_v42 = vpop.f32.mrf.mxu0 }
 0x530   : > { %v1473_v44 = vmul.f32 0.17677669, %v1463_v42 }
 0x531   : > { %v2851_v45 = vpop.f32.mrf.mxu0 }
 0x532   : > { %v1478_v46 = vsel %vm818_vm2, %v1473_v44, -inf }
 0x533   : > { %1479 = vmax.xlane.f32.xlu0 %v1478_v46  ;;  %v1468_v47 = vpop.f32.mrf.mxu0 }
 0x534   : > { %v1474_v48 = vmul.f32 0.17677669, %v1468_v47 }
 0x535   : > { %v2854_v49 = vpop.f32.mrf.mxu0 }
 0x536   : > { %v1481_v51 = vsel %vm818_vm2, %v1474_v48, -inf }
 0x537   : > { %1482 = vmax.xlane.f32.xlu0 %v1481_v51 }
 0x540   : > { %1510 = vrot.lane.b32.xlu1 %v3573_v33, %s3150_s21 }
 0x544   : > { %1508 = vrot.lane.b32.xlu1 %v3577_v36, %s3150_s21 }
 0x54d   : > { %1512 = vrot.lane.b32.xlu0 %v3575_v34, %s3150_s21 }
 0x5b8   : > { %v1477_v52 = vpop.xlane.xlu1 %1476 }
 0x5b9   : > { %v1484_v53 = vsub.f32 %v1472_v37, %v1477_v52 }
 0x5bb   : > { %v1487_v54 = vmul.f32 1.442695, %v1484_v53 }
 0x5bc   : > { %v1480_v56 = vpop.xlane.xlu0 %1479  ;;  %v1511_v62 = vpop.permute.xlu1 %1510 }
 0x5bd   : > { %3007 = vpow2.f32 %v1487_v54  ;;  %v1485_v57 = vsub.f32 %v1473_v44, %v1480_v56 }
 0x5bf   : > { %v1489_v58 = vmul.f32 1.442695, %v1485_v57  ;;  %v1355_v57 = vadd.f32 %v3682_v21, %v3688_v27 }
 0x5c0   : > { %v1483_v59 = vpop.xlane.xlu0 %1482  ;;  %v1509_v2 = vpop.permute.xlu1 %1508 }
 0x5c1   : > { %3009 = vpow2.f32 %v1489_v58  ;;  %v1486_v8 = vsub.f32 %v1474_v48, %v1483_v59 }
 0x5c3   : > { %v1491_v9 = vmul.f32 1.442695, %v1486_v8 }
 0x5c4   : > { %v1513_v1 = vpop.permute.xlu0 %1512 }
 0x5c5   : > { %2856 = vmatpush3.msra.mxu1 %v1513_v1  ;;  %3011 = vpow2.f32 %v1491_v9  ;;  %v1360_v1 = vadd.f32 %v3684_v23, %v3690_v29 }
 0x5c6   : > { %2857 = vmatprep.subr.mxu1 %v3147_v0 }
 0x5c7   : > { %2858 = vmatpush3.msra.mxu1 %v1511_v62 }
 0x5c8   : > { %2859 = vmatprep.subr.mxu1 %v3147_v0 }
 0x5c9   : > { %2860 = vmatpush3.msra.mxu1 %v1509_v2 }
 0x5ca   : > { %v3008_v4 = vpop.eup %3007  ;;  %2887 = vmatprep.subr.mxu1 %v3147_v0 }
 0x5cb   : > { %v1493_v5 = vsel %vm818_vm2, %v3008_v4, 0.0 }
 0x5cc   : > { %1494 = vadd.xlane.f32.xlu1 %v1493_v5 }
 0x5ce   : > { %v3010_v6 = vpop.eup %3009 }
 0x5cf   : > { %v1496_v7 = vsel %vm818_vm2, %v3010_v6, 0.0 }
 0x5d0   : > { %1497 = vadd.xlane.f32.xlu0 %v1496_v7 }
 0x5d2   : > { %v3012_v10 = vpop.eup %3011 }
 0x5d3   : > { %v1499_v11 = vsel %vm818_vm2, %v3012_v10, 0.0 }
 0x5dd   : > { %1710 = vrot.lane.b32.xlu1 %v3493_v63, %s3151_s16  ;;  %v1608_v63 = vld [vmem:[#allocation2 + $0x50] sm:$0xff] }
 0x5e6   : > { %1712 = vrot.lane.b32.xlu0 %v3478_v60, %s3151_s16  ;;  %v1609_v60 = vld [vmem:[#allocation2 + $0x58] sm:$0xff] }
 0x5e7   : > { %2871 = vmatpush3.msra.mxu0 %v1609_v60 }
 0x5e8   : > { %2872 = vmatprep.subr.mxu0 %v3147_v0 }
 0x5e9   : > { %2873 = vmatpush3.msra.mxu0 %v1608_v63 }
 0x5ea   : > { %1708 = vrot.lane.b32.xlu0 %v3454_v50, %s3151_s16  ;;  %v1607_v50 = vld [vmem:[#allocation2 + $0x48] sm:$0xff]  ;;  %2874 = vmatprep.subr.mxu0 %v3147_v0 }
 0x5eb   : > { %2875 = vmatpush3.msra.mxu0 %v1607_v50 }
 0x5ec   : > { %2876 = vmatprep.subr.mxu0 %v3147_v0 }
 0x5ed   : > { %2877 = vmatpush3.msra.mxu0 %v1606_v28 }
 0x5ee   : > { %1704 = vrot.lane.b32.xlu0 %v3507_v3, %s3151_s16  ;;  %2902 = vmatprep.subr.mxu0 %v3147_v0 }
 0x601   : > { %1500 = vadd.xlane.f32.xlu1 %v1499_v11 }
 0x612   : > { %1702 = vrot.lane.b32.xlu1 %v3466_v55, %s3151_s16 }
 0x616   : > { %1706 = vrot.lane.b32.xlu1 %v3480_v61, %s3151_s16 }
 0x655   : > { %v1495_v3 = vpop.xlane.xlu1 %1494 }
 0x656   : > { %3013 = vrcp.f32 %v1495_v3 }
 0x659   : > { %v1498_v12 = vpop.xlane.xlu0 %1497  ;;  %v1711_v16 = vpop.permute.xlu1 %1710 }
 0x65a   : > { %3015 = vrcp.f32 %v1498_v12 }
 0x65d   : > { %v1713_v14 = vpop.permute.xlu0 %1712 }
 0x661   : > { %v1709_v17 = vpop.permute.xlu0 %1708 }
 0x663   : > { %v3014_v55 = vpop.eup %3013 }
 0x664   : > { %v1505_v13 = vmul.f32 %v3014_v55, %v3008_v4  ;;  %v1365_v55 = vadd.f32 %v3686_v25, %v3692_v31 }
 0x665   : > { %v1705_v24 = vpop.permute.xlu0 %1704 }
 0x666   : > { %2862 = vmatmul.mubr.msk.f32.vlgmr.msra.gmra.mxu1 %vm818_vm2, %v1505_v13 }
 0x667   : > { %v3016_v61 = vpop.eup %3015  ;;  %2888 = vmatpush3.xpose.msk.msra.mxu1 %vm716_vm1, %v1713_v14  ;;  %2864 = vmatprep.mubr.msk.f32.mxu1 %vm3148_vm0, %v3147_v0 }
 0x668   : > { %2889 = vmatprep.subr.mxu1 %v3147_v0  ;;  %v1506_v15 = vmul.f32 %v3016_v61, %v3010_v6 }
 0x66a   : > { %2865 = vmatmul.mubr.msk.f32.gmra.mxu1 %vm818_vm2, %v1506_v15  ;;  %v1943_v15 = vld [vmem:[#allocation2 + $0x78] sm:$0xff] }
 0x66b   : > { %2890 = vmatpush3.xpose.msk.msra.mxu1 %vm716_vm1, %v1711_v16  ;;  %2867 = vmatprep.mubr.msk.f32.mxu1 %vm3148_vm0, %v3147_v0  ;;  %v1942_v16 = vld [vmem:[#allocation2 + $0x70] sm:$0xff] }
 0x66c   : > { %2891 = vmatprep.subr.mxu1 %v3147_v0 }
 0x66f   : > { %2892 = vmatpush3.xpose.msk.msra.mxu1 %vm716_vm1, %v1709_v17  ;;  %v1941_v17 = vld [vmem:[#allocation2 + $0x68] sm:$0xff] }
 0x670   : > { %2917 = vmatprep.subr.mxu1 %v3147_v0 }
 0x68a   : > { %v1501_v18 = vpop.xlane.xlu1 %1500 }
 0x68b   : > { %3017 = vrcp.f32 %v1501_v18 }
 0x68e   : > { %v1703_v22 = vpop.permute.xlu1 %1702 }
 0x692   : > { %v1707_v26 = vpop.permute.xlu1 %1706 }
 0x698   : > { %v3018_v19 = vpop.eup %3017 }
 0x699   : > { %v1507_v20 = vmul.f32 %v3018_v19, %v3012_v10 }
 0x69b   : > { %2868 = vmatmul.mubr.msk.f32.gmra.mxu1 %vm818_vm2, %v1507_v20 }
 0x69c   : > { %2893 = vmatprep.mubr.msk.f32.mxu1 %vm3148_vm0, %v3147_v0 }
 0x69f   : > { %2894 = vmatmul.mubr.msk.f32.vlgmr.msra.gmra.mxu1 %vm716_vm1, %v1703_v22 }
 0x6a0   : > { %2896 = vmatprep.mubr.msk.f32.mxu1 %vm3148_vm0, %v3147_v0  ;;  %2918 = vmatpush3.msra.mxu1 %v1943_v15  ;;  %v2126_v15 = vld [vmem:[#allocation4 + $0xb8] sm:$0xff] }
 0x6a1   : > { %2919 = vmatprep.subr.mxu1 %v3147_v0 }
 0x6a2   : > { %2920 = vmatpush3.msra.mxu1 %v1942_v16  ;;  %v2125_v16 = vld [vmem:[#allocation4 + $0xb0] sm:$0xff] }
 0x6a3   : > { %2897 = vmatmul.mubr.msk.f32.gmra.mxu1 %vm716_vm1, %v1705_v24  ;;  %2921 = vmatprep.subr.mxu1 %v3147_v0 }
 0x6a4   : > { %2899 = vmatprep.mubr.msk.f32.mxu1 %vm3148_vm0, %v3147_v0  ;;  %2922 = vmatpush3.msra.mxu1 %v1941_v17  ;;  %v2124_v17 = vld [vmem:[#allocation4 + $0xa8] sm:$0xff] }
 0x6a5   : > { %2923 = vmatprep.subr.mxu1 %v3147_v0 }
 0x6a7   : > { %2900 = vmatmul.mubr.msk.f32.gmra.mxu1 %vm716_vm1, %v1707_v26 }
 0x6a8   : > { %2925 = vmatprep.mubr.msk.f32.mxu1 %vm3148_vm0, %v3147_v0 }
 0x726   : > { %v1592_v30 = vpop.f32.mrf.mxu1 }
 0x727   : > { %2879 = vmatmul.mubr.msk.f32.vlgmr.msra.gmra.mxu0 %vm716_vm1, %v1592_v30  ;;  %v1940_v30 = vld [vmem:[#allocation2 + $0x60] sm:$0xff] }
 0x728   : > { %v2863_v32 = vpop.f32.mrf.mxu1  ;;  %2881 = vmatprep.mubr.msk.f32.mxu0 %vm3148_vm0, %v3147_v0  ;;  %2924 = vmatpush3.msra.mxu1 %v1940_v30  ;;  %v2112_v30 = vld [vmem:[#allocation4 + $0x48] sm:$0xff] }
 0x72a   : > { %v1597_v35 = vpop.f32.mrf.mxu1 }
 0x72b   : > { %2882 = vmatmul.mubr.msk.f32.gmra.mxu0 %vm716_vm1, %v1597_v35 }
 0x72c   : > { %v2866_v37 = vpop.f32.mrf.mxu1  ;;  %2884 = vmatprep.mubr.msk.f32.mxu0 %vm3148_vm0, %v3147_v0 }
 0x75b   : > { %v1602_v40 = vpop.f32.mrf.mxu1 }
 0x75c   : > { %2885 = vmatmul.mubr.msk.f32.gmra.mxu0 %vm716_vm1, %v1602_v40 }
 0x75d   : > { %v2869_v41 = vpop.f32.mrf.mxu1  ;;  %2908 = vmatprep.mubr.msk.f32.mxu0 %vm3148_vm0, %v3147_v0 }
 0x75f   : > { %v1792_v42 = vpop.f32.mrf.mxu1 }
 0x760   : > { %v1806_v44 = vmul.f32 0.17677669, %v1792_v42 }
 0x761   : > { %v2895_v45 = vpop.f32.mrf.mxu1 }
 0x762   : > { %v1809_v46 = vsel %vm818_vm2, %v1806_v44, -inf  ;;  %v2561_v45 = vld [vmem:[%s3867_s4] ss:$0 sm:$0xff] }
 0x763   : > { %1810 = vmax.xlane.f32.xlu0 %v1809_v46  ;;  %v1797_v47 = vpop.f32.mrf.mxu1 }
 0x764   : > { %v1807_v48 = vmul.f32 0.17677669, %v1797_v47 }
 0x765   : > { %v2898_v49 = vpop.f32.mrf.mxu1 }
 0x766   : > { %v1812_v51 = vsel %vm818_vm2, %v1807_v48, -inf }
 0x767   : > { %1813 = vmax.xlane.f32.xlu1 %v1812_v51  ;;  %v1802_v52 = vpop.f32.mrf.mxu1 }
 0x768   : > { %v1808_v53 = vmul.f32 0.17677669, %v1802_v52  ;;  %v3043_v52 = vld [vmem:[%s3393_s17] sm:$0xff] }
 0x769   : > { %v2901_v54 = vpop.f32.mrf.mxu1 }
 0x76a   : > { %v1815_v56 = vsel %vm818_vm2, %v1808_v53, -inf }
 0x76b   : > { %1816 = vmax.xlane.f32.xlu0 %v1815_v56 }
 0x778   : > { %1846 = vrot.lane.b32.xlu1 %v3575_v34, %s3151_s16 }
 0x7e7   : > { %v1685_v58 = vpop.f32.mrf.mxu0 }
 0x7e8   : > { %v3765_v59 = vadd.f32 %v1685_v58, %v1355_v57 }
 0x7e9   : > { %v2880_v62 = vpop.f32.mrf.mxu0 }
 0x7ea   : > { %v3044_v62 = vld [vmem:[%s3393_s17 + $0x8] sm:$0xff] }
 0x7eb   : > { %v1690_v2 = vpop.f32.mrf.mxu0 }
 0x7ec   : > { %v3769_v4 = vadd.f32 %v1690_v2, %v1360_v1  ;;  %v1811_v5 = vpop.xlane.xlu0 %1810 }
 0x7ed   : > { %v1818_v6 = vsub.f32 %v1806_v44, %v1811_v5  ;;  %v2883_v7 = vpop.f32.mrf.mxu0 }
 0x7ee   : > { %v2134_v7 = vld [vmem:[#allocation4 + $0xf8] sm:$0xff] }
 0x7ef   : > { %v1821_v8 = vmul.f32 1.442695, %v1818_v6  ;;  %v3045_v6 = vld [vmem:[%s3393_s17 + $0x10] sm:$0xff]  ;;  %s484_s17 = scalar_lea.vmem %s3876_s13, %s2934_s23 }
 0x7f0   : > { %v1814_v9 = vpop.xlane.xlu1 %1813 }
 0x7f1   : > { %3019 = vpow2.f32 %v1821_v8  ;;  %v1819_v34 = vsub.f32 %v1807_v48, %v1814_v9  ;;  %v2133_v8 = vld [vmem:[#allocation4 + $0xf0] sm:$0xff]  ;;  %v2132_v9 = vld [vmem:[#allocation4 + $0xe8] sm:$0xff] }
 0x7f3   : > { %v1823_v10 = vmul.f32 1.442695, %v1819_v34  ;;  %v2130_v34 = vld [vmem:[#allocation4 + $0xd8] sm:$0xff] }
 0x7f4   : > { %v1847_v11 = vpop.permute.xlu1 %1846  ;;  %v1817_v21 = vpop.xlane.xlu0 %1816 }
 0x7f5   : > { %3021 = vpow2.f32 %v1823_v10  ;;  %v1820_v27 = vsub.f32 %v1808_v53, %v1817_v21  ;;  %2903 = vmatpush3.msra.mxu0 %v1847_v11  ;;  %v2129_v10 = vld [vmem:[#allocation4 + $0xd0] sm:$0xff]  ;;  %v2128_v11 = vld [vmem:[#allocation4 + $0xc8] sm:$0xff]  ;;  %v2127_v21 = vld [vmem:[#allocation4 + $0xc0] sm:$0xff] }
 0x7f6   : > { %2904 = vmatprep.subr.mxu0 %v3147_v0 }
 0x7f7   : > { %v1825_v60 = vmul.f32 1.442695, %v1820_v27 }
 0x7f9   : > { %3023 = vpow2.f32 %v1825_v60 }
 0x7fe   : > { %v3020_v23 = vpop.eup %3019 }
 0x7ff   : > { %v1827_v29 = vsel %vm818_vm2, %v3020_v23, 0.0 }
 0x800   : > { %1828 = vadd.xlane.f32.xlu0 %v1827_v29 }
 0x802   : > { %v3022_v63 = vpop.eup %3021 }
 0x803   : > { %v1830_v50 = vsel %vm818_vm2, %v3022_v63, 0.0 }
 0x804   : > { %1831 = vadd.xlane.f32.xlu1 %v1830_v50 }
 0x806   : > { %v3024_v3 = vpop.eup %3023 }
 0x807   : > { %v1833_v12 = vsel %vm818_vm2, %v3024_v3, 0.0 }
 0x808   : > { %1834 = vadd.xlane.f32.xlu0 %v1833_v12 }
 0x815   : > { %1842 = vrot.lane.b32.xlu1 %v3577_v36, %s3151_s16 }
 0x81c   : > { %v1695_v13 = vpop.f32.mrf.mxu0 }
 0x81d   : > { %v1701_v14 = vadd.f32 %v1695_v13, %v1365_v55 }
 0x81e   : > { %1844 = vrot.lane.b32.xlu0 %v3573_v33, %s3151_s16  ;;  %v2886_v61 = vpop.f32.mrf.mxu0 }
 0x889   : > { %v1829_v36 = vpop.xlane.xlu0 %1828 }
 0x88a   : > { %3025 = vrcp.f32 %v1829_v36  ;;  %v2123_v36 = vld [vmem:[#allocation4 + $0xa0] sm:$0xff] }
 0x88d   : > { %v1832_v25 = vpop.xlane.xlu1 %1831 }
 0x88e   : > { %3027 = vrcp.f32 %v1832_v25  ;;  %v2122_v25 = vld [vmem:[#allocation4 + $0x98] sm:$0xff] }
 0x891   : > { %v1835_v31 = vpop.xlane.xlu0 %1834  ;;  %v1843_v19 = vpop.permute.xlu1 %1842 }
 0x892   : > { %3029 = vrcp.f32 %v1835_v31  ;;  %v2121_v31 = vld [vmem:[#allocation4 + $0x90] sm:$0xff] }
 0x895   : > { %v1845_v33 = vpop.permute.xlu0 %1844 }
 0x896   : > { %2905 = vmatpush3.msra.mxu0 %v1845_v33  ;;  %v2120_v33 = vld [vmem:[#allocation4 + $0x88] sm:$0xff] }
 0x897   : > { %v3026_v18 = vpop.eup %3025  ;;  %2906 = vmatprep.subr.mxu0 %v3147_v0 }
 0x898   : > { %v1839_v20 = vmul.f32 %v3026_v18, %v3020_v23  ;;  %2907 = vmatpush3.msra.mxu0 %v1843_v19  ;;  %v2119_v18 = vld [vmem:[#allocation4 + $0x80] sm:$0xff]  ;;  %v2118_v19 = vld [vmem:[#allocation4 + $0x78] sm:$0xff] }
 0x899   : > { %2147 = vmatprep.subr.mxu0 %v2134_v7  ;;  %v2259_v7 = vld [vmem:[#allocation6 + $0xb8] sm:$0xff] }
 0x89a   : > { %2909 = vmatmul.mubr.msk.f32.vlgmr.msra.gmra.mxu0 %vm818_vm2, %v1839_v20  ;;  %v2117_v20 = vld [vmem:[#allocation4 + $0x70] sm:$0xff] }
 0x89b   : > { %v3028_v22 = vpop.eup %3027  ;;  %2911 = vmatprep.mubr.msk.f32.mxu0 %vm3148_vm0, %v3147_v0  ;;  %2148 = vmatpush1.msra.mxu0 %v2133_v8  ;;  %v2243_v8 = vld [vmem:[#allocation6 + $0x38] sm:$0xff] }
 0x89c   : > { %v1840_v24 = vmul.f32 %v3028_v22, %v3022_v63  ;;  %2149 = vmatprep.subr.mxu0 %v2132_v9  ;;  %v2116_v22 = vld [vmem:[#allocation4 + $0x68] sm:$0xff]  ;;  %v2258_v9 = vld [vmem:[#allocation6 + $0xb0] sm:$0xff] }
 0x89e   : > { %2912 = vmatmul.mubr.msk.f32.gmra.mxu0 %vm818_vm2, %v1840_v24  ;;  %v2115_v24 = vld [vmem:[#allocation4 + $0x60] sm:$0xff] }
 0x89f   : > { %v3030_v26 = vpop.eup %3029  ;;  %2914 = vmatprep.mubr.msk.f32.mxu0 %vm3148_vm0, %v3147_v0 }
 0x8a0   : > { %v1841_v28 = vmul.f32 %v3030_v26, %v3024_v3  ;;  %v2114_v26 = vld [vmem:[#allocation4 + $0x58] sm:$0xff] }
 0x8a2   : > { %2915 = vmatmul.mubr.msk.f32.gmra.mxu0 %vm818_vm2, %v1841_v28  ;;  %v2113_v28 = vld [vmem:[#allocation4 + $0x50] sm:$0xff] }
 0x8a3   : > { %2211 = vmatprep.mubr.f32.mxu0 %v3147_v0 }
 0x95a   : > { %v1926_v32 = vpop.f32.mrf.mxu0 }
 0x95b   : > { %2926 = vmatmul.mubr.msk.f32.vlgmr.msra.gmra.mxu1 %vm716_vm1, %v1926_v32  ;;  %v2111_v32 = vld [vmem:[#allocation4 + $0x40] sm:$0xff] }
 0x95c   : > { %v2910_v35 = vpop.f32.mrf.mxu0  ;;  %2928 = vmatprep.mubr.msk.f32.mxu1 %vm3148_vm0, %v3147_v0 }
 0x95d   : > { %v2110_v35 = vld [vmem:[#allocation4 + $0x38] sm:$0xff] }
 0x95e   : > { %v1931_v37 = vpop.f32.mrf.mxu0 }
 0x95f   : > { %2929 = vmatmul.mubr.msk.f32.gmra.mxu1 %vm716_vm1, %v1931_v37  ;;  %v2109_v37 = vld [vmem:[#allocation4 + $0x30] sm:$0xff] }
 0x960   : > { %v2913_v40 = vpop.f32.mrf.mxu0  ;;  %2931 = vmatprep.mubr.msk.f32.mxu1 %vm3148_vm0, %v3147_v0 }
 0x961   : > { %v2108_v40 = vld [vmem:[#allocation4 + $0x28] sm:$0xff] }
 0x962   : > { %v1936_v41 = vpop.f32.mrf.mxu0 }
 0x963   : > { %2932 = vmatmul.mubr.msk.f32.gmra.mxu1 %vm716_vm1, %v1936_v41  ;;  %v2107_v41 = vld [vmem:[#allocation4 + $0x20] sm:$0xff] }
 0x964   : > { %v2916_v42 = vpop.f32.mrf.mxu0 }
 0x965   : > { %v2106_v42 = vld [vmem:[#allocation4 + $0x18] sm:$0xff] }
 0xa1b   : > { %v2019_v44 = vpop.f32.mrf.mxu1 }
 0xa1c   : > { %v2033_v46 = vadd.f32 %v2019_v44, %v3765_v59  ;;  %v2105_v44 = vld [vmem:[#allocation4 + $0x10] sm:$0xff] }
 0xa1d   : > { %v2927_v47 = vpop.f32.mrf.mxu1 }
 0xa1e   : > { %v2043_v48 = vadd.f32 %v2561_v45, %v2033_v46  ;;  %v2103_v46 = vld [vmem:[#allocation4] sm:$0xff]  ;;  %v2267_v47 = vld [vmem:[#allocation6 + $0xf8] sm:$0xff] }
 0xa1f   : > { %v2024_v49 = vpop.f32.mrf.mxu1  ;;  %2664 = vmatprep.subr.mxu1 %v2267_v47 }
 0xa20   : > { %v2034_v51 = vadd.f32 %v2024_v49, %v3769_v4  ;;  %v2046_v53 = vadd.f32 %v3043_v52, %v2043_v48  ;;  %v2131_v4 = vld [vmem:[#allocation4 + $0xe0] sm:$0xff]  ;;  %v2251_v48 = vld [vmem:[#allocation6 + $0x78] sm:$0xff]  ;;  %v2266_v49 = vld [vmem:[#allocation6 + $0xf0] sm:$0xff] }
 0xa21   : > { %v2930_v54 = vpop.f32.mrf.mxu1  ;;  %2150 = vmatpush1.msra.mxu0 %v2131_v4  ;;  %2665 = vmatpush3.msra.mxu1 %v2251_v48  ;;  %v2265_v52 = vld [vmem:[#allocation6 + $0xe8] sm:$0xff]  ;;  %v2242_v4 = vld [vmem:[#allocation6 + $0x30] sm:$0xff] }
 0xa22   : > { %v2044_v56 = vadd.f32 %v2561_v45, %v2034_v51  ;;  %2051 = vadd.xlane.f32.xlu1 %v2046_v53  ;;  %2151 = vmatprep.subr.mxu0 %v2130_v34  ;;  %v2250_v51 = vld [vmem:[#allocation6 + $0x70] sm:$0xff]  ;;  %v2264_v54 = vld [vmem:[#allocation6 + $0xe0] sm:$0xff]  ;;  %v2257_v34 = vld [vmem:[#allocation6 + $0xa8] sm:$0xff] }
 0xa23   : > { %v2029_v57 = vpop.f32.mrf.mxu1  ;;  %2152 = vmatpush1.msra.mxu0 %v2129_v10  ;;  %2666 = vmatprep.subr.mxu1 %v2266_v49  ;;  %v2241_v10 = vld [vmem:[#allocation6 + $0x28] sm:$0xff] }
 0xa24   : > { %v2035_v58 = vadd.f32 %v2029_v57, %v1701_v14  ;;  %v2047_v1 = vadd.f32 %v3044_v62, %v2044_v56  ;;  %2153 = vmatprep.subr.mxu0 %v2128_v11  ;;  %2667 = vmatpush3.msra.mxu1 %v2250_v51  ;;  %v2248_v56 = vld [vmem:[#allocation6 + $0x60] sm:$0xff]  ;;  %v2263_v57 = vld [vmem:[#allocation6 + $0xd8] sm:$0xff]  ;;  %v2262_v62 = vld [vmem:[#allocation6 + $0xd0] sm:$0xff] }
 0xa25   : > { %v2933_v2 = vpop.f32.mrf.mxu1  ;;  %2154 = vmatpush1.msra.mxu0 %v2127_v21  ;;  %2668 = vmatprep.subr.mxu1 %v2265_v52  ;;  %v2256_v11 = vld [vmem:[#allocation6 + $0xa0] sm:$0xff] }
 0xa26   : > { %v2045_v5 = vadd.f32 %v2561_v45, %v2035_v58  ;;  %2053 = vadd.xlane.f32.xlu0 %v2047_v1  ;;  %2155 = vmatprep.subr.mxu0 %v2126_v15  ;;  %v2104_v45 = vld [vmem:[#allocation4 + $0x8] sm:$0xff]  ;;  %v2247_v58 = vld [vmem:[#allocation6 + $0x58] sm:$0xff]  ;;  %v2240_v21 = vld [vmem:[#allocation6 + $0x20] sm:$0xff] }
 0xa27   : > { %2156 = vmatpush1.msra.mxu0 %v2125_v16  ;;  %v2261_v2 = vld [vmem:[#allocation6 + $0xc8] sm:$0xff]  ;;  %v2562_v16 = vld [vmem:[%s3868_s5] ss:$0 sm:$0xff] }
 0xa28   : > { %v2048_v59 = vadd.f32 %v3045_v6, %v2045_v5  ;;  %2157 = vmatprep.subr.mxu0 %v2124_v17  ;;  %v2245_v5 = vld [vmem:[#allocation6 + $0x48] sm:$0xff]  ;;  %v2260_v6 = vld [vmem:[#allocation6 + $0xc0] sm:$0xff] }
 0xa29   : > { %2158 = vmatpush1.msra.mxu0 %v2123_v36  ;;  %v2563_v36 = vld [vmem:[%s3869_s6] ss:$0 sm:$0xff] }
 0xa2a   : > { %2055 = vadd.xlane.f32.xlu0 %v2048_v59  ;;  %2159 = vmatprep.subr.mxu0 %v2122_v25 }
 0xa2b   : > { %2160 = vmatpush1.msra.mxu0 %v2121_v31 }
 0xa2c   : > { %2161 = vmatprep.subr.mxu0 %v2120_v33 }
 0xa2d   : > { %2162 = vmatpush1.msra.mxu0 %v2119_v18 }
 0xa2e   : > { %2163 = vmatprep.subr.mxu0 %v2118_v19 }
 0xa2f   : > { %2164 = vmatpush1.msra.mxu0 %v2117_v20 }
 0xa30   : > { %2165 = vmatprep.subr.mxu0 %v2116_v22 }
 0xa31   : > { %2166 = vmatpush1.msra.mxu0 %v2115_v24 }
 0xa32   : > { %2167 = vmatprep.subr.mxu0 %v2114_v26 }
 0xa33   : > { %2168 = vmatpush1.msra.mxu0 %v2113_v28  ;;  %v2255_v28 = vld [vmem:[#allocation6 + $0x98] sm:$0xff] }
 0xa34   : > { %2169 = vmatprep.subr.mxu0 %v2112_v30  ;;  %v2254_v30 = vld [vmem:[#allocation6 + $0x90] sm:$0xff] }
 0xa35   : > { %2170 = vmatpush1.msra.mxu0 %v2111_v32  ;;  %v2238_v32 = vld [vmem:[#allocation6 + $0x10] sm:$0xff] }
 0xa36   : > { %2171 = vmatprep.subr.mxu0 %v2110_v35  ;;  %v2253_v35 = vld [vmem:[#allocation6 + $0x88] sm:$0xff] }
 0xa37   : > { %2172 = vmatpush1.msra.mxu0 %v2109_v37  ;;  %v2237_v37 = vld [vmem:[#allocation6 + $0x8] sm:$0xff] }
 0xa38   : > { %2173 = vmatprep.subr.mxu0 %v2108_v40  ;;  %v2236_v40 = vld [vmem:[#allocation6] sm:$0xff] }
 0xa39   : > { %2174 = vmatpush1.msra.mxu0 %v2107_v41 }
 0xa3a   : > { %2175 = vmatprep.subr.mxu0 %v2106_v42 }
 0xa3b   : > { %2176 = vmatpush1.msra.mxu0 %v2105_v44 }
 0xa3c   : > { %2177 = vmatprep.subr.mxu0 %v2104_v45 }
 0xa3d   : > { %2178 = vmatpush1.msra.mxu0 %v2103_v46 }
 0xaab   : > { %v2052_v27 = vpop.xlane.xlu1 %2051 }
 0xaac   : > { %v2058_v60 = vmul.f32 0.0078125, %v2052_v27 }
 0xaae   : > { %v3808_v23 = vsub.f32 %v2046_v53, %v2058_v60  ;;  %v2249_v53 = vld [vmem:[#allocation6 + $0x68] sm:$0xff] }
 0xaaf   : > { %v2054_v29 = vpop.xlane.xlu0 %2053  ;;  %2669 = vmatpush3.msra.mxu1 %v2249_v53 }
 0xab0   : > { %v2059_v63 = vmul.f32 0.0078125, %v2054_v29  ;;  %v2064_v50 = vmul.f32 %v3808_v23, %v3808_v23  ;;  %2670 = vmatprep.subr.mxu1 %v2264_v54 }
 0xab1   : > { %2671 = vmatpush3.msra.mxu1 %v2248_v56 }
 0xab2   : > { %v3812_v3 = vsub.f32 %v2047_v1, %v2059_v63  ;;  %2067 = vadd.xlane.f32.xlu1 %v2064_v50  ;;  %2672 = vmatprep.subr.mxu1 %v2263_v57  ;;  %v2246_v1 = vld [vmem:[#allocation6 + $0x50] sm:$0xff] }
 0xab3   : > { %v2056_v12 = vpop.xlane.xlu0 %2055  ;;  %2673 = vmatpush3.msra.mxu1 %v2247_v58 }
 0xab4   : > { %v2060_v55 = vmul.f32 0.0078125, %v2056_v12  ;;  %v2065_v13 = vmul.f32 %v3812_v3, %v3812_v3  ;;  %2674 = vmatprep.subr.mxu1 %v2262_v62 }
 0xab5   : > { %2675 = vmatpush3.msra.mxu1 %v2246_v1 }
 0xab6   : > { %v3816_v14 = vsub.f32 %v2048_v59, %v2060_v55  ;;  %2069 = vadd.xlane.f32.xlu0 %v2065_v13  ;;  %2676 = vmatprep.subr.mxu1 %v2261_v2  ;;  %v2244_v59 = vld [vmem:[#allocation6 + $0x40] sm:$0xff] }
 0xab7   : > { %2677 = vmatpush3.msra.mxu1 %v2245_v5  ;;  %v2564_v5 = vld [vmem:[%s3873_s10] ss:$0 sm:$0xff] }
 0xab8   : > { %v2066_v61 = vmul.f32 %v3816_v14, %v3816_v14  ;;  %2678 = vmatprep.subr.mxu1 %v2260_v6 }
 0xab9   : > { %2679 = vmatpush3.msra.mxu1 %v2244_v59 }
 0xaba   : > { %2071 = vadd.xlane.f32.xlu1 %v2066_v61  ;;  %2680 = vmatprep.subr.mxu1 %v2259_v7 }
 0xabb   : > { %2681 = vmatpush3.msra.mxu1 %v2243_v8 }
 0xabc   : > { %2682 = vmatprep.subr.mxu1 %v2258_v9 }
 0xabd   : > { %2683 = vmatpush3.msra.mxu1 %v2242_v4 }
 0xabe   : > { %2684 = vmatprep.subr.mxu1 %v2257_v34 }
 0xabf   : > { %2685 = vmatpush3.msra.mxu1 %v2241_v10 }
 0xac0   : > { %2686 = vmatprep.subr.mxu1 %v2256_v11 }
 0xac1   : > { %2687 = vmatpush3.msra.mxu1 %v2240_v21 }
 0xac2   : > { %2688 = vmatprep.subr.mxu1 %v2255_v28 }
 0xb3b   : > { %v2068_v27 = vpop.xlane.xlu1 %2067 }
 0xb3c   : > { %v2073_v60 = vmul.f32 0.0078125, %v2068_v27 }
 0xb3e   : > { %v2076_v29 = vadd.f32 1e-06, %v2073_v60 }
 0xb3f   : > { %v2070_v63 = vpop.xlane.xlu0 %2069 }
 0xb40   : > { %3031 = vrsqrt.f32 %v2076_v29  ;;  %v2074_v50 = vmul.f32 0.0078125, %v2070_v63 }
 0xb42   : > { %v2077_v12 = vadd.f32 1e-06, %v2074_v50 }
 0xb43   : > { %v2072_v55 = vpop.xlane.xlu1 %2071 }
 0xb44   : > { %3033 = vrsqrt.f32 %v2077_v12  ;;  %v2075_v13 = vmul.f32 0.0078125, %v2072_v55 }
 0xb46   : > { %v2078_v61 = vadd.f32 1e-06, %v2075_v13 }
 0xb48   : > { %3035 = vrsqrt.f32 %v2078_v61 }
 0xb4d   : > { %v3032_v15 = vpop.eup %3031 }
 0xb4e   : > { %v2082_v17 = vmul.f32 %v3032_v15, %v3808_v23 }
 0xb50   : > { %v2091_v25 = vmul.f32 %v2562_v16, %v2082_v17 }
 0xb51   : > { %v3034_v31 = vpop.eup %3033 }
 0xb52   : > { %v3827_v33 = vadd.f32 %v2563_v36, %v2091_v25  ;;  %v2083_v18 = vmul.f32 %v3034_v31, %v3812_v3  ;;  %v2239_v3 = vld [vmem:[#allocation6 + $0x18] sm:$0xff] }
 0xb53   : > { %2689 = vmatpush3.msra.mxu1 %v2239_v3 }
 0xb54   : > { %2212 = vmatmul.mubr.f32.vlgmr.msra.gmra.mxu0 %v3827_v33  ;;  %v2092_v19 = vmul.f32 %v2562_v16, %v2083_v18  ;;  %2690 = vmatprep.subr.mxu1 %v2254_v30 }
 0xb55   : > { %v3036_v20 = vpop.eup %3035  ;;  %2217 = vmatprep.mubr.f32.mxu0 %v3147_v0  ;;  %2691 = vmatpush3.msra.mxu1 %v2238_v32  ;;  %v2565_v32 = vld [vmem:[%s3874_s11] ss:$0 sm:$0xff] }
 0xb56   : > { %v3832_v22 = vadd.f32 %v2563_v36, %v2092_v19  ;;  %v2084_v23 = vmul.f32 %v3036_v20, %v3816_v14  ;;  %2692 = vmatprep.subr.mxu1 %v2253_v35  ;;  %v2252_v14 = vld [vmem:[#allocation6 + $0x80] sm:$0xff] }
 0xb57   : > { %2693 = vmatpush3.msra.mxu1 %v2237_v37  ;;  %v2566_v37 = vld [vmem:[%s3875_s12] ss:$0 sm:$0xff] }
 0xb58   : > { %2218 = vmatmul.mubr.f32.gmra.mxu0 %v3832_v22  ;;  %v2093_v24 = vmul.f32 %v2562_v16, %v2084_v23  ;;  %2694 = vmatprep.subr.mxu1 %v2252_v14 }
 0xb59   : > { %2223 = vmatprep.mubr.f32.mxu0 %v3147_v0  ;;  %2695 = vmatpush3.msra.mxu1 %v2236_v40  ;;  %v2135_v0 = vld [vmem:[%s3871_s8] sm:$0x3] }
 0xb5a   : > { %v2102_v26 = vadd.f32 %v2563_v36, %v2093_v24  ;;  %v2140_v41 = vrot.slane %v2135_v0, %v540_v43  ;;  %v2144_v42 = vrot.slane %v2135_v0, %v544_v39 }
 0xb5c   : > { %2224 = vmatmul.mubr.f32.gmra.mxu0 %v2102_v26 }
 0xc14   : > { %v2213_v44 = vpop.f32.mrf.mxu0 }
 0xc15   : > { %v2214_v45 = vadd.f32 %v2213_v44, %v2140_v41 }
 0xc16   : > { %v2215_v46 = vpop.f32.mrf.mxu0 }
 0xc17   : > { %v2216_v47 = vadd.f32 %v2215_v46, %v2144_v42  ;;  %v2230_v51 = vmax.f32 %v2214_v45, 0.0 }
 0xc18   : > { %v2219_v48 = vpop.f32.mrf.mxu0 }
 0xc19   : > { %v2231_v49 = vmax.f32 %v2216_v47, 0.0  ;;  %v2220_v52 = vadd.f32 %v2219_v48, %v2140_v41 }
 0xc1a   : > { %v2221_v53 = vpop.f32.mrf.mxu0 }
 0xc1b   : > { %v2222_v54 = vadd.f32 %v2221_v53, %v2144_v42  ;;  %2339 = vmatprep.mubr.f32.mxu1 %v2231_v49  ;;  %v2232_v58 = vmax.f32 %v2220_v52, 0.0 }
 0xc1c   : > { %v2225_v56 = vpop.f32.mrf.mxu0  ;;  %2340 = vmatmul.mubr.f32.vlgmr.msra.gmra.mxu1 %v2230_v51 }
 0xc1d   : > { %v2233_v57 = vmax.f32 %v2222_v54, 0.0  ;;  %v2226_v62 = vadd.f32 %v2225_v56, %v2140_v41 }
 0xc1e   : > { %v2227_v43 = vpop.f32.mrf.mxu0 }
 0xc1f   : > { %v2228_v1 = vadd.f32 %v2227_v43, %v2144_v42  ;;  %2344 = vmatprep.mubr.f32.mxu1 %v2233_v57  ;;  %v2234_v39 = vmax.f32 %v2226_v62, 0.0 }
 0xc20   : > { %2345 = vmatmul.mubr.f32.gmra.mxu1 %v2232_v58 }
 0xc21   : > { %v2235_v38 = vmax.f32 %v2228_v1, 0.0 }
 0xc23   : > { %2349 = vmatprep.mubr.f32.mxu1 %v2235_v38 }
 0xc24   : > { %2350 = vmatmul.mubr.f32.gmra.mxu1 %v2234_v39 }
 0xcdc   : > { %v2696_v2 = vpop.f32.mrf.mxu1 }
 0xcde   : > { %v2697_v6 = vpop.f32.mrf.mxu1 }
 0xcdf   : > { %v2698_v59 = vadd.f32 %v2697_v6, %v2696_v2 }
 0xce0   : > { %v2699_v7 = vpop.f32.mrf.mxu1 }
 0xce1   : > { %v2342_v8 = vadd.f32 %v2698_v59, %v2564_v5 }
 0xce2   : > { %v2700_v9 = vpop.f32.mrf.mxu1 }
 0xce3   : > { %v2701_v4 = vadd.f32 %v2700_v9, %v2699_v7  ;;  %v2355_v34 = vadd.f32 %v2342_v8, %v3827_v33 }
 0xce4   : > { %v2702_v10 = vpop.f32.mrf.mxu1 }
 0xce5   : > { %v2347_v11 = vadd.f32 %v2701_v4, %v2564_v5  ;;  %2360 = vadd.xlane.f32.xlu0 %v2355_v34 }
 0xce6   : > { %v2703_v21 = vpop.f32.mrf.mxu1 }
 0xce7   : > { %v2704_v27 = vadd.f32 %v2703_v21, %v2702_v10  ;;  %v2356_v60 = vadd.f32 %v2347_v11, %v3832_v22 }
 0xce9   : > { %v2352_v29 = vadd.f32 %v2704_v27, %v2564_v5  ;;  %2362 = vadd.xlane.f32.xlu1 %v2356_v60 }
 0xceb   : > { %v2357_v63 = vadd.f32 %v2352_v29, %v2102_v26 }
 0xced   : > { %2364 = vadd.xlane.f32.xlu0 %v2357_v63 }
 0xd6e   : > { %v2361_v50 = vpop.xlane.xlu0 %2360 }
 0xd6f   : > { %v2366_v12 = vmul.f32 0.0078125, %v2361_v50 }
 0xd71   : > { %v2369_v55 = vsub.f32 %v2355_v34, %v2366_v12 }
 0xd72   : > { %v2363_v13 = vpop.xlane.xlu1 %2362 }
 0xd73   : > { %v2367_v61 = vmul.f32 0.0078125, %v2363_v13  ;;  %v2372_v15 = vmul.f32 %v2369_v55, %v2369_v55 }
 0xd75   : > { %v2370_v16 = vsub.f32 %v2356_v60, %v2367_v61  ;;  %2375 = vadd.xlane.f32.xlu1 %v2372_v15 }
 0xd76   : > { %v2365_v17 = vpop.xlane.xlu0 %2364 }
 0xd77   : > { %v2368_v36 = vmul.f32 0.0078125, %v2365_v17  ;;  %v2373_v25 = vmul.f32 %v2370_v16, %v2370_v16 }
 0xd79   : > { %v2371_v31 = vsub.f32 %v2357_v63, %v2368_v36  ;;  %2377 = vadd.xlane.f32.xlu0 %v2373_v25 }
 0xd7b   : > { %v2374_v33 = vmul.f32 %v2371_v31, %v2371_v31 }
 0xd7d   : > { %2379 = vadd.xlane.f32.xlu1 %v2374_v33 }
 0xdfe   : > { %v2376_v18 = vpop.xlane.xlu1 %2375 }
 0xdff   : > { %v2381_v19 = vmul.f32 0.0078125, %v2376_v18 }
 0xe01   : > { %v2384_v20 = vadd.f32 1e-06, %v2381_v19 }
 0xe02   : > { %v2378_v22 = vpop.xlane.xlu0 %2377 }
 0xe03   : > { %3037 = vrsqrt.f32 %v2384_v20  ;;  %v2382_v23 = vmul.f32 0.0078125, %v2378_v22 }
 0xe05   : > { %v2385_v24 = vadd.f32 1e-06, %v2382_v23 }
 0xe06   : > { %v2380_v26 = vpop.xlane.xlu1 %2379 }
 0xe07   : > { %3039 = vrsqrt.f32 %v2385_v24  ;;  %v2383_v28 = vmul.f32 0.0078125, %v2380_v26 }
 0xe09   : > { %v2386_v3 = vadd.f32 1e-06, %v2383_v28 }
 0xe0b   : > { %3041 = vrsqrt.f32 %v2386_v3 }
 0xe10   : > { %v3038_v30 = vpop.eup %3037 }
 0xe11   : > { %v2390_v35 = vmul.f32 %v3038_v30, %v2369_v55 }
 0xe13   : > { %v2399_v14 = vmul.f32 %v2565_v32, %v2390_v35 }
 0xe14   : > { %v3040_v40 = vpop.eup %3039 }
 0xe15   : > { %v2408_v0 = vadd.f32 %v2566_v37, %v2399_v14  ;;  %v2391_v41 = vmul.f32 %v3040_v40, %v2370_v16 }
 0xe17   : > { %2411 = vst [vmem:[%s484_s17] sm:$0xff] %v2408_v0  ;;  %v2400_v42 = vmul.f32 %v2565_v32, %v2391_v41 }
 0xe18   : > { %v3042_v44 = vpop.eup %3041 }
 0xe19   : > { %v2409_v45 = vadd.f32 %v2566_v37, %v2400_v42  ;;  %v2392_v46 = vmul.f32 %v3042_v44, %v2371_v31 }
 0xe1b   : > { %2412 = vst [vmem:[%s484_s17 + $0x8] sm:$0xff] %v2409_v45  ;;  %v2401_v47 = vmul.f32 %v2565_v32, %v2392_v46 }
 0xe1d   : > { %v2410_v48 = vadd.f32 %v2566_v37, %v2401_v47 }
 0xe1f   : > { %2413 = vst [vmem:[%s484_s17 + $0x10] sm:$0xff] %v2410_v48 }
 0xe20 PF: > { %s25_s25 = sadd.s32 1, %s3138_s25  }
 0xe21   : > { %p22_p3 = scmp.ge.s32.totalorder %s25_s25, 4  }
 0xe23   :  { %24 = sbr.rel (!%p22_p3) target bundleno = 2 (0x2), region = 115 }
 0xe28   :  { %2435 = vsyncpa [#allocation3], 1 }
 0xe29   :  { %2437 = vsyncpa [#allocation3 + $0x1], 1 }
 0xe2a   :  { %2438 = vsyncpa [#allocation5], 1 }

// kernel: audio_segmenter_forward.13
= control target key start
LH: loop header
LB: loop body
LE: loop exit
PB: predicated region body
PF: predicated region fallthrough
CT: control target
= control target key end

     0   :  { %8 = vsyncpa [#allocation3], 0  ;;  %s662_s0 = inlined_call_operand.vmem [shape: f32[2,4,128], index: 0, kind: input, shape index: {}]   ;;  %s663_s1 = inlined_call_operand.vmem [shape: f32[128,128], index: 1, kind: input, shape index: {}]   ;;  %s664_s2 = inlined_call_operand.vmem [shape: f32[1,128], index: 2, kind: input, shape index: {}]   ;;  %s665_s3 = inlined_call_operand.hbm [shape: f32[2,1,128], index: 3, kind: output, shape index: {}]  }
   0x1   :  { %10 = vsyncpa [#allocation3 + $0x1], 0  ;;  %s518_s12 = smov 0   ;;  %s520_s13 = smov 0  }
   0x2   :  { %s522_s14 = smov 0   ;;  %s524_s15 = smov 0  }
   0x3 LB: > { %s539_s16 = sadd.s32 4294967295, %s493_s15   ;;  %s332_s17 = sadd.s32 4294967294, %s493_s15   ;;  %s493_s15 = sphi %s524_s15, %s671_s15   ;;  %s489_s14 = sphi %s522_s14, %s670_s14   ;;  %s485_s13 = sphi %s520_s13, %s669_s13   ;;  %s481_s12 = sphi %s518_s12, %s668_s12  }
   0x4   : > { %s543_s18 = sadd.s32 1, %s493_s15   ;;  %s91_s19 = sadd.s32 1, %s489_s14 }
   0x5   : > { %s88_s20 = ssub.s32 %s493_s15, %s543_s18  ;;  %p101_p0 = scmp.ne.s32.totalorder %s489_s14, %s485_s13 }
   0x6   : > { %p89_p1 = scmp.eq.s32.totalorder %s88_s20, 0  ;;  %p102_p2 = scmp.eq.s32.totalorder %s539_s16, 1 }
   0x7   : > { %p107_p3 = scmp.ne.s32.totalorder %s485_s13, %s481_s12  ;;  %p108_p4 = scmp.eq.s32.totalorder %s332_s17, 1 }
   0x8   : > { %s554_s21 = scalar_select %p89_p1, %s489_s14, %s91_s19  }
   0x9   : > { %p556_p5 = por %p102_p2, %p101_p0  ;;  %p560_p6 = por %p108_p4, %p107_p3 }
   0xa   : > { %p335_p7 = scmp.ge.s32.totalorder %s493_s15, 1  ;;  %p139_p8 = scmp.lt.s32.totalorder %s493_s15, 3 }
   0xc   : > { %p140_p9 = pnand %p335_p7, %p139_p8 }
   0xd   : > { %p161_p10 = scmp.lt.s32.totalorder (!%p140_p9), %s539_s16, 1  ;;  %s159_s25 = sand.u32 (!%p140_p9), 1, %s485_s13  }
   0xe   : > { %143 = sbr.rel (%p140_p9) target bundleno = 260 (0x104), region = 32  ;;  %s160_s29 = scalar_lea.vmem (!%p140_p9), [#allocation2], %s159_s25 }
   0xf   : > { %s277_s30 = sshll.u32 (!%p140_p9), %s160_s29, 4  ;;  %s265_s7 = scalar_lea.sflag (!%p140_p9), [#allocation3], %s159_s25  ;;  %s278_s30 = int_to_ptr.vmem [resolvable:$true] %s277_s30 }
  0x10   : > { %s433_s8 = scalar_lea.vmem (!%p140_p9), %s278_s30, 16 }
  0x11   : > { %p434_p11 = scmp.ne.s32.totalorder (!%p140_p9), %s278_s30, %s433_s8 }
  0x13   : > { %v191_v0 = vld [vmem:[%s663_s1 + $0x78] sm:$0xff]  ;;  %v495_v1 = vmov 0.0   ;;  %v190_v2 = vld [vmem:[%s663_s1 + $0x70] sm:$0xff]  ;;  %vm496_vm0 = vmmov 0   ;;  %s162_s28 = scalar_select %p161_p10, %s539_s16, 1  ;;  %v189_v3 = vld [vmem:[%s663_s1 + $0x68] sm:$0xff] }
  0x14   : > { %357 = vmatprep.subr.mxu0 %v495_v1  ;;  %389 = vmatprep.mubr.msk.f32.mxu0 %vm496_vm0, %v495_v1  ;;  %vm166_vm1 = vcmask 1043456   ;;  %v188_v4 = vld [vmem:[%s663_s1 + $0x60] sm:$0xff]  ;;  %v187_v6 = vld [vmem:[%s663_s1 + $0x58] sm:$0xff]  ;;  %v186_v9 = vld [vmem:[%s663_s1 + $0x50] sm:$0xff]  ;;  %p435_p12 = pnand %p434_p11, %p556_p5 }
  0x15   : > { %358 = vmatpush3.msra.mxu0 %v191_v0  ;;  %s336_s4 = sshll.u32 %s162_s28, 2  ;;  %v185_v11 = vld [vmem:[%s663_s1 + $0x48] sm:$0xff]  ;;  %v184_v12 = vld [vmem:[%s663_s1 + $0x40] sm:$0xff]  ;;  %v183_v14 = vld [vmem:[%s663_s1 + $0x38] sm:$0xff]  ;;  %s337_s28 = sshll.u32 %s539_s16, 4 }
  0x16   : > { %359 = vmatprep.subr.mxu0 %v495_v1  ;;  %s164_s9 = scalar_lea.vmem %s662_s0, %s336_s4  ;;  %v182_v15 = vld [vmem:[%s663_s1 + $0x30] sm:$0xff]  ;;  %v181_v17 = vld [vmem:[%s663_s1 + $0x28] sm:$0xff]  ;;  %v180_v18 = vld [vmem:[%s663_s1 + $0x20] sm:$0xff]  ;;  %s627_s6 = scalar_lea.hbm %s665_s3, %s337_s28 }
  0x17   : > { %360 = vmatpush3.msra.mxu0 %v190_v2  ;;  %v165_v5 = vld [vmem:[%s164_s9] sm:$0xf]  ;;  %v179_v20 = vld [vmem:[%s663_s1 + $0x18] sm:$0xff]  ;;  %v178_v21 = vld [vmem:[%s663_s1 + $0x10] sm:$0xff]  ;;  %p436_p13 = pneg %p435_p12  ;;  %s497_s9 = smov [#allocation2]  }
  0x18   : > { %361 = vmatprep.subr.mxu0 %v495_v1  ;;  %v167_v7 = vsel %vm166_vm1, %v165_v5, 0.0  ;;  %v177_v23 = vld [vmem:[%s663_s1 + $0x8] sm:$0xff]  ;;  %v176_v24 = vld [vmem:[%s663_s1] sm:$0xff]  ;;  %s437_s16 = sshll.u32 %s497_s9, 4  ;;  %s438_s16 = int_to_ptr.vmem [resolvable:$false] %s437_s16 }
  0x19   : > { %362 = vmatpush3.msra.mxu0 %v189_v3  ;;  %v168_v8 = vrot.slane %v167_v7, 4  ;;  %v192_v26 = vld [vmem:[%s664_s2] sm:$0x1]  ;;  %s439_s10 = scalar_lea.vmem %s438_s16, 32  ;;  %p440_p0 = scmp.lt.s32.totalorder %s278_s30, %s438_s16 }
  0x1a   : > { %363 = vmatprep.subr.mxu0 %v495_v1  ;;  %p441_p1 = scmp.lt.s32.totalorder %s439_s10, %s433_s8 }
  0x1b   : > { %364 = vmatpush3.msra.mxu0 %v188_v4  ;;  %v169_v10 = vadd.f32 %v168_v8, %v167_v7 }
  0x1c   : > { %365 = vmatprep.subr.mxu0 %v495_v1  ;;  %p442_p2 = por %p441_p1, %p440_p0 }
  0x1d   : > { %366 = vmatpush3.msra.mxu0 %v187_v6  ;;  %v170_v13 = vrot.slane %v169_v10, 2 }
  0x1e   : > { %367 = vmatprep.subr.mxu0 %v495_v1  ;;  %p443_p3 = pnand %p442_p2, %p436_p13 }
  0x1f   : > { %368 = vmatpush3.msra.mxu0 %v186_v9  ;;  %v171_v16 = vadd.f32 %v170_v13, %v169_v10 }
  0x20   : > { %369 = vmatprep.subr.mxu0 %v495_v1 }
  0x21   : > { %370 = vmatpush3.msra.mxu0 %v185_v11  ;;  %v172_v19 = vrot.slane %v171_v16, 1 }
  0x22   : > { %371 = vmatprep.subr.mxu0 %v495_v1 }
  0x23   : > { %372 = vmatpush3.msra.mxu0 %v184_v12  ;;  %v173_v22 = vadd.f32 %v172_v19, %v171_v16 }
  0x24   : > { %373 = vmatprep.subr.mxu0 %v495_v1 }
  0x25   : > { %374 = vmatpush3.msra.mxu0 %v183_v14  ;;  %v175_v25 = vmul.f32 0.25, %v173_v22 }
  0x26   : > { %375 = vmatprep.subr.mxu0 %v495_v1 }
  0x27   : > { %376 = vmatpush3.msra.mxu0 %v182_v15 }
  0x28   : > { %377 = vmatprep.subr.mxu0 %v495_v1 }
  0x29   : > { %378 = vmatpush3.msra.mxu0 %v181_v17 }
  0x2a   : > { %379 = vmatprep.subr.mxu0 %v495_v1 }
  0x2b   : > { %380 = vmatpush3.msra.mxu0 %v180_v18 }
  0x2c   : > { %381 = vmatprep.subr.mxu0 %v495_v1 }
  0x2d   : > { %382 = vmatpush3.msra.mxu0 %v179_v20 }
  0x2e   : > { %383 = vmatprep.subr.mxu0 %v495_v1 }
  0x2f   : > { %384 = vmatpush3.msra.mxu0 %v178_v21 }
  0x30   : > { %385 = vmatprep.subr.mxu0 %v495_v1 }
  0x31   : > { %386 = vmatpush3.msra.mxu0 %v177_v23 }
  0x32   : > { %387 = vmatprep.subr.mxu0 %v495_v1 }
  0x33   : > { %388 = vmatpush3.msra.mxu0 %v176_v24 }
  0x34   : > { %390 = vmatmul.mubr.f32.vlgmr.msra.gmra.mxu0 %v175_v25 }
  0xf4   : > { %v259_v27 = vpop.f32.mrf.mxu0 }
  0xf5   : > { %v260_v28 = vadd.f32 %v259_v27, %v192_v26 }
  0xf6   : > { %v391_v29 = vpop.f32.mrf.mxu0 }
  0xf7   : > { %263 = vst [vmem:[%s160_s29] sm:$0x1] %v260_v28 }
  0xf8   : > { %446 = shalt.err (!%p443_p3)
}
  0xf9   : > { %s447_s11 = scalar_lea.hbm %s627_s6, 16  ;;  %s451_s20 = scalar_lea.hbm %s665_s3, 32 }
  0xfa   : > { %p448_p4 = scmp.ne.s32.totalorder %s627_s6, %s447_s11  ;;  %p452_p9 = scmp.lt.s32.totalorder %s627_s6, %s665_s3 }
  0xfb   : > { %p453_p10 = scmp.lt.s32.totalorder %s451_s20, %s447_s11 }
  0xfc   : > { %p449_p7 = pnand %p448_p4, %p556_p5 }
  0xfd   : > { %p454_p11 = por %p453_p10, %p452_p9 }
  0xfe   : > { %p450_p8 = pneg %p449_p7 }
 0x100   : > { %p455_p12 = pnand %p454_p11, %p450_p8 }
 0x102   : > { %458 = shalt.err (!%p455_p12)
}
 0x103   : > { %392 = dma.vmem_to_hbm [thread:$0]  (%p556_p5), %s278_s30, 16, %s627_s6, %s265_s7  }
 0x104 PF: > { %p398_p13 = scmp.ge.s32.totalorder %s493_s15, 2  ;;  %s289_s26 = sand.u32 1, %s481_s12  }
 0x105   : > { %s290_s27 = scalar_lea.sflag [#allocation3], %s289_s26 }
 0x106   : > { %p395_p0 = pnand %p398_p13, %p560_p6 }
 0x108   : > { %p396_p1 = pneg %p395_p0 }
 0x10a   : > { %476 = dma.done.wait (%p396_p1), %s290_s27, 16  }
 0x10b   : > { %478 = vsyncadd (%p396_p1), %s290_s27, 4294967280  ;;  %p13_p2 = scmp.ge.s32.totalorder %s543_s18, 4   ;;  %s668_s12 = smov %s485_s13 }
 0x10c   : > { %s669_s13 = smov %s489_s14  ;;  %s670_s14 = smov %s554_s21 }
 0x10d   : > { %s671_s15 = smov %s543_s18  ;;  %15 = sbr.rel (!%p13_p2) target bundleno = 3 (0x3), region = 67 }
 0x112   :  { %294 = vsyncpa [#allocation3], 1 }
 0x113   :  { %296 = vsyncpa [#allocation3 + $0x1], 1 }

// kernel: audio_segmenter_forward.12
= control target key start
LH: loop header
LB: loop body
LE: loop exit
PB: predicated region body
PF: predicated region fallthrough
CT: control target
= control target key end

     0   :  { %s2329_s25 = smov 0   ;;  %s2918_s0 = inlined_call_operand.vmem [shape: f32[2,4,128], index: 0, kind: input, shape index: {}]   ;;  %s2919_s1 = inlined_call_operand.vmem [shape: f32[128,384], index: 1, kind: input, shape index: {}]   ;;  %s2920_s2 = inlined_call_operand.vmem [shape: f32[1,384], index: 2, kind: input, shape index: {}]   ;;  %s2921_s3 = inlined_call_operand.vmem [shape: f32[128,128], index: 3, kind: input, shape index: {}]   ;;  %s2922_s4 = inlined_call_operand.vmem [shape: f32[1,128], index: 4, kind: input, shape index: {}]   ;;  %s2923_s5 = inlined_call_operand.vmem [shape: f32[1,128], index: 5, kind: input, shape index: {}]   ;;  %s2924_s6 = inlined_call_operand.vmem [shape: f32[1,128], index: 6, kind: input, shape index: {}]   ;;  %s2925_s7 = inlined_call_operand.vmem [shape: f32[128,256], index: 7, kind: input, shape index: {}]   ;;  %s2926_s8 = inlined_call_operand.vmem [shape: f32[1,256], index: 8, kind: input, shape index: {}]   ;;  %s2927_s9 = inlined_call_operand.vmem [shape: f32[256,128], index: 9, kind: input, shape index: {}]   ;;  %s2928_s10 = inlined_call_operand.vmem [shape: f32[1,128], index: 10, kind: input, shape index: {}]   ;;  %s2929_s11 = inlined_call_operand.vmem [shape: f32[1,128], index: 11, kind: input, shape index: {}]   ;;  %s2930_s12 = inlined_call_operand.vmem [shape: f32[1,128], index: 12, kind: input, shape index: {}]   ;;  %s2931_s13 = inlined_call_operand.vmem [shape: f32[2,4,128], index: 13, kind: output, shape index: {}]  }
   0x1 LB: > { %s1971_s26 = sadd.s32 4294967295, %s2252_s25   ;;  %p1975_p0 = scmp.ge.s32.totalorder %s2252_s25, 1  ;;  %s2252_s25 = sphi %s2329_s25, %s23_s25  }
   0x2   : > { %p386_p1 = scmp.lt.s32.totalorder %s2252_s25, 3 }
   0x4   : > { %p387_p2 = pnand %p1975_p0, %p386_p1 }
   0x5   : > { %p2412_p3 = scmp.lt.s32.totalorder (!%p387_p2), %s1971_s26, 1  ;;  %s2256_s27 = smov (!%p387_p2), 96  }
   0x6   : > { %390 = sbr.rel (%p387_p2) target bundleno = 3492 (0xda4), region = 72  ;;  %s2257_s29 = smov (!%p387_p2), 64  }
   0x7   : > { %s2258_s15 = smov (!%p387_p2), 32  }
   0xb   : > { %v483_v0 = vld [vmem:[%s2919_s1 + $0x170] sm:$0xff]  ;;  %v482_v1 = vld [vmem:[%s2919_s1 + $0x168] sm:$0xff]  ;;  %v480_v2 = vld [vmem:[%s2919_s1 + $0x158] sm:$0xff]  ;;  %v2254_v4 = vmov 0.0   ;;  %s2934_s26 = smov (!%p2412_p3, %s1971_s26), 1  ;;  %vm2255_vm0 = vmmov 0   ;;  %v487_v50 = vlaneseq }
   0xc   : > { %502 = vmatprep.subr.mxu0 %v483_v0  ;;  %v479_v3 = vld [vmem:[%s2919_s1 + $0x150] sm:$0xff]  ;;  %566 = vmatprep.mubr.f32.mxu0 %v2254_v4  ;;  %v477_v5 = vld [vmem:[%s2919_s1 + $0x140] sm:$0xff]  ;;  %v476_v6 = vld [vmem:[%s2919_s1 + $0x138] sm:$0xff]  ;;  %s1976_s21 = sshll.u32 %s2934_s26, 2  ;;  %vm643_vm1 = vcmask 261120   ;;  %vm737_vm2 = vcmask 1043456  }
   0xd   : > { %503 = vmatpush1.msra.mxu0 %v482_v1  ;;  %2094 = vmatprep.subr.mxu1 %v2254_v4  ;;  %v474_v7 = vld [vmem:[%s2919_s1 + $0x128] sm:$0xff]  ;;  %v473_v8 = vld [vmem:[%s2919_s1 + $0x120] sm:$0xff]  ;;  %v471_v9 = vld [vmem:[%s2919_s1 + $0x110] sm:$0xff]  ;;  %s431_s17 = scalar_lea.vmem %s2918_s0, %s1976_s21  ;;  %v2528_v51 = vshrl.u32 %v487_v50, 7  ;;  %vm721_vm3 = vcmask 27648   ;;  %vm733_vm4 = vcmask 31744   ;;  %s435_s22 = scalar_lea.vmem %s2931_s13, %s1976_s21 }
   0xe   : > { %504 = vmatprep.subr.mxu0 %v480_v2  ;;  %v470_v10 = vld [vmem:[%s2919_s1 + $0x108] sm:$0xff]  ;;  %v468_v11 = vld [vmem:[%s2919_s1 + $0xf8] sm:$0xff]  ;;  %v467_v12 = vld [vmem:[%s2919_s1 + $0xf0] sm:$0xff]  ;;  %2126 = vmatprep.mubr.msk.f32.mxu1 %vm2255_vm0, %v2254_v4 }
   0xf   : > { %505 = vmatpush1.msra.mxu0 %v479_v3  ;;  %v465_v13 = vld [vmem:[%s2919_s1 + $0xe0] sm:$0xff]  ;;  %v464_v14 = vld [vmem:[%s2919_s1 + $0xd8] sm:$0xff]  ;;  %v462_v17 = vld [vmem:[%s2919_s1 + $0xc8] sm:$0xff]  ;;  %v493_v52 = vsub.s32 1, %v2528_v51  ;;  %v489_v54 = vsub.s32 0, %v2528_v51  ;;  %v497_v61 = vsub.s32 2, %v2528_v51 }
  0x10   : > { %506 = vmatprep.subr.mxu0 %v477_v5  ;;  %v484_v15 = vld [vmem:[%s2919_s1 + $0x178] sm:$0xff]  ;;  %v481_v16 = vld [vmem:[%s2919_s1 + $0x160] sm:$0xff]  ;;  %v478_v19 = vld [vmem:[%s2919_s1 + $0x148] sm:$0xff] }
  0x11   : > { %507 = vmatpush1.msra.mxu0 %v476_v6  ;;  %2095 = vmatpush3.msra.mxu1 %v484_v15  ;;  %v461_v18 = vld [vmem:[%s2919_s1 + $0xc0] sm:$0xff]  ;;  %v459_v20 = vld [vmem:[%s2919_s1 + $0xb0] sm:$0xff]  ;;  %v458_v21 = vld [vmem:[%s2919_s1 + $0xa8] sm:$0xff] }
  0x12   : > { %508 = vmatprep.subr.mxu0 %v474_v7  ;;  %2096 = vmatprep.subr.mxu1 %v2254_v4  ;;  %v475_v22 = vld [vmem:[%s2919_s1 + $0x130] sm:$0xff]  ;;  %v456_v23 = vld [vmem:[%s2919_s1 + $0x98] sm:$0xff]  ;;  %v453_v26 = vld [vmem:[%s2919_s1 + $0x80] sm:$0xff] }
  0x13   : > { %509 = vmatpush1.msra.mxu0 %v473_v8  ;;  %2097 = vmatpush3.msra.mxu1 %v481_v16  ;;  %v455_v24 = vld [vmem:[%s2919_s1 + $0x90] sm:$0xff]  ;;  %v472_v25 = vld [vmem:[%s2919_s1 + $0x118] sm:$0xff]  ;;  %v469_v28 = vld [vmem:[%s2919_s1 + $0x100] sm:$0xff] }
  0x14   : > { %510 = vmatprep.subr.mxu0 %v471_v9  ;;  %2098 = vmatprep.subr.mxu1 %v2254_v4  ;;  %v452_v27 = vld [vmem:[%s2919_s1 + $0x78] sm:$0xff]  ;;  %v450_v29 = vld [vmem:[%s2919_s1 + $0x68] sm:$0xff]  ;;  %v449_v30 = vld [vmem:[%s2919_s1 + $0x60] sm:$0xff] }
  0x15   : > { %511 = vmatpush1.msra.mxu0 %v470_v10  ;;  %2099 = vmatpush3.msra.mxu1 %v478_v19  ;;  %v466_v31 = vld [vmem:[%s2919_s1 + $0xe8] sm:$0xff]  ;;  %v447_v32 = vld [vmem:[%s2919_s1 + $0x50] sm:$0xff]  ;;  %v444_v35 = vld [vmem:[%s2919_s1 + $0x38] sm:$0xff] }
  0x16   : > { %512 = vmatprep.subr.mxu0 %v468_v11  ;;  %2100 = vmatprep.subr.mxu1 %v2254_v4  ;;  %v446_v33 = vld [vmem:[%s2919_s1 + $0x48] sm:$0xff]  ;;  %v463_v34 = vld [vmem:[%s2919_s1 + $0xd0] sm:$0xff]  ;;  %v460_v37 = vld [vmem:[%s2919_s1 + $0xb8] sm:$0xff] }
  0x17   : > { %513 = vmatpush1.msra.mxu0 %v467_v12  ;;  %2101 = vmatpush3.msra.mxu1 %v475_v22  ;;  %v443_v36 = vld [vmem:[%s2919_s1 + $0x30] sm:$0xff]  ;;  %v441_v38 = vld [vmem:[%s2919_s1 + $0x20] sm:$0xff]  ;;  %v440_v39 = vld [vmem:[%s2919_s1 + $0x18] sm:$0xff] }
  0x18   : > { %514 = vmatprep.subr.mxu0 %v465_v13  ;;  %2102 = vmatprep.subr.mxu1 %v2254_v4  ;;  %v457_v40 = vld [vmem:[%s2919_s1 + $0xa0] sm:$0xff]  ;;  %v438_v41 = vld [vmem:[%s2919_s1 + $0x8] sm:$0xff]  ;;  %v451_v45 = vld [vmem:[%s2919_s1 + $0x70] sm:$0xff] }
  0x19   : > { %515 = vmatpush1.msra.mxu0 %v464_v14  ;;  %2103 = vmatpush3.msra.mxu1 %v472_v25  ;;  %v437_v42 = vld [vmem:[%s2919_s1] sm:$0xff]  ;;  %v454_v43 = vld [vmem:[%s2919_s1 + $0x88] sm:$0xff]  ;;  %v448_v46 = vld [vmem:[%s2919_s1 + $0x58] sm:$0xff] }
  0x1a   : > { %516 = vmatprep.subr.mxu0 %v462_v17  ;;  %2104 = vmatprep.subr.mxu1 %v2254_v4  ;;  %v2495_v44 = vld [vmem:[%s431_s17] sm:$0xf]  ;;  %v442_v48 = vld [vmem:[%s2919_s1 + $0x28] sm:$0xff]  ;;  %v439_v49 = vld [vmem:[%s2919_s1 + $0x10] sm:$0xff] }
  0x1b   : > { %517 = vmatpush1.msra.mxu0 %v461_v18  ;;  %2105 = vmatpush3.msra.mxu1 %v469_v28  ;;  %v445_v47 = vld [vmem:[%s2919_s1 + $0x40] sm:$0xff]  ;;  %v983_v28 = vld [vmem:[%s2921_s3 + $0x28] sm:$0xff] }
  0x1c   : > { %518 = vmatprep.subr.mxu0 %v459_v20  ;;  %2106 = vmatprep.subr.mxu1 %v2254_v4  ;;  %v485_v53 = vld [vmem:[%s2920_s2] sm:$0x7] }
  0x1d   : > { %519 = vmatpush1.msra.mxu0 %v458_v21  ;;  %2107 = vmatpush3.msra.mxu1 %v466_v31  ;;  %v494_v55 = vrot.slane %v485_v53, %v493_v52  ;;  %v490_v57 = vrot.slane %v485_v53, %v489_v54  ;;  %v498_v63 = vrot.slane %v485_v53, %v497_v61 }
  0x1e   : > { %520 = vmatprep.subr.mxu0 %v456_v23  ;;  %2108 = vmatprep.subr.mxu1 %v2254_v4 }
  0x1f   : > { %521 = vmatpush1.msra.mxu0 %v455_v24  ;;  %2109 = vmatpush3.msra.mxu1 %v463_v34  ;;  %v814_v34 = vld [vmem:[%s2921_s3 + $0x18] sm:$0xff] }
  0x20   : > { %522 = vmatprep.subr.mxu0 %v453_v26  ;;  %2110 = vmatprep.subr.mxu1 %v2254_v4  ;;  %v985_v26 = vld [vmem:[%s2921_s3 + $0x38] sm:$0xff] }
  0x21   : > { %523 = vmatpush1.msra.mxu0 %v452_v27  ;;  %2111 = vmatpush3.msra.mxu1 %v460_v37  ;;  %v984_v27 = vld [vmem:[%s2921_s3 + $0x30] sm:$0xff]  ;;  %v811_v37 = vld [vmem:[%s2921_s3] sm:$0xff] }
  0x22   : > { %524 = vmatprep.subr.mxu0 %v450_v29  ;;  %2112 = vmatprep.subr.mxu1 %v2254_v4  ;;  %v982_v29 = vld [vmem:[%s2921_s3 + $0x20] sm:$0xff] }
  0x23   : > { %525 = vmatpush1.msra.mxu0 %v449_v30  ;;  %2113 = vmatpush3.msra.mxu1 %v457_v40 }
  0x24   : > { %526 = vmatprep.subr.mxu0 %v447_v32  ;;  %2114 = vmatprep.subr.mxu1 %v2254_v4 }
  0x25   : > { %527 = vmatpush1.msra.mxu0 %v446_v33  ;;  %2115 = vmatpush3.msra.mxu1 %v454_v43 }
  0x26   : > { %528 = vmatprep.subr.mxu0 %v444_v35  ;;  %2116 = vmatprep.subr.mxu1 %v2254_v4  ;;  %v813_v35 = vld [vmem:[%s2921_s3 + $0x10] sm:$0xff] }
  0x27   : > { %529 = vmatpush1.msra.mxu0 %v443_v36  ;;  %2117 = vmatpush3.msra.mxu1 %v451_v45  ;;  %v812_v36 = vld [vmem:[%s2921_s3 + $0x8] sm:$0xff] }
  0x28   : > { %530 = vmatprep.subr.mxu0 %v441_v38  ;;  %2118 = vmatprep.subr.mxu1 %v2254_v4 }
  0x29   : > { %531 = vmatpush1.msra.mxu0 %v440_v39  ;;  %2119 = vmatpush3.msra.mxu1 %v448_v46 }
  0x2a   : > { %532 = vmatprep.subr.mxu0 %v438_v41  ;;  %2120 = vmatprep.subr.mxu1 %v2254_v4 }
  0x2b   : > { %533 = vmatpush1.msra.mxu0 %v437_v42  ;;  %2121 = vmatpush3.msra.mxu1 %v445_v47 }
  0x2c   : > { %567 = vmatmul.mubr.f32.vlgmr.msra.gmra.mxu0 %v2495_v44  ;;  %2139 = vmatprep.subr.mxu0 %v2254_v4 }
  0x2d   : > { %2122 = vmatprep.subr.mxu1 %v2254_v4  ;;  %2141 = vmatprep.mubr.msk.f32.mxu0 %vm2255_vm0, %v2254_v4 }
  0x2e   : > { %2123 = vmatpush3.msra.mxu1 %v442_v48 }
  0x2f   : > { %2124 = vmatprep.subr.mxu1 %v2254_v4 }
  0x30   : > { %2125 = vmatpush3.msra.mxu1 %v439_v49 }
  0x31   : > { %2127 = vmatmul.mubr.f32.vlgmr.msra.gmra.mxu1 %v2495_v44  ;;  %2129 = vmatprep.subr.mxu1 %v2254_v4 }
  0x32   : > { %2131 = vmatprep.mubr.msk.f32.mxu1 %vm2255_vm0, %v2254_v4 }
  0xec   : > { %v568_v56 = vpop.f32.mrf.mxu0 }
  0xed   : > { %v2545_v60 = vadd.f32 %v568_v56, %v490_v57 }
  0xee   : > { %v570_v58 = vpop.f32.mrf.mxu0 }
  0xef   : > { %v2539_v59 = vadd.f32 %v570_v58, %v494_v55 }
  0xf1   : > { %817 = vrot.lane.b32.xlu0 %v2539_v59, %s2256_s27  ;;  %2130 = vmatpush3.xpose.msk.msra.mxu1 %vm643_vm1, %v2539_v59  ;;  %v639_v62 = vpop.f32.mrf.mxu1 }
  0xf2   : > { %2134 = vmatprep.subr.mxu1 %v2254_v4  ;;  %v2555_v1 = vadd.f32 %v639_v62, %v498_v63 }
  0xf3   : > { %v2128_v0 = vpop.f32.mrf.mxu1 }
  0xf4   : > { %2132 = vmatmul.mubr.msk.f32.vlgmr.msra.gmra.mxu1 %vm643_vm1, %v2545_v60  ;;  %v1302_v0 = vld [vmem:[%s2921_s3 + $0x58] sm:$0xff] }
  0xf5   : > { %815 = vrot.lane.b32.xlu0 %v2545_v60, %s2256_s27  ;;  %2136 = vmatprep.mubr.msk.f32.mxu1 %vm2255_vm0, %v2254_v4 }
  0xf6   : > { %2135 = vmatpush3.msk.msra.mxu1 %vm737_vm2, %v2555_v1 }
  0xf7   : > { %2144 = vmatprep.subr.mxu1 %v2254_v4 }
 0x163   : > { %v818_v2 = vpop.permute.xlu0 %817 }
 0x164   : > { %2140 = vmatpush3.xpose.msk.msra.mxu0 %vm643_vm1, %v818_v2  ;;  %v1301_v2 = vld [vmem:[%s2921_s3 + $0x50] sm:$0xff] }
 0x165   : > { %2149 = vmatprep.subr.mxu0 %v2254_v4 }
 0x167   : > { %v816_v3 = vpop.permute.xlu0 %815 }
 0x168   : > { %2142 = vmatmul.mubr.msk.f32.vlgmr.msra.gmra.mxu0 %vm643_vm1, %v816_v3  ;;  %v1300_v3 = vld [vmem:[%s2921_s3 + $0x48] sm:$0xff] }
 0x169   : > { %2157 = vmatprep.mubr.msk.f32.mxu0 %vm2255_vm0, %v2254_v4  ;;  %2150 = vmatpush3.msra.mxu0 %v985_v26 }
 0x16a   : > { %2151 = vmatprep.subr.mxu0 %v2254_v4 }
 0x16b   : > { %2152 = vmatpush3.msra.mxu0 %v984_v27 }
 0x16c   : > { %2153 = vmatprep.subr.mxu0 %v2254_v4 }
 0x16d   : > { %2154 = vmatpush3.msra.mxu0 %v983_v28 }
 0x16e   : > { %2155 = vmatprep.subr.mxu0 %v2254_v4 }
 0x16f   : > { %2156 = vmatpush3.msra.mxu0 %v982_v29 }
 0x170   : > { %2171 = vmatprep.subr.mxu0 %v2254_v4 }
 0x1b4   : > { %v716_v5 = vpop.f32.mrf.mxu1 }
 0x1b5   : > { %v720_v6 = vmul.f32 0.17677669, %v716_v5 }
 0x1b6   : > { %v2133_v7 = vpop.f32.mrf.mxu1 }
 0x1b7   : > { %v722_v8 = vsel %vm721_vm3, %v720_v6, -inf }
 0x1b8   : > { %723 = vmax.xlane.f32.xlu1 %v722_v8  ;;  %v1299_v8 = vld [vmem:[%s2921_s3 + $0x40] sm:$0xff] }
 0x228   : > { %v889_v9 = vpop.f32.mrf.mxu0 }
 0x229   : > { %v893_v10 = vmul.f32 0.17677669, %v889_v9 }
 0x22a   : > { %v2143_v11 = vpop.f32.mrf.mxu0 }
 0x22b   : > { %v894_v12 = vsel %vm721_vm3, %v893_v10, -inf }
 0x22c   : > { %895 = vmax.xlane.f32.xlu1 %v894_v12 }
 0x241   : > { %v724_v13 = vpop.xlane.xlu1 %723 }
 0x242   : > { %v725_v14 = vsub.f32 %v720_v6, %v724_v13 }
 0x244   : > { %v726_v15 = vmul.f32 1.442695, %v725_v14 }
 0x246   : > { %2226 = vpow2.f32 %v726_v15 }
 0x253   : > { %v2227_v16 = vpop.eup %2226 }
 0x254   : > { %v728_v17 = vsel %vm721_vm3, %v2227_v16, 0.0 }
 0x255   : > { %729 = vadd.xlane.f32.xlu0 %v728_v17 }
 0x26b   : > { %1222 = vrot.lane.b32.xlu0 %v2555_v1, %s2257_s29 }
 0x2b5   : > { %v896_v18 = vpop.xlane.xlu1 %895 }
 0x2b6   : > { %v897_v19 = vsub.f32 %v893_v10, %v896_v18 }
 0x2b8   : > { %v898_v20 = vmul.f32 1.442695, %v897_v19 }
 0x2ba   : > { %2228 = vpow2.f32 %v898_v20  ;;  %v1547_v20 = vld [vmem:[%s2921_s3 + $0x78] sm:$0xff] }
 0x2c7   : > { %v2229_v21 = vpop.eup %2228 }
 0x2c8   : > { %v900_v22 = vsel %vm721_vm3, %v2229_v21, 0.0 }
 0x2c9   : > { %901 = vadd.xlane.f32.xlu1 %v900_v22 }
 0x2da   : > { %905 = vrot.lane.b32.xlu1 %v2555_v1, %s2256_s27 }
 0x2de   : > { %v730_v23 = vpop.xlane.xlu0 %729  ;;  %1134 = vrot.lane.b32.xlu1 %v2539_v59, %s2257_s29 }
 0x2df   : > { %2230 = vrcp.f32 %v730_v23 }
 0x2e2   : > { %1132 = vrot.lane.b32.xlu1 %v2545_v60, %s2257_s29  ;;  %v1223_v39 = vpop.permute.xlu0 %1222 }
 0x2ec   : > { %v2231_v24 = vpop.eup %2230 }
 0x2ed   : > { %v732_v25 = vmul.f32 %v2231_v24, %v2227_v16  ;;  %v1545_v24 = vld [vmem:[%s2921_s3 + $0x68] sm:$0xff] }
 0x2ef   : > { %2137 = vmatmul.mubr.msk.f32.vlgmr.msra.gmra.mxu1 %vm733_vm4, %v732_v25 }
 0x2f0   : > { %2146 = vmatprep.mubr.msk.f32.mxu1 %vm2255_vm0, %v2254_v4 }
 0x352   : > { %v902_v30 = vpop.xlane.xlu1 %901 }
 0x353   : > { %2232 = vrcp.f32 %v902_v30  ;;  %v1544_v30 = vld [vmem:[%s2921_s3 + $0x60] sm:$0xff] }
 0x356   : > { %v906_v31 = vpop.permute.xlu1 %905 }
 0x357   : > { %2145 = vmatpush3.msk.msra.mxu1 %vm737_vm2, %v906_v31 }
 0x358   : > { %2160 = vmatprep.subr.mxu1 %v2254_v4 }
 0x35a   : > { %v1135_v41 = vpop.permute.xlu1 %1134 }
 0x35e   : > { %v1133_v45 = vpop.permute.xlu1 %1132 }
 0x360   : > { %v2233_v32 = vpop.eup %2232 }
 0x361   : > { %v904_v33 = vmul.f32 %v2233_v32, %v2229_v21  ;;  %v1546_v21 = vld [vmem:[%s2921_s3 + $0x70] sm:$0xff] }
 0x363   : > { %2147 = vmatmul.mubr.msk.f32.vlgmr.msra.gmra.mxu1 %vm733_vm4, %v904_v33 }
 0x364   : > { %2161 = vmatpush3.msra.mxu1 %v814_v34  ;;  %2168 = vmatprep.mubr.msk.f32.mxu1 %vm2255_vm0, %v2254_v4  ;;  %v1998_v34 = vld [vmem:[%s2922_s4] ss:$0 sm:$0xff] }
 0x365   : > { %2162 = vmatprep.subr.mxu1 %v2254_v4 }
 0x366   : > { %2163 = vmatpush3.msra.mxu1 %v813_v35 }
 0x367   : > { %2164 = vmatprep.subr.mxu1 %v2254_v4 }
 0x368   : > { %2165 = vmatpush3.msra.mxu1 %v812_v36 }
 0x369   : > { %2166 = vmatprep.subr.mxu1 %v2254_v4 }
 0x36a   : > { %2167 = vmatpush3.msra.mxu1 %v811_v37 }
 0x36b   : > { %2176 = vmatprep.subr.mxu1 %v2254_v4 }
 0x3af   : > { %v807_v38 = vpop.f32.mrf.mxu1 }
 0x3b0   : > { %2169 = vmatmul.mubr.msk.f32.vlgmr.msra.gmra.mxu1 %vm643_vm1, %v807_v38 }
 0x3b1   : > { %2177 = vmatpush3.msk.msra.mxu1 %vm737_vm2, %v1223_v39  ;;  %v2138_v40 = vpop.f32.mrf.mxu1  ;;  %2178 = vmatprep.mubr.msk.f32.mxu1 %vm2255_vm0, %v2254_v4  ;;  %v1692_v39 = vld [vmem:[%s2925_s7 + $0xf8] sm:$0xff] }
 0x3b2   : > { %2192 = vmatprep.subr.mxu1 %v2254_v4  ;;  %v1691_v40 = vld [vmem:[%s2925_s7 + $0xf0] sm:$0xff] }
 0x423   : > { %v978_v42 = vpop.f32.mrf.mxu1 }
 0x424   : > { %2158 = vmatmul.mubr.msk.f32.vlgmr.msra.gmra.mxu0 %vm643_vm1, %v978_v42  ;;  %v1688_v42 = vld [vmem:[%s2925_s7 + $0xd8] sm:$0xff] }
 0x425   : > { %2172 = vmatpush3.xpose.msk.msra.mxu0 %vm643_vm1, %v1135_v41  ;;  %v2148_v43 = vpop.f32.mrf.mxu1  ;;  %2173 = vmatprep.mubr.msk.f32.mxu0 %vm2255_vm0, %v2254_v4  ;;  %v1690_v41 = vld [vmem:[%s2925_s7 + $0xe8] sm:$0xff] }
 0x426   : > { %2181 = vmatprep.subr.mxu0 %v2254_v4  ;;  %v1687_v43 = vld [vmem:[%s2925_s7 + $0xd0] sm:$0xff] }
 0x428   : > { %2174 = vmatmul.mubr.msk.f32.vlgmr.msra.gmra.mxu0 %vm643_vm1, %v1133_v45  ;;  %v1686_v45 = vld [vmem:[%s2925_s7 + $0xc8] sm:$0xff] }
 0x429   : > { %2189 = vmatprep.mubr.msk.f32.mxu0 %vm2255_vm0, %v2254_v4  ;;  %2182 = vmatpush3.msra.mxu0 %v1302_v0  ;;  %v1677_v0 = vld [vmem:[%s2925_s7 + $0x80] sm:$0xff] }
 0x42a   : > { %2183 = vmatprep.subr.mxu0 %v2254_v4 }
 0x42b   : > { %2184 = vmatpush3.msra.mxu0 %v1301_v2  ;;  %v1676_v2 = vld [vmem:[%s2925_s7 + $0x78] sm:$0xff] }
 0x42c   : > { %2185 = vmatprep.subr.mxu0 %v2254_v4 }
 0x42d   : > { %2186 = vmatpush3.msra.mxu0 %v1300_v3  ;;  %v1675_v3 = vld [vmem:[%s2925_s7 + $0x70] sm:$0xff] }
 0x42e   : > { %2187 = vmatprep.subr.mxu0 %v2254_v4 }
 0x42f   : > { %2188 = vmatpush3.msra.mxu0 %v1299_v8  ;;  %v1669_v8 = vld [vmem:[%s2925_s7 + $0x40] sm:$0xff] }
 0x430   : > { %2202 = vmatprep.subr.mxu0 %v2254_v4 }
 0x470   : > { %v1128_v46 = vpop.f32.mrf.mxu1 }
 0x472   : > { %v2170_v47 = vpop.f32.mrf.mxu1 }
 0x4e4   : > { %v1055_v48 = vpop.f32.mrf.mxu0 }
 0x4e5   : > { %v1129_v22 = vadd.f32 %v1128_v46, %v1055_v48  ;;  %v1685_v46 = vld [vmem:[%s2925_s7 + $0xc0] sm:$0xff] }
 0x4e6   : > { %v2159_v49 = vpop.f32.mrf.mxu0 }
 0x4e8   : > { %v1206_v50 = vpop.f32.mrf.mxu0 }
 0x4e9   : > { %v1210_v53 = vmul.f32 0.17677669, %v1206_v50 }
 0x4ea   : > { %v2175_v55 = vpop.f32.mrf.mxu0 }
 0x4eb   : > { %v1211_v56 = vsel %vm721_vm3, %v1210_v53, -inf  ;;  %v1684_v55 = vld [vmem:[%s2925_s7 + $0xb8] sm:$0xff] }
 0x4ec   : > { %1212 = vmax.xlane.f32.xlu1 %v1211_v56  ;;  %v1683_v56 = vld [vmem:[%s2925_s7 + $0xb0] sm:$0xff] }
 0x575   : > { %v1213_v57 = vpop.xlane.xlu1 %1212 }
 0x576   : > { %v1214_v58 = vsub.f32 %v1210_v53, %v1213_v57  ;;  %v1682_v57 = vld [vmem:[%s2925_s7 + $0xa8] sm:$0xff] }
 0x578   : > { %v1215_v61 = vmul.f32 1.442695, %v1214_v58  ;;  %v1681_v58 = vld [vmem:[%s2925_s7 + $0xa0] sm:$0xff] }
 0x57a   : > { %2234 = vpow2.f32 %v1215_v61  ;;  %v1680_v61 = vld [vmem:[%s2925_s7 + $0x98] sm:$0xff] }
 0x587   : > { %v2235_v62 = vpop.eup %2234 }
 0x588   : > { %v1217_v63 = vsel %vm721_vm3, %v2235_v62, 0.0 }
 0x589   : > { %1218 = vadd.xlane.f32.xlu0 %v1217_v63  ;;  %v1678_v63 = vld [vmem:[%s2925_s7 + $0x88] sm:$0xff] }
 0x59f   : > { %1379 = vrot.lane.b32.xlu0 %v2539_v59, %s2258_s15 }
 0x5a3   : > { %1377 = vrot.lane.b32.xlu0 %v2545_v60, %s2258_s15 }
 0x612   : > { %v1219_v59 = vpop.xlane.xlu0 %1218 }
 0x613   : > { %2236 = vrcp.f32 %v1219_v59  ;;  %v1674_v59 = vld [vmem:[%s2925_s7 + $0x68] sm:$0xff] }
 0x616   : > { %v1380_v5 = vpop.permute.xlu0 %1379 }
 0x61a   : > { %v1378_v7 = vpop.permute.xlu0 %1377 }
 0x620   : > { %v2237_v60 = vpop.eup %2236 }
 0x621   : > { %v1221_v6 = vmul.f32 %v2237_v60, %v2235_v62  ;;  %v1679_v62 = vld [vmem:[%s2925_s7 + $0x90] sm:$0xff]  ;;  %v1673_v60 = vld [vmem:[%s2925_s7 + $0x60] sm:$0xff] }
 0x623   : > { %2179 = vmatmul.mubr.msk.f32.vlgmr.msra.gmra.mxu1 %vm733_vm4, %v1221_v6  ;;  %v1671_v6 = vld [vmem:[%s2925_s7 + $0x50] sm:$0xff] }
 0x624   : > { %2193 = vmatpush3.xpose.msk.msra.mxu1 %vm643_vm1, %v1380_v5  ;;  %2194 = vmatprep.mubr.msk.f32.mxu1 %vm2255_vm0, %v2254_v4  ;;  %v1672_v5 = vld [vmem:[%s2925_s7 + $0x58] sm:$0xff] }
 0x625   : > { %2197 = vmatprep.subr.mxu1 %v2254_v4 }
 0x627   : > { %2195 = vmatmul.mubr.msk.f32.vlgmr.msra.gmra.mxu1 %vm643_vm1, %v1378_v7  ;;  %v1670_v7 = vld [vmem:[%s2925_s7 + $0x48] sm:$0xff] }
 0x628   : > { %2199 = vmatprep.mubr.msk.f32.mxu1 %vm2255_vm0, %v2254_v4 }
 0x6e3   : > { %v1295_v9 = vpop.f32.mrf.mxu1 }
 0x6e4   : > { %2190 = vmatmul.mubr.msk.f32.vlgmr.msra.gmra.mxu0 %vm643_vm1, %v1295_v9  ;;  %v1668_v9 = vld [vmem:[%s2925_s7 + $0x38] sm:$0xff] }
 0x6e5   : > { %v2180_v10 = vpop.f32.mrf.mxu1  ;;  %2210 = vmatprep.mubr.msk.f32.mxu0 %vm2255_vm0, %v2254_v4  ;;  %2203 = vmatpush3.msra.mxu0 %v1547_v20  ;;  %v1792_v20 = vld [vmem:[%s2927_s9 + $0x70] sm:$0xff] }
 0x6e6   : > { %2204 = vmatprep.subr.mxu0 %v2254_v4  ;;  %v1667_v10 = vld [vmem:[%s2925_s7 + $0x30] sm:$0xff] }
 0x6e7   : > { %v1451_v11 = vpop.f32.mrf.mxu1  ;;  %2205 = vmatpush3.msra.mxu0 %v1546_v21  ;;  %v1807_v21 = vld [vmem:[%s2927_s9 + $0xe8] sm:$0xff] }
 0x6e8   : > { %v1455_v12 = vmul.f32 0.17677669, %v1451_v11  ;;  %2206 = vmatprep.subr.mxu0 %v2254_v4  ;;  %v1666_v11 = vld [vmem:[%s2925_s7 + $0x28] sm:$0xff] }
 0x6e9   : > { %v2196_v13 = vpop.f32.mrf.mxu1  ;;  %2207 = vmatpush3.msra.mxu0 %v1545_v24  ;;  %v1790_v24 = vld [vmem:[%s2927_s9 + $0x60] sm:$0xff] }
 0x6ea   : > { %v1456_v14 = vsel %vm721_vm3, %v1455_v12, -inf  ;;  %2208 = vmatprep.subr.mxu0 %v2254_v4  ;;  %v1664_v13 = vld [vmem:[%s2925_s7 + $0x18] sm:$0xff] }
 0x6eb   : > { %1457 = vmax.xlane.f32.xlu0 %v1456_v14  ;;  %2209 = vmatpush3.msra.mxu0 %v1544_v30  ;;  %v1663_v14 = vld [vmem:[%s2925_s7 + $0x10] sm:$0xff]  ;;  %v1802_v30 = vld [vmem:[%s2927_s9 + $0xc0] sm:$0xff] }
 0x774   : > { %v1458_v15 = vpop.xlane.xlu0 %1457 }
 0x775   : > { %v1459_v16 = vsub.f32 %v1455_v12, %v1458_v15  ;;  %v1665_v12 = vld [vmem:[%s2925_s7 + $0x20] sm:$0xff]  ;;  %v1662_v15 = vld [vmem:[%s2925_s7 + $0x8] sm:$0xff] }
 0x777   : > { %v1460_v17 = vmul.f32 1.442695, %v1459_v16  ;;  %v1661_v16 = vld [vmem:[%s2925_s7] sm:$0xff] }
 0x779   : > { %2238 = vpow2.f32 %v1460_v17  ;;  %v1809_v17 = vld [vmem:[%s2927_s9 + $0xf8] sm:$0xff] }
 0x77a   : > { %2059 = vmatprep.subr.mxu0 %v1809_v17 }
 0x786   : > { %v2239_v18 = vpop.eup %2238 }
 0x787   : > { %v1462_v19 = vsel %vm721_vm3, %v2239_v18, 0.0 }
 0x788   : > { %1463 = vadd.xlane.f32.xlu1 %v1462_v19  ;;  %v1808_v19 = vld [vmem:[%s2927_s9 + $0xf0] sm:$0xff] }
 0x799   : > { %1467 = vrot.lane.b32.xlu1 %v2555_v1, %s2258_s15 }
 0x7a4   : > { %v1372_v23 = vpop.f32.mrf.mxu0 }
 0x7a5   : > { %v1376_v25 = vadd.f32 %v1372_v23, %v1129_v22  ;;  %v1791_v22 = vld [vmem:[%s2927_s9 + $0x68] sm:$0xff]  ;;  %v1806_v23 = vld [vmem:[%s2927_s9 + $0xe0] sm:$0xff] }
 0x7a6   : > { %v2191_v1 = vpop.f32.mrf.mxu0 }
 0x7a7   : > { %v1789_v1 = vld [vmem:[%s2927_s9 + $0x58] sm:$0xff] }
 0x811   : > { %v1464_v26 = vpop.xlane.xlu1 %1463 }
 0x812   : > { %2240 = vrcp.f32 %v1464_v26  ;;  %v1804_v26 = vld [vmem:[%s2927_s9 + $0xd0] sm:$0xff] }
 0x815   : > { %v1468_v27 = vpop.permute.xlu1 %1467 }
 0x816   : > { %2198 = vmatpush3.msk.msra.mxu1 %vm737_vm2, %v1468_v27  ;;  %v1788_v27 = vld [vmem:[%s2927_s9 + $0x50] sm:$0xff] }
 0x817   : > { %1705 = vmatprep.subr.mxu1 %v1692_v39 }
 0x81f   : > { %v2241_v28 = vpop.eup %2240 }
 0x820   : > { %v1466_v29 = vmul.f32 %v2241_v28, %v2239_v18  ;;  %v1793_v18 = vld [vmem:[%s2927_s9 + $0x78] sm:$0xff]  ;;  %v1803_v28 = vld [vmem:[%s2927_s9 + $0xc8] sm:$0xff] }
 0x822   : > { %2200 = vmatmul.mubr.msk.f32.vlgmr.msra.gmra.mxu1 %vm733_vm4, %v1466_v29  ;;  %v1787_v29 = vld [vmem:[%s2927_s9 + $0x48] sm:$0xff] }
 0x823   : > { %1769 = vmatprep.mubr.f32.mxu1 %v2254_v4  ;;  %1706 = vmatpush1.msra.mxu1 %v1691_v40 }
 0x824   : > { %1707 = vmatprep.subr.mxu1 %v1690_v41 }
 0x8e2   : > { %v1540_v31 = vpop.f32.mrf.mxu1 }
 0x8e3   : > { %2211 = vmatmul.mubr.msk.f32.vlgmr.msra.gmra.mxu0 %vm643_vm1, %v1540_v31  ;;  %v1786_v31 = vld [vmem:[%s2927_s9 + $0x40] sm:$0xff] }
 0x8e4   : > { %v2201_v32 = vpop.f32.mrf.mxu1  ;;  %2060 = vmatpush3.msra.mxu0 %v1793_v18 }
 0x8e5   : > { %2061 = vmatprep.subr.mxu0 %v1808_v19  ;;  %v1801_v32 = vld [vmem:[%s2927_s9 + $0xb8] sm:$0xff]  ;;  %v2002_v19 = vld [vmem:[%s2929_s11] ss:$0 sm:$0xff] }
 0x8e6   : > { %2062 = vmatpush3.msra.mxu0 %v1792_v20 }
 0x8e7   : > { %2063 = vmatprep.subr.mxu0 %v1807_v21  ;;  %v2003_v21 = vld [vmem:[%s2930_s12] ss:$0 sm:$0xff] }
 0x8e8   : > { %2064 = vmatpush3.msra.mxu0 %v1791_v22 }
 0x8e9   : > { %2065 = vmatprep.subr.mxu0 %v1806_v23 }
 0x8ea   : > { %2066 = vmatpush3.msra.mxu0 %v1790_v24 }
 0x9a3   : > { %v1617_v33 = vpop.f32.mrf.mxu0 }
 0x9a4   : > { %v1621_v35 = vadd.f32 %v1617_v33, %v1376_v25  ;;  %v1805_v25 = vld [vmem:[%s2927_s9 + $0xd8] sm:$0xff] }
 0x9a5   : > { %v2212_v36 = vpop.f32.mrf.mxu0  ;;  %2067 = vmatprep.subr.mxu0 %v1805_v25  ;;  %v1785_v33 = vld [vmem:[%s2927_s9 + $0x38] sm:$0xff] }
 0x9a6   : > { %v1629_v37 = vadd.f32 %v1998_v34, %v1621_v35  ;;  %2068 = vmatpush3.msra.mxu0 %v1789_v1  ;;  %v1800_v34 = vld [vmem:[%s2927_s9 + $0xb0] sm:$0xff]  ;;  %v1799_v36 = vld [vmem:[%s2927_s9 + $0xa8] sm:$0xff] }
 0x9a7   : > { %2069 = vmatprep.subr.mxu0 %v1804_v26  ;;  %v1784_v35 = vld [vmem:[%s2927_s9 + $0x30] sm:$0xff] }
 0x9a8   : > { %v1630_v38 = vadd.f32 %v1629_v37, %v2495_v44  ;;  %v1689_v44 = vld [vmem:[%s2925_s7 + $0xe0] sm:$0xff]  ;;  %2070 = vmatpush3.msra.mxu0 %v1788_v27  ;;  %v1783_v37 = vld [vmem:[%s2927_s9 + $0x28] sm:$0xff] }
 0x9a9   : > { %1708 = vmatpush1.msra.mxu1 %v1689_v44  ;;  %2071 = vmatprep.subr.mxu0 %v1803_v28 }
 0x9aa   : > { %v1633_v4 = vsel %vm737_vm2, %v1630_v38, 0.0  ;;  %1709 = vmatprep.subr.mxu1 %v1688_v42  ;;  %2072 = vmatpush3.msra.mxu0 %v1787_v29  ;;  %v1999_v42 = vld [vmem:[%s2923_s5] ss:$0 sm:$0xff] }
 0x9ab   : > { %1634 = vadd.xlane.f32.xlu1 %v1633_v4  ;;  %1710 = vmatpush1.msra.mxu1 %v1687_v43  ;;  %v1782_v4 = vld [vmem:[%s2927_s9 + $0x20] sm:$0xff] }
 0x9ac   : > { %1711 = vmatprep.subr.mxu1 %v1686_v45  ;;  %2073 = vmatprep.subr.mxu0 %v1802_v30  ;;  %v2000_v45 = vld [vmem:[%s2924_s6] ss:$0 sm:$0xff] }
 0x9ad   : > { %1712 = vmatpush1.msra.mxu1 %v1685_v46  ;;  %2074 = vmatpush3.msra.mxu0 %v1786_v31 }
 0x9ae   : > { %1713 = vmatprep.subr.mxu1 %v1684_v55  ;;  %2075 = vmatprep.subr.mxu0 %v1801_v32  ;;  %v1795_v55 = vld [vmem:[%s2927_s9 + $0x88] sm:$0xff] }
 0x9af   : > { %1714 = vmatpush1.msra.mxu1 %v1683_v56  ;;  %2076 = vmatpush3.msra.mxu0 %v1785_v33  ;;  %v1779_v56 = vld [vmem:[%s2927_s9 + $0x8] sm:$0xff] }
 0x9b0   : > { %1715 = vmatprep.subr.mxu1 %v1682_v57  ;;  %2077 = vmatprep.subr.mxu0 %v1800_v34  ;;  %v1794_v57 = vld [vmem:[%s2927_s9 + $0x80] sm:$0xff] }
 0x9b1   : > { %1716 = vmatpush1.msra.mxu1 %v1681_v58  ;;  %2078 = vmatpush3.msra.mxu0 %v1784_v35  ;;  %v1778_v58 = vld [vmem:[%s2927_s9] sm:$0xff] }
 0x9b2   : > { %1717 = vmatprep.subr.mxu1 %v1680_v61  ;;  %2079 = vmatprep.subr.mxu0 %v1799_v36  ;;  %v1693_v61 = vld [vmem:[%s2926_s8] sm:$0x3] }
 0x9b3   : > { %1718 = vmatpush1.msra.mxu1 %v1679_v62  ;;  %2080 = vmatpush3.msra.mxu0 %v1783_v37  ;;  %v1698_v62 = vrot.slane %v1693_v61, %v489_v54 }
 0x9b4   : > { %1719 = vmatprep.subr.mxu1 %v1678_v63  ;;  %v1702_v63 = vrot.slane %v1693_v61, %v493_v52 }
 0x9b5   : > { %1720 = vmatpush1.msra.mxu1 %v1677_v0 }
 0x9b6   : > { %1721 = vmatprep.subr.mxu1 %v1676_v2 }
 0x9b7   : > { %1722 = vmatpush1.msra.mxu1 %v1675_v3 }
 0x9b8   : > { %1723 = vmatprep.subr.mxu1 %v1674_v59 }
 0x9b9   : > { %1724 = vmatpush1.msra.mxu1 %v1673_v60 }
 0x9ba   : > { %1725 = vmatprep.subr.mxu1 %v1672_v5 }
 0x9bb   : > { %1726 = vmatpush1.msra.mxu1 %v1671_v6 }
 0x9bc   : > { %1727 = vmatprep.subr.mxu1 %v1670_v7  ;;  %v2001_v7 = vld [vmem:[%s2928_s10] ss:$0 sm:$0xff] }
 0x9bd   : > { %1728 = vmatpush1.msra.mxu1 %v1669_v8 }
 0x9be   : > { %1729 = vmatprep.subr.mxu1 %v1668_v9 }
 0x9bf   : > { %1730 = vmatpush1.msra.mxu1 %v1667_v10 }
 0x9c0   : > { %1731 = vmatprep.subr.mxu1 %v1666_v11 }
 0x9c1   : > { %1732 = vmatpush1.msra.mxu1 %v1665_v12 }
 0x9c2   : > { %1733 = vmatprep.subr.mxu1 %v1664_v13 }
 0x9c3   : > { %1734 = vmatpush1.msra.mxu1 %v1663_v14 }
 0x9c4   : > { %1735 = vmatprep.subr.mxu1 %v1662_v15 }
 0x9c5   : > { %1736 = vmatpush1.msra.mxu1 %v1661_v16 }
 0xa34   : > { %v1635_v47 = vpop.xlane.xlu1 %1634 }
 0xa35   : > { %v1637_v48 = vmul.f32 0.0078125, %v1635_v47 }
 0xa37   : > { %v2712_v49 = vsub.f32 %v1630_v38, %v1637_v48  ;;  %v1798_v38 = vld [vmem:[%s2927_s9 + $0xa0] sm:$0xff]  ;;  %v1797_v48 = vld [vmem:[%s2927_s9 + $0x98] sm:$0xff] }
 0xa38   : > { %2081 = vmatprep.subr.mxu0 %v1798_v38 }
 0xa39   : > { %v1639_v50 = vmul.f32 %v2712_v49, %v2712_v49  ;;  %2082 = vmatpush3.msra.mxu0 %v1782_v4 }
 0xa3a   : > { %2083 = vmatprep.subr.mxu0 %v1797_v48 }
 0xa3b   : > { %v1640_v53 = vsel %vm737_vm2, %v1639_v50, 0.0  ;;  %v1781_v50 = vld [vmem:[%s2927_s9 + $0x18] sm:$0xff] }
 0xa3c   : > { %1641 = vadd.xlane.f32.xlu0 %v1640_v53  ;;  %2084 = vmatpush3.msra.mxu0 %v1781_v50  ;;  %v1780_v53 = vld [vmem:[%s2927_s9 + $0x10] sm:$0xff] }
 0xac5   : > { %v1642_v39 = vpop.xlane.xlu0 %1641 }
 0xac6   : > { %v1643_v40 = vmul.f32 0.0078125, %v1642_v39 }
 0xac8   : > { %v1644_v41 = vadd.f32 1e-06, %v1643_v40 }
 0xaca   : > { %2242 = vrsqrt.f32 %v1644_v41 }
 0xad7   : > { %v2243_v44 = vpop.eup %2242 }
 0xad8   : > { %v1646_v43 = vmul.f32 %v2243_v44, %v2712_v49  ;;  %v1796_v49 = vld [vmem:[%s2927_s9 + $0x90] sm:$0xff] }
 0xad9   : > { %2085 = vmatprep.subr.mxu0 %v1796_v49 }
 0xada   : > { %v1653_v46 = vmul.f32 %v1999_v42, %v1646_v43  ;;  %2086 = vmatpush3.msra.mxu0 %v1780_v53 }
 0xadb   : > { %2087 = vmatprep.subr.mxu0 %v1795_v55 }
 0xadc   : > { %v1660_v47 = vadd.f32 %v2000_v45, %v1653_v46  ;;  %2088 = vmatpush3.msra.mxu0 %v1779_v56 }
 0xadd   : > { %2089 = vmatprep.subr.mxu0 %v1794_v57 }
 0xade   : > { %1770 = vmatmul.mubr.f32.vlgmr.msra.gmra.mxu1 %v1660_v47  ;;  %2090 = vmatpush3.msra.mxu0 %v1778_v58 }
 0xb9e   : > { %v1771_v0 = vpop.f32.mrf.mxu1 }
 0xb9f   : > { %v1772_v2 = vadd.f32 %v1771_v0, %v1698_v62 }
 0xba0   : > { %v1773_v3 = vpop.f32.mrf.mxu1 }
 0xba1   : > { %v1774_v59 = vadd.f32 %v1773_v3, %v1702_v63  ;;  %v1776_v5 = vmax.f32 %v1772_v2, 0.0 }
 0xba3   : > { %v1777_v60 = vmax.f32 %v1774_v59, 0.0 }
 0xba5   : > { %1881 = vmatprep.mubr.f32.mxu0 %v1777_v60 }
 0xba6   : > { %1882 = vmatmul.mubr.f32.vlgmr.msra.gmra.mxu0 %v1776_v5 }
 0xc66   : > { %v2091_v6 = vpop.f32.mrf.mxu0 }
 0xc68   : > { %v2092_v8 = vpop.f32.mrf.mxu0 }
 0xc69   : > { %v2093_v9 = vadd.f32 %v2092_v8, %v2091_v6 }
 0xc6b   : > { %v1884_v10 = vadd.f32 %v2093_v9, %v2001_v7 }
 0xc6d   : > { %v1887_v54 = vadd.f32 %v1884_v10, %v1660_v47 }
 0xc6f   : > { %v1890_v51 = vsel %vm737_vm2, %v1887_v54, 0.0 }
 0xc70   : > { %1891 = vadd.xlane.f32.xlu0 %v1890_v51 }
 0xcf9   : > { %v1892_v52 = vpop.xlane.xlu0 %1891 }
 0xcfa   : > { %v1893_v11 = vmul.f32 0.0078125, %v1892_v52 }
 0xcfc   : > { %v1894_v12 = vsub.f32 %v1887_v54, %v1893_v11 }
 0xcfe   : > { %v1895_v13 = vmul.f32 %v1894_v12, %v1894_v12 }
 0xd00   : > { %v1896_v14 = vsel %vm737_vm2, %v1895_v13, 0.0 }
 0xd01   : > { %1897 = vadd.xlane.f32.xlu0 %v1896_v14 }
 0xd8a   : > { %v1898_v15 = vpop.xlane.xlu0 %1897 }
 0xd8b   : > { %v1899_v16 = vmul.f32 0.0078125, %v1898_v15 }
 0xd8d   : > { %v1900_v17 = vadd.f32 1e-06, %v1899_v16 }
 0xd8f   : > { %2244 = vrsqrt.f32 %v1900_v17 }
 0xd9c   : > { %v2245_v18 = vpop.eup %2244 }
 0xd9d   : > { %v1902_v20 = vmul.f32 %v2245_v18, %v1894_v12 }
 0xd9f   : > { %v1909_v22 = vmul.f32 %v2002_v19, %v1902_v20 }
 0xda1   : > { %v1916_v23 = vadd.f32 %v2003_v21, %v1909_v22 }
 0xda3   : > { %1917 = vst [vmem:[%s435_s22] sm:$0xf] %v1916_v23 }
 0xda4 PF: > { %s23_s25 = sadd.s32 1, %s2252_s25  }
 0xda5   : > { %p20_p4 = scmp.ge.s32.totalorder %s23_s25, 4  }
 0xda7   :  { %22 = sbr.rel (!%p20_p4) target bundleno = 1 (0x1), region = 102 }

</bundles_post_ra>
